<compile_context>
chip_gen: v5e
topology: v5e:2x2
jax: 0.10.0
libtpu: 0.0.40
codegen_flags: <defaults>
</compile_context>

<pallas_src>
import functools

import jax
import jax.numpy as jnp
import numpy as np
from jax.experimental import pallas as pl
from jax.experimental.pallas import tpu as pltpu

# ----------------------------- config (small synthetic sizes) -----------------------------
SR = 16000
N_FFT = 256            # window length == n_fft
HOP = 128
N_FREQ = 128           # keep 128 bins (drop Nyquist) for lane-friendly shapes
N_MELS = 64
NUM_CLASSES = 527
NUM_CLASSES_PAD = 640  # 527 -> multiple of 128 (lane-dense final store, zero-padded)
C_STEM = 16
C_EXP = 32
C_PROJ = 24
C_LAST = 64
HID_MLP = 80
HID_PAD = 128          # 80 -> 128 (lane-dense / full MXU K, zero-padded)


def _hardswish(y):
    return y * jnp.clip(y + 3.0, 0.0, 6.0) * (1.0 / 6.0)


def _conv_out(n):
    # 3x3 conv, stride 2, pad 1
    return (n + 2 - 3) // 2 + 1


# ----------------------------- Pallas kernel 1: log-mel preprocess -----------------------------

def _mel_kernel(frames_ref, dftc_ref, melfb_ref, o_ref):
    # frames block: [1, win, T]; dftc: [2F, win] (windowed cos;sin); melfb: [M, F]
    x = frames_ref[0]                                                          # [win, T]
    spec = jnp.dot(dftc_ref[...], x, preferred_element_type=jnp.float32)       # [2F, T]
    re = spec[:N_FREQ, :]
    im = spec[N_FREQ:, :]
    power = re * re + im * im                                                  # [F, T]
    mel = jnp.dot(melfb_ref[...], power, preferred_element_type=jnp.float32)   # [M, T]
    o_ref[0] = jnp.log(mel + 1e-5)


def mel_spectrogram(frames_t, dft_comb, mel_fb):
    B, win, T = frames_t.shape
    M = mel_fb.shape[0]
    return pl.pallas_call(
        _mel_kernel,
        out_shape=jax.ShapeDtypeStruct((B, M, T), jnp.float32),
        grid=(B,),
        in_specs=[
            pl.BlockSpec((1, win, T), lambda b: (b, 0, 0)),
            pl.BlockSpec(dft_comb.shape, lambda b: (0, 0)),
            pl.BlockSpec(mel_fb.shape, lambda b: (0, 0)),
        ],
        out_specs=pl.BlockSpec((1, M, T), lambda b: (b, 0, 0)),
        compiler_params=pltpu.CompilerParams(dimension_semantics=("parallel",)),
    )(frames_t, dft_comb, mel_fb)


# ----------------------------- Pallas kernel 2: fused backbone + head -----------------------------

def _backbone_kernel(p_ref, stem_w_ref, stem_b_ref, exp_w_ref, exp_b_ref,
                     cs1_ref, dw_w_ref, dw_b_ref, proj_w_ref, proj_b_ref,
                     last_w_ref, last_b_ref, m1w_ref, m1b_ref, m2w_ref, m2b_ref,
                     logit_ref, feat_ref, *, OH1, OW1, OH2, OW2):
    # ---- stem: 3x3 s2, 1 -> C_STEM, hardswish (patches precomputed, single MXU matmul) ----
    patches = p_ref[0]                                                        # [OH1*OW1, 9]
    stem = _hardswish(
        jnp.dot(patches, stem_w_ref[...], preferred_element_type=jnp.float32)
        + stem_b_ref[...])                                                    # [N1, C_STEM]

    # ---- inverted residual: 1x1 expand (hswish) ----
    exp = _hardswish(
        jnp.dot(stem, exp_w_ref[...], preferred_element_type=jnp.float32)
        + exp_b_ref[...])                                                     # [N1, C_EXP]

    # ---- depthwise 3x3 stride-2 (hswish), taps via 0/1 selection matmul, fully in VMEM ----
    cs1 = cs1_ref[...]                                                        # [3*OW2, OW1]
    dw_w = dw_w_ref[...]                                                      # [9, C_EXP]
    dw_b = dw_b_ref[...]                                                      # [1, C_EXP]
    rows = []
    for oh2 in range(OH2):                      # static unroll (16)
        acc = jnp.zeros((OW2, C_EXP), jnp.float32)
        for dh in range(3):
            ih = 2 * oh2 + dh - 1
            if ih < 0 or ih >= OH1:             # zero padding row contributes nothing
                continue
            blk = exp[ih * OW1:(ih + 1) * OW1, :]                             # [OW1, C_EXP]
            # q[dw*OW2 + ow, c] = exp[ih, 2*ow + dw - 1, c]   (zero cols handle W padding)
            q = jnp.dot(cs1, blk, preferred_element_type=jnp.float32)         # [3*OW2, C_EXP]
            for dw in range(3):
                k = 3 * dh + dw
                acc = acc + q[dw * OW2:(dw + 1) * OW2, :] * dw_w[k:k + 1, :]
        rows.append(_hardswish(acc + dw_b))                                   # [OW2, C_EXP]
    dw_flat = jnp.concatenate(rows, axis=0)                                   # [OH2*OW2, C_EXP]

    # ---- 1x1 project (linear) + last 1x1 (hswish) ----
    proj = (jnp.dot(dw_flat, proj_w_ref[...], preferred_element_type=jnp.float32)
            + proj_b_ref[...])                                                # [N2, C_PROJ]
    last = _hardswish(
        jnp.dot(proj, last_w_ref[...], preferred_element_type=jnp.float32)
        + last_b_ref[...])                                                    # [N2, C_LAST]

    # ---- global average pool + MLP head (padded, lane-dense) ----
    pooled = jnp.sum(last, axis=0, keepdims=True) * (1.0 / float(OH2 * OW2))  # [1, C_LAST]
    feat_ref[0] = pooled
    h = _hardswish(
        jnp.dot(pooled, m1w_ref[...], preferred_element_type=jnp.float32) + m1b_ref[...])
    logit_ref[0] = (jnp.dot(h, m2w_ref[...], preferred_element_type=jnp.float32)
                    + m2b_ref[...])                                           # [1, NUM_CLASSES_PAD]


def backbone_forward(patches, params, OH1, OW1, OH2, OW2):
    B, N1, KK = patches.shape
    kernel = functools.partial(_backbone_kernel, OH1=OH1, OW1=OW1, OH2=OH2, OW2=OW2)

    def full(a):
        return pl.BlockSpec(a.shape, lambda b: (0,) * a.ndim)

    weights = [params[k] for k in ("stem_w", "stem_b", "exp_w", "exp_b", "cs1",
                                   "dw_w", "dw_b", "proj_w", "proj_b",
                                   "last_w", "last_b", "mlp1_w", "mlp1_b",
                                   "mlp2_w", "mlp2_b")]
    logits_pad, feature = pl.pallas_call(
        kernel,
        out_shape=(jax.ShapeDtypeStruct((B, 1, NUM_CLASSES_PAD), jnp.float32),
                   jax.ShapeDtypeStruct((B, 1, C_LAST), jnp.float32)),
        grid=(B,),
        in_specs=[pl.BlockSpec((1, N1, KK), lambda b: (b, 0, 0))] + [full(w) for w in weights],
        out_specs=(pl.BlockSpec((1, 1, NUM_CLASSES_PAD), lambda b: (b, 0, 0)),
                   pl.BlockSpec((1, 1, C_LAST), lambda b: (b, 0, 0))),
        compiler_params=pltpu.CompilerParams(dimension_semantics=("parallel",)),
    )(patches, *weights)
    return logits_pad, feature


# ----------------------------- XLA glue (tiny tensors only) -----------------------------

def frame_signal_t(wave, win, hop):
    # -> [B, win, T]   (framed directly in transposed layout: no XLA transpose op needed)
    B, L = wave.shape
    T = (L - win) // hop + 1
    idx = jnp.arange(win)[:, None] + hop * jnp.arange(T)[None, :]
    return wave[:, idx]


def stem_patches(logmel):
    # 3x3 stride-2 pad-1 patch extraction for the 1-channel stem (tiny [B, 64, 32] tensor).
    B, H0, W0 = logmel.shape
    OH1, OW1 = _conv_out(H0), _conv_out(W0)
    xp = jnp.pad(logmel, ((0, 0), (1, 1), (1, 1)))
    taps = []
    for dh in range(3):
        for dw in range(3):
            taps.append(xp[:, dh:dh + 2 * OH1 - 1:2, dw:dw + 2 * OW1 - 1:2])
    p = jnp.stack(taps, axis=-1)                                              # [B, OH1, OW1, 9]
    return p.reshape(B, OH1 * OW1, 9), OH1, OW1


# ----------------------------- constants / parameters -----------------------------

def make_dft_comb(win, n_freq):
    n = np.arange(win, dtype=np.float64)
    k = np.arange(n_freq, dtype=np.float64)
    window = 0.5 - 0.5 * np.cos(2.0 * np.pi * n / win)                        # Hann
    ang = -2.0 * np.pi * np.outer(k, n) / float(win)                          # [F, win]
    dre = window[None, :] * np.cos(ang)
    dim = window[None, :] * np.sin(ang)
    return jnp.asarray(np.concatenate([dre, dim], axis=0), jnp.float32)       # [2F, win]


def make_mel_fb(n_freq, n_mels, sr, n_fft):
    hz2mel = lambda f: 2595.0 * np.log10(1.0 + f / 700.0)
    mel2hz = lambda m: 700.0 * (10.0 ** (m / 2595.0) - 1.0)
    mels = np.linspace(hz2mel(0.0), hz2mel(sr / 2.0), n_mels + 2)
    bins = mel2hz(mels) * n_fft / sr
    freqs = np.arange(n_freq, dtype=np.float64)
    lower = (freqs[None, :] - bins[:-2, None]) / (bins[1:-1, None] - bins[:-2, None] + 1e-8)
    upper = (bins[2:, None] - freqs[None, :]) / (bins[2:, None] - bins[1:-1, None] + 1e-8)
    fb = np.maximum(0.0, np.minimum(lower, upper))                            # [n_mels, n_freq]
    return jnp.asarray(fb, jnp.float32)                                       # [M, F]


def make_dw_select(w_in, ow_out):
    # cs[dw*OW2 + ow, w] = 1  iff  w == 2*ow + dw - 1  (zero-pad handled by all-zero columns)
    cs = np.zeros((3 * ow_out, w_in), np.float32)
    for dw in range(3):
        for ow in range(ow_out):
            w = 2 * ow + dw - 1
            if 0 <= w < w_in:
                cs[dw * ow_out + ow, w] = 1.0
    return jnp.asarray(cs)


def init_params(key, ow1, ow2):
    ks = jax.random.split(key, 7)

    def w(k, shape):
        return jax.random.normal(k, shape, jnp.float32) / jnp.sqrt(jnp.float32(shape[0]))

    mlp1_w = w(ks[5], (C_LAST, HID_MLP))
    mlp2_w = w(ks[6], (HID_MLP, NUM_CLASSES))
    p = {
        "stem_w": w(ks[0], (9, C_STEM)),      "stem_b": jnp.zeros((1, C_STEM), jnp.float32),
        "exp_w":  w(ks[1], (C_STEM, C_EXP)),  "exp_b":  jnp.zeros((1, C_EXP), jnp.float32),
        "dw_w":   w(ks[2], (9, C_EXP)),       "dw_b":   jnp.zeros((1, C_EXP), jnp.float32),
        "proj_w": w(ks[3], (C_EXP, C_PROJ)),  "proj_b": jnp.zeros((1, C_PROJ), jnp.float32),
        "last_w": w(ks[4], (C_PROJ, C_LAST)), "last_b": jnp.zeros((1, C_LAST), jnp.float32),
        # MLP head padded with exact zeros (80->128, 527->640): identical math, lane-dense.
        "mlp1_w": jnp.pad(mlp1_w, ((0, 0), (0, HID_PAD - HID_MLP))),
        "mlp1_b": jnp.zeros((1, HID_PAD), jnp.float32),
        "mlp2_w": jnp.pad(mlp2_w, ((0, HID_PAD - HID_MLP), (0, NUM_CLASSES_PAD - NUM_CLASSES))),
        "mlp2_b": jnp.zeros((1, NUM_CLASSES_PAD), jnp.float32),
        "dft_comb": make_dft_comb(N_FFT, N_FREQ),
        "mel_fb": make_mel_fb(N_FREQ, N_MELS, SR, N_FFT),
        "cs1": make_dw_select(ow1, ow2),
    }
    return p


# ----------------------------- forward -----------------------------

@jax.jit
def sound_event_detector_forward(params, wave):
    # wave: [B, L] raw audio
    frames_t = frame_signal_t(wave, N_FFT, HOP)                               # [B, win, T]
    logmel = mel_spectrogram(frames_t, params["dft_comb"], params["mel_fb"])  # [B, n_mels, T]
    patches, OH1, OW1 = stem_patches(logmel)                                  # [B, OH1*OW1, 9]
    OH2, OW2 = _conv_out(OH1), _conv_out(OW1)
    logits_pad, feature = backbone_forward(patches, params, OH1, OW1, OH2, OW2)
    return logits_pad[:, 0, :NUM_CLASSES], feature[:, 0, :]


# ----------------------------- main -----------------------------

if __name__ == "__main__":
    B = 2
    T_FRAMES = 32
    L = N_FFT + (T_FRAMES - 1) * HOP                                          # 4224 samples
    OW1 = _conv_out(T_FRAMES)                                                 # 16
    OW2 = _conv_out(OW1)                                                      # 8

    key = jax.random.PRNGKey(0)
    pkey, xkey = jax.random.split(key)
    params = init_params(pkey, OW1, OW2)
    wave = jax.random.normal(xkey, (B, L), jnp.float32) * 0.1

    logits, feature = sound_event_detector_forward(params, wave)
    jax.block_until_ready((logits, feature))

    assert logits.shape == (B, NUM_CLASSES), logits.shape
    assert feature.shape == (B, C_LAST), feature.shape
    assert bool(jnp.all(jnp.isfinite(logits))) and bool(jnp.all(jnp.isfinite(feature)))
    print("KERNEL_OK")
</pallas_src>

<mosaic_0001>
module attributes {stable_mosaic.version = 11 : i64} {
  func.func @_mel_kernel(%arg0: i32, %arg1: memref<1x256x32xf32, #tpu.memory_space<vmem>>, %arg2: memref<256x256xf32, #tpu.memory_space<vmem>>, %arg3: memref<64x128xf32, #tpu.memory_space<vmem>>, %arg4: memref<1x64x32xf32, #tpu.memory_space<vmem>>) attributes {dimension_semantics = [#tpu.dimension_semantics<parallel>], iteration_bounds = array<i64: 2>, scalar_prefetch = 0 : i64, scratch_operands = 0 : i64, tpu.core_type = #tpu.core_type<tc>, window_params = [{transform_indices = @transform_0, window_bounds = array<i64: 1, 256, 32>}, {pipeline_mode = #tpu.pipeline_mode<synchronous>, transform_indices = @transform_1, window_bounds = array<i64: 256, 256>}, {pipeline_mode = #tpu.pipeline_mode<synchronous>, transform_indices = @transform_2, window_bounds = array<i64: 64, 128>}, {transform_indices = @transform_3, window_bounds = array<i64: 1, 64, 32>}]} {
    %c0 = arith.constant 0 : index
    %c0_0 = arith.constant 0 : index
    %c0_1 = arith.constant 0 : index
    %0 = vector.load %arg1[%c0, %c0_0, %c0_1] : memref<1x256x32xf32, #tpu.memory_space<vmem>>, vector<1x256x32xf32>
    %1 = vector.shape_cast %0 : vector<1x256x32xf32> to vector<256x32xf32>
    %c0_2 = arith.constant 0 : index
    %c0_3 = arith.constant 0 : index
    %2 = vector.load %arg2[%c0_2, %c0_3] : memref<256x256xf32, #tpu.memory_space<vmem>>, vector<256x256xf32>
    %cst = arith.constant dense<0.000000e+00> : vector<256x32xf32>
    %3 = tpu.matmul %2, %1, %cst {dimension_numbers = #tpu.dot_dimension_numbers<[1], [0], [0], [1], [0, 0, 1, 1], [], []>} : vector<256x256xf32>, vector<256x32xf32>, vector<256x32xf32> -> vector<256x32xf32>
    %4 = vector.extract_strided_slice %3 {offsets = [0, 0], sizes = [128, 32], strides = [1, 1]} : vector<256x32xf32> to vector<128x32xf32>
    %5 = vector.extract_strided_slice %3 {offsets = [128, 0], sizes = [128, 32], strides = [1, 1]} : vector<256x32xf32> to vector<128x32xf32>
    %6 = arith.mulf %4, %4 : vector<128x32xf32>
    %7 = arith.mulf %5, %5 : vector<128x32xf32>
    %8 = arith.addf %6, %7 : vector<128x32xf32>
    %c0_4 = arith.constant 0 : index
    %c0_5 = arith.constant 0 : index
    %9 = vector.load %arg3[%c0_4, %c0_5] : memref<64x128xf32, #tpu.memory_space<vmem>>, vector<64x128xf32>
    %cst_6 = arith.constant dense<0.000000e+00> : vector<64x32xf32>
    %10 = tpu.matmul %9, %8, %cst_6 {dimension_numbers = #tpu.dot_dimension_numbers<[1], [0], [0], [1], [0, 0, 1, 1], [], []>} : vector<64x128xf32>, vector<128x32xf32>, vector<64x32xf32> -> vector<64x32xf32>
    %cst_7 = arith.constant 9.99999974E-6 : f32
    %11 = vector.broadcast %cst_7 : f32 to vector<64x32xf32>
    %12 = arith.addf %10, %11 : vector<64x32xf32>
    %13 = math.log %12 : vector<64x32xf32>
    %c0_8 = arith.constant 0 : index
    %c0_9 = arith.constant 0 : index
    %c0_10 = arith.constant 0 : index
    %14 = vector.load %arg4[%c0_8, %c0_9, %c0_10] : memref<1x64x32xf32, #tpu.memory_space<vmem>>, vector<1x64x32xf32>
    %15 = vector.shape_cast %14 : vector<1x64x32xf32> to vector<64x32xf32>
    %16 = vector.shape_cast %13 : vector<64x32xf32> to vector<1x64x32xf32>
    tpu.vector_store %arg4[%c0_8, %c0_9, %c0_10], %16 {strides = array<i32>} : memref<1x64x32xf32, #tpu.memory_space<vmem>>, vector<1x64x32xf32>,
    return
  }
  func.func @transform_0(%arg0: i32) -> (i32, i32, i32) {
    %c0_i32 = arith.constant 0 : i32
    %c0_i32_0 = arith.constant 0 : i32
    %c0_i32_1 = arith.constant 0 : i32
    return %arg0, %c0_i32, %c0_i32_0 : i32, i32, i32
  }
  func.func @transform_1(%arg0: i32) -> (i32, i32) {
    %c0_i32 = arith.constant 0 : i32
    %c0_i32_0 = arith.constant 0 : i32
    %c0_i32_1 = arith.constant 0 : i32
    return %c0_i32, %c0_i32_0 : i32, i32
  }
  func.func @transform_2(%arg0: i32) -> (i32, i32) {
    %c0_i32 = arith.constant 0 : i32
    %c0_i32_0 = arith.constant 0 : i32
    %c0_i32_1 = arith.constant 0 : i32
    return %c0_i32, %c0_i32_0 : i32, i32
  }
  func.func @transform_3(%arg0: i32) -> (i32, i32, i32) {
    %c0_i32 = arith.constant 0 : i32
    %c0_i32_0 = arith.constant 0 : i32
    %c0_i32_1 = arith.constant 0 : i32
    return %arg0, %c0_i32, %c0_i32_0 : i32, i32, i32
  }
}

module attributes {stable_mosaic.version = 11 : i64} {
  func.func @_backbone_kernel(%arg0: i32, %arg1: memref<1x512x9xf32, #tpu.memory_space<vmem>>, %arg2: memref<9x16xf32, #tpu.memory_space<vmem>>, %arg3: memref<1x16xf32, #tpu.memory_space<vmem>>, %arg4: memref<16x32xf32, #tpu.memory_space<vmem>>, %arg5: memref<1x32xf32, #tpu.memory_space<vmem>>, %arg6: memref<24x16xf32, #tpu.memory_space<vmem>>, %arg7: memref<9x32xf32, #tpu.memory_space<vmem>>, %arg8: memref<1x32xf32, #tpu.memory_space<vmem>>, %arg9: memref<32x24xf32, #tpu.memory_space<vmem>>, %arg10: memref<1x24xf32, #tpu.memory_space<vmem>>, %arg11: memref<24x64xf32, #tpu.memory_space<vmem>>, %arg12: memref<1x64xf32, #tpu.memory_space<vmem>>, %arg13: memref<64x128xf32, #tpu.memory_space<vmem>>, %arg14: memref<1x128xf32, #tpu.memory_space<vmem>>, %arg15: memref<128x640xf32, #tpu.memory_space<vmem>>, %arg16: memref<1x640xf32, #tpu.memory_space<vmem>>, %arg17: memref<1x1x640xf32, #tpu.memory_space<vmem>>, %arg18: memref<1x1x64xf32, #tpu.memory_space<vmem>>) attributes {dimension_semantics = [#tpu.dimension_semantics<parallel>], iteration_bounds = array<i64: 2>, scalar_prefetch = 0 : i64, scratch_operands = 0 : i64, tpu.core_type = #tpu.core_type<tc>, window_params = [{transform_indices = @transform_0, window_bounds = array<i64: 1, 512, 9>}, {pipeline_mode = #tpu.pipeline_mode<synchronous>, transform_indices = @transform_1, window_bounds = array<i64: 9, 16>}, {pipeline_mode = #tpu.pipeline_mode<synchronous>, transform_indices = @transform_2, window_bounds = array<i64: 1, 16>}, {pipeline_mode = #tpu.pipeline_mode<synchronous>, transform_indices = @transform_3, window_bounds = array<i64: 16, 32>}, {pipeline_mode = #tpu.pipeline_mode<synchronous>, transform_indices = @transform_4, window_bounds = array<i64: 1, 32>}, {pipeline_mode = #tpu.pipeline_mode<synchronous>, transform_indices = @transform_5, window_bounds = array<i64: 24, 16>}, {pipeline_mode = #tpu.pipeline_mode<synchronous>, transform_indices = @transform_6, window_bounds = array<i64: 9, 32>}, {pipeline_mode = #tpu.pipeline_mode<synchronous>, transform_indices = @transform_7, window_bounds = array<i64: 1, 32>}, {pipeline_mode = #tpu.pipeline_mode<synchronous>, transform_indices = @transform_8, window_bounds = array<i64: 32, 24>}, {pipeline_mode = #tpu.pipeline_mode<synchronous>, transform_indices = @transform_9, window_bounds = array<i64: 1, 24>}, {pipeline_mode = #tpu.pipeline_mode<synchronous>, transform_indices = @transform_10, window_bounds = array<i64: 24, 64>}, {pipeline_mode = #tpu.pipeline_mode<synchronous>, transform_indices = @transform_11, window_bounds = array<i64: 1, 64>}, {pipeline_mode = #tpu.pipeline_mode<synchronous>, transform_indices = @transform_12, window_bounds = array<i64: 64, 128>}, {pipeline_mode = #tpu.pipeline_mode<synchronous>, transform_indices = @transform_13, window_bounds = array<i64: 1, 128>}, {pipeline_mode = #tpu.pipeline_mode<synchronous>, transform_indices = @transform_14, window_bounds = array<i64: 128, 640>}, {pipeline_mode = #tpu.pipeline_mode<synchronous>, transform_indices = @transform_15, window_bounds = array<i64: 1, 640>}, {transform_indices = @transform_16, window_bounds = array<i64: 1, 1, 640>}, {transform_indices = @transform_17, window_bounds = array<i64: 1, 1, 64>}]} {
    %c0 = arith.constant 0 : index
    %c0_0 = arith.constant 0 : index
    %c0_1 = arith.constant 0 : index
    %0 = vector.load %arg1[%c0, %c0_0, %c0_1] : memref<1x512x9xf32, #tpu.memory_space<vmem>>, vector<1x512x9xf32>
    %1 = vector.shape_cast %0 : vector<1x512x9xf32> to vector<512x9xf32>
    %c0_2 = arith.constant 0 : index
    %c0_3 = arith.constant 0 : index
    %2 = vector.load %arg2[%c0_2, %c0_3] : memref<9x16xf32, #tpu.memory_space<vmem>>, vector<9x16xf32>
    %cst = arith.constant dense<0.000000e+00> : vector<512x16xf32>
    %3 = tpu.matmul %1, %2, %cst {dimension_numbers = #tpu.dot_dimension_numbers<[1], [0], [0], [1], [0, 0, 1, 1], [], []>} : vector<512x9xf32>, vector<9x16xf32>, vector<512x16xf32> -> vector<512x16xf32>
    %c0_4 = arith.constant 0 : index
    %c0_5 = arith.constant 0 : index
    %4 = vector.load %arg3[%c0_4, %c0_5] : memref<1x16xf32, #tpu.memory_space<vmem>>, vector<1x16xf32>
    %5 = vector.broadcast %4 : vector<1x16xf32> to vector<512x16xf32>
    %6 = arith.addf %3, %5 : vector<512x16xf32>
    %cst_6 = arith.constant 3.000000e+00 : f32
    %7 = vector.broadcast %cst_6 : f32 to vector<512x16xf32>
    %8 = arith.addf %6, %7 : vector<512x16xf32>
    %cst_7 = arith.constant 0.000000e+00 : f32
    %cst_8 = arith.constant 6.000000e+00 : f32
    %9 = vector.broadcast %cst_7 : f32 to vector<512x16xf32>
    %10 = arith.maximumf %9, %8 : vector<512x16xf32>
    %11 = vector.broadcast %cst_8 : f32 to vector<512x16xf32>
    %12 = arith.minimumf %11, %10 : vector<512x16xf32>
    %13 = arith.mulf %6, %12 : vector<512x16xf32>
    %cst_9 = arith.constant 0.166666672 : f32
    %14 = vector.broadcast %cst_9 : f32 to vector<512x16xf32>
    %15 = arith.mulf %13, %14 : vector<512x16xf32>
    %c0_10 = arith.constant 0 : index
    %c0_11 = arith.constant 0 : index
    %16 = vector.load %arg4[%c0_10, %c0_11] : memref<16x32xf32, #tpu.memory_space<vmem>>, vector<16x32xf32>
    %cst_12 = arith.constant dense<0.000000e+00> : vector<512x32xf32>
    %17 = tpu.matmul %15, %16, %cst_12 {dimension_numbers = #tpu.dot_dimension_numbers<[1], [0], [0], [1], [0, 0, 1, 1], [], []>} : vector<512x16xf32>, vector<16x32xf32>, vector<512x32xf32> -> vector<512x32xf32>
    %c0_13 = arith.constant 0 : index
    %c0_14 = arith.constant 0 : index
    %18 = vector.load %arg5[%c0_13, %c0_14] : memref<1x32xf32, #tpu.memory_space<vmem>>, vector<1x32xf32>
    %19 = vector.broadcast %18 : vector<1x32xf32> to vector<512x32xf32>
    %20 = arith.addf %17, %19 : vector<512x32xf32>
    %cst_15 = arith.constant 3.000000e+00 : f32
    %21 = vector.broadcast %cst_15 : f32 to vector<512x32xf32>
    %22 = arith.addf %20, %21 : vector<512x32xf32>
    %cst_16 = arith.constant 0.000000e+00 : f32
    %cst_17 = arith.constant 6.000000e+00 : f32
    %23 = vector.broadcast %cst_16 : f32 to vector<512x32xf32>
    %24 = arith.maximumf %23, %22 : vector<512x32xf32>
    %25 = vector.broadcast %cst_17 : f32 to vector<512x32xf32>
    %26 = arith.minimumf %25, %24 : vector<512x32xf32>
    %27 = arith.mulf %20, %26 : vector<512x32xf32>
    %cst_18 = arith.constant 0.166666672 : f32
    %28 = vector.broadcast %cst_18 : f32 to vector<512x32xf32>
    %29 = arith.mulf %27, %28 : vector<512x32xf32>
    %c0_19 = arith.constant 0 : index
    %c0_20 = arith.constant 0 : index
    %30 = vector.load %arg6[%c0_19, %c0_20] : memref<24x16xf32, #tpu.memory_space<vmem>>, vector<24x16xf32>
    %c0_21 = arith.constant 0 : index
    %c0_22 = arith.constant 0 : index
    %31 = vector.load %arg7[%c0_21, %c0_22] : memref<9x32xf32, #tpu.memory_space<vmem>>, vector<9x32xf32>
    %c0_23 = arith.constant 0 : index
    %c0_24 = arith.constant 0 : index
    %32 = vector.load %arg8[%c0_23, %c0_24] : memref<1x32xf32, #tpu.memory_space<vmem>>, vector<1x32xf32>
    %cst_25 = arith.constant 0.000000e+00 : f32
    %33 = vector.broadcast %cst_25 : f32 to vector<8x32xf32>
    %34 = vector.extract_strided_slice %29 {offsets = [0, 0], sizes = [16, 32], strides = [1, 1]} : vector<512x32xf32> to vector<16x32xf32>
    %cst_26 = arith.constant dense<0.000000e+00> : vector<24x32xf32>
    %35 = tpu.matmul %30, %34, %cst_26 {dimension_numbers = #tpu.dot_dimension_numbers<[1], [0], [0], [1], [0, 0, 1, 1], [], []>} : vector<24x16xf32>, vector<16x32xf32>, vector<24x32xf32> -> vector<24x32xf32>
    %36 = vector.extract_strided_slice %35 {offsets = [0, 0], sizes = [8, 32], strides = [1, 1]} : vector<24x32xf32> to vector<8x32xf32>
    %37 = vector.extract_strided_slice %31 {offsets = [3, 0], sizes = [1, 32], strides = [1, 1]} : vector<9x32xf32> to vector<1x32xf32>
    %38 = vector.broadcast %37 : vector<1x32xf32> to vector<8x32xf32>
    %39 = arith.mulf %36, %38 : vector<8x32xf32>
    %40 = arith.addf %33, %39 : vector<8x32xf32>
    %41 = vector.extract_strided_slice %35 {offsets = [8, 0], sizes = [8, 32], strides = [1, 1]} : vector<24x32xf32> to vector<8x32xf32>
    %42 = vector.extract_strided_slice %31 {offsets = [4, 0], sizes = [1, 32], strides = [1, 1]} : vector<9x32xf32> to vector<1x32xf32>
    %43 = vector.broadcast %42 : vector<1x32xf32> to vector<8x32xf32>
    %44 = arith.mulf %41, %43 : vector<8x32xf32>
    %45 = arith.addf %40, %44 : vector<8x32xf32>
    %46 = vector.extract_strided_slice %35 {offsets = [16, 0], sizes = [8, 32], strides = [1, 1]} : vector<24x32xf32> to vector<8x32xf32>
    %47 = vector.extract_strided_slice %31 {offsets = [5, 0], sizes = [1, 32], strides = [1, 1]} : vector<9x32xf32> to vector<1x32xf32>
    %48 = vector.broadcast %47 : vector<1x32xf32> to vector<8x32xf32>
    %49 = arith.mulf %46, %48 : vector<8x32xf32>
    %50 = arith.addf %45, %49 : vector<8x32xf32>
    %51 = vector.extract_strided_slice %29 {offsets = [16, 0], sizes = [16, 32], strides = [1, 1]} : vector<512x32xf32> to vector<16x32xf32>
    %cst_27 = arith.constant dense<0.000000e+00> : vector<24x32xf32>
    %52 = tpu.matmul %30, %51, %cst_27 {dimension_numbers = #tpu.dot_dimension_numbers<[1], [0], [0], [1], [0, 0, 1, 1], [], []>} : vector<24x16xf32>, vector<16x32xf32>, vector<24x32xf32> -> vector<24x32xf32>
    %53 = vector.extract_strided_slice %52 {offsets = [0, 0], sizes = [8, 32], strides = [1, 1]} : vector<24x32xf32> to vector<8x32xf32>
    %54 = vector.extract_strided_slice %31 {offsets = [6, 0], sizes = [1, 32], strides = [1, 1]} : vector<9x32xf32> to vector<1x32xf32>
    %55 = vector.broadcast %54 : vector<1x32xf32> to vector<8x32xf32>
    %56 = arith.mulf %53, %55 : vector<8x32xf32>
    %57 = arith.addf %50, %56 : vector<8x32xf32>
    %58 = vector.extract_strided_slice %52 {offsets = [8, 0], sizes = [8, 32], strides = [1, 1]} : vector<24x32xf32> to vector<8x32xf32>
    %59 = vector.extract_strided_slice %31 {offsets = [7, 0], sizes = [1, 32], strides = [1, 1]} : vector<9x32xf32> to vector<1x32xf32>
    %60 = vector.broadcast %59 : vector<1x32xf32> to vector<8x32xf32>
    %61 = arith.mulf %58, %60 : vector<8x32xf32>
    %62 = arith.addf %57, %61 : vector<8x32xf32>
    %63 = vector.extract_strided_slice %52 {offsets = [16, 0], sizes = [8, 32], strides = [1, 1]} : vector<24x32xf32> to vector<8x32xf32>
    %64 = vector.extract_strided_slice %31 {offsets = [8, 0], sizes = [1, 32], strides = [1, 1]} : vector<9x32xf32> to vector<1x32xf32>
    %65 = vector.broadcast %64 : vector<1x32xf32> to vector<8x32xf32>
    %66 = arith.mulf %63, %65 : vector<8x32xf32>
    %67 = arith.addf %62, %66 : vector<8x32xf32>
    %68 = vector.broadcast %32 : vector<1x32xf32> to vector<8x32xf32>
    %69 = arith.addf %67, %68 : vector<8x32xf32>
    %cst_28 = arith.constant 3.000000e+00 : f32
    %70 = vector.broadcast %cst_28 : f32 to vector<8x32xf32>
    %71 = arith.addf %69, %70 : vector<8x32xf32>
    %cst_29 = arith.constant 0.000000e+00 : f32
    %cst_30 = arith.constant 6.000000e+00 : f32
    %72 = vector.broadcast %cst_29 : f32 to vector<8x32xf32>
    %73 = arith.maximumf %72, %71 : vector<8x32xf32>
    %74 = vector.broadcast %cst_30 : f32 to vector<8x32xf32>
    %75 = arith.minimumf %74, %73 : vector<8x32xf32>
    %76 = arith.mulf %69, %75 : vector<8x32xf32>
    %cst_31 = arith.constant 0.166666672 : f32
    %77 = vector.broadcast %cst_31 : f32 to vector<8x32xf32>
    %78 = arith.mulf %76, %77 : vector<8x32xf32>
    %cst_32 = arith.constant 0.000000e+00 : f32
    %79 = vector.broadcast %cst_32 : f32 to vector<8x32xf32>
    %80 = vector.extract_strided_slice %29 {offsets = [16, 0], sizes = [16, 32], strides = [1, 1]} : vector<512x32xf32> to vector<16x32xf32>
    %cst_33 = arith.constant dense<0.000000e+00> : vector<24x32xf32>
    %81 = tpu.matmul %30, %80, %cst_33 {dimension_numbers = #tpu.dot_dimension_numbers<[1], [0], [0], [1], [0, 0, 1, 1], [], []>} : vector<24x16xf32>, vector<16x32xf32>, vector<24x32xf32> -> vector<24x32xf32>
    %82 = vector.extract_strided_slice %81 {offsets = [0, 0], sizes = [8, 32], strides = [1, 1]} : vector<24x32xf32> to vector<8x32xf32>
    %83 = vector.extract_strided_slice %31 {offsets = [0, 0], sizes = [1, 32], strides = [1, 1]} : vector<9x32xf32> to vector<1x32xf32>
    %84 = vector.broadcast %83 : vector<1x32xf32> to vector<8x32xf32>
    %85 = arith.mulf %82, %84 : vector<8x32xf32>
    %86 = arith.addf %79, %85 : vector<8x32xf32>
    %87 = vector.extract_strided_slice %81 {offsets = [8, 0], sizes = [8, 32], strides = [1, 1]} : vector<24x32xf32> to vector<8x32xf32>
    %88 = vector.extract_strided_slice %31 {offsets = [1, 0], sizes = [1, 32], strides = [1, 1]} : vector<9x32xf32> to vector<1x32xf32>
    %89 = vector.broadcast %88 : vector<1x32xf32> to vector<8x32xf32>
    %90 = arith.mulf %87, %89 : vector<8x32xf32>
    %91 = arith.addf %86, %90 : vector<8x32xf32>
    %92 = vector.extract_strided_slice %81 {offsets = [16, 0], sizes = [8, 32], strides = [1, 1]} : vector<24x32xf32> to vector<8x32xf32>
    %93 = vector.extract_strided_slice %31 {offsets = [2, 0], sizes = [1, 32], strides = [1, 1]} : vector<9x32xf32> to vector<1x32xf32>
    %94 = vector.broadcast %93 : vector<1x32xf32> to vector<8x32xf32>
    %95 = arith.mulf %92, %94 : vector<8x32xf32>
    %96 = arith.addf %91, %95 : vector<8x32xf32>
    %97 = vector.extract_strided_slice %29 {offsets = [32, 0], sizes = [16, 32], strides = [1, 1]} : vector<512x32xf32> to vector<16x32xf32>
    %cst_34 = arith.constant dense<0.000000e+00> : vector<24x32xf32>
    %98 = tpu.matmul %30, %97, %cst_34 {dimension_numbers = #tpu.dot_dimension_numbers<[1], [0], [0], [1], [0, 0, 1, 1], [], []>} : vector<24x16xf32>, vector<16x32xf32>, vector<24x32xf32> -> vector<24x32xf32>
    %99 = vector.extract_strided_slice %98 {offsets = [0, 0], sizes = [8, 32], strides = [1, 1]} : vector<24x32xf32> to vector<8x32xf32>
    %100 = vector.extract_strided_slice %31 {offsets = [3, 0], sizes = [1, 32], strides = [1, 1]} : vector<9x32xf32> to vector<1x32xf32>
    %101 = vector.broadcast %100 : vector<1x32xf32> to vector<8x32xf32>
    %102 = arith.mulf %99, %101 : vector<8x32xf32>
    %103 = arith.addf %96, %102 : vector<8x32xf32>
    %104 = vector.extract_strided_slice %98 {offsets = [8, 0], sizes = [8, 32], strides = [1, 1]} : vector<24x32xf32> to vector<8x32xf32>
    %105 = vector.extract_strided_slice %31 {offsets = [4, 0], sizes = [1, 32], strides = [1, 1]} : vector<9x32xf32> to vector<1x32xf32>
    %106 = vector.broadcast %105 : vector<1x32xf32> to vector<8x32xf32>
    %107 = arith.mulf %104, %106 : vector<8x32xf32>
    %108 = arith.addf %103, %107 : vector<8x32xf32>
    %109 = vector.extract_strided_slice %98 {offsets = [16, 0], sizes = [8, 32], strides = [1, 1]} : vector<24x32xf32> to vector<8x32xf32>
    %110 = vector.extract_strided_slice %31 {offsets = [5, 0], sizes = [1, 32], strides = [1, 1]} : vector<9x32xf32> to vector<1x32xf32>
    %111 = vector.broadcast %110 : vector<1x32xf32> to vector<8x32xf32>
    %112 = arith.mulf %109, %111 : vector<8x32xf32>
    %113 = arith.addf %108, %112 : vector<8x32xf32>
    %114 = vector.extract_strided_slice %29 {offsets = [48, 0], sizes = [16, 32], strides = [1, 1]} : vector<512x32xf32> to vector<16x32xf32>
    %cst_35 = arith.constant dense<0.000000e+00> : vector<24x32xf32>
    %115 = tpu.matmul %30, %114, %cst_35 {dimension_numbers = #tpu.dot_dimension_numbers<[1], [0], [0], [1], [0, 0, 1, 1], [], []>} : vector<24x16xf32>, vector<16x32xf32>, vector<24x32xf32> -> vector<24x32xf32>
    %116 = vector.extract_strided_slice %115 {offsets = [0, 0], sizes = [8, 32], strides = [1, 1]} : vector<24x32xf32> to vector<8x32xf32>
    %117 = vector.extract_strided_slice %31 {offsets = [6, 0], sizes = [1, 32], strides = [1, 1]} : vector<9x32xf32> to vector<1x32xf32>
    %118 = vector.broadcast %117 : vector<1x32xf32> to vector<8x32xf32>
    %119 = arith.mulf %116, %118 : vector<8x32xf32>
    %120 = arith.addf %113, %119 : vector<8x32xf32>
    %121 = vector.extract_strided_slice %115 {offsets = [8, 0], sizes = [8, 32], strides = [1, 1]} : vector<24x32xf32> to vector<8x32xf32>
    %122 = vector.extract_strided_slice %31 {offsets = [7, 0], sizes = [1, 32], strides = [1, 1]} : vector<9x32xf32> to vector<1x32xf32>
    %123 = vector.broadcast %122 : vector<1x32xf32> to vector<8x32xf32>
    %124 = arith.mulf %121, %123 : vector<8x32xf32>
    %125 = arith.addf %120, %124 : vector<8x32xf32>
    %126 = vector.extract_strided_slice %115 {offsets = [16, 0], sizes = [8, 32], strides = [1, 1]} : vector<24x32xf32> to vector<8x32xf32>
    %127 = vector.extract_strided_slice %31 {offsets = [8, 0], sizes = [1, 32], strides = [1, 1]} : vector<9x32xf32> to vector<1x32xf32>
    %128 = vector.broadcast %127 : vector<1x32xf32> to vector<8x32xf32>
    %129 = arith.mulf %126, %128 : vector<8x32xf32>
    %130 = arith.addf %125, %129 : vector<8x32xf32>
    %131 = vector.broadcast %32 : vector<1x32xf32> to vector<8x32xf32>
    %132 = arith.addf %130, %131 : vector<8x32xf32>
    %cst_36 = arith.constant 3.000000e+00 : f32
    %133 = vector.broadcast %cst_36 : f32 to vector<8x32xf32>
    %134 = arith.addf %132, %133 : vector<8x32xf32>
    %cst_37 = arith.constant 0.000000e+00 : f32
    %cst_38 = arith.constant 6.000000e+00 : f32
    %135 = vector.broadcast %cst_37 : f32 to vector<8x32xf32>
    %136 = arith.maximumf %135, %134 : vector<8x32xf32>
    %137 = vector.broadcast %cst_38 : f32 to vector<8x32xf32>
    %138 = arith.minimumf %137, %136 : vector<8x32xf32>
    %139 = arith.mulf %132, %138 : vector<8x32xf32>
    %cst_39 = arith.constant 0.166666672 : f32
    %140 = vector.broadcast %cst_39 : f32 to vector<8x32xf32>
    %141 = arith.mulf %139, %140 : vector<8x32xf32>
    %cst_40 = arith.constant 0.000000e+00 : f32
    %142 = vector.broadcast %cst_40 : f32 to vector<8x32xf32>
    %143 = vector.extract_strided_slice %29 {offsets = [48, 0], sizes = [16, 32], strides = [1, 1]} : vector<512x32xf32> to vector<16x32xf32>
    %cst_41 = arith.constant dense<0.000000e+00> : vector<24x32xf32>
    %144 = tpu.matmul %30, %143, %cst_41 {dimension_numbers = #tpu.dot_dimension_numbers<[1], [0], [0], [1], [0, 0, 1, 1], [], []>} : vector<24x16xf32>, vector<16x32xf32>, vector<24x32xf32> -> vector<24x32xf32>
    %145 = vector.extract_strided_slice %144 {offsets = [0, 0], sizes = [8, 32], strides = [1, 1]} : vector<24x32xf32> to vector<8x32xf32>
    %146 = vector.extract_strided_slice %31 {offsets = [0, 0], sizes = [1, 32], strides = [1, 1]} : vector<9x32xf32> to vector<1x32xf32>
    %147 = vector.broadcast %146 : vector<1x32xf32> to vector<8x32xf32>
    %148 = arith.mulf %145, %147 : vector<8x32xf32>
    %149 = arith.addf %142, %148 : vector<8x32xf32>
    %150 = vector.extract_strided_slice %144 {offsets = [8, 0], sizes = [8, 32], strides = [1, 1]} : vector<24x32xf32> to vector<8x32xf32>
    %151 = vector.extract_strided_slice %31 {offsets = [1, 0], sizes = [1, 32], strides = [1, 1]} : vector<9x32xf32> to vector<1x32xf32>
    %152 = vector.broadcast %151 : vector<1x32xf32> to vector<8x32xf32>
    %153 = arith.mulf %150, %152 : vector<8x32xf32>
    %154 = arith.addf %149, %153 : vector<8x32xf32>
    %155 = vector.extract_strided_slice %144 {offsets = [16, 0], sizes = [8, 32], strides = [1, 1]} : vector<24x32xf32> to vector<8x32xf32>
    %156 = vector.extract_strided_slice %31 {offsets = [2, 0], sizes = [1, 32], strides = [1, 1]} : vector<9x32xf32> to vector<1x32xf32>
    %157 = vector.broadcast %156 : vector<1x32xf32> to vector<8x32xf32>
    %158 = arith.mulf %155, %157 : vector<8x32xf32>
    %159 = arith.addf %154, %158 : vector<8x32xf32>
    %160 = vector.extract_strided_slice %29 {offsets = [64, 0], sizes = [16, 32], strides = [1, 1]} : vector<512x32xf32> to vector<16x32xf32>
    %cst_42 = arith.constant dense<0.000000e+00> : vector<24x32xf32>
    %161 = tpu.matmul %30, %160, %cst_42 {dimension_numbers = #tpu.dot_dimension_numbers<[1], [0], [0], [1], [0, 0, 1, 1], [], []>} : vector<24x16xf32>, vector<16x32xf32>, vector<24x32xf32> -> vector<24x32xf32>
    %162 = vector.extract_strided_slice %161 {offsets = [0, 0], sizes = [8, 32], strides = [1, 1]} : vector<24x32xf32> to vector<8x32xf32>
    %163 = vector.extract_strided_slice %31 {offsets = [3, 0], sizes = [1, 32], strides = [1, 1]} : vector<9x32xf32> to vector<1x32xf32>
    %164 = vector.broadcast %163 : vector<1x32xf32> to vector<8x32xf32>
    %165 = arith.mulf %162, %164 : vector<8x32xf32>
    %166 = arith.addf %159, %165 : vector<8x32xf32>
    %167 = vector.extract_strided_slice %161 {offsets = [8, 0], sizes = [8, 32], strides = [1, 1]} : vector<24x32xf32> to vector<8x32xf32>
    %168 = vector.extract_strided_slice %31 {offsets = [4, 0], sizes = [1, 32], strides = [1, 1]} : vector<9x32xf32> to vector<1x32xf32>
    %169 = vector.broadcast %168 : vector<1x32xf32> to vector<8x32xf32>
    %170 = arith.mulf %167, %169 : vector<8x32xf32>
    %171 = arith.addf %166, %170 : vector<8x32xf32>
    %172 = vector.extract_strided_slice %161 {offsets = [16, 0], sizes = [8, 32], strides = [1, 1]} : vector<24x32xf32> to vector<8x32xf32>
    %173 = vector.extract_strided_slice %31 {offsets = [5, 0], sizes = [1, 32], strides = [1, 1]} : vector<9x32xf32> to vector<1x32xf32>
    %174 = vector.broadcast %173 : vector<1x32xf32> to vector<8x32xf32>
    %175 = arith.mulf %172, %174 : vector<8x32xf32>
    %176 = arith.addf %171, %175 : vector<8x32xf32>
    %177 = vector.extract_strided_slice %29 {offsets = [80, 0], sizes = [16, 32], strides = [1, 1]} : vector<512x32xf32> to vector<16x32xf32>
    %cst_43 = arith.constant dense<0.000000e+00> : vector<24x32xf32>
    %178 = tpu.matmul %30, %177, %cst_43 {dimension_numbers = #tpu.dot_dimension_numbers<[1], [0], [0], [1], [0, 0, 1, 1], [], []>} : vector<24x16xf32>, vector<16x32xf32>, vector<24x32xf32> -> vector<24x32xf32>
    %179 = vector.extract_strided_slice %178 {offsets = [0, 0], sizes = [8, 32], strides = [1, 1]} : vector<24x32xf32> to vector<8x32xf32>
    %180 = vector.extract_strided_slice %31 {offsets = [6, 0], sizes = [1, 32], strides = [1, 1]} : vector<9x32xf32> to vector<1x32xf32>
    %181 = vector.broadcast %180 : vector<1x32xf32> to vector<8x32xf32>
    %182 = arith.mulf %179, %181 : vector<8x32xf32>
    %183 = arith.addf %176, %182 : vector<8x32xf32>
    %184 = vector.extract_strided_slice %178 {offsets = [8, 0], sizes = [8, 32], strides = [1, 1]} : vector<24x32xf32> to vector<8x32xf32>
    %185 = vector.extract_strided_slice %31 {offsets = [7, 0], sizes = [1, 32], strides = [1, 1]} : vector<9x32xf32> to vector<1x32xf32>
    %186 = vector.broadcast %185 : vector<1x32xf32> to vector<8x32xf32>
    %187 = arith.mulf %184, %186 : vector<8x32xf32>
    %188 = arith.addf %183, %187 : vector<8x32xf32>
    %189 = vector.extract_strided_slice %178 {offsets = [16, 0], sizes = [8, 32], strides = [1, 1]} : vector<24x32xf32> to vector<8x32xf32>
    %190 = vector.extract_strided_slice %31 {offsets = [8, 0], sizes = [1, 32], strides = [1, 1]} : vector<9x32xf32> to vector<1x32xf32>
    %191 = vector.broadcast %190 : vector<1x32xf32> to vector<8x32xf32>
    %192 = arith.mulf %189, %191 : vector<8x32xf32>
    %193 = arith.addf %188, %192 : vector<8x32xf32>
    %194 = vector.broadcast %32 : vector<1x32xf32> to vector<8x32xf32>
    %195 = arith.addf %193, %194 : vector<8x32xf32>
    %cst_44 = arith.constant 3.000000e+00 : f32
    %196 = vector.broadcast %cst_44 : f32 to vector<8x32xf32>
    %197 = arith.addf %195, %196 : vector<8x32xf32>
    %cst_45 = arith.constant 0.000000e+00 : f32
    %cst_46 = arith.constant 6.000000e+00 : f32
    %198 = vector.broadcast %cst_45 : f32 to vector<8x32xf32>
    %199 = arith.maximumf %198, %197 : vector<8x32xf32>
    %200 = vector.broadcast %cst_46 : f32 to vector<8x32xf32>
    %201 = arith.minimumf %200, %199 : vector<8x32xf32>
    %202 = arith.mulf %195, %201 : vector<8x32xf32>
    %cst_47 = arith.constant 0.166666672 : f32
    %203 = vector.broadcast %cst_47 : f32 to vector<8x32xf32>
    %204 = arith.mulf %202, %203 : vector<8x32xf32>
    %cst_48 = arith.constant 0.000000e+00 : f32
    %205 = vector.broadcast %cst_48 : f32 to vector<8x32xf32>
    %206 = vector.extract_strided_slice %29 {offsets = [80, 0], sizes = [16, 32], strides = [1, 1]} : vector<512x32xf32> to vector<16x32xf32>
    %cst_49 = arith.constant dense<0.000000e+00> : vector<24x32xf32>
    %207 = tpu.matmul %30, %206, %cst_49 {dimension_numbers = #tpu.dot_dimension_numbers<[1], [0], [0], [1], [0, 0, 1, 1], [], []>} : vector<24x16xf32>, vector<16x32xf32>, vector<24x32xf32> -> vector<24x32xf32>
    %208 = vector.extract_strided_slice %207 {offsets = [0, 0], sizes = [8, 32], strides = [1, 1]} : vector<24x32xf32> to vector<8x32xf32>
    %209 = vector.extract_strided_slice %31 {offsets = [0, 0], sizes = [1, 32], strides = [1, 1]} : vector<9x32xf32> to vector<1x32xf32>
    %210 = vector.broadcast %209 : vector<1x32xf32> to vector<8x32xf32>
    %211 = arith.mulf %208, %210 : vector<8x32xf32>
    %212 = arith.addf %205, %211 : vector<8x32xf32>
    %213 = vector.extract_strided_slice %207 {offsets = [8, 0], sizes = [8, 32], strides = [1, 1]} : vector<24x32xf32> to vector<8x32xf32>
    %214 = vector.extract_strided_slice %31 {offsets = [1, 0], sizes = [1, 32], strides = [1, 1]} : vector<9x32xf32> to vector<1x32xf32>
    %215 = vector.broadcast %214 : vector<1x32xf32> to vector<8x32xf32>
    %216 = arith.mulf %213, %215 : vector<8x32xf32>
    %217 = arith.addf %212, %216 : vector<8x32xf32>
    %218 = vector.extract_strided_slice %207 {offsets = [16, 0], sizes = [8, 32], strides = [1, 1]} : vector<24x32xf32> to vector<8x32xf32>
    %219 = vector.extract_strided_slice %31 {offsets = [2, 0], sizes = [1, 32], strides = [1, 1]} : vector<9x32xf32> to vector<1x32xf32>
    %220 = vector.broadcast %219 : vector<1x32xf32> to vector<8x32xf32>
    %221 = arith.mulf %218, %220 : vector<8x32xf32>
    %222 = arith.addf %217, %221 : vector<8x32xf32>
    %223 = vector.extract_strided_slice %29 {offsets = [96, 0], sizes = [16, 32], strides = [1, 1]} : vector<512x32xf32> to vector<16x32xf32>
    %cst_50 = arith.constant dense<0.000000e+00> : vector<24x32xf32>
    %224 = tpu.matmul %30, %223, %cst_50 {dimension_numbers = #tpu.dot_dimension_numbers<[1], [0], [0], [1], [0, 0, 1, 1], [], []>} : vector<24x16xf32>, vector<16x32xf32>, vector<24x32xf32> -> vector<24x32xf32>
    %225 = vector.extract_strided_slice %224 {offsets = [0, 0], sizes = [8, 32], strides = [1, 1]} : vector<24x32xf32> to vector<8x32xf32>
    %226 = vector.extract_strided_slice %31 {offsets = [3, 0], sizes = [1, 32], strides = [1, 1]} : vector<9x32xf32> to vector<1x32xf32>
    %227 = vector.broadcast %226 : vector<1x32xf32> to vector<8x32xf32>
    %228 = arith.mulf %225, %227 : vector<8x32xf32>
    %229 = arith.addf %222, %228 : vector<8x32xf32>
    %230 = vector.extract_strided_slice %224 {offsets = [8, 0], sizes = [8, 32], strides = [1, 1]} : vector<24x32xf32> to vector<8x32xf32>
    %231 = vector.extract_strided_slice %31 {offsets = [4, 0], sizes = [1, 32], strides = [1, 1]} : vector<9x32xf32> to vector<1x32xf32>
    %232 = vector.broadcast %231 : vector<1x32xf32> to vector<8x32xf32>
    %233 = arith.mulf %230, %232 : vector<8x32xf32>
    %234 = arith.addf %229, %233 : vector<8x32xf32>
    %235 = vector.extract_strided_slice %224 {offsets = [16, 0], sizes = [8, 32], strides = [1, 1]} : vector<24x32xf32> to vector<8x32xf32>
    %236 = vector.extract_strided_slice %31 {offsets = [5, 0], sizes = [1, 32], strides = [1, 1]} : vector<9x32xf32> to vector<1x32xf32>
    %237 = vector.broadcast %236 : vector<1x32xf32> to vector<8x32xf32>
    %238 = arith.mulf %235, %237 : vector<8x32xf32>
    %239 = arith.addf %234, %238 : vector<8x32xf32>
    %240 = vector.extract_strided_slice %29 {offsets = [112, 0], sizes = [16, 32], strides = [1, 1]} : vector<512x32xf32> to vector<16x32xf32>
    %cst_51 = arith.constant dense<0.000000e+00> : vector<24x32xf32>
    %241 = tpu.matmul %30, %240, %cst_51 {dimension_numbers = #tpu.dot_dimension_numbers<[1], [0], [0], [1], [0, 0, 1, 1], [], []>} : vector<24x16xf32>, vector<16x32xf32>, vector<24x32xf32> -> vector<24x32xf32>
    %242 = vector.extract_strided_slice %241 {offsets = [0, 0], sizes = [8, 32], strides = [1, 1]} : vector<24x32xf32> to vector<8x32xf32>
    %243 = vector.extract_strided_slice %31 {offsets = [6, 0], sizes = [1, 32], strides = [1, 1]} : vector<9x32xf32> to vector<1x32xf32>
    %244 = vector.broadcast %243 : vector<1x32xf32> to vector<8x32xf32>
    %245 = arith.mulf %242, %244 : vector<8x32xf32>
    %246 = arith.addf %239, %245 : vector<8x32xf32>
    %247 = vector.extract_strided_slice %241 {offsets = [8, 0], sizes = [8, 32], strides = [1, 1]} : vector<24x32xf32> to vector<8x32xf32>
    %248 = vector.extract_strided_slice %31 {offsets = [7, 0], sizes = [1, 32], strides = [1, 1]} : vector<9x32xf32> to vector<1x32xf32>
    %249 = vector.broadcast %248 : vector<1x32xf32> to vector<8x32xf32>
    %250 = arith.mulf %247, %249 : vector<8x32xf32>
    %251 = arith.addf %246, %250 : vector<8x32xf32>
    %252 = vector.extract_strided_slice %241 {offsets = [16, 0], sizes = [8, 32], strides = [1, 1]} : vector<24x32xf32> to vector<8x32xf32>
    %253 = vector.extract_strided_slice %31 {offsets = [8, 0], sizes = [1, 32], strides = [1, 1]} : vector<9x32xf32> to vector<1x32xf32>
    %254 = vector.broadcast %253 : vector<1x32xf32> to vector<8x32xf32>
    %255 = arith.mulf %252, %254 : vector<8x32xf32>
    %256 = arith.addf %251, %255 : vector<8x32xf32>
    %257 = vector.broadcast %32 : vector<1x32xf32> to vector<8x32xf32>
    %258 = arith.addf %256, %257 : vector<8x32xf32>
    %cst_52 = arith.constant 3.000000e+00 : f32
    %259 = vector.broadcast %cst_52 : f32 to vector<8x32xf32>
    %260 = arith.addf %258, %259 : vector<8x32xf32>
    %cst_53 = arith.constant 0.000000e+00 : f32
    %cst_54 = arith.constant 6.000000e+00 : f32
    %261 = vector.broadcast %cst_53 : f32 to vector<8x32xf32>
    %262 = arith.maximumf %261, %260 : vector<8x32xf32>
    %263 = vector.broadcast %cst_54 : f32 to vector<8x32xf32>
    %264 = arith.minimumf %263, %262 : vector<8x32xf32>
    %265 = arith.mulf %258, %264 : vector<8x32xf32>
    %cst_55 = arith.constant 0.166666672 : f32
    %266 = vector.broadcast %cst_55 : f32 to vector<8x32xf32>
    %267 = arith.mulf %265, %266 : vector<8x32xf32>
    %cst_56 = arith.constant 0.000000e+00 : f32
    %268 = vector.broadcast %cst_56 : f32 to vector<8x32xf32>
    %269 = vector.extract_strided_slice %29 {offsets = [112, 0], sizes = [16, 32], strides = [1, 1]} : vector<512x32xf32> to vector<16x32xf32>
    %cst_57 = arith.constant dense<0.000000e+00> : vector<24x32xf32>
    %270 = tpu.matmul %30, %269, %cst_57 {dimension_numbers = #tpu.dot_dimension_numbers<[1], [0], [0], [1], [0, 0, 1, 1], [], []>} : vector<24x16xf32>, vector<16x32xf32>, vector<24x32xf32> -> vector<24x32xf32>
    %271 = vector.extract_strided_slice %270 {offsets = [0, 0], sizes = [8, 32], strides = [1, 1]} : vector<24x32xf32> to vector<8x32xf32>
    %272 = vector.extract_strided_slice %31 {offsets = [0, 0], sizes = [1, 32], strides = [1, 1]} : vector<9x32xf32> to vector<1x32xf32>
    %273 = vector.broadcast %272 : vector<1x32xf32> to vector<8x32xf32>
    %274 = arith.mulf %271, %273 : vector<8x32xf32>
    %275 = arith.addf %268, %274 : vector<8x32xf32>
    %276 = vector.extract_strided_slice %270 {offsets = [8, 0], sizes = [8, 32], strides = [1, 1]} : vector<24x32xf32> to vector<8x32xf32>
    %277 = vector.extract_strided_slice %31 {offsets = [1, 0], sizes = [1, 32], strides = [1, 1]} : vector<9x32xf32> to vector<1x32xf32>
    %278 = vector.broadcast %277 : vector<1x32xf32> to vector<8x32xf32>
    %279 = arith.mulf %276, %278 : vector<8x32xf32>
    %280 = arith.addf %275, %279 : vector<8x32xf32>
    %281 = vector.extract_strided_slice %270 {offsets = [16, 0], sizes = [8, 32], strides = [1, 1]} : vector<24x32xf32> to vector<8x32xf32>
    %282 = vector.extract_strided_slice %31 {offsets = [2, 0], sizes = [1, 32], strides = [1, 1]} : vector<9x32xf32> to vector<1x32xf32>
    %283 = vector.broadcast %282 : vector<1x32xf32> to vector<8x32xf32>
    %284 = arith.mulf %281, %283 : vector<8x32xf32>
    %285 = arith.addf %280, %284 : vector<8x32xf32>
    %286 = vector.extract_strided_slice %29 {offsets = [128, 0], sizes = [16, 32], strides = [1, 1]} : vector<512x32xf32> to vector<16x32xf32>
    %cst_58 = arith.constant dense<0.000000e+00> : vector<24x32xf32>
    %287 = tpu.matmul %30, %286, %cst_58 {dimension_numbers = #tpu.dot_dimension_numbers<[1], [0], [0], [1], [0, 0, 1, 1], [], []>} : vector<24x16xf32>, vector<16x32xf32>, vector<24x32xf32> -> vector<24x32xf32>
    %288 = vector.extract_strided_slice %287 {offsets = [0, 0], sizes = [8, 32], strides = [1, 1]} : vector<24x32xf32> to vector<8x32xf32>
    %289 = vector.extract_strided_slice %31 {offsets = [3, 0], sizes = [1, 32], strides = [1, 1]} : vector<9x32xf32> to vector<1x32xf32>
    %290 = vector.broadcast %289 : vector<1x32xf32> to vector<8x32xf32>
    %291 = arith.mulf %288, %290 : vector<8x32xf32>
    %292 = arith.addf %285, %291 : vector<8x32xf32>
    %293 = vector.extract_strided_slice %287 {offsets = [8, 0], sizes = [8, 32], strides = [1, 1]} : vector<24x32xf32> to vector<8x32xf32>
    %294 = vector.extract_strided_slice %31 {offsets = [4, 0], sizes = [1, 32], strides = [1, 1]} : vector<9x32xf32> to vector<1x32xf32>
    %295 = vector.broadcast %294 : vector<1x32xf32> to vector<8x32xf32>
    %296 = arith.mulf %293, %295 : vector<8x32xf32>
    %297 = arith.addf %292, %296 : vector<8x32xf32>
    %298 = vector.extract_strided_slice %287 {offsets = [16, 0], sizes = [8, 32], strides = [1, 1]} : vector<24x32xf32> to vector<8x32xf32>
    %299 = vector.extract_strided_slice %31 {offsets = [5, 0], sizes = [1, 32], strides = [1, 1]} : vector<9x32xf32> to vector<1x32xf32>
    %300 = vector.broadcast %299 : vector<1x32xf32> to vector<8x32xf32>
    %301 = arith.mulf %298, %300 : vector<8x32xf32>
    %302 = arith.addf %297, %301 : vector<8x32xf32>
    %303 = vector.extract_strided_slice %29 {offsets = [144, 0], sizes = [16, 32], strides = [1, 1]} : vector<512x32xf32> to vector<16x32xf32>
    %cst_59 = arith.constant dense<0.000000e+00> : vector<24x32xf32>
    %304 = tpu.matmul %30, %303, %cst_59 {dimension_numbers = #tpu.dot_dimension_numbers<[1], [0], [0], [1], [0, 0, 1, 1], [], []>} : vector<24x16xf32>, vector<16x32xf32>, vector<24x32xf32> -> vector<24x32xf32>
    %305 = vector.extract_strided_slice %304 {offsets = [0, 0], sizes = [8, 32], strides = [1, 1]} : vector<24x32xf32> to vector<8x32xf32>
    %306 = vector.extract_strided_slice %31 {offsets = [6, 0], sizes = [1, 32], strides = [1, 1]} : vector<9x32xf32> to vector<1x32xf32>
    %307 = vector.broadcast %306 : vector<1x32xf32> to vector<8x32xf32>
    %308 = arith.mulf %305, %307 : vector<8x32xf32>
    %309 = arith.addf %302, %308 : vector<8x32xf32>
    %310 = vector.extract_strided_slice %304 {offsets = [8, 0], sizes = [8, 32], strides = [1, 1]} : vector<24x32xf32> to vector<8x32xf32>
    %311 = vector.extract_strided_slice %31 {offsets = [7, 0], sizes = [1, 32], strides = [1, 1]} : vector<9x32xf32> to vector<1x32xf32>
    %312 = vector.broadcast %311 : vector<1x32xf32> to vector<8x32xf32>
    %313 = arith.mulf %310, %312 : vector<8x32xf32>
    %314 = arith.addf %309, %313 : vector<8x32xf32>
    %315 = vector.extract_strided_slice %304 {offsets = [16, 0], sizes = [8, 32], strides = [1, 1]} : vector<24x32xf32> to vector<8x32xf32>
    %316 = vector.extract_strided_slice %31 {offsets = [8, 0], sizes = [1, 32], strides = [1, 1]} : vector<9x32xf32> to vector<1x32xf32>
    %317 = vector.broadcast %316 : vector<1x32xf32> to vector<8x32xf32>
    %318 = arith.mulf %315, %317 : vector<8x32xf32>
    %319 = arith.addf %314, %318 : vector<8x32xf32>
    %320 = vector.broadcast %32 : vector<1x32xf32> to vector<8x32xf32>
    %321 = arith.addf %319, %320 : vector<8x32xf32>
    %cst_60 = arith.constant 3.000000e+00 : f32
    %322 = vector.broadcast %cst_60 : f32 to vector<8x32xf32>
    %323 = arith.addf %321, %322 : vector<8x32xf32>
    %cst_61 = arith.constant 0.000000e+00 : f32
    %cst_62 = arith.constant 6.000000e+00 : f32
    %324 = vector.broadcast %cst_61 : f32 to vector<8x32xf32>
    %325 = arith.maximumf %324, %323 : vector<8x32xf32>
    %326 = vector.broadcast %cst_62 : f32 to vector<8x32xf32>
    %327 = arith.minimumf %326, %325 : vector<8x32xf32>
    %328 = arith.mulf %321, %327 : vector<8x32xf32>
    %cst_63 = arith.constant 0.166666672 : f32
    %329 = vector.broadcast %cst_63 : f32 to vector<8x32xf32>
    %330 = arith.mulf %328, %329 : vector<8x32xf32>
    %cst_64 = arith.constant 0.000000e+00 : f32
    %331 = vector.broadcast %cst_64 : f32 to vector<8x32xf32>
    %332 = vector.extract_strided_slice %29 {offsets = [144, 0], sizes = [16, 32], strides = [1, 1]} : vector<512x32xf32> to vector<16x32xf32>
    %cst_65 = arith.constant dense<0.000000e+00> : vector<24x32xf32>
    %333 = tpu.matmul %30, %332, %cst_65 {dimension_numbers = #tpu.dot_dimension_numbers<[1], [0], [0], [1], [0, 0, 1, 1], [], []>} : vector<24x16xf32>, vector<16x32xf32>, vector<24x32xf32> -> vector<24x32xf32>
    %334 = vector.extract_strided_slice %333 {offsets = [0, 0], sizes = [8, 32], strides = [1, 1]} : vector<24x32xf32> to vector<8x32xf32>
    %335 = vector.extract_strided_slice %31 {offsets = [0, 0], sizes = [1, 32], strides = [1, 1]} : vector<9x32xf32> to vector<1x32xf32>
    %336 = vector.broadcast %335 : vector<1x32xf32> to vector<8x32xf32>
    %337 = arith.mulf %334, %336 : vector<8x32xf32>
    %338 = arith.addf %331, %337 : vector<8x32xf32>
    %339 = vector.extract_strided_slice %333 {offsets = [8, 0], sizes = [8, 32], strides = [1, 1]} : vector<24x32xf32> to vector<8x32xf32>
    %340 = vector.extract_strided_slice %31 {offsets = [1, 0], sizes = [1, 32], strides = [1, 1]} : vector<9x32xf32> to vector<1x32xf32>
    %341 = vector.broadcast %340 : vector<1x32xf32> to vector<8x32xf32>
    %342 = arith.mulf %339, %341 : vector<8x32xf32>
    %343 = arith.addf %338, %342 : vector<8x32xf32>
    %344 = vector.extract_strided_slice %333 {offsets = [16, 0], sizes = [8, 32], strides = [1, 1]} : vector<24x32xf32> to vector<8x32xf32>
    %345 = vector.extract_strided_slice %31 {offsets = [2, 0], sizes = [1, 32], strides = [1, 1]} : vector<9x32xf32> to vector<1x32xf32>
    %346 = vector.broadcast %345 : vector<1x32xf32> to vector<8x32xf32>
    %347 = arith.mulf %344, %346 : vector<8x32xf32>
    %348 = arith.addf %343, %347 : vector<8x32xf32>
    %349 = vector.extract_strided_slice %29 {offsets = [160, 0], sizes = [16, 32], strides = [1, 1]} : vector<512x32xf32> to vector<16x32xf32>
    %cst_66 = arith.constant dense<0.000000e+00> : vector<24x32xf32>
    %350 = tpu.matmul %30, %349, %cst_66 {dimension_numbers = #tpu.dot_dimension_numbers<[1], [0], [0], [1], [0, 0, 1, 1], [], []>} : vector<24x16xf32>, vector<16x32xf32>, vector<24x32xf32> -> vector<24x32xf32>
    %351 = vector.extract_strided_slice %350 {offsets = [0, 0], sizes = [8, 32], strides = [1, 1]} : vector<24x32xf32> to vector<8x32xf32>
    %352 = vector.extract_strided_slice %31 {offsets = [3, 0], sizes = [1, 32], strides = [1, 1]} : vector<9x32xf32> to vector<1x32xf32>
    %353 = vector.broadcast %352 : vector<1x32xf32> to vector<8x32xf32>
    %354 = arith.mulf %351, %353 : vector<8x32xf32>
    %355 = arith.addf %348, %354 : vector<8x32xf32>
    %356 = vector.extract_strided_slice %350 {offsets = [8, 0], sizes = [8, 32], strides = [1, 1]} : vector<24x32xf32> to vector<8x32xf32>
    %357 = vector.extract_strided_slice %31 {offsets = [4, 0], sizes = [1, 32], strides = [1, 1]} : vector<9x32xf32> to vector<1x32xf32>
    %358 = vector.broadcast %357 : vector<1x32xf32> to vector<8x32xf32>
    %359 = arith.mulf %356, %358 : vector<8x32xf32>
    %360 = arith.addf %355, %359 : vector<8x32xf32>
    %361 = vector.extract_strided_slice %350 {offsets = [16, 0], sizes = [8, 32], strides = [1, 1]} : vector<24x32xf32> to vector<8x32xf32>
    %362 = vector.extract_strided_slice %31 {offsets = [5, 0], sizes = [1, 32], strides = [1, 1]} : vector<9x32xf32> to vector<1x32xf32>
    %363 = vector.broadcast %362 : vector<1x32xf32> to vector<8x32xf32>
    %364 = arith.mulf %361, %363 : vector<8x32xf32>
    %365 = arith.addf %360, %364 : vector<8x32xf32>
    %366 = vector.extract_strided_slice %29 {offsets = [176, 0], sizes = [16, 32], strides = [1, 1]} : vector<512x32xf32> to vector<16x32xf32>
    %cst_67 = arith.constant dense<0.000000e+00> : vector<24x32xf32>
    %367 = tpu.matmul %30, %366, %cst_67 {dimension_numbers = #tpu.dot_dimension_numbers<[1], [0], [0], [1], [0, 0, 1, 1], [], []>} : vector<24x16xf32>, vector<16x32xf32>, vector<24x32xf32> -> vector<24x32xf32>
    %368 = vector.extract_strided_slice %367 {offsets = [0, 0], sizes = [8, 32], strides = [1, 1]} : vector<24x32xf32> to vector<8x32xf32>
    %369 = vector.extract_strided_slice %31 {offsets = [6, 0], sizes = [1, 32], strides = [1, 1]} : vector<9x32xf32> to vector<1x32xf32>
    %370 = vector.broadcast %369 : vector<1x32xf32> to vector<8x32xf32>
    %371 = arith.mulf %368, %370 : vector<8x32xf32>
    %372 = arith.addf %365, %371 : vector<8x32xf32>
    %373 = vector.extract_strided_slice %367 {offsets = [8, 0], sizes = [8, 32], strides = [1, 1]} : vector<24x32xf32> to vector<8x32xf32>
    %374 = vector.extract_strided_slice %31 {offsets = [7, 0], sizes = [1, 32], strides = [1, 1]} : vector<9x32xf32> to vector<1x32xf32>
    %375 = vector.broadcast %374 : vector<1x32xf32> to vector<8x32xf32>
    %376 = arith.mulf %373, %375 : vector<8x32xf32>
    %377 = arith.addf %372, %376 : vector<8x32xf32>
    %378 = vector.extract_strided_slice %367 {offsets = [16, 0], sizes = [8, 32], strides = [1, 1]} : vector<24x32xf32> to vector<8x32xf32>
    %379 = vector.extract_strided_slice %31 {offsets = [8, 0], sizes = [1, 32], strides = [1, 1]} : vector<9x32xf32> to vector<1x32xf32>
    %380 = vector.broadcast %379 : vector<1x32xf32> to vector<8x32xf32>
    %381 = arith.mulf %378, %380 : vector<8x32xf32>
    %382 = arith.addf %377, %381 : vector<8x32xf32>
    %383 = vector.broadcast %32 : vector<1x32xf32> to vector<8x32xf32>
    %384 = arith.addf %382, %383 : vector<8x32xf32>
    %cst_68 = arith.constant 3.000000e+00 : f32
    %385 = vector.broadcast %cst_68 : f32 to vector<8x32xf32>
    %386 = arith.addf %384, %385 : vector<8x32xf32>
    %cst_69 = arith.constant 0.000000e+00 : f32
    %cst_70 = arith.constant 6.000000e+00 : f32
    %387 = vector.broadcast %cst_69 : f32 to vector<8x32xf32>
    %388 = arith.maximumf %387, %386 : vector<8x32xf32>
    %389 = vector.broadcast %cst_70 : f32 to vector<8x32xf32>
    %390 = arith.minimumf %389, %388 : vector<8x32xf32>
    %391 = arith.mulf %384, %390 : vector<8x32xf32>
    %cst_71 = arith.constant 0.166666672 : f32
    %392 = vector.broadcast %cst_71 : f32 to vector<8x32xf32>
    %393 = arith.mulf %391, %392 : vector<8x32xf32>
    %cst_72 = arith.constant 0.000000e+00 : f32
    %394 = vector.broadcast %cst_72 : f32 to vector<8x32xf32>
    %395 = vector.extract_strided_slice %29 {offsets = [176, 0], sizes = [16, 32], strides = [1, 1]} : vector<512x32xf32> to vector<16x32xf32>
    %cst_73 = arith.constant dense<0.000000e+00> : vector<24x32xf32>
    %396 = tpu.matmul %30, %395, %cst_73 {dimension_numbers = #tpu.dot_dimension_numbers<[1], [0], [0], [1], [0, 0, 1, 1], [], []>} : vector<24x16xf32>, vector<16x32xf32>, vector<24x32xf32> -> vector<24x32xf32>
    %397 = vector.extract_strided_slice %396 {offsets = [0, 0], sizes = [8, 32], strides = [1, 1]} : vector<24x32xf32> to vector<8x32xf32>
    %398 = vector.extract_strided_slice %31 {offsets = [0, 0], sizes = [1, 32], strides = [1, 1]} : vector<9x32xf32> to vector<1x32xf32>
    %399 = vector.broadcast %398 : vector<1x32xf32> to vector<8x32xf32>
    %400 = arith.mulf %397, %399 : vector<8x32xf32>
    %401 = arith.addf %394, %400 : vector<8x32xf32>
    %402 = vector.extract_strided_slice %396 {offsets = [8, 0], sizes = [8, 32], strides = [1, 1]} : vector<24x32xf32> to vector<8x32xf32>
    %403 = vector.extract_strided_slice %31 {offsets = [1, 0], sizes = [1, 32], strides = [1, 1]} : vector<9x32xf32> to vector<1x32xf32>
    %404 = vector.broadcast %403 : vector<1x32xf32> to vector<8x32xf32>
    %405 = arith.mulf %402, %404 : vector<8x32xf32>
    %406 = arith.addf %401, %405 : vector<8x32xf32>
    %407 = vector.extract_strided_slice %396 {offsets = [16, 0], sizes = [8, 32], strides = [1, 1]} : vector<24x32xf32> to vector<8x32xf32>
    %408 = vector.extract_strided_slice %31 {offsets = [2, 0], sizes = [1, 32], strides = [1, 1]} : vector<9x32xf32> to vector<1x32xf32>
    %409 = vector.broadcast %408 : vector<1x32xf32> to vector<8x32xf32>
    %410 = arith.mulf %407, %409 : vector<8x32xf32>
    %411 = arith.addf %406, %410 : vector<8x32xf32>
    %412 = vector.extract_strided_slice %29 {offsets = [192, 0], sizes = [16, 32], strides = [1, 1]} : vector<512x32xf32> to vector<16x32xf32>
    %cst_74 = arith.constant dense<0.000000e+00> : vector<24x32xf32>
    %413 = tpu.matmul %30, %412, %cst_74 {dimension_numbers = #tpu.dot_dimension_numbers<[1], [0], [0], [1], [0, 0, 1, 1], [], []>} : vector<24x16xf32>, vector<16x32xf32>, vector<24x32xf32> -> vector<24x32xf32>
    %414 = vector.extract_strided_slice %413 {offsets = [0, 0], sizes = [8, 32], strides = [1, 1]} : vector<24x32xf32> to vector<8x32xf32>
    %415 = vector.extract_strided_slice %31 {offsets = [3, 0], sizes = [1, 32], strides = [1, 1]} : vector<9x32xf32> to vector<1x32xf32>
    %416 = vector.broadcast %415 : vector<1x32xf32> to vector<8x32xf32>
    %417 = arith.mulf %414, %416 : vector<8x32xf32>
    %418 = arith.addf %411, %417 : vector<8x32xf32>
    %419 = vector.extract_strided_slice %413 {offsets = [8, 0], sizes = [8, 32], strides = [1, 1]} : vector<24x32xf32> to vector<8x32xf32>
    %420 = vector.extract_strided_slice %31 {offsets = [4, 0], sizes = [1, 32], strides = [1, 1]} : vector<9x32xf32> to vector<1x32xf32>
    %421 = vector.broadcast %420 : vector<1x32xf32> to vector<8x32xf32>
    %422 = arith.mulf %419, %421 : vector<8x32xf32>
    %423 = arith.addf %418, %422 : vector<8x32xf32>
    %424 = vector.extract_strided_slice %413 {offsets = [16, 0], sizes = [8, 32], strides = [1, 1]} : vector<24x32xf32> to vector<8x32xf32>
    %425 = vector.extract_strided_slice %31 {offsets = [5, 0], sizes = [1, 32], strides = [1, 1]} : vector<9x32xf32> to vector<1x32xf32>
    %426 = vector.broadcast %425 : vector<1x32xf32> to vector<8x32xf32>
    %427 = arith.mulf %424, %426 : vector<8x32xf32>
    %428 = arith.addf %423, %427 : vector<8x32xf32>
    %429 = vector.extract_strided_slice %29 {offsets = [208, 0], sizes = [16, 32], strides = [1, 1]} : vector<512x32xf32> to vector<16x32xf32>
    %cst_75 = arith.constant dense<0.000000e+00> : vector<24x32xf32>
    %430 = tpu.matmul %30, %429, %cst_75 {dimension_numbers = #tpu.dot_dimension_numbers<[1], [0], [0], [1], [0, 0, 1, 1], [], []>} : vector<24x16xf32>, vector<16x32xf32>, vector<24x32xf32> -> vector<24x32xf32>
    %431 = vector.extract_strided_slice %430 {offsets = [0, 0], sizes = [8, 32], strides = [1, 1]} : vector<24x32xf32> to vector<8x32xf32>
    %432 = vector.extract_strided_slice %31 {offsets = [6, 0], sizes = [1, 32], strides = [1, 1]} : vector<9x32xf32> to vector<1x32xf32>
    %433 = vector.broadcast %432 : vector<1x32xf32> to vector<8x32xf32>
    %434 = arith.mulf %431, %433 : vector<8x32xf32>
    %435 = arith.addf %428, %434 : vector<8x32xf32>
    %436 = vector.extract_strided_slice %430 {offsets = [8, 0], sizes = [8, 32], strides = [1, 1]} : vector<24x32xf32> to vector<8x32xf32>
    %437 = vector.extract_strided_slice %31 {offsets = [7, 0], sizes = [1, 32], strides = [1, 1]} : vector<9x32xf32> to vector<1x32xf32>
    %438 = vector.broadcast %437 : vector<1x32xf32> to vector<8x32xf32>
    %439 = arith.mulf %436, %438 : vector<8x32xf32>
    %440 = arith.addf %435, %439 : vector<8x32xf32>
    %441 = vector.extract_strided_slice %430 {offsets = [16, 0], sizes = [8, 32], strides = [1, 1]} : vector<24x32xf32> to vector<8x32xf32>
    %442 = vector.extract_strided_slice %31 {offsets = [8, 0], sizes = [1, 32], strides = [1, 1]} : vector<9x32xf32> to vector<1x32xf32>
    %443 = vector.broadcast %442 : vector<1x32xf32> to vector<8x32xf32>
    %444 = arith.mulf %441, %443 : vector<8x32xf32>
    %445 = arith.addf %440, %444 : vector<8x32xf32>
    %446 = vector.broadcast %32 : vector<1x32xf32> to vector<8x32xf32>
    %447 = arith.addf %445, %446 : vector<8x32xf32>
    %cst_76 = arith.constant 3.000000e+00 : f32
    %448 = vector.broadcast %cst_76 : f32 to vector<8x32xf32>
    %449 = arith.addf %447, %448 : vector<8x32xf32>
    %cst_77 = arith.constant 0.000000e+00 : f32
    %cst_78 = arith.constant 6.000000e+00 : f32
    %450 = vector.broadcast %cst_77 : f32 to vector<8x32xf32>
    %451 = arith.maximumf %450, %449 : vector<8x32xf32>
    %452 = vector.broadcast %cst_78 : f32 to vector<8x32xf32>
    %453 = arith.minimumf %452, %451 : vector<8x32xf32>
    %454 = arith.mulf %447, %453 : vector<8x32xf32>
    %cst_79 = arith.constant 0.166666672 : f32
    %455 = vector.broadcast %cst_79 : f32 to vector<8x32xf32>
    %456 = arith.mulf %454, %455 : vector<8x32xf32>
    %cst_80 = arith.constant 0.000000e+00 : f32
    %457 = vector.broadcast %cst_80 : f32 to vector<8x32xf32>
    %458 = vector.extract_strided_slice %29 {offsets = [208, 0], sizes = [16, 32], strides = [1, 1]} : vector<512x32xf32> to vector<16x32xf32>
    %cst_81 = arith.constant dense<0.000000e+00> : vector<24x32xf32>
    %459 = tpu.matmul %30, %458, %cst_81 {dimension_numbers = #tpu.dot_dimension_numbers<[1], [0], [0], [1], [0, 0, 1, 1], [], []>} : vector<24x16xf32>, vector<16x32xf32>, vector<24x32xf32> -> vector<24x32xf32>
    %460 = vector.extract_strided_slice %459 {offsets = [0, 0], sizes = [8, 32], strides = [1, 1]} : vector<24x32xf32> to vector<8x32xf32>
    %461 = vector.extract_strided_slice %31 {offsets = [0, 0], sizes = [1, 32], strides = [1, 1]} : vector<9x32xf32> to vector<1x32xf32>
    %462 = vector.broadcast %461 : vector<1x32xf32> to vector<8x32xf32>
    %463 = arith.mulf %460, %462 : vector<8x32xf32>
    %464 = arith.addf %457, %463 : vector<8x32xf32>
    %465 = vector.extract_strided_slice %459 {offsets = [8, 0], sizes = [8, 32], strides = [1, 1]} : vector<24x32xf32> to vector<8x32xf32>
    %466 = vector.extract_strided_slice %31 {offsets = [1, 0], sizes = [1, 32], strides = [1, 1]} : vector<9x32xf32> to vector<1x32xf32>
    %467 = vector.broadcast %466 : vector<1x32xf32> to vector<8x32xf32>
    %468 = arith.mulf %465, %467 : vector<8x32xf32>
    %469 = arith.addf %464, %468 : vector<8x32xf32>
    %470 = vector.extract_strided_slice %459 {offsets = [16, 0], sizes = [8, 32], strides = [1, 1]} : vector<24x32xf32> to vector<8x32xf32>
    %471 = vector.extract_strided_slice %31 {offsets = [2, 0], sizes = [1, 32], strides = [1, 1]} : vector<9x32xf32> to vector<1x32xf32>
    %472 = vector.broadcast %471 : vector<1x32xf32> to vector<8x32xf32>
    %473 = arith.mulf %470, %472 : vector<8x32xf32>
    %474 = arith.addf %469, %473 : vector<8x32xf32>
    %475 = vector.extract_strided_slice %29 {offsets = [224, 0], sizes = [16, 32], strides = [1, 1]} : vector<512x32xf32> to vector<16x32xf32>
    %cst_82 = arith.constant dense<0.000000e+00> : vector<24x32xf32>
    %476 = tpu.matmul %30, %475, %cst_82 {dimension_numbers = #tpu.dot_dimension_numbers<[1], [0], [0], [1], [0, 0, 1, 1], [], []>} : vector<24x16xf32>, vector<16x32xf32>, vector<24x32xf32> -> vector<24x32xf32>
    %477 = vector.extract_strided_slice %476 {offsets = [0, 0], sizes = [8, 32], strides = [1, 1]} : vector<24x32xf32> to vector<8x32xf32>
    %478 = vector.extract_strided_slice %31 {offsets = [3, 0], sizes = [1, 32], strides = [1, 1]} : vector<9x32xf32> to vector<1x32xf32>
    %479 = vector.broadcast %478 : vector<1x32xf32> to vector<8x32xf32>
    %480 = arith.mulf %477, %479 : vector<8x32xf32>
    %481 = arith.addf %474, %480 : vector<8x32xf32>
    %482 = vector.extract_strided_slice %476 {offsets = [8, 0], sizes = [8, 32], strides = [1, 1]} : vector<24x32xf32> to vector<8x32xf32>
    %483 = vector.extract_strided_slice %31 {offsets = [4, 0], sizes = [1, 32], strides = [1, 1]} : vector<9x32xf32> to vector<1x32xf32>
    %484 = vector.broadcast %483 : vector<1x32xf32> to vector<8x32xf32>
    %485 = arith.mulf %482, %484 : vector<8x32xf32>
    %486 = arith.addf %481, %485 : vector<8x32xf32>
    %487 = vector.extract_strided_slice %476 {offsets = [16, 0], sizes = [8, 32], strides = [1, 1]} : vector<24x32xf32> to vector<8x32xf32>
    %488 = vector.extract_strided_slice %31 {offsets = [5, 0], sizes = [1, 32], strides = [1, 1]} : vector<9x32xf32> to vector<1x32xf32>
    %489 = vector.broadcast %488 : vector<1x32xf32> to vector<8x32xf32>
    %490 = arith.mulf %487, %489 : vector<8x32xf32>
    %491 = arith.addf %486, %490 : vector<8x32xf32>
    %492 = vector.extract_strided_slice %29 {offsets = [240, 0], sizes = [16, 32], strides = [1, 1]} : vector<512x32xf32> to vector<16x32xf32>
    %cst_83 = arith.constant dense<0.000000e+00> : vector<24x32xf32>
    %493 = tpu.matmul %30, %492, %cst_83 {dimension_numbers = #tpu.dot_dimension_numbers<[1], [0], [0], [1], [0, 0, 1, 1], [], []>} : vector<24x16xf32>, vector<16x32xf32>, vector<24x32xf32> -> vector<24x32xf32>
    %494 = vector.extract_strided_slice %493 {offsets = [0, 0], sizes = [8, 32], strides = [1, 1]} : vector<24x32xf32> to vector<8x32xf32>
    %495 = vector.extract_strided_slice %31 {offsets = [6, 0], sizes = [1, 32], strides = [1, 1]} : vector<9x32xf32> to vector<1x32xf32>
    %496 = vector.broadcast %495 : vector<1x32xf32> to vector<8x32xf32>
    %497 = arith.mulf %494, %496 : vector<8x32xf32>
    %498 = arith.addf %491, %497 : vector<8x32xf32>
    %499 = vector.extract_strided_slice %493 {offsets = [8, 0], sizes = [8, 32], strides = [1, 1]} : vector<24x32xf32> to vector<8x32xf32>
    %500 = vector.extract_strided_slice %31 {offsets = [7, 0], sizes = [1, 32], strides = [1, 1]} : vector<9x32xf32> to vector<1x32xf32>
    %501 = vector.broadcast %500 : vector<1x32xf32> to vector<8x32xf32>
    %502 = arith.mulf %499, %501 : vector<8x32xf32>
    %503 = arith.addf %498, %502 : vector<8x32xf32>
    %504 = vector.extract_strided_slice %493 {offsets = [16, 0], sizes = [8, 32], strides = [1, 1]} : vector<24x32xf32> to vector<8x32xf32>
    %505 = vector.extract_strided_slice %31 {offsets = [8, 0], sizes = [1, 32], strides = [1, 1]} : vector<9x32xf32> to vector<1x32xf32>
    %506 = vector.broadcast %505 : vector<1x32xf32> to vector<8x32xf32>
    %507 = arith.mulf %504, %506 : vector<8x32xf32>
    %508 = arith.addf %503, %507 : vector<8x32xf32>
    %509 = vector.broadcast %32 : vector<1x32xf32> to vector<8x32xf32>
    %510 = arith.addf %508, %509 : vector<8x32xf32>
    %cst_84 = arith.constant 3.000000e+00 : f32
    %511 = vector.broadcast %cst_84 : f32 to vector<8x32xf32>
    %512 = arith.addf %510, %511 : vector<8x32xf32>
    %cst_85 = arith.constant 0.000000e+00 : f32
    %cst_86 = arith.constant 6.000000e+00 : f32
    %513 = vector.broadcast %cst_85 : f32 to vector<8x32xf32>
    %514 = arith.maximumf %513, %512 : vector<8x32xf32>
    %515 = vector.broadcast %cst_86 : f32 to vector<8x32xf32>
    %516 = arith.minimumf %515, %514 : vector<8x32xf32>
    %517 = arith.mulf %510, %516 : vector<8x32xf32>
    %cst_87 = arith.constant 0.166666672 : f32
    %518 = vector.broadcast %cst_87 : f32 to vector<8x32xf32>
    %519 = arith.mulf %517, %518 : vector<8x32xf32>
    %cst_88 = arith.constant 0.000000e+00 : f32
    %520 = vector.broadcast %cst_88 : f32 to vector<8x32xf32>
    %521 = vector.extract_strided_slice %29 {offsets = [240, 0], sizes = [16, 32], strides = [1, 1]} : vector<512x32xf32> to vector<16x32xf32>
    %cst_89 = arith.constant dense<0.000000e+00> : vector<24x32xf32>
    %522 = tpu.matmul %30, %521, %cst_89 {dimension_numbers = #tpu.dot_dimension_numbers<[1], [0], [0], [1], [0, 0, 1, 1], [], []>} : vector<24x16xf32>, vector<16x32xf32>, vector<24x32xf32> -> vector<24x32xf32>
    %523 = vector.extract_strided_slice %522 {offsets = [0, 0], sizes = [8, 32], strides = [1, 1]} : vector<24x32xf32> to vector<8x32xf32>
    %524 = vector.extract_strided_slice %31 {offsets = [0, 0], sizes = [1, 32], strides = [1, 1]} : vector<9x32xf32> to vector<1x32xf32>
    %525 = vector.broadcast %524 : vector<1x32xf32> to vector<8x32xf32>
    %526 = arith.mulf %523, %525 : vector<8x32xf32>
    %527 = arith.addf %520, %526 : vector<8x32xf32>
    %528 = vector.extract_strided_slice %522 {offsets = [8, 0], sizes = [8, 32], strides = [1, 1]} : vector<24x32xf32> to vector<8x32xf32>
    %529 = vector.extract_strided_slice %31 {offsets = [1, 0], sizes = [1, 32], strides = [1, 1]} : vector<9x32xf32> to vector<1x32xf32>
    %530 = vector.broadcast %529 : vector<1x32xf32> to vector<8x32xf32>
    %531 = arith.mulf %528, %530 : vector<8x32xf32>
    %532 = arith.addf %527, %531 : vector<8x32xf32>
    %533 = vector.extract_strided_slice %522 {offsets = [16, 0], sizes = [8, 32], strides = [1, 1]} : vector<24x32xf32> to vector<8x32xf32>
    %534 = vector.extract_strided_slice %31 {offsets = [2, 0], sizes = [1, 32], strides = [1, 1]} : vector<9x32xf32> to vector<1x32xf32>
    %535 = vector.broadcast %534 : vector<1x32xf32> to vector<8x32xf32>
    %536 = arith.mulf %533, %535 : vector<8x32xf32>
    %537 = arith.addf %532, %536 : vector<8x32xf32>
    %538 = vector.extract_strided_slice %29 {offsets = [256, 0], sizes = [16, 32], strides = [1, 1]} : vector<512x32xf32> to vector<16x32xf32>
    %cst_90 = arith.constant dense<0.000000e+00> : vector<24x32xf32>
    %539 = tpu.matmul %30, %538, %cst_90 {dimension_numbers = #tpu.dot_dimension_numbers<[1], [0], [0], [1], [0, 0, 1, 1], [], []>} : vector<24x16xf32>, vector<16x32xf32>, vector<24x32xf32> -> vector<24x32xf32>
    %540 = vector.extract_strided_slice %539 {offsets = [0, 0], sizes = [8, 32], strides = [1, 1]} : vector<24x32xf32> to vector<8x32xf32>
    %541 = vector.extract_strided_slice %31 {offsets = [3, 0], sizes = [1, 32], strides = [1, 1]} : vector<9x32xf32> to vector<1x32xf32>
    %542 = vector.broadcast %541 : vector<1x32xf32> to vector<8x32xf32>
    %543 = arith.mulf %540, %542 : vector<8x32xf32>
    %544 = arith.addf %537, %543 : vector<8x32xf32>
    %545 = vector.extract_strided_slice %539 {offsets = [8, 0], sizes = [8, 32], strides = [1, 1]} : vector<24x32xf32> to vector<8x32xf32>
    %546 = vector.extract_strided_slice %31 {offsets = [4, 0], sizes = [1, 32], strides = [1, 1]} : vector<9x32xf32> to vector<1x32xf32>
    %547 = vector.broadcast %546 : vector<1x32xf32> to vector<8x32xf32>
    %548 = arith.mulf %545, %547 : vector<8x32xf32>
    %549 = arith.addf %544, %548 : vector<8x32xf32>
    %550 = vector.extract_strided_slice %539 {offsets = [16, 0], sizes = [8, 32], strides = [1, 1]} : vector<24x32xf32> to vector<8x32xf32>
    %551 = vector.extract_strided_slice %31 {offsets = [5, 0], sizes = [1, 32], strides = [1, 1]} : vector<9x32xf32> to vector<1x32xf32>
    %552 = vector.broadcast %551 : vector<1x32xf32> to vector<8x32xf32>
    %553 = arith.mulf %550, %552 : vector<8x32xf32>
    %554 = arith.addf %549, %553 : vector<8x32xf32>
    %555 = vector.extract_strided_slice %29 {offsets = [272, 0], sizes = [16, 32], strides = [1, 1]} : vector<512x32xf32> to vector<16x32xf32>
    %cst_91 = arith.constant dense<0.000000e+00> : vector<24x32xf32>
    %556 = tpu.matmul %30, %555, %cst_91 {dimension_numbers = #tpu.dot_dimension_numbers<[1], [0], [0], [1], [0, 0, 1, 1], [], []>} : vector<24x16xf32>, vector<16x32xf32>, vector<24x32xf32> -> vector<24x32xf32>
    %557 = vector.extract_strided_slice %556 {offsets = [0, 0], sizes = [8, 32], strides = [1, 1]} : vector<24x32xf32> to vector<8x32xf32>
    %558 = vector.extract_strided_slice %31 {offsets = [6, 0], sizes = [1, 32], strides = [1, 1]} : vector<9x32xf32> to vector<1x32xf32>
    %559 = vector.broadcast %558 : vector<1x32xf32> to vector<8x32xf32>
    %560 = arith.mulf %557, %559 : vector<8x32xf32>
    %561 = arith.addf %554, %560 : vector<8x32xf32>
    %562 = vector.extract_strided_slice %556 {offsets = [8, 0], sizes = [8, 32], strides = [1, 1]} : vector<24x32xf32> to vector<8x32xf32>
    %563 = vector.extract_strided_slice %31 {offsets = [7, 0], sizes = [1, 32], strides = [1, 1]} : vector<9x32xf32> to vector<1x32xf32>
    %564 = vector.broadcast %563 : vector<1x32xf32> to vector<8x32xf32>
    %565 = arith.mulf %562, %564 : vector<8x32xf32>
    %566 = arith.addf %561, %565 : vector<8x32xf32>
    %567 = vector.extract_strided_slice %556 {offsets = [16, 0], sizes = [8, 32], strides = [1, 1]} : vector<24x32xf32> to vector<8x32xf32>
    %568 = vector.extract_strided_slice %31 {offsets = [8, 0], sizes = [1, 32], strides = [1, 1]} : vector<9x32xf32> to vector<1x32xf32>
    %569 = vector.broadcast %568 : vector<1x32xf32> to vector<8x32xf32>
    %570 = arith.mulf %567, %569 : vector<8x32xf32>
    %571 = arith.addf %566, %570 : vector<8x32xf32>
    %572 = vector.broadcast %32 : vector<1x32xf32> to vector<8x32xf32>
    %573 = arith.addf %571, %572 : vector<8x32xf32>
    %cst_92 = arith.constant 3.000000e+00 : f32
    %574 = vector.broadcast %cst_92 : f32 to vector<8x32xf32>
    %575 = arith.addf %573, %574 : vector<8x32xf32>
    %cst_93 = arith.constant 0.000000e+00 : f32
    %cst_94 = arith.constant 6.000000e+00 : f32
    %576 = vector.broadcast %cst_93 : f32 to vector<8x32xf32>
    %577 = arith.maximumf %576, %575 : vector<8x32xf32>
    %578 = vector.broadcast %cst_94 : f32 to vector<8x32xf32>
    %579 = arith.minimumf %578, %577 : vector<8x32xf32>
    %580 = arith.mulf %573, %579 : vector<8x32xf32>
    %cst_95 = arith.constant 0.166666672 : f32
    %581 = vector.broadcast %cst_95 : f32 to vector<8x32xf32>
    %582 = arith.mulf %580, %581 : vector<8x32xf32>
    %cst_96 = arith.constant 0.000000e+00 : f32
    %583 = vector.broadcast %cst_96 : f32 to vector<8x32xf32>
    %584 = vector.extract_strided_slice %29 {offsets = [272, 0], sizes = [16, 32], strides = [1, 1]} : vector<512x32xf32> to vector<16x32xf32>
    %cst_97 = arith.constant dense<0.000000e+00> : vector<24x32xf32>
    %585 = tpu.matmul %30, %584, %cst_97 {dimension_numbers = #tpu.dot_dimension_numbers<[1], [0], [0], [1], [0, 0, 1, 1], [], []>} : vector<24x16xf32>, vector<16x32xf32>, vector<24x32xf32> -> vector<24x32xf32>
    %586 = vector.extract_strided_slice %585 {offsets = [0, 0], sizes = [8, 32], strides = [1, 1]} : vector<24x32xf32> to vector<8x32xf32>
    %587 = vector.extract_strided_slice %31 {offsets = [0, 0], sizes = [1, 32], strides = [1, 1]} : vector<9x32xf32> to vector<1x32xf32>
    %588 = vector.broadcast %587 : vector<1x32xf32> to vector<8x32xf32>
    %589 = arith.mulf %586, %588 : vector<8x32xf32>
    %590 = arith.addf %583, %589 : vector<8x32xf32>
    %591 = vector.extract_strided_slice %585 {offsets = [8, 0], sizes = [8, 32], strides = [1, 1]} : vector<24x32xf32> to vector<8x32xf32>
    %592 = vector.extract_strided_slice %31 {offsets = [1, 0], sizes = [1, 32], strides = [1, 1]} : vector<9x32xf32> to vector<1x32xf32>
    %593 = vector.broadcast %592 : vector<1x32xf32> to vector<8x32xf32>
    %594 = arith.mulf %591, %593 : vector<8x32xf32>
    %595 = arith.addf %590, %594 : vector<8x32xf32>
    %596 = vector.extract_strided_slice %585 {offsets = [16, 0], sizes = [8, 32], strides = [1, 1]} : vector<24x32xf32> to vector<8x32xf32>
    %597 = vector.extract_strided_slice %31 {offsets = [2, 0], sizes = [1, 32], strides = [1, 1]} : vector<9x32xf32> to vector<1x32xf32>
    %598 = vector.broadcast %597 : vector<1x32xf32> to vector<8x32xf32>
    %599 = arith.mulf %596, %598 : vector<8x32xf32>
    %600 = arith.addf %595, %599 : vector<8x32xf32>
    %601 = vector.extract_strided_slice %29 {offsets = [288, 0], sizes = [16, 32], strides = [1, 1]} : vector<512x32xf32> to vector<16x32xf32>
    %cst_98 = arith.constant dense<0.000000e+00> : vector<24x32xf32>
    %602 = tpu.matmul %30, %601, %cst_98 {dimension_numbers = #tpu.dot_dimension_numbers<[1], [0], [0], [1], [0, 0, 1, 1], [], []>} : vector<24x16xf32>, vector<16x32xf32>, vector<24x32xf32> -> vector<24x32xf32>
    %603 = vector.extract_strided_slice %602 {offsets = [0, 0], sizes = [8, 32], strides = [1, 1]} : vector<24x32xf32> to vector<8x32xf32>
    %604 = vector.extract_strided_slice %31 {offsets = [3, 0], sizes = [1, 32], strides = [1, 1]} : vector<9x32xf32> to vector<1x32xf32>
    %605 = vector.broadcast %604 : vector<1x32xf32> to vector<8x32xf32>
    %606 = arith.mulf %603, %605 : vector<8x32xf32>
    %607 = arith.addf %600, %606 : vector<8x32xf32>
    %608 = vector.extract_strided_slice %602 {offsets = [8, 0], sizes = [8, 32], strides = [1, 1]} : vector<24x32xf32> to vector<8x32xf32>
    %609 = vector.extract_strided_slice %31 {offsets = [4, 0], sizes = [1, 32], strides = [1, 1]} : vector<9x32xf32> to vector<1x32xf32>
    %610 = vector.broadcast %609 : vector<1x32xf32> to vector<8x32xf32>
    %611 = arith.mulf %608, %610 : vector<8x32xf32>
    %612 = arith.addf %607, %611 : vector<8x32xf32>
    %613 = vector.extract_strided_slice %602 {offsets = [16, 0], sizes = [8, 32], strides = [1, 1]} : vector<24x32xf32> to vector<8x32xf32>
    %614 = vector.extract_strided_slice %31 {offsets = [5, 0], sizes = [1, 32], strides = [1, 1]} : vector<9x32xf32> to vector<1x32xf32>
    %615 = vector.broadcast %614 : vector<1x32xf32> to vector<8x32xf32>
    %616 = arith.mulf %613, %615 : vector<8x32xf32>
    %617 = arith.addf %612, %616 : vector<8x32xf32>
    %618 = vector.extract_strided_slice %29 {offsets = [304, 0], sizes = [16, 32], strides = [1, 1]} : vector<512x32xf32> to vector<16x32xf32>
    %cst_99 = arith.constant dense<0.000000e+00> : vector<24x32xf32>
    %619 = tpu.matmul %30, %618, %cst_99 {dimension_numbers = #tpu.dot_dimension_numbers<[1], [0], [0], [1], [0, 0, 1, 1], [], []>} : vector<24x16xf32>, vector<16x32xf32>, vector<24x32xf32> -> vector<24x32xf32>
    %620 = vector.extract_strided_slice %619 {offsets = [0, 0], sizes = [8, 32], strides = [1, 1]} : vector<24x32xf32> to vector<8x32xf32>
    %621 = vector.extract_strided_slice %31 {offsets = [6, 0], sizes = [1, 32], strides = [1, 1]} : vector<9x32xf32> to vector<1x32xf32>
    %622 = vector.broadcast %621 : vector<1x32xf32> to vector<8x32xf32>
    %623 = arith.mulf %620, %622 : vector<8x32xf32>
    %624 = arith.addf %617, %623 : vector<8x32xf32>
    %625 = vector.extract_strided_slice %619 {offsets = [8, 0], sizes = [8, 32], strides = [1, 1]} : vector<24x32xf32> to vector<8x32xf32>
    %626 = vector.extract_strided_slice %31 {offsets = [7, 0], sizes = [1, 32], strides = [1, 1]} : vector<9x32xf32> to vector<1x32xf32>
    %627 = vector.broadcast %626 : vector<1x32xf32> to vector<8x32xf32>
    %628 = arith.mulf %625, %627 : vector<8x32xf32>
    %629 = arith.addf %624, %628 : vector<8x32xf32>
    %630 = vector.extract_strided_slice %619 {offsets = [16, 0], sizes = [8, 32], strides = [1, 1]} : vector<24x32xf32> to vector<8x32xf32>
    %631 = vector.extract_strided_slice %31 {offsets = [8, 0], sizes = [1, 32], strides = [1, 1]} : vector<9x32xf32> to vector<1x32xf32>
    %632 = vector.broadcast %631 : vector<1x32xf32> to vector<8x32xf32>
    %633 = arith.mulf %630, %632 : vector<8x32xf32>
    %634 = arith.addf %629, %633 : vector<8x32xf32>
    %635 = vector.broadcast %32 : vector<1x32xf32> to vector<8x32xf32>
    %636 = arith.addf %634, %635 : vector<8x32xf32>
    %cst_100 = arith.constant 3.000000e+00 : f32
    %637 = vector.broadcast %cst_100 : f32 to vector<8x32xf32>
    %638 = arith.addf %636, %637 : vector<8x32xf32>
    %cst_101 = arith.constant 0.000000e+00 : f32
    %cst_102 = arith.constant 6.000000e+00 : f32
    %639 = vector.broadcast %cst_101 : f32 to vector<8x32xf32>
    %640 = arith.maximumf %639, %638 : vector<8x32xf32>
    %641 = vector.broadcast %cst_102 : f32 to vector<8x32xf32>
    %642 = arith.minimumf %641, %640 : vector<8x32xf32>
    %643 = arith.mulf %636, %642 : vector<8x32xf32>
    %cst_103 = arith.constant 0.166666672 : f32
    %644 = vector.broadcast %cst_103 : f32 to vector<8x32xf32>
    %645 = arith.mulf %643, %644 : vector<8x32xf32>
    %cst_104 = arith.constant 0.000000e+00 : f32
    %646 = vector.broadcast %cst_104 : f32 to vector<8x32xf32>
    %647 = vector.extract_strided_slice %29 {offsets = [304, 0], sizes = [16, 32], strides = [1, 1]} : vector<512x32xf32> to vector<16x32xf32>
    %cst_105 = arith.constant dense<0.000000e+00> : vector<24x32xf32>
    %648 = tpu.matmul %30, %647, %cst_105 {dimension_numbers = #tpu.dot_dimension_numbers<[1], [0], [0], [1], [0, 0, 1, 1], [], []>} : vector<24x16xf32>, vector<16x32xf32>, vector<24x32xf32> -> vector<24x32xf32>
    %649 = vector.extract_strided_slice %648 {offsets = [0, 0], sizes = [8, 32], strides = [1, 1]} : vector<24x32xf32> to vector<8x32xf32>
    %650 = vector.extract_strided_slice %31 {offsets = [0, 0], sizes = [1, 32], strides = [1, 1]} : vector<9x32xf32> to vector<1x32xf32>
    %651 = vector.broadcast %650 : vector<1x32xf32> to vector<8x32xf32>
    %652 = arith.mulf %649, %651 : vector<8x32xf32>
    %653 = arith.addf %646, %652 : vector<8x32xf32>
    %654 = vector.extract_strided_slice %648 {offsets = [8, 0], sizes = [8, 32], strides = [1, 1]} : vector<24x32xf32> to vector<8x32xf32>
    %655 = vector.extract_strided_slice %31 {offsets = [1, 0], sizes = [1, 32], strides = [1, 1]} : vector<9x32xf32> to vector<1x32xf32>
    %656 = vector.broadcast %655 : vector<1x32xf32> to vector<8x32xf32>
    %657 = arith.mulf %654, %656 : vector<8x32xf32>
    %658 = arith.addf %653, %657 : vector<8x32xf32>
    %659 = vector.extract_strided_slice %648 {offsets = [16, 0], sizes = [8, 32], strides = [1, 1]} : vector<24x32xf32> to vector<8x32xf32>
    %660 = vector.extract_strided_slice %31 {offsets = [2, 0], sizes = [1, 32], strides = [1, 1]} : vector<9x32xf32> to vector<1x32xf32>
    %661 = vector.broadcast %660 : vector<1x32xf32> to vector<8x32xf32>
    %662 = arith.mulf %659, %661 : vector<8x32xf32>
    %663 = arith.addf %658, %662 : vector<8x32xf32>
    %664 = vector.extract_strided_slice %29 {offsets = [320, 0], sizes = [16, 32], strides = [1, 1]} : vector<512x32xf32> to vector<16x32xf32>
    %cst_106 = arith.constant dense<0.000000e+00> : vector<24x32xf32>
    %665 = tpu.matmul %30, %664, %cst_106 {dimension_numbers = #tpu.dot_dimension_numbers<[1], [0], [0], [1], [0, 0, 1, 1], [], []>} : vector<24x16xf32>, vector<16x32xf32>, vector<24x32xf32> -> vector<24x32xf32>
    %666 = vector.extract_strided_slice %665 {offsets = [0, 0], sizes = [8, 32], strides = [1, 1]} : vector<24x32xf32> to vector<8x32xf32>
    %667 = vector.extract_strided_slice %31 {offsets = [3, 0], sizes = [1, 32], strides = [1, 1]} : vector<9x32xf32> to vector<1x32xf32>
    %668 = vector.broadcast %667 : vector<1x32xf32> to vector<8x32xf32>
    %669 = arith.mulf %666, %668 : vector<8x32xf32>
    %670 = arith.addf %663, %669 : vector<8x32xf32>
    %671 = vector.extract_strided_slice %665 {offsets = [8, 0], sizes = [8, 32], strides = [1, 1]} : vector<24x32xf32> to vector<8x32xf32>
    %672 = vector.extract_strided_slice %31 {offsets = [4, 0], sizes = [1, 32], strides = [1, 1]} : vector<9x32xf32> to vector<1x32xf32>
    %673 = vector.broadcast %672 : vector<1x32xf32> to vector<8x32xf32>
    %674 = arith.mulf %671, %673 : vector<8x32xf32>
    %675 = arith.addf %670, %674 : vector<8x32xf32>
    %676 = vector.extract_strided_slice %665 {offsets = [16, 0], sizes = [8, 32], strides = [1, 1]} : vector<24x32xf32> to vector<8x32xf32>
    %677 = vector.extract_strided_slice %31 {offsets = [5, 0], sizes = [1, 32], strides = [1, 1]} : vector<9x32xf32> to vector<1x32xf32>
    %678 = vector.broadcast %677 : vector<1x32xf32> to vector<8x32xf32>
    %679 = arith.mulf %676, %678 : vector<8x32xf32>
    %680 = arith.addf %675, %679 : vector<8x32xf32>
    %681 = vector.extract_strided_slice %29 {offsets = [336, 0], sizes = [16, 32], strides = [1, 1]} : vector<512x32xf32> to vector<16x32xf32>
    %cst_107 = arith.constant dense<0.000000e+00> : vector<24x32xf32>
    %682 = tpu.matmul %30, %681, %cst_107 {dimension_numbers = #tpu.dot_dimension_numbers<[1], [0], [0], [1], [0, 0, 1, 1], [], []>} : vector<24x16xf32>, vector<16x32xf32>, vector<24x32xf32> -> vector<24x32xf32>
    %683 = vector.extract_strided_slice %682 {offsets = [0, 0], sizes = [8, 32], strides = [1, 1]} : vector<24x32xf32> to vector<8x32xf32>
    %684 = vector.extract_strided_slice %31 {offsets = [6, 0], sizes = [1, 32], strides = [1, 1]} : vector<9x32xf32> to vector<1x32xf32>
    %685 = vector.broadcast %684 : vector<1x32xf32> to vector<8x32xf32>
    %686 = arith.mulf %683, %685 : vector<8x32xf32>
    %687 = arith.addf %680, %686 : vector<8x32xf32>
    %688 = vector.extract_strided_slice %682 {offsets = [8, 0], sizes = [8, 32], strides = [1, 1]} : vector<24x32xf32> to vector<8x32xf32>
    %689 = vector.extract_strided_slice %31 {offsets = [7, 0], sizes = [1, 32], strides = [1, 1]} : vector<9x32xf32> to vector<1x32xf32>
    %690 = vector.broadcast %689 : vector<1x32xf32> to vector<8x32xf32>
    %691 = arith.mulf %688, %690 : vector<8x32xf32>
    %692 = arith.addf %687, %691 : vector<8x32xf32>
    %693 = vector.extract_strided_slice %682 {offsets = [16, 0], sizes = [8, 32], strides = [1, 1]} : vector<24x32xf32> to vector<8x32xf32>
    %694 = vector.extract_strided_slice %31 {offsets = [8, 0], sizes = [1, 32], strides = [1, 1]} : vector<9x32xf32> to vector<1x32xf32>
    %695 = vector.broadcast %694 : vector<1x32xf32> to vector<8x32xf32>
    %696 = arith.mulf %693, %695 : vector<8x32xf32>
    %697 = arith.addf %692, %696 : vector<8x32xf32>
    %698 = vector.broadcast %32 : vector<1x32xf32> to vector<8x32xf32>
    %699 = arith.addf %697, %698 : vector<8x32xf32>
    %cst_108 = arith.constant 3.000000e+00 : f32
    %700 = vector.broadcast %cst_108 : f32 to vector<8x32xf32>
    %701 = arith.addf %699, %700 : vector<8x32xf32>
    %cst_109 = arith.constant 0.000000e+00 : f32
    %cst_110 = arith.constant 6.000000e+00 : f32
    %702 = vector.broadcast %cst_109 : f32 to vector<8x32xf32>
    %703 = arith.maximumf %702, %701 : vector<8x32xf32>
    %704 = vector.broadcast %cst_110 : f32 to vector<8x32xf32>
    %705 = arith.minimumf %704, %703 : vector<8x32xf32>
    %706 = arith.mulf %699, %705 : vector<8x32xf32>
    %cst_111 = arith.constant 0.166666672 : f32
    %707 = vector.broadcast %cst_111 : f32 to vector<8x32xf32>
    %708 = arith.mulf %706, %707 : vector<8x32xf32>
    %cst_112 = arith.constant 0.000000e+00 : f32
    %709 = vector.broadcast %cst_112 : f32 to vector<8x32xf32>
    %710 = vector.extract_strided_slice %29 {offsets = [336, 0], sizes = [16, 32], strides = [1, 1]} : vector<512x32xf32> to vector<16x32xf32>
    %cst_113 = arith.constant dense<0.000000e+00> : vector<24x32xf32>
    %711 = tpu.matmul %30, %710, %cst_113 {dimension_numbers = #tpu.dot_dimension_numbers<[1], [0], [0], [1], [0, 0, 1, 1], [], []>} : vector<24x16xf32>, vector<16x32xf32>, vector<24x32xf32> -> vector<24x32xf32>
    %712 = vector.extract_strided_slice %711 {offsets = [0, 0], sizes = [8, 32], strides = [1, 1]} : vector<24x32xf32> to vector<8x32xf32>
    %713 = vector.extract_strided_slice %31 {offsets = [0, 0], sizes = [1, 32], strides = [1, 1]} : vector<9x32xf32> to vector<1x32xf32>
    %714 = vector.broadcast %713 : vector<1x32xf32> to vector<8x32xf32>
    %715 = arith.mulf %712, %714 : vector<8x32xf32>
    %716 = arith.addf %709, %715 : vector<8x32xf32>
    %717 = vector.extract_strided_slice %711 {offsets = [8, 0], sizes = [8, 32], strides = [1, 1]} : vector<24x32xf32> to vector<8x32xf32>
    %718 = vector.extract_strided_slice %31 {offsets = [1, 0], sizes = [1, 32], strides = [1, 1]} : vector<9x32xf32> to vector<1x32xf32>
    %719 = vector.broadcast %718 : vector<1x32xf32> to vector<8x32xf32>
    %720 = arith.mulf %717, %719 : vector<8x32xf32>
    %721 = arith.addf %716, %720 : vector<8x32xf32>
    %722 = vector.extract_strided_slice %711 {offsets = [16, 0], sizes = [8, 32], strides = [1, 1]} : vector<24x32xf32> to vector<8x32xf32>
    %723 = vector.extract_strided_slice %31 {offsets = [2, 0], sizes = [1, 32], strides = [1, 1]} : vector<9x32xf32> to vector<1x32xf32>
    %724 = vector.broadcast %723 : vector<1x32xf32> to vector<8x32xf32>
    %725 = arith.mulf %722, %724 : vector<8x32xf32>
    %726 = arith.addf %721, %725 : vector<8x32xf32>
    %727 = vector.extract_strided_slice %29 {offsets = [352, 0], sizes = [16, 32], strides = [1, 1]} : vector<512x32xf32> to vector<16x32xf32>
    %cst_114 = arith.constant dense<0.000000e+00> : vector<24x32xf32>
    %728 = tpu.matmul %30, %727, %cst_114 {dimension_numbers = #tpu.dot_dimension_numbers<[1], [0], [0], [1], [0, 0, 1, 1], [], []>} : vector<24x16xf32>, vector<16x32xf32>, vector<24x32xf32> -> vector<24x32xf32>
    %729 = vector.extract_strided_slice %728 {offsets = [0, 0], sizes = [8, 32], strides = [1, 1]} : vector<24x32xf32> to vector<8x32xf32>
    %730 = vector.extract_strided_slice %31 {offsets = [3, 0], sizes = [1, 32], strides = [1, 1]} : vector<9x32xf32> to vector<1x32xf32>
    %731 = vector.broadcast %730 : vector<1x32xf32> to vector<8x32xf32>
    %732 = arith.mulf %729, %731 : vector<8x32xf32>
    %733 = arith.addf %726, %732 : vector<8x32xf32>
    %734 = vector.extract_strided_slice %728 {offsets = [8, 0], sizes = [8, 32], strides = [1, 1]} : vector<24x32xf32> to vector<8x32xf32>
    %735 = vector.extract_strided_slice %31 {offsets = [4, 0], sizes = [1, 32], strides = [1, 1]} : vector<9x32xf32> to vector<1x32xf32>
    %736 = vector.broadcast %735 : vector<1x32xf32> to vector<8x32xf32>
    %737 = arith.mulf %734, %736 : vector<8x32xf32>
    %738 = arith.addf %733, %737 : vector<8x32xf32>
    %739 = vector.extract_strided_slice %728 {offsets = [16, 0], sizes = [8, 32], strides = [1, 1]} : vector<24x32xf32> to vector<8x32xf32>
    %740 = vector.extract_strided_slice %31 {offsets = [5, 0], sizes = [1, 32], strides = [1, 1]} : vector<9x32xf32> to vector<1x32xf32>
    %741 = vector.broadcast %740 : vector<1x32xf32> to vector<8x32xf32>
    %742 = arith.mulf %739, %741 : vector<8x32xf32>
    %743 = arith.addf %738, %742 : vector<8x32xf32>
    %744 = vector.extract_strided_slice %29 {offsets = [368, 0], sizes = [16, 32], strides = [1, 1]} : vector<512x32xf32> to vector<16x32xf32>
    %cst_115 = arith.constant dense<0.000000e+00> : vector<24x32xf32>
    %745 = tpu.matmul %30, %744, %cst_115 {dimension_numbers = #tpu.dot_dimension_numbers<[1], [0], [0], [1], [0, 0, 1, 1], [], []>} : vector<24x16xf32>, vector<16x32xf32>, vector<24x32xf32> -> vector<24x32xf32>
    %746 = vector.extract_strided_slice %745 {offsets = [0, 0], sizes = [8, 32], strides = [1, 1]} : vector<24x32xf32> to vector<8x32xf32>
    %747 = vector.extract_strided_slice %31 {offsets = [6, 0], sizes = [1, 32], strides = [1, 1]} : vector<9x32xf32> to vector<1x32xf32>
    %748 = vector.broadcast %747 : vector<1x32xf32> to vector<8x32xf32>
    %749 = arith.mulf %746, %748 : vector<8x32xf32>
    %750 = arith.addf %743, %749 : vector<8x32xf32>
    %751 = vector.extract_strided_slice %745 {offsets = [8, 0], sizes = [8, 32], strides = [1, 1]} : vector<24x32xf32> to vector<8x32xf32>
    %752 = vector.extract_strided_slice %31 {offsets = [7, 0], sizes = [1, 32], strides = [1, 1]} : vector<9x32xf32> to vector<1x32xf32>
    %753 = vector.broadcast %752 : vector<1x32xf32> to vector<8x32xf32>
    %754 = arith.mulf %751, %753 : vector<8x32xf32>
    %755 = arith.addf %750, %754 : vector<8x32xf32>
    %756 = vector.extract_strided_slice %745 {offsets = [16, 0], sizes = [8, 32], strides = [1, 1]} : vector<24x32xf32> to vector<8x32xf32>
    %757 = vector.extract_strided_slice %31 {offsets = [8, 0], sizes = [1, 32], strides = [1, 1]} : vector<9x32xf32> to vector<1x32xf32>
    %758 = vector.broadcast %757 : vector<1x32xf32> to vector<8x32xf32>
    %759 = arith.mulf %756, %758 : vector<8x32xf32>
    %760 = arith.addf %755, %759 : vector<8x32xf32>
    %761 = vector.broadcast %32 : vector<1x32xf32> to vector<8x32xf32>
    %762 = arith.addf %760, %761 : vector<8x32xf32>
    %cst_116 = arith.constant 3.000000e+00 : f32
    %763 = vector.broadcast %cst_116 : f32 to vector<8x32xf32>
    %764 = arith.addf %762, %763 : vector<8x32xf32>
    %cst_117 = arith.constant 0.000000e+00 : f32
    %cst_118 = arith.constant 6.000000e+00 : f32
    %765 = vector.broadcast %cst_117 : f32 to vector<8x32xf32>
    %766 = arith.maximumf %765, %764 : vector<8x32xf32>
    %767 = vector.broadcast %cst_118 : f32 to vector<8x32xf32>
    %768 = arith.minimumf %767, %766 : vector<8x32xf32>
    %769 = arith.mulf %762, %768 : vector<8x32xf32>
    %cst_119 = arith.constant 0.166666672 : f32
    %770 = vector.broadcast %cst_119 : f32 to vector<8x32xf32>
    %771 = arith.mulf %769, %770 : vector<8x32xf32>
    %cst_120 = arith.constant 0.000000e+00 : f32
    %772 = vector.broadcast %cst_120 : f32 to vector<8x32xf32>
    %773 = vector.extract_strided_slice %29 {offsets = [368, 0], sizes = [16, 32], strides = [1, 1]} : vector<512x32xf32> to vector<16x32xf32>
    %cst_121 = arith.constant dense<0.000000e+00> : vector<24x32xf32>
    %774 = tpu.matmul %30, %773, %cst_121 {dimension_numbers = #tpu.dot_dimension_numbers<[1], [0], [0], [1], [0, 0, 1, 1], [], []>} : vector<24x16xf32>, vector<16x32xf32>, vector<24x32xf32> -> vector<24x32xf32>
    %775 = vector.extract_strided_slice %774 {offsets = [0, 0], sizes = [8, 32], strides = [1, 1]} : vector<24x32xf32> to vector<8x32xf32>
    %776 = vector.extract_strided_slice %31 {offsets = [0, 0], sizes = [1, 32], strides = [1, 1]} : vector<9x32xf32> to vector<1x32xf32>
    %777 = vector.broadcast %776 : vector<1x32xf32> to vector<8x32xf32>
    %778 = arith.mulf %775, %777 : vector<8x32xf32>
    %779 = arith.addf %772, %778 : vector<8x32xf32>
    %780 = vector.extract_strided_slice %774 {offsets = [8, 0], sizes = [8, 32], strides = [1, 1]} : vector<24x32xf32> to vector<8x32xf32>
    %781 = vector.extract_strided_slice %31 {offsets = [1, 0], sizes = [1, 32], strides = [1, 1]} : vector<9x32xf32> to vector<1x32xf32>
    %782 = vector.broadcast %781 : vector<1x32xf32> to vector<8x32xf32>
    %783 = arith.mulf %780, %782 : vector<8x32xf32>
    %784 = arith.addf %779, %783 : vector<8x32xf32>
    %785 = vector.extract_strided_slice %774 {offsets = [16, 0], sizes = [8, 32], strides = [1, 1]} : vector<24x32xf32> to vector<8x32xf32>
    %786 = vector.extract_strided_slice %31 {offsets = [2, 0], sizes = [1, 32], strides = [1, 1]} : vector<9x32xf32> to vector<1x32xf32>
    %787 = vector.broadcast %786 : vector<1x32xf32> to vector<8x32xf32>
    %788 = arith.mulf %785, %787 : vector<8x32xf32>
    %789 = arith.addf %784, %788 : vector<8x32xf32>
    %790 = vector.extract_strided_slice %29 {offsets = [384, 0], sizes = [16, 32], strides = [1, 1]} : vector<512x32xf32> to vector<16x32xf32>
    %cst_122 = arith.constant dense<0.000000e+00> : vector<24x32xf32>
    %791 = tpu.matmul %30, %790, %cst_122 {dimension_numbers = #tpu.dot_dimension_numbers<[1], [0], [0], [1], [0, 0, 1, 1], [], []>} : vector<24x16xf32>, vector<16x32xf32>, vector<24x32xf32> -> vector<24x32xf32>
    %792 = vector.extract_strided_slice %791 {offsets = [0, 0], sizes = [8, 32], strides = [1, 1]} : vector<24x32xf32> to vector<8x32xf32>
    %793 = vector.extract_strided_slice %31 {offsets = [3, 0], sizes = [1, 32], strides = [1, 1]} : vector<9x32xf32> to vector<1x32xf32>
    %794 = vector.broadcast %793 : vector<1x32xf32> to vector<8x32xf32>
    %795 = arith.mulf %792, %794 : vector<8x32xf32>
    %796 = arith.addf %789, %795 : vector<8x32xf32>
    %797 = vector.extract_strided_slice %791 {offsets = [8, 0], sizes = [8, 32], strides = [1, 1]} : vector<24x32xf32> to vector<8x32xf32>
    %798 = vector.extract_strided_slice %31 {offsets = [4, 0], sizes = [1, 32], strides = [1, 1]} : vector<9x32xf32> to vector<1x32xf32>
    %799 = vector.broadcast %798 : vector<1x32xf32> to vector<8x32xf32>
    %800 = arith.mulf %797, %799 : vector<8x32xf32>
    %801 = arith.addf %796, %800 : vector<8x32xf32>
    %802 = vector.extract_strided_slice %791 {offsets = [16, 0], sizes = [8, 32], strides = [1, 1]} : vector<24x32xf32> to vector<8x32xf32>
    %803 = vector.extract_strided_slice %31 {offsets = [5, 0], sizes = [1, 32], strides = [1, 1]} : vector<9x32xf32> to vector<1x32xf32>
    %804 = vector.broadcast %803 : vector<1x32xf32> to vector<8x32xf32>
    %805 = arith.mulf %802, %804 : vector<8x32xf32>
    %806 = arith.addf %801, %805 : vector<8x32xf32>
    %807 = vector.extract_strided_slice %29 {offsets = [400, 0], sizes = [16, 32], strides = [1, 1]} : vector<512x32xf32> to vector<16x32xf32>
    %cst_123 = arith.constant dense<0.000000e+00> : vector<24x32xf32>
    %808 = tpu.matmul %30, %807, %cst_123 {dimension_numbers = #tpu.dot_dimension_numbers<[1], [0], [0], [1], [0, 0, 1, 1], [], []>} : vector<24x16xf32>, vector<16x32xf32>, vector<24x32xf32> -> vector<24x32xf32>
    %809 = vector.extract_strided_slice %808 {offsets = [0, 0], sizes = [8, 32], strides = [1, 1]} : vector<24x32xf32> to vector<8x32xf32>
    %810 = vector.extract_strided_slice %31 {offsets = [6, 0], sizes = [1, 32], strides = [1, 1]} : vector<9x32xf32> to vector<1x32xf32>
    %811 = vector.broadcast %810 : vector<1x32xf32> to vector<8x32xf32>
    %812 = arith.mulf %809, %811 : vector<8x32xf32>
    %813 = arith.addf %806, %812 : vector<8x32xf32>
    %814 = vector.extract_strided_slice %808 {offsets = [8, 0], sizes = [8, 32], strides = [1, 1]} : vector<24x32xf32> to vector<8x32xf32>
    %815 = vector.extract_strided_slice %31 {offsets = [7, 0], sizes = [1, 32], strides = [1, 1]} : vector<9x32xf32> to vector<1x32xf32>
    %816 = vector.broadcast %815 : vector<1x32xf32> to vector<8x32xf32>
    %817 = arith.mulf %814, %816 : vector<8x32xf32>
    %818 = arith.addf %813, %817 : vector<8x32xf32>
    %819 = vector.extract_strided_slice %808 {offsets = [16, 0], sizes = [8, 32], strides = [1, 1]} : vector<24x32xf32> to vector<8x32xf32>
    %820 = vector.extract_strided_slice %31 {offsets = [8, 0], sizes = [1, 32], strides = [1, 1]} : vector<9x32xf32> to vector<1x32xf32>
    %821 = vector.broadcast %820 : vector<1x32xf32> to vector<8x32xf32>
    %822 = arith.mulf %819, %821 : vector<8x32xf32>
    %823 = arith.addf %818, %822 : vector<8x32xf32>
    %824 = vector.broadcast %32 : vector<1x32xf32> to vector<8x32xf32>
    %825 = arith.addf %823, %824 : vector<8x32xf32>
    %cst_124 = arith.constant 3.000000e+00 : f32
    %826 = vector.broadcast %cst_124 : f32 to vector<8x32xf32>
    %827 = arith.addf %825, %826 : vector<8x32xf32>
    %cst_125 = arith.constant 0.000000e+00 : f32
    %cst_126 = arith.constant 6.000000e+00 : f32
    %828 = vector.broadcast %cst_125 : f32 to vector<8x32xf32>
    %829 = arith.maximumf %828, %827 : vector<8x32xf32>
    %830 = vector.broadcast %cst_126 : f32 to vector<8x32xf32>
    %831 = arith.minimumf %830, %829 : vector<8x32xf32>
    %832 = arith.mulf %825, %831 : vector<8x32xf32>
    %cst_127 = arith.constant 0.166666672 : f32
    %833 = vector.broadcast %cst_127 : f32 to vector<8x32xf32>
    %834 = arith.mulf %832, %833 : vector<8x32xf32>
    %cst_128 = arith.constant 0.000000e+00 : f32
    %835 = vector.broadcast %cst_128 : f32 to vector<8x32xf32>
    %836 = vector.extract_strided_slice %29 {offsets = [400, 0], sizes = [16, 32], strides = [1, 1]} : vector<512x32xf32> to vector<16x32xf32>
    %cst_129 = arith.constant dense<0.000000e+00> : vector<24x32xf32>
    %837 = tpu.matmul %30, %836, %cst_129 {dimension_numbers = #tpu.dot_dimension_numbers<[1], [0], [0], [1], [0, 0, 1, 1], [], []>} : vector<24x16xf32>, vector<16x32xf32>, vector<24x32xf32> -> vector<24x32xf32>
    %838 = vector.extract_strided_slice %837 {offsets = [0, 0], sizes = [8, 32], strides = [1, 1]} : vector<24x32xf32> to vector<8x32xf32>
    %839 = vector.extract_strided_slice %31 {offsets = [0, 0], sizes = [1, 32], strides = [1, 1]} : vector<9x32xf32> to vector<1x32xf32>
    %840 = vector.broadcast %839 : vector<1x32xf32> to vector<8x32xf32>
    %841 = arith.mulf %838, %840 : vector<8x32xf32>
    %842 = arith.addf %835, %841 : vector<8x32xf32>
    %843 = vector.extract_strided_slice %837 {offsets = [8, 0], sizes = [8, 32], strides = [1, 1]} : vector<24x32xf32> to vector<8x32xf32>
    %844 = vector.extract_strided_slice %31 {offsets = [1, 0], sizes = [1, 32], strides = [1, 1]} : vector<9x32xf32> to vector<1x32xf32>
    %845 = vector.broadcast %844 : vector<1x32xf32> to vector<8x32xf32>
    %846 = arith.mulf %843, %845 : vector<8x32xf32>
    %847 = arith.addf %842, %846 : vector<8x32xf32>
    %848 = vector.extract_strided_slice %837 {offsets = [16, 0], sizes = [8, 32], strides = [1, 1]} : vector<24x32xf32> to vector<8x32xf32>
    %849 = vector.extract_strided_slice %31 {offsets = [2, 0], sizes = [1, 32], strides = [1, 1]} : vector<9x32xf32> to vector<1x32xf32>
    %850 = vector.broadcast %849 : vector<1x32xf32> to vector<8x32xf32>
    %851 = arith.mulf %848, %850 : vector<8x32xf32>
    %852 = arith.addf %847, %851 : vector<8x32xf32>
    %853 = vector.extract_strided_slice %29 {offsets = [416, 0], sizes = [16, 32], strides = [1, 1]} : vector<512x32xf32> to vector<16x32xf32>
    %cst_130 = arith.constant dense<0.000000e+00> : vector<24x32xf32>
    %854 = tpu.matmul %30, %853, %cst_130 {dimension_numbers = #tpu.dot_dimension_numbers<[1], [0], [0], [1], [0, 0, 1, 1], [], []>} : vector<24x16xf32>, vector<16x32xf32>, vector<24x32xf32> -> vector<24x32xf32>
    %855 = vector.extract_strided_slice %854 {offsets = [0, 0], sizes = [8, 32], strides = [1, 1]} : vector<24x32xf32> to vector<8x32xf32>
    %856 = vector.extract_strided_slice %31 {offsets = [3, 0], sizes = [1, 32], strides = [1, 1]} : vector<9x32xf32> to vector<1x32xf32>
    %857 = vector.broadcast %856 : vector<1x32xf32> to vector<8x32xf32>
    %858 = arith.mulf %855, %857 : vector<8x32xf32>
    %859 = arith.addf %852, %858 : vector<8x32xf32>
    %860 = vector.extract_strided_slice %854 {offsets = [8, 0], sizes = [8, 32], strides = [1, 1]} : vector<24x32xf32> to vector<8x32xf32>
    %861 = vector.extract_strided_slice %31 {offsets = [4, 0], sizes = [1, 32], strides = [1, 1]} : vector<9x32xf32> to vector<1x32xf32>
    %862 = vector.broadcast %861 : vector<1x32xf32> to vector<8x32xf32>
    %863 = arith.mulf %860, %862 : vector<8x32xf32>
    %864 = arith.addf %859, %863 : vector<8x32xf32>
    %865 = vector.extract_strided_slice %854 {offsets = [16, 0], sizes = [8, 32], strides = [1, 1]} : vector<24x32xf32> to vector<8x32xf32>
    %866 = vector.extract_strided_slice %31 {offsets = [5, 0], sizes = [1, 32], strides = [1, 1]} : vector<9x32xf32> to vector<1x32xf32>
    %867 = vector.broadcast %866 : vector<1x32xf32> to vector<8x32xf32>
    %868 = arith.mulf %865, %867 : vector<8x32xf32>
    %869 = arith.addf %864, %868 : vector<8x32xf32>
    %870 = vector.extract_strided_slice %29 {offsets = [432, 0], sizes = [16, 32], strides = [1, 1]} : vector<512x32xf32> to vector<16x32xf32>
    %cst_131 = arith.constant dense<0.000000e+00> : vector<24x32xf32>
    %871 = tpu.matmul %30, %870, %cst_131 {dimension_numbers = #tpu.dot_dimension_numbers<[1], [0], [0], [1], [0, 0, 1, 1], [], []>} : vector<24x16xf32>, vector<16x32xf32>, vector<24x32xf32> -> vector<24x32xf32>
    %872 = vector.extract_strided_slice %871 {offsets = [0, 0], sizes = [8, 32], strides = [1, 1]} : vector<24x32xf32> to vector<8x32xf32>
    %873 = vector.extract_strided_slice %31 {offsets = [6, 0], sizes = [1, 32], strides = [1, 1]} : vector<9x32xf32> to vector<1x32xf32>
    %874 = vector.broadcast %873 : vector<1x32xf32> to vector<8x32xf32>
    %875 = arith.mulf %872, %874 : vector<8x32xf32>
    %876 = arith.addf %869, %875 : vector<8x32xf32>
    %877 = vector.extract_strided_slice %871 {offsets = [8, 0], sizes = [8, 32], strides = [1, 1]} : vector<24x32xf32> to vector<8x32xf32>
    %878 = vector.extract_strided_slice %31 {offsets = [7, 0], sizes = [1, 32], strides = [1, 1]} : vector<9x32xf32> to vector<1x32xf32>
    %879 = vector.broadcast %878 : vector<1x32xf32> to vector<8x32xf32>
    %880 = arith.mulf %877, %879 : vector<8x32xf32>
    %881 = arith.addf %876, %880 : vector<8x32xf32>
    %882 = vector.extract_strided_slice %871 {offsets = [16, 0], sizes = [8, 32], strides = [1, 1]} : vector<24x32xf32> to vector<8x32xf32>
    %883 = vector.extract_strided_slice %31 {offsets = [8, 0], sizes = [1, 32], strides = [1, 1]} : vector<9x32xf32> to vector<1x32xf32>
    %884 = vector.broadcast %883 : vector<1x32xf32> to vector<8x32xf32>
    %885 = arith.mulf %882, %884 : vector<8x32xf32>
    %886 = arith.addf %881, %885 : vector<8x32xf32>
    %887 = vector.broadcast %32 : vector<1x32xf32> to vector<8x32xf32>
    %888 = arith.addf %886, %887 : vector<8x32xf32>
    %cst_132 = arith.constant 3.000000e+00 : f32
    %889 = vector.broadcast %cst_132 : f32 to vector<8x32xf32>
    %890 = arith.addf %888, %889 : vector<8x32xf32>
    %cst_133 = arith.constant 0.000000e+00 : f32
    %cst_134 = arith.constant 6.000000e+00 : f32
    %891 = vector.broadcast %cst_133 : f32 to vector<8x32xf32>
    %892 = arith.maximumf %891, %890 : vector<8x32xf32>
    %893 = vector.broadcast %cst_134 : f32 to vector<8x32xf32>
    %894 = arith.minimumf %893, %892 : vector<8x32xf32>
    %895 = arith.mulf %888, %894 : vector<8x32xf32>
    %cst_135 = arith.constant 0.166666672 : f32
    %896 = vector.broadcast %cst_135 : f32 to vector<8x32xf32>
    %897 = arith.mulf %895, %896 : vector<8x32xf32>
    %cst_136 = arith.constant 0.000000e+00 : f32
    %898 = vector.broadcast %cst_136 : f32 to vector<8x32xf32>
    %899 = vector.extract_strided_slice %29 {offsets = [432, 0], sizes = [16, 32], strides = [1, 1]} : vector<512x32xf32> to vector<16x32xf32>
    %cst_137 = arith.constant dense<0.000000e+00> : vector<24x32xf32>
    %900 = tpu.matmul %30, %899, %cst_137 {dimension_numbers = #tpu.dot_dimension_numbers<[1], [0], [0], [1], [0, 0, 1, 1], [], []>} : vector<24x16xf32>, vector<16x32xf32>, vector<24x32xf32> -> vector<24x32xf32>
    %901 = vector.extract_strided_slice %900 {offsets = [0, 0], sizes = [8, 32], strides = [1, 1]} : vector<24x32xf32> to vector<8x32xf32>
    %902 = vector.extract_strided_slice %31 {offsets = [0, 0], sizes = [1, 32], strides = [1, 1]} : vector<9x32xf32> to vector<1x32xf32>
    %903 = vector.broadcast %902 : vector<1x32xf32> to vector<8x32xf32>
    %904 = arith.mulf %901, %903 : vector<8x32xf32>
    %905 = arith.addf %898, %904 : vector<8x32xf32>
    %906 = vector.extract_strided_slice %900 {offsets = [8, 0], sizes = [8, 32], strides = [1, 1]} : vector<24x32xf32> to vector<8x32xf32>
    %907 = vector.extract_strided_slice %31 {offsets = [1, 0], sizes = [1, 32], strides = [1, 1]} : vector<9x32xf32> to vector<1x32xf32>
    %908 = vector.broadcast %907 : vector<1x32xf32> to vector<8x32xf32>
    %909 = arith.mulf %906, %908 : vector<8x32xf32>
    %910 = arith.addf %905, %909 : vector<8x32xf32>
    %911 = vector.extract_strided_slice %900 {offsets = [16, 0], sizes = [8, 32], strides = [1, 1]} : vector<24x32xf32> to vector<8x32xf32>
    %912 = vector.extract_strided_slice %31 {offsets = [2, 0], sizes = [1, 32], strides = [1, 1]} : vector<9x32xf32> to vector<1x32xf32>
    %913 = vector.broadcast %912 : vector<1x32xf32> to vector<8x32xf32>
    %914 = arith.mulf %911, %913 : vector<8x32xf32>
    %915 = arith.addf %910, %914 : vector<8x32xf32>
    %916 = vector.extract_strided_slice %29 {offsets = [448, 0], sizes = [16, 32], strides = [1, 1]} : vector<512x32xf32> to vector<16x32xf32>
    %cst_138 = arith.constant dense<0.000000e+00> : vector<24x32xf32>
    %917 = tpu.matmul %30, %916, %cst_138 {dimension_numbers = #tpu.dot_dimension_numbers<[1], [0], [0], [1], [0, 0, 1, 1], [], []>} : vector<24x16xf32>, vector<16x32xf32>, vector<24x32xf32> -> vector<24x32xf32>
    %918 = vector.extract_strided_slice %917 {offsets = [0, 0], sizes = [8, 32], strides = [1, 1]} : vector<24x32xf32> to vector<8x32xf32>
    %919 = vector.extract_strided_slice %31 {offsets = [3, 0], sizes = [1, 32], strides = [1, 1]} : vector<9x32xf32> to vector<1x32xf32>
    %920 = vector.broadcast %919 : vector<1x32xf32> to vector<8x32xf32>
    %921 = arith.mulf %918, %920 : vector<8x32xf32>
    %922 = arith.addf %915, %921 : vector<8x32xf32>
    %923 = vector.extract_strided_slice %917 {offsets = [8, 0], sizes = [8, 32], strides = [1, 1]} : vector<24x32xf32> to vector<8x32xf32>
    %924 = vector.extract_strided_slice %31 {offsets = [4, 0], sizes = [1, 32], strides = [1, 1]} : vector<9x32xf32> to vector<1x32xf32>
    %925 = vector.broadcast %924 : vector<1x32xf32> to vector<8x32xf32>
    %926 = arith.mulf %923, %925 : vector<8x32xf32>
    %927 = arith.addf %922, %926 : vector<8x32xf32>
    %928 = vector.extract_strided_slice %917 {offsets = [16, 0], sizes = [8, 32], strides = [1, 1]} : vector<24x32xf32> to vector<8x32xf32>
    %929 = vector.extract_strided_slice %31 {offsets = [5, 0], sizes = [1, 32], strides = [1, 1]} : vector<9x32xf32> to vector<1x32xf32>
    %930 = vector.broadcast %929 : vector<1x32xf32> to vector<8x32xf32>
    %931 = arith.mulf %928, %930 : vector<8x32xf32>
    %932 = arith.addf %927, %931 : vector<8x32xf32>
    %933 = vector.extract_strided_slice %29 {offsets = [464, 0], sizes = [16, 32], strides = [1, 1]} : vector<512x32xf32> to vector<16x32xf32>
    %cst_139 = arith.constant dense<0.000000e+00> : vector<24x32xf32>
    %934 = tpu.matmul %30, %933, %cst_139 {dimension_numbers = #tpu.dot_dimension_numbers<[1], [0], [0], [1], [0, 0, 1, 1], [], []>} : vector<24x16xf32>, vector<16x32xf32>, vector<24x32xf32> -> vector<24x32xf32>
    %935 = vector.extract_strided_slice %934 {offsets = [0, 0], sizes = [8, 32], strides = [1, 1]} : vector<24x32xf32> to vector<8x32xf32>
    %936 = vector.extract_strided_slice %31 {offsets = [6, 0], sizes = [1, 32], strides = [1, 1]} : vector<9x32xf32> to vector<1x32xf32>
    %937 = vector.broadcast %936 : vector<1x32xf32> to vector<8x32xf32>
    %938 = arith.mulf %935, %937 : vector<8x32xf32>
    %939 = arith.addf %932, %938 : vector<8x32xf32>
    %940 = vector.extract_strided_slice %934 {offsets = [8, 0], sizes = [8, 32], strides = [1, 1]} : vector<24x32xf32> to vector<8x32xf32>
    %941 = vector.extract_strided_slice %31 {offsets = [7, 0], sizes = [1, 32], strides = [1, 1]} : vector<9x32xf32> to vector<1x32xf32>
    %942 = vector.broadcast %941 : vector<1x32xf32> to vector<8x32xf32>
    %943 = arith.mulf %940, %942 : vector<8x32xf32>
    %944 = arith.addf %939, %943 : vector<8x32xf32>
    %945 = vector.extract_strided_slice %934 {offsets = [16, 0], sizes = [8, 32], strides = [1, 1]} : vector<24x32xf32> to vector<8x32xf32>
    %946 = vector.extract_strided_slice %31 {offsets = [8, 0], sizes = [1, 32], strides = [1, 1]} : vector<9x32xf32> to vector<1x32xf32>
    %947 = vector.broadcast %946 : vector<1x32xf32> to vector<8x32xf32>
    %948 = arith.mulf %945, %947 : vector<8x32xf32>
    %949 = arith.addf %944, %948 : vector<8x32xf32>
    %950 = vector.broadcast %32 : vector<1x32xf32> to vector<8x32xf32>
    %951 = arith.addf %949, %950 : vector<8x32xf32>
    %cst_140 = arith.constant 3.000000e+00 : f32
    %952 = vector.broadcast %cst_140 : f32 to vector<8x32xf32>
    %953 = arith.addf %951, %952 : vector<8x32xf32>
    %cst_141 = arith.constant 0.000000e+00 : f32
    %cst_142 = arith.constant 6.000000e+00 : f32
    %954 = vector.broadcast %cst_141 : f32 to vector<8x32xf32>
    %955 = arith.maximumf %954, %953 : vector<8x32xf32>
    %956 = vector.broadcast %cst_142 : f32 to vector<8x32xf32>
    %957 = arith.minimumf %956, %955 : vector<8x32xf32>
    %958 = arith.mulf %951, %957 : vector<8x32xf32>
    %cst_143 = arith.constant 0.166666672 : f32
    %959 = vector.broadcast %cst_143 : f32 to vector<8x32xf32>
    %960 = arith.mulf %958, %959 : vector<8x32xf32>
    %cst_144 = arith.constant 0.000000e+00 : f32
    %961 = vector.broadcast %cst_144 : f32 to vector<8x32xf32>
    %962 = vector.extract_strided_slice %29 {offsets = [464, 0], sizes = [16, 32], strides = [1, 1]} : vector<512x32xf32> to vector<16x32xf32>
    %cst_145 = arith.constant dense<0.000000e+00> : vector<24x32xf32>
    %963 = tpu.matmul %30, %962, %cst_145 {dimension_numbers = #tpu.dot_dimension_numbers<[1], [0], [0], [1], [0, 0, 1, 1], [], []>} : vector<24x16xf32>, vector<16x32xf32>, vector<24x32xf32> -> vector<24x32xf32>
    %964 = vector.extract_strided_slice %963 {offsets = [0, 0], sizes = [8, 32], strides = [1, 1]} : vector<24x32xf32> to vector<8x32xf32>
    %965 = vector.extract_strided_slice %31 {offsets = [0, 0], sizes = [1, 32], strides = [1, 1]} : vector<9x32xf32> to vector<1x32xf32>
    %966 = vector.broadcast %965 : vector<1x32xf32> to vector<8x32xf32>
    %967 = arith.mulf %964, %966 : vector<8x32xf32>
    %968 = arith.addf %961, %967 : vector<8x32xf32>
    %969 = vector.extract_strided_slice %963 {offsets = [8, 0], sizes = [8, 32], strides = [1, 1]} : vector<24x32xf32> to vector<8x32xf32>
    %970 = vector.extract_strided_slice %31 {offsets = [1, 0], sizes = [1, 32], strides = [1, 1]} : vector<9x32xf32> to vector<1x32xf32>
    %971 = vector.broadcast %970 : vector<1x32xf32> to vector<8x32xf32>
    %972 = arith.mulf %969, %971 : vector<8x32xf32>
    %973 = arith.addf %968, %972 : vector<8x32xf32>
    %974 = vector.extract_strided_slice %963 {offsets = [16, 0], sizes = [8, 32], strides = [1, 1]} : vector<24x32xf32> to vector<8x32xf32>
    %975 = vector.extract_strided_slice %31 {offsets = [2, 0], sizes = [1, 32], strides = [1, 1]} : vector<9x32xf32> to vector<1x32xf32>
    %976 = vector.broadcast %975 : vector<1x32xf32> to vector<8x32xf32>
    %977 = arith.mulf %974, %976 : vector<8x32xf32>
    %978 = arith.addf %973, %977 : vector<8x32xf32>
    %979 = vector.extract_strided_slice %29 {offsets = [480, 0], sizes = [16, 32], strides = [1, 1]} : vector<512x32xf32> to vector<16x32xf32>
    %cst_146 = arith.constant dense<0.000000e+00> : vector<24x32xf32>
    %980 = tpu.matmul %30, %979, %cst_146 {dimension_numbers = #tpu.dot_dimension_numbers<[1], [0], [0], [1], [0, 0, 1, 1], [], []>} : vector<24x16xf32>, vector<16x32xf32>, vector<24x32xf32> -> vector<24x32xf32>
    %981 = vector.extract_strided_slice %980 {offsets = [0, 0], sizes = [8, 32], strides = [1, 1]} : vector<24x32xf32> to vector<8x32xf32>
    %982 = vector.extract_strided_slice %31 {offsets = [3, 0], sizes = [1, 32], strides = [1, 1]} : vector<9x32xf32> to vector<1x32xf32>
    %983 = vector.broadcast %982 : vector<1x32xf32> to vector<8x32xf32>
    %984 = arith.mulf %981, %983 : vector<8x32xf32>
    %985 = arith.addf %978, %984 : vector<8x32xf32>
    %986 = vector.extract_strided_slice %980 {offsets = [8, 0], sizes = [8, 32], strides = [1, 1]} : vector<24x32xf32> to vector<8x32xf32>
    %987 = vector.extract_strided_slice %31 {offsets = [4, 0], sizes = [1, 32], strides = [1, 1]} : vector<9x32xf32> to vector<1x32xf32>
    %988 = vector.broadcast %987 : vector<1x32xf32> to vector<8x32xf32>
    %989 = arith.mulf %986, %988 : vector<8x32xf32>
    %990 = arith.addf %985, %989 : vector<8x32xf32>
    %991 = vector.extract_strided_slice %980 {offsets = [16, 0], sizes = [8, 32], strides = [1, 1]} : vector<24x32xf32> to vector<8x32xf32>
    %992 = vector.extract_strided_slice %31 {offsets = [5, 0], sizes = [1, 32], strides = [1, 1]} : vector<9x32xf32> to vector<1x32xf32>
    %993 = vector.broadcast %992 : vector<1x32xf32> to vector<8x32xf32>
    %994 = arith.mulf %991, %993 : vector<8x32xf32>
    %995 = arith.addf %990, %994 : vector<8x32xf32>
    %996 = vector.extract_strided_slice %29 {offsets = [496, 0], sizes = [16, 32], strides = [1, 1]} : vector<512x32xf32> to vector<16x32xf32>
    %cst_147 = arith.constant dense<0.000000e+00> : vector<24x32xf32>
    %997 = tpu.matmul %30, %996, %cst_147 {dimension_numbers = #tpu.dot_dimension_numbers<[1], [0], [0], [1], [0, 0, 1, 1], [], []>} : vector<24x16xf32>, vector<16x32xf32>, vector<24x32xf32> -> vector<24x32xf32>
    %998 = vector.extract_strided_slice %997 {offsets = [0, 0], sizes = [8, 32], strides = [1, 1]} : vector<24x32xf32> to vector<8x32xf32>
    %999 = vector.extract_strided_slice %31 {offsets = [6, 0], sizes = [1, 32], strides = [1, 1]} : vector<9x32xf32> to vector<1x32xf32>
    %1000 = vector.broadcast %999 : vector<1x32xf32> to vector<8x32xf32>
    %1001 = arith.mulf %998, %1000 : vector<8x32xf32>
    %1002 = arith.addf %995, %1001 : vector<8x32xf32>
    %1003 = vector.extract_strided_slice %997 {offsets = [8, 0], sizes = [8, 32], strides = [1, 1]} : vector<24x32xf32> to vector<8x32xf32>
    %1004 = vector.extract_strided_slice %31 {offsets = [7, 0], sizes = [1, 32], strides = [1, 1]} : vector<9x32xf32> to vector<1x32xf32>
    %1005 = vector.broadcast %1004 : vector<1x32xf32> to vector<8x32xf32>
    %1006 = arith.mulf %1003, %1005 : vector<8x32xf32>
    %1007 = arith.addf %1002, %1006 : vector<8x32xf32>
    %1008 = vector.extract_strided_slice %997 {offsets = [16, 0], sizes = [8, 32], strides = [1, 1]} : vector<24x32xf32> to vector<8x32xf32>
    %1009 = vector.extract_strided_slice %31 {offsets = [8, 0], sizes = [1, 32], strides = [1, 1]} : vector<9x32xf32> to vector<1x32xf32>
    %1010 = vector.broadcast %1009 : vector<1x32xf32> to vector<8x32xf32>
    %1011 = arith.mulf %1008, %1010 : vector<8x32xf32>
    %1012 = arith.addf %1007, %1011 : vector<8x32xf32>
    %1013 = vector.broadcast %32 : vector<1x32xf32> to vector<8x32xf32>
    %1014 = arith.addf %1012, %1013 : vector<8x32xf32>
    %cst_148 = arith.constant 3.000000e+00 : f32
    %1015 = vector.broadcast %cst_148 : f32 to vector<8x32xf32>
    %1016 = arith.addf %1014, %1015 : vector<8x32xf32>
    %cst_149 = arith.constant 0.000000e+00 : f32
    %cst_150 = arith.constant 6.000000e+00 : f32
    %1017 = vector.broadcast %cst_149 : f32 to vector<8x32xf32>
    %1018 = arith.maximumf %1017, %1016 : vector<8x32xf32>
    %1019 = vector.broadcast %cst_150 : f32 to vector<8x32xf32>
    %1020 = arith.minimumf %1019, %1018 : vector<8x32xf32>
    %1021 = arith.mulf %1014, %1020 : vector<8x32xf32>
    %cst_151 = arith.constant 0.166666672 : f32
    %1022 = vector.broadcast %cst_151 : f32 to vector<8x32xf32>
    %1023 = arith.mulf %1021, %1022 : vector<8x32xf32>
    %1024 = tpu.concatenate %78, %141, %204, %267, %330, %393, %456, %519, %582, %645, %708, %771, %834, %897, %960, %1023 in 0 : vector<8x32xf32>, vector<8x32xf32>, vector<8x32xf32>, vector<8x32xf32>, vector<8x32xf32>, vector<8x32xf32>, vector<8x32xf32>, vector<8x32xf32>, vector<8x32xf32>, vector<8x32xf32>, vector<8x32xf32>, vector<8x32xf32>, vector<8x32xf32>, vector<8x32xf32>, vector<8x32xf32>, vector<8x32xf32> -> vector<128x32xf32>
    %c0_152 = arith.constant 0 : index
    %c0_153 = arith.constant 0 : index
    %1025 = vector.load %arg9[%c0_152, %c0_153] : memref<32x24xf32, #tpu.memory_space<vmem>>, vector<32x24xf32>
    %cst_154 = arith.constant dense<0.000000e+00> : vector<128x24xf32>
    %1026 = tpu.matmul %1024, %1025, %cst_154 {dimension_numbers = #tpu.dot_dimension_numbers<[1], [0], [0], [1], [0, 0, 1, 1], [], []>} : vector<128x32xf32>, vector<32x24xf32>, vector<128x24xf32> -> vector<128x24xf32>
    %c0_155 = arith.constant 0 : index
    %c0_156 = arith.constant 0 : index
    %1027 = vector.load %arg10[%c0_155, %c0_156] : memref<1x24xf32, #tpu.memory_space<vmem>>, vector<1x24xf32>
    %1028 = vector.broadcast %1027 : vector<1x24xf32> to vector<128x24xf32>
    %1029 = arith.addf %1026, %1028 : vector<128x24xf32>
    %c0_157 = arith.constant 0 : index
    %c0_158 = arith.constant 0 : index
    %1030 = vector.load %arg11[%c0_157, %c0_158] : memref<24x64xf32, #tpu.memory_space<vmem>>, vector<24x64xf32>
    %cst_159 = arith.constant dense<0.000000e+00> : vector<128x64xf32>
    %1031 = tpu.matmul %1029, %1030, %cst_159 {dimension_numbers = #tpu.dot_dimension_numbers<[1], [0], [0], [1], [0, 0, 1, 1], [], []>} : vector<128x24xf32>, vector<24x64xf32>, vector<128x64xf32> -> vector<128x64xf32>
    %c0_160 = arith.constant 0 : index
    %c0_161 = arith.constant 0 : index
    %1032 = vector.load %arg12[%c0_160, %c0_161] : memref<1x64xf32, #tpu.memory_space<vmem>>, vector<1x64xf32>
    %1033 = vector.broadcast %1032 : vector<1x64xf32> to vector<128x64xf32>
    %1034 = arith.addf %1031, %1033 : vector<128x64xf32>
    %cst_162 = arith.constant 3.000000e+00 : f32
    %1035 = vector.broadcast %cst_162 : f32 to vector<128x64xf32>
    %1036 = arith.addf %1034, %1035 : vector<128x64xf32>
    %cst_163 = arith.constant 0.000000e+00 : f32
    %cst_164 = arith.constant 6.000000e+00 : f32
    %1037 = vector.broadcast %cst_163 : f32 to vector<128x64xf32>
    %1038 = arith.maximumf %1037, %1036 : vector<128x64xf32>
    %1039 = vector.broadcast %cst_164 : f32 to vector<128x64xf32>
    %1040 = arith.minimumf %1039, %1038 : vector<128x64xf32>
    %1041 = arith.mulf %1034, %1040 : vector<128x64xf32>
    %cst_165 = arith.constant 0.166666672 : f32
    %1042 = vector.broadcast %cst_165 : f32 to vector<128x64xf32>
    %1043 = arith.mulf %1041, %1042 : vector<128x64xf32>
    %cst_166 = arith.constant dense<0.000000e+00> : vector<64xf32>
    %1044 = vector.multi_reduction <add>, %1043, %cst_166 [0] : vector<128x64xf32> to vector<64xf32>
    %1045 = vector.shape_cast %1044 : vector<64xf32> to vector<1x64xf32>
    %cst_167 = arith.constant 7.812500e-03 : f32
    %1046 = vector.broadcast %cst_167 : f32 to vector<1x64xf32>
    %1047 = arith.mulf %1045, %1046 : vector<1x64xf32>
    %c0_168 = arith.constant 0 : index
    %c0_169 = arith.constant 0 : index
    %c0_170 = arith.constant 0 : index
    %1048 = vector.load %arg18[%c0_168, %c0_169, %c0_170] : memref<1x1x64xf32, #tpu.memory_space<vmem>>, vector<1x1x64xf32>
    %1049 = vector.shape_cast %1048 : vector<1x1x64xf32> to vector<1x64xf32>
    %1050 = vector.shape_cast %1047 : vector<1x64xf32> to vector<1x1x64xf32>
    tpu.vector_store %arg18[%c0_168, %c0_169, %c0_170], %1050 {strides = array<i32>} : memref<1x1x64xf32, #tpu.memory_space<vmem>>, vector<1x1x64xf32>,
    %c0_171 = arith.constant 0 : index
    %c0_172 = arith.constant 0 : index
    %1051 = vector.load %arg13[%c0_171, %c0_172] : memref<64x128xf32, #tpu.memory_space<vmem>>, vector<64x128xf32>
    %cst_173 = arith.constant dense<0.000000e+00> : vector<1x128xf32>
    %1052 = tpu.matmul %1047, %1051, %cst_173 {dimension_numbers = #tpu.dot_dimension_numbers<[1], [0], [0], [1], [0, 0, 1, 1], [], []>} : vector<1x64xf32>, vector<64x128xf32>, vector<1x128xf32> -> vector<1x128xf32>
    %c0_174 = arith.constant 0 : index
    %c0_175 = arith.constant 0 : index
    %1053 = vector.load %arg14[%c0_174, %c0_175] : memref<1x128xf32, #tpu.memory_space<vmem>>, vector<1x128xf32>
    %1054 = arith.addf %1052, %1053 : vector<1x128xf32>
    %cst_176 = arith.constant 3.000000e+00 : f32
    %1055 = vector.broadcast %cst_176 : f32 to vector<1x128xf32>
    %1056 = arith.addf %1054, %1055 : vector<1x128xf32>
    %cst_177 = arith.constant 0.000000e+00 : f32
    %cst_178 = arith.constant 6.000000e+00 : f32
    %1057 = vector.broadcast %cst_177 : f32 to vector<1x128xf32>
    %1058 = arith.maximumf %1057, %1056 : vector<1x128xf32>
    %1059 = vector.broadcast %cst_178 : f32 to vector<1x128xf32>
    %1060 = arith.minimumf %1059, %1058 : vector<1x128xf32>
    %1061 = arith.mulf %1054, %1060 : vector<1x128xf32>
    %cst_179 = arith.constant 0.166666672 : f32
    %1062 = vector.broadcast %cst_179 : f32 to vector<1x128xf32>
    %1063 = arith.mulf %1061, %1062 : vector<1x128xf32>
    %c0_180 = arith.constant 0 : index
    %c0_181 = arith.constant 0 : index
    %1064 = vector.load %arg15[%c0_180, %c0_181] : memref<128x640xf32, #tpu.memory_space<vmem>>, vector<128x640xf32>
    %cst_182 = arith.constant dense<0.000000e+00> : vector<1x640xf32>
    %1065 = tpu.matmul %1063, %1064, %cst_182 {dimension_numbers = #tpu.dot_dimension_numbers<[1], [0], [0], [1], [0, 0, 1, 1], [], []>} : vector<1x128xf32>, vector<128x640xf32>, vector<1x640xf32> -> vector<1x640xf32>
    %c0_183 = arith.constant 0 : index
    %c0_184 = arith.constant 0 : index
    %1066 = vector.load %arg16[%c0_183, %c0_184] : memref<1x640xf32, #tpu.memory_space<vmem>>, vector<1x640xf32>
    %1067 = arith.addf %1065, %1066 : vector<1x640xf32>
    %c0_185 = arith.constant 0 : index
    %c0_186 = arith.constant 0 : index
    %c0_187 = arith.constant 0 : index
    %1068 = vector.load %arg17[%c0_185, %c0_186, %c0_187] : memref<1x1x640xf32, #tpu.memory_space<vmem>>, vector<1x1x640xf32>
    %1069 = vector.shape_cast %1068 : vector<1x1x640xf32> to vector<1x640xf32>
    %1070 = vector.shape_cast %1067 : vector<1x640xf32> to vector<1x1x640xf32>
    tpu.vector_store %arg17[%c0_185, %c0_186, %c0_187], %1070 {strides = array<i32>} : memref<1x1x640xf32, #tpu.memory_space<vmem>>, vector<1x1x640xf32>,
    return
  }
  func.func @transform_0(%arg0: i32) -> (i32, i32, i32) {
    %c0_i32 = arith.constant 0 : i32
    %c0_i32_0 = arith.constant 0 : i32
    %c0_i32_1 = arith.constant 0 : i32
    return %arg0, %c0_i32, %c0_i32_0 : i32, i32, i32
  }
  func.func @transform_1(%arg0: i32) -> (i32, i32) {
    %c0_i32 = arith.constant 0 : i32
    %c0_i32_0 = arith.constant 0 : i32
    %c0_i32_1 = arith.constant 0 : i32
    return %c0_i32, %c0_i32_0 : i32, i32
  }
  func.func @transform_2(%arg0: i32) -> (i32, i32) {
    %c0_i32 = arith.constant 0 : i32
    %c0_i32_0 = arith.constant 0 : i32
    %c0_i32_1 = arith.constant 0 : i32
    return %c0_i32, %c0_i32_0 : i32, i32
  }
  func.func @transform_3(%arg0: i32) -> (i32, i32) {
    %c0_i32 = arith.constant 0 : i32
    %c0_i32_0 = arith.constant 0 : i32
    %c0_i32_1 = arith.constant 0 : i32
    return %c0_i32, %c0_i32_0 : i32, i32
  }
  func.func @transform_4(%arg0: i32) -> (i32, i32) {
    %c0_i32 = arith.constant 0 : i32
    %c0_i32_0 = arith.constant 0 : i32
    %c0_i32_1 = arith.constant 0 : i32
    return %c0_i32, %c0_i32_0 : i32, i32
  }
  func.func @transform_5(%arg0: i32) -> (i32, i32) {
    %c0_i32 = arith.constant 0 : i32
    %c0_i32_0 = arith.constant 0 : i32
    %c0_i32_1 = arith.constant 0 : i32
    return %c0_i32, %c0_i32_0 : i32, i32
  }
  func.func @transform_6(%arg0: i32) -> (i32, i32) {
    %c0_i32 = arith.constant 0 : i32
    %c0_i32_0 = arith.constant 0 : i32
    %c0_i32_1 = arith.constant 0 : i32
    return %c0_i32, %c0_i32_0 : i32, i32
  }
  func.func @transform_7(%arg0: i32) -> (i32, i32) {
    %c0_i32 = arith.constant 0 : i32
    %c0_i32_0 = arith.constant 0 : i32
    %c0_i32_1 = arith.constant 0 : i32
    return %c0_i32, %c0_i32_0 : i32, i32
  }
  func.func @transform_8(%arg0: i32) -> (i32, i32) {
    %c0_i32 = arith.constant 0 : i32
    %c0_i32_0 = arith.constant 0 : i32
    %c0_i32_1 = arith.constant 0 : i32
    return %c0_i32, %c0_i32_0 : i32, i32
  }
  func.func @transform_9(%arg0: i32) -> (i32, i32) {
    %c0_i32 = arith.constant 0 : i32
    %c0_i32_0 = arith.constant 0 : i32
    %c0_i32_1 = arith.constant 0 : i32
    return %c0_i32, %c0_i32_0 : i32, i32
  }
  func.func @transform_10(%arg0: i32) -> (i32, i32) {
    %c0_i32 = arith.constant 0 : i32
    %c0_i32_0 = arith.constant 0 : i32
    %c0_i32_1 = arith.constant 0 : i32
    return %c0_i32, %c0_i32_0 : i32, i32
  }
  func.func @transform_11(%arg0: i32) -> (i32, i32) {
    %c0_i32 = arith.constant 0 : i32
    %c0_i32_0 = arith.constant 0 : i32
    %c0_i32_1 = arith.constant 0 : i32
    return %c0_i32, %c0_i32_0 : i32, i32
  }
  func.func @transform_12(%arg0: i32) -> (i32, i32) {
    %c0_i32 = arith.constant 0 : i32
    %c0_i32_0 = arith.constant 0 : i32
    %c0_i32_1 = arith.constant 0 : i32
    return %c0_i32, %c0_i32_0 : i32, i32
  }
  func.func @transform_13(%arg0: i32) -> (i32, i32) {
    %c0_i32 = arith.constant 0 : i32
    %c0_i32_0 = arith.constant 0 : i32
    %c0_i32_1 = arith.constant 0 : i32
    return %c0_i32, %c0_i32_0 : i32, i32
  }
  func.func @transform_14(%arg0: i32) -> (i32, i32) {
    %c0_i32 = arith.constant 0 : i32
    %c0_i32_0 = arith.constant 0 : i32
    %c0_i32_1 = arith.constant 0 : i32
    return %c0_i32, %c0_i32_0 : i32, i32
  }
  func.func @transform_15(%arg0: i32) -> (i32, i32) {
    %c0_i32 = arith.constant 0 : i32
    %c0_i32_0 = arith.constant 0 : i32
    %c0_i32_1 = arith.constant 0 : i32
    return %c0_i32, %c0_i32_0 : i32, i32
  }
  func.func @transform_16(%arg0: i32) -> (i32, i32, i32) {
    %c0_i32 = arith.constant 0 : i32
    %c0_i32_0 = arith.constant 0 : i32
    %c0_i32_1 = arith.constant 0 : i32
    return %arg0, %c0_i32, %c0_i32_0 : i32, i32, i32
  }
  func.func @transform_17(%arg0: i32) -> (i32, i32, i32) {
    %c0_i32 = arith.constant 0 : i32
    %c0_i32_0 = arith.constant 0 : i32
    %c0_i32_1 = arith.constant 0 : i32
    return %arg0, %c0_i32, %c0_i32_0 : i32, i32, i32
  }
}

</mosaic_0001>

<bundles_post_ra>
// kernel: sound_event_detector_forward.2
= control target key start
LH: loop header
LB: loop body
LE: loop exit
PB: predicated region body
PF: predicated region fallthrough
CT: control target
= control target key end

     0   :  { %s783_s12 = smov 0   ;;  %s1184_s0 = inlined_call_operand.vmem [shape: f32[2,256,32], index: 0, kind: input, shape index: {}]   ;;  %s1185_s1 = inlined_call_operand.vmem [shape: f32[256,256], index: 1, kind: input, shape index: {}]   ;;  %s1186_s2 = inlined_call_operand.vmem [shape: f32[64,128], index: 2, kind: input, shape index: {}]   ;;  %s1187_s3 = inlined_call_operand.vmem [shape: f32[2,64,32], index: 3, kind: output, shape index: {}]  }
   0x1 LB: > { %s670_s13 = sadd.s32 4294967295, %s761_s12   ;;  %p674_p0 = scmp.ge.s32.totalorder %s761_s12, 1  ;;  %s761_s12 = sphi %s783_s12, %s13_s12  }
   0x2   : > { %p137_p1 = scmp.lt.s32.totalorder %s761_s12, 3 }
   0x4   : > { %p138_p2 = pnand %p674_p0, %p137_p1 }
   0x5   : > { %p161_p3 = scmp.lt.s32.totalorder (!%p138_p2), %s670_s13, 1 }
   0x6   : > { %141 = sbr.rel (%p138_p2) target bundleno = 552 (0x228), region = 32 }
   0xb   : > { %s1189_s13 = smov (!%p161_p3, %s670_s13), 1  ;;  %v203_v32 = vld [vmem:[%s1185_s1] sm:$0xff]  ;;  %v204_v34 = vld [vmem:[%s1185_s1 + $0x8] sm:$0xff]  ;;  %v205_v36 = vld [vmem:[%s1185_s1 + $0x10] sm:$0xff]  ;;  %vm606_vm0 = vcmask 261120  }
   0xc   : > { %s681_s14 = sshll.u32 %s1189_s13, 8  ;;  %v239_v33 = vld [vmem:[%s1185_s1 + $0x120] sm:$0xff]  ;;  %v240_v35 = vld [vmem:[%s1185_s1 + $0x128] sm:$0xff]  ;;  %v241_v37 = vld [vmem:[%s1185_s1 + $0x130] sm:$0xff]  ;;  %s682_s10 = sshll.u32 %s1189_s13, 6 }
   0xd   : > { %s797_s17 = scalar_lea.vmem %s1184_s0, %s681_s14  ;;  %v206_v38 = vld [vmem:[%s1185_s1 + $0x18] sm:$0xff]  ;;  %v207_v40 = vld [vmem:[%s1185_s1 + $0x20] sm:$0xff]  ;;  %v208_v42 = vld [vmem:[%s1185_s1 + $0x28] sm:$0xff]  ;;  %s1163_s15 = scalar_lea.vmem %s1187_s3, %s682_s10 }
   0xe   : > { %v186_v0 = vld [vmem:[%s797_s17 + $0x78] sm:$0xff]  ;;  %v185_v2 = vld [vmem:[%s797_s17 + $0x70] sm:$0xff]  ;;  %v184_v4 = vld [vmem:[%s797_s17 + $0x68] sm:$0xff] }
   0xf   : > { %v801_v1 = vld [vmem:[%s797_s17 + $0xf8] sm:$0xff]  ;;  %267 = vmatpush.msra.mxu0 %v186_v0  ;;  %683 = vmatpush.msra.mxu3 %v186_v0  ;;  %v805_v3 = vld [vmem:[%s797_s17 + $0xf0] sm:$0xff]  ;;  %v811_v5 = vld [vmem:[%s797_s17 + $0xe8] sm:$0xff] }
  0x10   : > { %380 = vmatpush.msra.mxu1 %v801_v1  ;;  %699 = vmatpush.msra.mxu2 %v801_v1  ;;  %v183_v6 = vld [vmem:[%s797_s17 + $0x60] sm:$0xff]  ;;  %v182_v8 = vld [vmem:[%s797_s17 + $0x58] sm:$0xff]  ;;  %v181_v10 = vld [vmem:[%s797_s17 + $0x50] sm:$0xff] }
  0x11   : > { %268 = vmatpush.msra.mxu0 %v185_v2  ;;  %684 = vmatpush.msra.mxu3 %v185_v2  ;;  %v817_v7 = vld [vmem:[%s797_s17 + $0xe0] sm:$0xff]  ;;  %v823_v9 = vld [vmem:[%s797_s17 + $0xd8] sm:$0xff]  ;;  %v829_v11 = vld [vmem:[%s797_s17 + $0xd0] sm:$0xff] }
  0x12   : > { %381 = vmatpush.msra.mxu1 %v805_v3  ;;  %701 = vmatpush.msra.mxu2 %v805_v3  ;;  %v180_v12 = vld [vmem:[%s797_s17 + $0x48] sm:$0xff]  ;;  %v179_v14 = vld [vmem:[%s797_s17 + $0x40] sm:$0xff]  ;;  %v178_v16 = vld [vmem:[%s797_s17 + $0x38] sm:$0xff] }
  0x13   : > { %269 = vmatpush.msra.mxu0 %v184_v4  ;;  %685 = vmatpush.msra.mxu3 %v184_v4  ;;  %v835_v13 = vld [vmem:[%s797_s17 + $0xc8] sm:$0xff]  ;;  %v841_v15 = vld [vmem:[%s797_s17 + $0xc0] sm:$0xff]  ;;  %v847_v17 = vld [vmem:[%s797_s17 + $0xb8] sm:$0xff] }
  0x14   : > { %382 = vmatpush.msra.mxu1 %v811_v5  ;;  %703 = vmatpush.msra.mxu2 %v811_v5  ;;  %v177_v18 = vld [vmem:[%s797_s17 + $0x30] sm:$0xff]  ;;  %v176_v20 = vld [vmem:[%s797_s17 + $0x28] sm:$0xff]  ;;  %v175_v22 = vld [vmem:[%s797_s17 + $0x20] sm:$0xff] }
  0x15   : > { %270 = vmatpush.msra.mxu0 %v183_v6  ;;  %686 = vmatpush.msra.mxu3 %v183_v6  ;;  %v853_v19 = vld [vmem:[%s797_s17 + $0xb0] sm:$0xff]  ;;  %v859_v21 = vld [vmem:[%s797_s17 + $0xa8] sm:$0xff]  ;;  %v865_v23 = vld [vmem:[%s797_s17 + $0xa0] sm:$0xff] }
  0x16   : > { %383 = vmatpush.msra.mxu1 %v817_v7  ;;  %705 = vmatpush.msra.mxu2 %v817_v7  ;;  %v174_v24 = vld [vmem:[%s797_s17 + $0x18] sm:$0xff]  ;;  %v173_v26 = vld [vmem:[%s797_s17 + $0x10] sm:$0xff]  ;;  %v172_v28 = vld [vmem:[%s797_s17 + $0x8] sm:$0xff] }
  0x17   : > { %271 = vmatpush.msra.mxu0 %v182_v8  ;;  %687 = vmatpush.msra.mxu3 %v182_v8  ;;  %v871_v25 = vld [vmem:[%s797_s17 + $0x98] sm:$0xff]  ;;  %v877_v27 = vld [vmem:[%s797_s17 + $0x90] sm:$0xff]  ;;  %v883_v29 = vld [vmem:[%s797_s17 + $0x88] sm:$0xff] }
  0x18   : > { %384 = vmatpush.msra.mxu1 %v823_v9  ;;  %707 = vmatpush.msra.mxu2 %v823_v9  ;;  %v171_v30 = vld [vmem:[%s797_s17] sm:$0xff]  ;;  %v242_v39 = vld [vmem:[%s1185_s1 + $0x138] sm:$0xff]  ;;  %v244_v43 = vld [vmem:[%s1185_s1 + $0x148] sm:$0xff] }
  0x19   : > { %272 = vmatpush.msra.mxu0 %v181_v10  ;;  %688 = vmatpush.msra.mxu3 %v181_v10  ;;  %v889_v31 = vld [vmem:[%s797_s17 + $0x80] sm:$0xff]  ;;  %v209_v44 = vld [vmem:[%s1185_s1 + $0x30] sm:$0xff]  ;;  %v210_v46 = vld [vmem:[%s1185_s1 + $0x38] sm:$0xff] }
  0x1a   : > { %385 = vmatpush.msra.mxu1 %v829_v11  ;;  %709 = vmatpush.msra.mxu2 %v829_v11  ;;  %v243_v41 = vld [vmem:[%s1185_s1 + $0x140] sm:$0xff]  ;;  %v245_v45 = vld [vmem:[%s1185_s1 + $0x150] sm:$0xff]  ;;  %v246_v47 = vld [vmem:[%s1185_s1 + $0x158] sm:$0xff] }
  0x1b   : > { %273 = vmatpush.msra.mxu0 %v180_v12  ;;  %689 = vmatpush.msra.mxu3 %v180_v12  ;;  %v211_v48 = vld [vmem:[%s1185_s1 + $0x40] sm:$0xff]  ;;  %v212_v50 = vld [vmem:[%s1185_s1 + $0x48] sm:$0xff]  ;;  %v213_v52 = vld [vmem:[%s1185_s1 + $0x50] sm:$0xff] }
  0x1c   : > { %386 = vmatpush.msra.mxu1 %v835_v13  ;;  %711 = vmatpush.msra.mxu2 %v835_v13  ;;  %v247_v49 = vld [vmem:[%s1185_s1 + $0x160] sm:$0xff]  ;;  %v248_v51 = vld [vmem:[%s1185_s1 + $0x168] sm:$0xff]  ;;  %v249_v53 = vld [vmem:[%s1185_s1 + $0x170] sm:$0xff] }
  0x1d   : > { %274 = vmatpush.msra.mxu0 %v179_v14  ;;  %690 = vmatpush.msra.mxu3 %v179_v14  ;;  %v214_v54 = vld [vmem:[%s1185_s1 + $0x58] sm:$0xff]  ;;  %v215_v56 = vld [vmem:[%s1185_s1 + $0x60] sm:$0xff]  ;;  %v216_v58 = vld [vmem:[%s1185_s1 + $0x68] sm:$0xff] }
  0x1e   : > { %387 = vmatpush.msra.mxu1 %v841_v15  ;;  %713 = vmatpush.msra.mxu2 %v841_v15  ;;  %v250_v55 = vld [vmem:[%s1185_s1 + $0x178] sm:$0xff]  ;;  %v251_v57 = vld [vmem:[%s1185_s1 + $0x180] sm:$0xff]  ;;  %v252_v59 = vld [vmem:[%s1185_s1 + $0x188] sm:$0xff] }
  0x1f   : > { %275 = vmatpush.msra.mxu0 %v178_v16  ;;  %691 = vmatpush.msra.mxu3 %v178_v16  ;;  %v217_v60 = vld [vmem:[%s1185_s1 + $0x70] sm:$0xff]  ;;  %v218_v62 = vld [vmem:[%s1185_s1 + $0x78] sm:$0xff]  ;;  %v219_v0 = vld [vmem:[%s1185_s1 + $0x80] sm:$0xff] }
  0x20   : > { %388 = vmatpush.msra.mxu1 %v847_v17  ;;  %715 = vmatpush.msra.mxu2 %v847_v17  ;;  %v253_v61 = vld [vmem:[%s1185_s1 + $0x190] sm:$0xff]  ;;  %v254_v63 = vld [vmem:[%s1185_s1 + $0x198] sm:$0xff]  ;;  %v220_v2 = vld [vmem:[%s1185_s1 + $0x88] sm:$0xff] }
  0x21   : > { %276 = vmatpush.msra.mxu0 %v177_v18  ;;  %692 = vmatpush.msra.mxu3 %v177_v18  ;;  %v221_v4 = vld [vmem:[%s1185_s1 + $0x90] sm:$0xff]  ;;  %v222_v6 = vld [vmem:[%s1185_s1 + $0x98] sm:$0xff]  ;;  %v223_v8 = vld [vmem:[%s1185_s1 + $0xa0] sm:$0xff] }
  0x22   : > { %389 = vmatpush.msra.mxu1 %v853_v19  ;;  %717 = vmatpush.msra.mxu2 %v853_v19  ;;  %v224_v10 = vld [vmem:[%s1185_s1 + $0xa8] sm:$0xff]  ;;  %v261_v12 = vld [vmem:[%s1185_s1 + $0x1d0] sm:$0xff]  ;;  %v227_v14 = vld [vmem:[%s1185_s1 + $0xc0] sm:$0xff] }
  0x23   : > { %277 = vmatpush.msra.mxu0 %v176_v20  ;;  %693 = vmatpush.msra.mxu3 %v176_v20  ;;  %v228_v16 = vld [vmem:[%s1185_s1 + $0xc8] sm:$0xff]  ;;  %v265_v18 = vld [vmem:[%s1185_s1 + $0x1f0] sm:$0xff]  ;;  %v231_v20 = vld [vmem:[%s1185_s1 + $0xe0] sm:$0xff] }
  0x24   : > { %390 = vmatpush.msra.mxu1 %v859_v21  ;;  %719 = vmatpush.msra.mxu2 %v859_v21 }
  0x25   : > { %278 = vmatpush.msra.mxu0 %v175_v22  ;;  %694 = vmatpush.msra.mxu3 %v175_v22  ;;  %v232_v22 = vld [vmem:[%s1185_s1 + $0xe8] sm:$0xff] }
  0x26   : > { %391 = vmatpush.msra.mxu1 %v865_v23  ;;  %721 = vmatpush.msra.mxu2 %v865_v23 }
  0x27   : > { %279 = vmatpush.msra.mxu0 %v174_v24  ;;  %695 = vmatpush.msra.mxu3 %v174_v24  ;;  %v262_v24 = vld [vmem:[%s1185_s1 + $0x1d8] sm:$0xff] }
  0x28   : > { %392 = vmatpush.msra.mxu1 %v871_v25  ;;  %723 = vmatpush.msra.mxu2 %v871_v25 }
  0x29   : > { %280 = vmatpush.msra.mxu0 %v173_v26  ;;  %696 = vmatpush.msra.mxu3 %v173_v26 }
  0x2a   : > { %393 = vmatpush.msra.mxu1 %v877_v27  ;;  %725 = vmatpush.msra.mxu2 %v877_v27 }
  0x2b   : > { %281 = vmatpush.msra.mxu0 %v172_v28  ;;  %697 = vmatpush.msra.mxu3 %v172_v28  ;;  %v264_v28 = vld [vmem:[%s1185_s1 + $0x1e8] sm:$0xff] }
  0x2c   : > { %394 = vmatpush.msra.mxu1 %v883_v29  ;;  %727 = vmatpush.msra.mxu2 %v883_v29 }
  0x2d   : > { %282 = vmatpush.msra.mxu0 %v171_v30  ;;  %698 = vmatpush.msra.mxu3 %v171_v30  ;;  %v236_v30 = vld [vmem:[%s1185_s1 + $0x108] sm:$0xff] }
  0x2e   : > { %395 = vmatpush.msra.mxu1 %v889_v31  ;;  %729 = vmatpush.msra.mxu2 %v889_v31 }
  0x2f   : > { %283 = vmatmul.f32.vlgmr.msra.gmra.mxu0 %v203_v32  ;;  %337 = vmatmul.f32.vlgmr.msra.gmra.mxu3 %v239_v33 }
  0x30   : > { %396 = vmatmul.f32.vlgmr.msra.gmra.mxu1 %v204_v34  ;;  %450 = vmatmul.f32.vlgmr.msra.gmra.mxu2 %v240_v35 }
  0x31   : > { %700 = vmatpush.msrb.mxu3 %v801_v1  ;;  %v255_v1 = vld [vmem:[%s1185_s1 + $0x1a0] sm:$0xff] }
  0x33   : > { %702 = vmatpush.msrb.mxu3 %v805_v3  ;;  %v256_v3 = vld [vmem:[%s1185_s1 + $0x1a8] sm:$0xff] }
  0x35   : > { %704 = vmatpush.msrb.mxu3 %v811_v5  ;;  %v257_v5 = vld [vmem:[%s1185_s1 + $0x1b0] sm:$0xff] }
  0x37   : > { %286 = vmatmul.f32.gmra.mxu0 %v205_v36  ;;  %340 = vmatmul.f32.gmra.mxu3 %v241_v37  ;;  %v237_v36 = vld [vmem:[%s1185_s1 + $0x110] sm:$0xff]  ;;  %v266_v37 = vld [vmem:[%s1185_s1 + $0x1f8] sm:$0xff] }
  0x38   : > { %399 = vmatmul.f32.gmra.mxu1 %v206_v38  ;;  %453 = vmatmul.f32.gmra.mxu2 %v242_v39  ;;  %v238_v39 = vld [vmem:[%s1185_s1 + $0x118] sm:$0xff] }
  0x39   : > { %706 = vmatpush.msrb.mxu3 %v817_v7  ;;  %v258_v7 = vld [vmem:[%s1185_s1 + $0x1b8] sm:$0xff] }
  0x3b   : > { %708 = vmatpush.msrb.mxu3 %v823_v9  ;;  %v259_v9 = vld [vmem:[%s1185_s1 + $0x1c0] sm:$0xff] }
  0x3d   : > { %710 = vmatpush.msrb.mxu3 %v829_v11  ;;  %v225_v11 = vld [vmem:[%s1185_s1 + $0xb0] sm:$0xff] }
  0x3f   : > { %289 = vmatmul.f32.gmra.mxu0 %v207_v40  ;;  %343 = vmatmul.f32.gmra.mxu3 %v243_v41 }
  0x40   : > { %402 = vmatmul.f32.gmra.mxu1 %v208_v42  ;;  %456 = vmatmul.f32.gmra.mxu2 %v244_v43 }
  0x41   : > { %712 = vmatpush.msrb.mxu3 %v835_v13  ;;  %v226_v13 = vld [vmem:[%s1185_s1 + $0xb8] sm:$0xff] }
  0x43   : > { %714 = vmatpush.msrb.mxu3 %v841_v15  ;;  %v263_v15 = vld [vmem:[%s1185_s1 + $0x1e0] sm:$0xff] }
  0x45   : > { %716 = vmatpush.msrb.mxu3 %v847_v17  ;;  %v229_v17 = vld [vmem:[%s1185_s1 + $0xd0] sm:$0xff] }
  0x47   : > { %292 = vmatmul.f32.gmra.mxu0 %v209_v44  ;;  %346 = vmatmul.f32.gmra.mxu3 %v245_v45 }
  0x48   : > { %405 = vmatmul.f32.gmra.mxu1 %v210_v46  ;;  %459 = vmatmul.f32.gmra.mxu2 %v246_v47 }
  0x49   : > { %718 = vmatpush.msrb.mxu3 %v853_v19  ;;  %v230_v19 = vld [vmem:[%s1185_s1 + $0xd8] sm:$0xff] }
  0x4b   : > { %720 = vmatpush.msrb.mxu3 %v859_v21  ;;  %v260_v21 = vld [vmem:[%s1185_s1 + $0x1c8] sm:$0xff] }
  0x4d   : > { %722 = vmatpush.msrb.mxu3 %v865_v23  ;;  %v233_v23 = vld [vmem:[%s1185_s1 + $0xf0] sm:$0xff] }
  0x4f   : > { %295 = vmatmul.f32.gmra.mxu0 %v211_v48  ;;  %349 = vmatmul.f32.gmra.mxu3 %v247_v49 }
  0x50   : > { %408 = vmatmul.f32.gmra.mxu1 %v212_v50  ;;  %462 = vmatmul.f32.gmra.mxu2 %v248_v51 }
  0x51   : > { %724 = vmatpush.msrb.mxu3 %v871_v25  ;;  %v234_v25 = vld [vmem:[%s1185_s1 + $0xf8] sm:$0xff] }
  0x53   : > { %726 = vmatpush.msrb.mxu3 %v877_v27  ;;  %v235_v27 = vld [vmem:[%s1185_s1 + $0x100] sm:$0xff] }
  0x55   : > { %728 = vmatpush.msrb.mxu3 %v883_v29 }
  0x57   : > { %298 = vmatmul.f32.gmra.mxu0 %v213_v52  ;;  %352 = vmatmul.f32.gmra.mxu3 %v249_v53 }
  0x58   : > { %411 = vmatmul.f32.gmra.mxu1 %v214_v54  ;;  %465 = vmatmul.f32.gmra.mxu2 %v250_v55 }
  0x59   : > { %730 = vmatpush.msrb.mxu3 %v889_v31 }
  0x5f   : > { %301 = vmatmul.f32.gmra.mxu0 %v215_v56  ;;  %355 = vmatmul.f32.gmra.mxu3 %v251_v57 }
  0x60   : > { %414 = vmatmul.f32.gmra.mxu1 %v216_v58  ;;  %468 = vmatmul.f32.gmra.mxu2 %v252_v59 }
  0x67   : > { %304 = vmatmul.f32.gmra.mxu0 %v217_v60  ;;  %358 = vmatmul.f32.gmra.mxu3 %v253_v61 }
  0x68   : > { %417 = vmatmul.f32.gmra.mxu1 %v218_v62  ;;  %471 = vmatmul.f32.gmra.mxu2 %v254_v63 }
  0x6f   : > { %307 = vmatmul.f32.gmra.mxu0 %v219_v0  ;;  %361 = vmatmul.f32.gmra.mxu3 %v255_v1 }
  0x70   : > { %420 = vmatmul.f32.gmra.mxu1 %v220_v2  ;;  %474 = vmatmul.f32.gmra.mxu2 %v256_v3 }
  0x77   : > { %310 = vmatmul.f32.gmra.mxu0 %v221_v4  ;;  %364 = vmatmul.f32.gmra.mxu3 %v257_v5 }
  0x78   : > { %423 = vmatmul.f32.gmra.mxu1 %v222_v6  ;;  %477 = vmatmul.f32.gmra.mxu2 %v258_v7 }
  0x7f   : > { %313 = vmatmul.f32.gmra.mxu0 %v223_v8  ;;  %367 = vmatmul.f32.gmra.mxu3 %v259_v9 }
  0x80   : > { %426 = vmatmul.f32.gmra.mxu1 %v224_v10 }
  0x87   : > { %316 = vmatmul.f32.gmra.mxu0 %v225_v11  ;;  %370 = vmatmul.f32.gmra.mxu3 %v261_v12 }
  0x88   : > { %429 = vmatmul.f32.gmra.mxu1 %v226_v13 }
  0x8f   : > { %319 = vmatmul.f32.gmra.mxu0 %v227_v14  ;;  %373 = vmatmul.f32.gmra.mxu3 %v263_v15 }
  0x90   : > { %432 = vmatmul.f32.gmra.mxu1 %v228_v16 }
  0x97   : > { %322 = vmatmul.f32.gmra.mxu0 %v229_v17  ;;  %376 = vmatmul.f32.gmra.mxu3 %v265_v18 }
  0x98   : > { %435 = vmatmul.f32.gmra.mxu1 %v230_v19 }
  0x9f   : > { %325 = vmatmul.f32.gmra.mxu0 %v231_v20  ;;  %480 = vmatmul.f32.vlgmr.msrb.gmra.mxu3 %v260_v21 }
  0xa0   : > { %438 = vmatmul.f32.gmra.mxu1 %v232_v22 }
  0xa7   : > { %328 = vmatmul.f32.gmra.mxu0 %v233_v23  ;;  %483 = vmatmul.f32.gmra.mxu3 %v262_v24 }
  0xa8   : > { %441 = vmatmul.f32.gmra.mxu1 %v234_v25 }
  0xac   : > { %v284_v26 = vpop.f32.mrf.mxu0 }
  0xad   : > { %v397_v29 = vpop.f32.mrf.mxu1 }
  0xae   : > { %v1094_v31 = vadd.f32 %v397_v29, %v284_v26 }
  0xaf   : > { %331 = vmatmul.f32.gmra.mxu0 %v235_v27  ;;  %486 = vmatmul.f32.gmra.mxu3 %v264_v28 }
  0xb0   : > { %444 = vmatmul.f32.gmra.mxu1 %v236_v30 }
  0xb2   : > { %v338_v32 = vpop.f32.mrf.mxu3 }
  0xb3   : > { %v451_v33 = vpop.f32.mrf.mxu2 }
  0xb4   : > { %v452_v34 = vadd.f32 %v451_v33, %v338_v32  ;;  %v287_v35 = vpop.f32.mrf.mxu0 }
  0xb5   : > { %v400_v38 = vpop.f32.mrf.mxu1 }
  0xb6   : > { %v1105_v40 = vadd.f32 %v400_v38, %v287_v35  ;;  %v511_v47 = vmul.f32 %v452_v34, %v452_v34 }
  0xb7   : > { %334 = vmatmul.f32.gmra.mxu0 %v237_v36  ;;  %489 = vmatmul.f32.gmra.mxu3 %v266_v37 }
  0xb8   : > { %447 = vmatmul.f32.gmra.mxu1 %v238_v39 }
  0xba   : > { %v341_v41 = vpop.f32.mrf.mxu3 }
  0xbb   : > { %v454_v42 = vpop.f32.mrf.mxu2 }
  0xbc   : > { %v455_v43 = vadd.f32 %v454_v42, %v341_v41  ;;  %v290_v44 = vpop.f32.mrf.mxu0 }
  0xbd   : > { %v403_v45 = vpop.f32.mrf.mxu1 }
  0xbe   : > { %v404_v46 = vadd.f32 %v403_v45, %v290_v44  ;;  %v512_v56 = vmul.f32 %v455_v43, %v455_v43 }
  0xc0   : > { %v495_v48 = vmul.f32 %v404_v46, %v404_v46 }
  0xc2   : > { %v344_v49 = vpop.f32.mrf.mxu3  ;;  %v1107_v50 = vadd.f32 %v511_v47, %v495_v48 }
  0xc3   : > { %v457_v51 = vpop.f32.mrf.mxu2 }
  0xc4   : > { %v458_v52 = vadd.f32 %v457_v51, %v344_v49  ;;  %v293_v53 = vpop.f32.mrf.mxu0 }
  0xc5   : > { %v406_v54 = vpop.f32.mrf.mxu1 }
  0xc6   : > { %v407_v55 = vadd.f32 %v406_v54, %v293_v53  ;;  %v513_v0 = vmul.f32 %v458_v52, %v458_v52 }
  0xc8   : > { %v496_v57 = vmul.f32 %v407_v55, %v407_v55 }
  0xca   : > { %v347_v58 = vpop.f32.mrf.mxu3  ;;  %v1109_v59 = vadd.f32 %v512_v56, %v496_v57 }
  0xcb   : > { %v460_v60 = vpop.f32.mrf.mxu2 }
  0xcc   : > { %v296_v61 = vpop.f32.mrf.mxu0  ;;  %v461_v4 = vadd.f32 %v460_v60, %v347_v58 }
  0xcd   : > { %v409_v62 = vpop.f32.mrf.mxu1 }
  0xce   : > { %v410_v63 = vadd.f32 %v409_v62, %v296_v61  ;;  %v514_v9 = vmul.f32 %v461_v4, %v461_v4 }
  0xd0   : > { %v497_v1 = vmul.f32 %v410_v63, %v410_v63 }
  0xd2   : > { %v350_v2 = vpop.f32.mrf.mxu3  ;;  %v1111_v3 = vadd.f32 %v513_v0, %v497_v1 }
  0xd3   : > { %v463_v6 = vpop.f32.mrf.mxu2 }
  0xd4   : > { %v299_v5 = vpop.f32.mrf.mxu0  ;;  %v464_v13 = vadd.f32 %v463_v6, %v350_v2 }
  0xd5   : > { %v412_v7 = vpop.f32.mrf.mxu1 }
  0xd6   : > { %v413_v8 = vadd.f32 %v412_v7, %v299_v5  ;;  %v515_v18 = vmul.f32 %v464_v13, %v464_v13 }
  0xd8   : > { %v498_v10 = vmul.f32 %v413_v8, %v413_v8 }
  0xda   : > { %v353_v11 = vpop.f32.mrf.mxu3  ;;  %v1113_v12 = vadd.f32 %v514_v9, %v498_v10 }
  0xdb   : > { %v466_v17 = vpop.f32.mrf.mxu2 }
  0xdc   : > { %v302_v14 = vpop.f32.mrf.mxu0  ;;  %v467_v22 = vadd.f32 %v466_v17, %v353_v11 }
  0xdd   : > { %v415_v15 = vpop.f32.mrf.mxu1 }
  0xde   : > { %v416_v16 = vadd.f32 %v415_v15, %v302_v14  ;;  %v516_v26 = vmul.f32 %v467_v22, %v467_v22 }
  0xe0   : > { %v499_v19 = vmul.f32 %v416_v16, %v416_v16 }
  0xe2   : > { %v356_v20 = vpop.f32.mrf.mxu3  ;;  %v1115_v21 = vadd.f32 %v515_v18, %v499_v19 }
  0xe3   : > { %v469_v28 = vpop.f32.mrf.mxu2 }
  0xe4   : > { %v305_v23 = vpop.f32.mrf.mxu0  ;;  %v470_v32 = vadd.f32 %v469_v28, %v356_v20 }
  0xe5   : > { %v418_v24 = vpop.f32.mrf.mxu1 }
  0xe6   : > { %v419_v25 = vadd.f32 %v418_v24, %v305_v23  ;;  %v517_v36 = vmul.f32 %v470_v32, %v470_v32 }
  0xe8   : > { %v500_v27 = vmul.f32 %v419_v25, %v419_v25 }
  0xea   : > { %v1117_v29 = vpop.f32.mrf.mxu3  ;;  %v1119_v30 = vadd.f32 %v516_v26, %v500_v27 }
  0xeb   : > { %v472_v58 = vpop.f32.mrf.mxu2 }
  0xec   : > { %v308_v33 = vpop.f32.mrf.mxu0 }
  0xed   : > { %v421_v34 = vpop.f32.mrf.mxu1 }
  0xee   : > { %v422_v35 = vadd.f32 %v421_v34, %v308_v33 }
  0xf0   : > { %v501_v37 = vmul.f32 %v422_v35, %v422_v35 }
  0xf2   : > { %v362_v38 = vpop.f32.mrf.mxu3  ;;  %v1121_v39 = vadd.f32 %v517_v36, %v501_v37  ;;  %v473_v36 = vadd.f32 %v472_v58, %v1117_v29  ;;  %v548_v58 = vld [vmem:[%s1186_s2 + $0x38] sm:$0xff] }
  0xf3   : > { %v475_v0 = vpop.f32.mrf.mxu2 }
  0xf4   : > { %v311_v41 = vpop.f32.mrf.mxu0  ;;  %v476_v32 = vadd.f32 %v475_v0, %v362_v38 }
  0xf5   : > { %v424_v42 = vpop.f32.mrf.mxu1 }
  0xf6   : > { %v425_v33 = vadd.f32 %v424_v42, %v311_v41 }
  0xfa   : > { %v365_v43 = vpop.f32.mrf.mxu3 }
  0xfb   : > { %v478_v14 = vpop.f32.mrf.mxu2 }
  0xfc   : > { %v314_v45 = vpop.f32.mrf.mxu0  ;;  %v479_v24 = vadd.f32 %v478_v14, %v365_v43  ;;  %v502_v43 = vmul.f32 %v425_v33, %v425_v33 }
  0xfd   : > { %v427_v46 = vpop.f32.mrf.mxu1 }
  0xfe   : > { %v428_v25 = vadd.f32 %v427_v46, %v314_v45  ;;  %v520_v37 = vmul.f32 %v479_v24, %v479_v24  ;;  %v518_v46 = vmul.f32 %v473_v36, %v473_v36 }
 0x100   : > { %v534_v38 = vadd.f32 %v518_v46, %v502_v43 }
 0x102   : > { %v368_v44 = vpop.f32.mrf.mxu3 }
 0x104   : > { %v317_v48 = vpop.f32.mrf.mxu0 }
 0x105   : > { %v430_v49 = vpop.f32.mrf.mxu1 }
 0x106   : > { %v431_v19 = vadd.f32 %v430_v49, %v317_v48 }
 0x108   : > { %v504_v34 = vmul.f32 %v431_v19, %v431_v19 }
 0x10a   : > { %v371_v47 = vpop.f32.mrf.mxu3  ;;  %v536_v45 = vadd.f32 %v520_v37, %v504_v34 }
 0x10c   : > { %v320_v52 = vpop.f32.mrf.mxu0 }
 0x10d   : > { %v433_v53 = vpop.f32.mrf.mxu1 }
 0x10e   : > { %v434_v13 = vadd.f32 %v433_v53, %v320_v52 }
 0x110   : > { %v505_v26 = vmul.f32 %v434_v13, %v434_v13 }
 0x112   : > { %v374_v51 = vpop.f32.mrf.mxu3 }
 0x114   : > { %v323_v55 = vpop.f32.mrf.mxu0 }
 0x115   : > { %v436_v56 = vpop.f32.mrf.mxu1 }
 0x116   : > { %v437_v8 = vadd.f32 %v436_v56, %v323_v55  ;;  %v494_v55 = vmul.f32 %v1105_v40, %v1105_v40  ;;  %v542_v40 = vld [vmem:[%s1186_s2 + $0x8] sm:$0xff] }
 0x118   : > { %v506_v20 = vmul.f32 %v437_v8, %v437_v8 }
 0x11a   : > { %v377_v54 = vpop.f32.mrf.mxu3 }
 0x11c   : > { %v326_v61 = vpop.f32.mrf.mxu0 }
 0x11d   : > { %v439_v62 = vpop.f32.mrf.mxu1 }
 0x11e   : > { %v440_v5 = vadd.f32 %v439_v62, %v326_v61 }
 0x120   : > { %v507_v15 = vmul.f32 %v440_v5, %v440_v5 }
 0x122   : > { %v481_v57 = vpop.f32.mrf.mxu3 }
 0x123   : > { %v482_v16 = vadd.f32 %v481_v57, %v368_v44  ;;  %v503_v44 = vmul.f32 %v428_v25, %v428_v25  ;;  %v547_v57 = vld [vmem:[%s1186_s2 + $0x30] sm:$0xff] }
 0x124   : > { %v329_v1 = vpop.f32.mrf.mxu0 }
 0x125   : > { %v442_v2 = vpop.f32.mrf.mxu1  ;;  %v521_v27 = vmul.f32 %v482_v16, %v482_v16 }
 0x126   : > { %v443_v4 = vadd.f32 %v442_v2, %v329_v1 }
 0x128   : > { %v508_v9 = vmul.f32 %v443_v4, %v443_v4 }
 0x12a   : > { %v484_v60 = vpop.f32.mrf.mxu3 }
 0x12b   : > { %v485_v10 = vadd.f32 %v484_v60, %v371_v47  ;;  %v537_v47 = vadd.f32 %v521_v27, %v505_v26 }
 0x12c   : > { %v332_v48 = vpop.f32.mrf.mxu0 }
 0x12d   : > { %v522_v22 = vmul.f32 %v485_v10, %v485_v10  ;;  %v445_v49 = vpop.f32.mrf.mxu1 }
 0x12e   : > { %v446_v53 = vadd.f32 %v445_v49, %v332_v48 }
 0x12f   : > { %v538_v35 = vadd.f32 %v522_v22, %v506_v20 }
 0x130   : > { %v509_v56 = vmul.f32 %v446_v53, %v446_v53 }
 0x132   : > { %v487_v63 = vpop.f32.mrf.mxu3 }
 0x133   : > { %v488_v6 = vadd.f32 %v487_v63, %v374_v51  ;;  %v519_v51 = vmul.f32 %v476_v32, %v476_v32 }
 0x134   : > { %v335_v41 = vpop.f32.mrf.mxu0 }
 0x135   : > { %v523_v17 = vmul.f32 %v488_v6, %v488_v6  ;;  %v535_v52 = vadd.f32 %v519_v51, %v503_v44  ;;  %v448_v29 = vpop.f32.mrf.mxu1 }
 0x136   : > { %v449_v42 = vadd.f32 %v448_v29, %v335_v41 }
 0x137   : > { %v539_v28 = vadd.f32 %v523_v17, %v507_v15 }
 0x13a   : > { %v490_v7 = vpop.f32.mrf.mxu3 }
 0x13b   : > { %v491_v11 = vadd.f32 %v490_v7, %v377_v54  ;;  %v510_v54 = vmul.f32 %v449_v42, %v449_v42 }
 0x13d   : > { %v524_v18 = vmul.f32 %v491_v11, %v491_v11 }
 0x13f   : > { %v540_v23 = vadd.f32 %v524_v18, %v508_v9 }
 0x141   : > { %549 = vmatpush.msrb.mxu2 %v540_v23 }
 0x143   : > { %550 = vmatpush.msrb.mxu2 %v539_v28 }
 0x145   : > { %551 = vmatpush.msrb.mxu2 %v538_v35 }
 0x147   : > { %552 = vmatpush.msrb.mxu2 %v537_v47 }
 0x149   : > { %553 = vmatpush.msrb.mxu2 %v536_v45 }
 0x14b   : > { %554 = vmatpush.msrb.mxu2 %v535_v52 }
 0x14d   : > { %555 = vmatpush.msrb.mxu2 %v534_v38 }
 0x14f   : > { %556 = vmatpush.msrb.mxu2 %v1121_v39  ;;  %v493_v39 = vmul.f32 %v1094_v31, %v1094_v31  ;;  %v543_v31 = vld [vmem:[%s1186_s2 + $0x10] sm:$0xff] }
 0x151   : > { %557 = vmatpush.msrb.mxu2 %v1119_v30  ;;  %v526_v30 = vadd.f32 %v510_v54, %v494_v55 }
 0x153   : > { %558 = vmatpush.msrb.mxu2 %v1115_v21  ;;  %v525_v21 = vadd.f32 %v509_v56, %v493_v39 }
 0x155   : > { %559 = vmatpush.msrb.mxu2 %v1113_v12  ;;  %v541_v12 = vld [vmem:[%s1186_s2] sm:$0xff] }
 0x157   : > { %560 = vmatpush.msrb.mxu2 %v1111_v3  ;;  %v546_v3 = vld [vmem:[%s1186_s2 + $0x28] sm:$0xff] }
 0x159   : > { %561 = vmatpush.msrb.mxu2 %v1109_v59  ;;  %v545_v59 = vld [vmem:[%s1186_s2 + $0x20] sm:$0xff] }
 0x15b   : > { %562 = vmatpush.msrb.mxu2 %v1107_v50  ;;  %v544_v50 = vld [vmem:[%s1186_s2 + $0x18] sm:$0xff] }
 0x15d   : > { %563 = vmatpush.msrb.mxu2 %v526_v30 }
 0x15f   : > { %564 = vmatpush.msrb.mxu2 %v525_v21 }
 0x160   : > { %565 = vmatmul.f32.vlgmr.msrb.gmra.mxu2 %v541_v12 }
 0x168   : > { %568 = vmatmul.f32.gmra.mxu2 %v542_v40 }
 0x170   : > { %571 = vmatmul.f32.gmra.mxu2 %v543_v31 }
 0x178   : > { %574 = vmatmul.f32.gmra.mxu2 %v544_v50 }
 0x180   : > { %577 = vmatmul.f32.gmra.mxu2 %v545_v59 }
 0x188   : > { %580 = vmatmul.f32.gmra.mxu2 %v546_v3 }
 0x190   : > { %583 = vmatmul.f32.gmra.mxu2 %v547_v57 }
 0x198   : > { %586 = vmatmul.f32.gmra.mxu2 %v548_v58 }
 0x1e3   : > { %v566_v60 = vpop.f32.mrf.mxu2 }
 0x1e4   : > { %v567_v61 = vadd.f32 1e-05, %v566_v60 }
 0x1e6   : > { %739 = vlog2.f32 %v567_v61 }
 0x1eb   : > { %v569_v62 = vpop.f32.mrf.mxu2 }
 0x1ec   : > { %v740_v63 = vpop.eup %739  ;;  %v570_v0 = vadd.f32 1e-05, %v569_v62 }
 0x1ed   : > { %v591_v1 = vmul.f32 0.6931472, %v740_v63 }
 0x1ee   : > { %741 = vlog2.f32 %v570_v0 }
 0x1ef   : > { %607 = vst.msk [vmem:[%s1163_s15] sm:$0xff] %vm606_vm0, %v591_v1 }
 0x1f3   : > { %v572_v2 = vpop.f32.mrf.mxu2 }
 0x1f4   : > { %v742_v4 = vpop.eup %741  ;;  %v573_v5 = vadd.f32 1e-05, %v572_v2 }
 0x1f5   : > { %v593_v6 = vmul.f32 0.6931472, %v742_v4 }
 0x1f6   : > { %743 = vlog2.f32 %v573_v5 }
 0x1f7   : > { %608 = vst.msk [vmem:[%s1163_s15 + $0x8] sm:$0xff] %vm606_vm0, %v593_v6 }
 0x1fb   : > { %v575_v7 = vpop.f32.mrf.mxu2 }
 0x1fc   : > { %v744_v8 = vpop.eup %743  ;;  %v576_v9 = vadd.f32 1e-05, %v575_v7 }
 0x1fd   : > { %v595_v10 = vmul.f32 0.6931472, %v744_v8 }
 0x1fe   : > { %745 = vlog2.f32 %v576_v9 }
 0x1ff   : > { %609 = vst.msk [vmem:[%s1163_s15 + $0x10] sm:$0xff] %vm606_vm0, %v595_v10 }
 0x203   : > { %v578_v11 = vpop.f32.mrf.mxu2 }
 0x204   : > { %v746_v13 = vpop.eup %745  ;;  %v579_v14 = vadd.f32 1e-05, %v578_v11 }
 0x205   : > { %v597_v15 = vmul.f32 0.6931472, %v746_v13 }
 0x206   : > { %747 = vlog2.f32 %v579_v14 }
 0x207   : > { %610 = vst.msk [vmem:[%s1163_s15 + $0x18] sm:$0xff] %vm606_vm0, %v597_v15 }
 0x20b   : > { %v581_v16 = vpop.f32.mrf.mxu2 }
 0x20c   : > { %v748_v17 = vpop.eup %747  ;;  %v582_v18 = vadd.f32 1e-05, %v581_v16 }
 0x20d   : > { %v599_v19 = vmul.f32 0.6931472, %v748_v17 }
 0x20e   : > { %749 = vlog2.f32 %v582_v18 }
 0x20f   : > { %611 = vst.msk [vmem:[%s1163_s15 + $0x20] sm:$0xff] %vm606_vm0, %v599_v19 }
 0x213   : > { %v584_v20 = vpop.f32.mrf.mxu2 }
 0x214   : > { %v750_v22 = vpop.eup %749  ;;  %v585_v23 = vadd.f32 1e-05, %v584_v20 }
 0x215   : > { %v601_v24 = vmul.f32 0.6931472, %v750_v22 }
 0x216   : > { %751 = vlog2.f32 %v585_v23 }
 0x217   : > { %612 = vst.msk [vmem:[%s1163_s15 + $0x28] sm:$0xff] %vm606_vm0, %v601_v24 }
 0x21b   : > { %v587_v25 = vpop.f32.mrf.mxu2 }
 0x21c   : > { %v752_v26 = vpop.eup %751  ;;  %v588_v27 = vadd.f32 1e-05, %v587_v25 }
 0x21d   : > { %v603_v28 = vmul.f32 0.6931472, %v752_v26 }
 0x21e   : > { %753 = vlog2.f32 %v588_v27 }
 0x21f   : > { %613 = vst.msk [vmem:[%s1163_s15 + $0x30] sm:$0xff] %vm606_vm0, %v603_v28 }
 0x224   : > { %v754_v32 = vpop.eup %753 }
 0x225   : > { %v605_v33 = vmul.f32 0.6931472, %v754_v32 }
 0x227   : > { %614 = vst.msk [vmem:[%s1163_s15 + $0x38] sm:$0xff] %vm606_vm0, %v605_v33 }
 0x228 PF: > { %s13_s12 = sadd.s32 1, %s761_s12  }
 0x229   : > { %p10_p4 = scmp.ge.s32.totalorder %s13_s12, 4  }
 0x22b   :  { %12 = sbr.rel (!%p10_p4) target bundleno = 1 (0x1), region = 62 }

// kernel: sound_event_detector_forward.3
= control target key start
LH: loop header
LB: loop body
LE: loop exit
PB: predicated region body
PF: predicated region fallthrough
CT: control target
= control target key end

     0   :  { %s6057_s0 = inlined_call_operand.vmem [shape: f32[2,512,9], index: 0, kind: input, shape index: {}]   ;;  %s6058_s1 = inlined_call_operand.vmem [shape: f32[9,16], index: 1, kind: input, shape index: {}]   ;;  %s6059_s2 = inlined_call_operand.vmem [shape: f32[1,16], index: 2, kind: input, shape index: {}]   ;;  %s6060_s3 = inlined_call_operand.vmem [shape: f32[16,32], index: 3, kind: input, shape index: {}]   ;;  %s6061_s4 = inlined_call_operand.vmem [shape: f32[1,32], index: 4, kind: input, shape index: {}]   ;;  %s6062_s5 = inlined_call_operand.vmem [shape: f32[24,16], index: 5, kind: input, shape index: {}]   ;;  %s6063_s6 = inlined_call_operand.vmem [shape: f32[9,32], index: 6, kind: input, shape index: {}]   ;;  %s6064_s7 = inlined_call_operand.vmem [shape: f32[1,32], index: 7, kind: input, shape index: {}]   ;;  %s6065_s8 = inlined_call_operand.vmem [shape: f32[32,24], index: 8, kind: input, shape index: {}]   ;;  %s6066_s9 = inlined_call_operand.vmem [shape: f32[1,24], index: 9, kind: input, shape index: {}]   ;;  %s6067_s10 = inlined_call_operand.vmem [shape: f32[24,64], index: 10, kind: input, shape index: {}]   ;;  %s6068_s11 = inlined_call_operand.vmem [shape: f32[1,64], index: 11, kind: input, shape index: {}]   ;;  %s6069_s12 = inlined_call_operand.vmem [shape: f32[64,128], index: 12, kind: input, shape index: {}]   ;;  %s6070_s13 = inlined_call_operand.vmem [shape: f32[1,128], index: 13, kind: input, shape index: {}]   ;;  %s6071_s14 = inlined_call_operand.vmem [shape: f32[128,640], index: 14, kind: input, shape index: {}]   ;;  %s6072_s15 = inlined_call_operand.vmem [shape: f32[1,640], index: 15, kind: input, shape index: {}]   ;;  %s6073_s16 = inlined_call_operand.vmem [shape: f32[2,1,640], index: 16, kind: output, shape index: {0}]   ;;  %s6074_s17 = inlined_call_operand.hbm [shape: f32[2,1,64], index: 17, kind: output, shape index: {1}]  }
   0x1   :  { %6093 = sst [smem:[#allocation34_spill]] %s6057_s0 }
   0x2   :  { %6094 = sst [smem:[#allocation35_spill]] %s6058_s1 }
   0x3   :  { %6095 = sst [smem:[#allocation36_spill]] %s6059_s2 }
   0x4   :  { %6096 = sst [smem:[#allocation37_spill]] %s6060_s3 }
   0x5   :  { %6097 = sst [smem:[#allocation38_spill]] %s6061_s4 }
   0x6   :  { %6098 = sst [smem:[#allocation39_spill]] %s6062_s5 }
   0x7   :  { %6099 = sst [smem:[#allocation40_spill]] %s6063_s6 }
   0x8   :  { %6100 = sst [smem:[#allocation41_spill]] %s6064_s7 }
   0x9   :  { %6101 = sst [smem:[#allocation42_spill]] %s6065_s8 }
   0xa   :  { %23 = vsyncpa [#allocation3], 0 }
   0xb   :  { %25 = vsyncpa [#allocation3 + $0x1], 0  ;;  %s4513_s24 = smov 0   ;;  %s4515_s25 = smov 0  }
   0xc   :  { %s4517_s26 = smov 0   ;;  %s4519_s27 = smov 0  }
   0xd LB: > { %6102 = sst [smem:[#allocation5_spill]] %s4417_s26  ;;  %s4534_s28 = sadd.s32 4294967295, %s4421_s27   ;;  %s4421_s27 = sphi %s4519_s27, %s6169_s27   ;;  %s4417_s26 = sphi %s4517_s26, %s6171_s26   ;;  %s4413_s25 = sphi %s4515_s25, %s6173_s25   ;;  %s4409_s24 = sphi %s4513_s24, %s6172_s24  }
   0xe   : > { %s4032_s29 = sadd.s32 4294967294, %s4421_s27   ;;  %s4538_s0 = sadd.s32 1, %s4421_s27  }
   0xf   : > { %6103 = sst [smem:[#allocation6_spill]] %s4538_s0  ;;  %s405_s30 = sadd.s32 1, %s4417_s26 }
  0x10   : > { %s402_s18 = ssub.s32 %s4421_s27, %s4538_s0  ;;  %p415_p0 = scmp.ne.s32.totalorder %s4417_s26, %s4413_s25 }
  0x11   : > { %p403_p1 = scmp.eq.s32.totalorder %s402_s18, 0  ;;  %p416_p2 = scmp.eq.s32.totalorder %s4534_s28, 1 }
  0x12   : > { %p421_p3 = scmp.ne.s32.totalorder %s4413_s25, %s4409_s24  ;;  %p422_p4 = scmp.eq.s32.totalorder %s4032_s29, 1 }
  0x13   : > { %s4549_s19 = scalar_select %p403_p1, %s4417_s26, %s405_s30  }
  0x14   : > { %p4551_p5 = por %p416_p2, %p415_p0  ;;  %p4555_p6 = por %p422_p4, %p421_p3 }
  0x15   : > { %6104 = sst [smem:[#allocation7_spill]] %s4549_s19  ;;  %p4035_p7 = scmp.ge.s32.totalorder %s4421_s27, 1 }
  0x16   : > { %p493_p8 = scmp.lt.s32.totalorder %s4421_s27, 3 }
  0x18   : > { %p494_p9 = pnand %p4035_p7, %p493_p8 }
  0x1a   : > { %497 = sbr.rel (%p494_p9) target bundleno = 1554 (0x612), region = 84 }
  0x1f   : > { %s6107_s23 = sld [smem:[#allocation35_spill]]  ;;  %vm820_vm0 = vcmask 1040384   ;;  %p548_p10 = scmp.lt.s32.totalorder %s4534_s28, 1  ;;  %vm627_vm1 = vcmask 72704   ;;  %vm1359_vm2 = vcmask 130048   ;;  %vm3326_vm3 = vcmask 261120  }
  0x20   : > { %s6108_s26 = sld [smem:[#allocation34_spill]]  ;;  %vm3447_vm4 = vcmask 195584   ;;  %vm3641_vm5 = vcmask 523264   ;;  %vm3680_vm6 = vcmask 516096  }
  0x21   : > { %s4571_s18 = scalar_select %p548_p10, %s4534_s28, 1 }
  0x22   : > { %s6109_s3 = sld [smem:[#allocation37_spill]] }
  0x23   : > { %s4298_s19 = sshll.u32 %s4571_s18, 9  ;;  %s6110_s2 = sld [smem:[#allocation36_spill]] }
  0x24   : > { %s6111_s4 = sld [smem:[#allocation38_spill]] }
  0x25   : > { %v622_v0 = vld [vmem:[%s6107_s23 + $0x8] sm:$0x1]  ;;  %v621_v1 = vld [vmem:[%s6107_s23] sm:$0xff]  ;;  %s6112_s5 = sld [smem:[#allocation39_spill]] }
  0x26   : > { %4038 = vmatpush.msk.msra.mxu0 %vm820_vm0, %v622_v0  ;;  %4299 = vmatpush.msk.msra.mxu2 %vm820_vm0, %v622_v0  ;;  %s4577_s0 = scalar_lea.vmem %s6108_s26, %s4298_s19  ;;  %s6113_s6 = sld [smem:[#allocation40_spill]] }
  0x27   : > { %v557_v2 = vld [vmem:[%s4577_s0] sm:$0xff]  ;;  %v558_v3 = vld [vmem:[%s4577_s0 + $0x8] sm:$0xff]  ;;  %v559_v4 = vld [vmem:[%s4577_s0 + $0x10] sm:$0xff]  ;;  %s6140_s7 = sld [smem:[#allocation41_spill]] }
  0x28   : > { %839 = vmatpush.msra.mxu0 %v621_v1  ;;  %4300 = vmatpush.msra.mxu2 %v621_v1  ;;  %v560_v5 = vld [vmem:[%s4577_s0 + $0x18] sm:$0xff]  ;;  %v561_v6 = vld [vmem:[%s4577_s0 + $0x20] sm:$0xff]  ;;  %v562_v7 = vld [vmem:[%s4577_s0 + $0x28] sm:$0xff]  ;;  %s6141_s8 = sld [smem:[#allocation42_spill]] }
  0x29   : > { %4039 = vmatmul.msk.f32.vlgmr.msra.gmra.mxu0 %vm627_vm1, %v557_v2  ;;  %v563_v8 = vld [vmem:[%s4577_s0 + $0x30] sm:$0xff]  ;;  %v564_v9 = vld [vmem:[%s4577_s0 + $0x38] sm:$0xff]  ;;  %v565_v10 = vld [vmem:[%s4577_s0 + $0x40] sm:$0xff] }
  0x2a   : > { %v566_v11 = vld [vmem:[%s4577_s0 + $0x48] sm:$0xff]  ;;  %v567_v12 = vld [vmem:[%s4577_s0 + $0x50] sm:$0xff]  ;;  %v568_v13 = vld [vmem:[%s4577_s0 + $0x58] sm:$0xff] }
  0x2b   : > { %v569_v14 = vld [vmem:[%s4577_s0 + $0x60] sm:$0xff]  ;;  %v570_v15 = vld [vmem:[%s4577_s0 + $0x68] sm:$0xff]  ;;  %v571_v18 = vld [vmem:[%s4577_s0 + $0x70] sm:$0xff] }
  0x2c   : > { %v1354_v16 = vld [vmem:[%s6109_s3 + $0x8] sm:$0xff]  ;;  %v1353_v17 = vld [vmem:[%s6109_s3] sm:$0xff]  ;;  %v572_v19 = vld [vmem:[%s4577_s0 + $0x78] sm:$0xff] }
  0x2d   : > { %1566 = vmatpush.msra.mxu1 %v1354_v16  ;;  %4301 = vmatpush.msra.mxu3 %v1354_v16  ;;  %v4620_v20 = vld [vmem:[%s6110_s2] ss:$0 sm:$0xff]  ;;  %v574_v28 = vld [vmem:[%s4577_s0 + $0x88] sm:$0xff]  ;;  %v575_v36 = vld [vmem:[%s4577_s0 + $0x90] sm:$0xff] }
  0x2e   : > { %v573_v22 = vld [vmem:[%s4577_s0 + $0x80] sm:$0xff]  ;;  %v576_v44 = vld [vmem:[%s4577_s0 + $0x98] sm:$0xff]  ;;  %v619_v50 = vld [vmem:[%s4577_s0 + $0x1f0] sm:$0xff] }
  0x2f   : > { %1567 = vmatpush.msra.mxu1 %v1353_v17  ;;  %4302 = vmatpush.msra.mxu3 %v1353_v17  ;;  %v577_v53 = vld [vmem:[%s4577_s0 + $0xa0] sm:$0xff]  ;;  %v578_v61 = vld [vmem:[%s4577_s0 + $0xa8] sm:$0xff] }
  0x30   : > { %4101 = vmatmul.msk.f32.vlgmr.msra.gmra.mxu2 %vm627_vm1, %v619_v50 }
  0x31   : > { %4040 = vmatmul.msk.f32.gmra.mxu0 %vm627_vm1, %v558_v3 }
  0x39   : > { %4041 = vmatmul.msk.f32.gmra.mxu0 %vm627_vm1, %v559_v4 }
  0x41   : > { %4042 = vmatmul.msk.f32.gmra.mxu0 %vm627_vm1, %v560_v5  ;;  %v579_v5 = vld [vmem:[%s4577_s0 + $0xb0] sm:$0xff] }
  0x49   : > { %4043 = vmatmul.msk.f32.gmra.mxu0 %vm627_vm1, %v561_v6 }
  0x51   : > { %4044 = vmatmul.msk.f32.gmra.mxu0 %vm627_vm1, %v562_v7 }
  0x59   : > { %4045 = vmatmul.msk.f32.gmra.mxu0 %vm627_vm1, %v563_v8 }
  0x61   : > { %4046 = vmatmul.msk.f32.gmra.mxu0 %vm627_vm1, %v564_v9 }
  0x69   : > { %4047 = vmatmul.msk.f32.gmra.mxu0 %vm627_vm1, %v565_v10 }
  0x71   : > { %4048 = vmatmul.msk.f32.gmra.mxu0 %vm627_vm1, %v566_v11  ;;  %v620_v11 = vld [vmem:[%s4577_s0 + $0x1f8] sm:$0xff] }
  0x72   : > { %4102 = vmatmul.msk.f32.gmra.mxu2 %vm627_vm1, %v620_v11 }
  0x79   : > { %4049 = vmatmul.msk.f32.gmra.mxu0 %vm627_vm1, %v567_v12 }
  0x81   : > { %4050 = vmatmul.msk.f32.gmra.mxu0 %vm627_vm1, %v568_v13 }
  0x89   : > { %4051 = vmatmul.msk.f32.gmra.mxu0 %vm627_vm1, %v569_v14  ;;  %v580_v14 = vld [vmem:[%s4577_s0 + $0xb8] sm:$0xff] }
  0x91   : > { %4052 = vmatmul.msk.f32.gmra.mxu0 %vm627_vm1, %v570_v15 }
  0x99   : > { %4053 = vmatmul.msk.f32.gmra.mxu0 %vm627_vm1, %v571_v18 }
  0xa1   : > { %4054 = vmatmul.msk.f32.gmra.mxu0 %vm627_vm1, %v572_v19 }
  0xa6   : > { %v841_v21 = vpop.f32.mrf.mxu0 }
  0xa7   : > { %v842_v23 = vadd.f32 %v4620_v20, %v841_v21 }
  0xa9   : > { %v1033_v24 = vadd.f32 3.0, %v842_v23  ;;  %4055 = vmatmul.msk.f32.gmra.mxu0 %vm627_vm1, %v573_v22 }
  0xab   : > { %v1097_v25 = vmax.f32 %v1033_v24, 0.0 }
  0xad   : > { %v1161_v26 = vmin.f32 %v1097_v25, 6.0 }
  0xae   : > { %v844_v27 = vpop.f32.mrf.mxu0 }
  0xaf   : > { %v1225_v29 = vmul.f32 %v1161_v26, %v842_v23  ;;  %v845_v30 = vadd.f32 %v4620_v20, %v844_v27  ;;  %v581_v23 = vld [vmem:[%s4577_s0 + $0xc0] sm:$0xff] }
  0xb1   : > { %v1034_v31 = vadd.f32 3.0, %v845_v30  ;;  %4056 = vmatmul.msk.f32.gmra.mxu0 %vm627_vm1, %v574_v28  ;;  %v1289_v32 = vmul.f32 0.16666667, %v1225_v29 }
  0xb3   : > { %v1098_v33 = vmax.f32 %v1034_v31, 0.0  ;;  %4103 = vmatmul.msk.f32.vlgmr.msra.gmra.mxu1 %vm1359_vm2, %v1289_v32  ;;  %v582_v31 = vld [vmem:[%s4577_s0 + $0xc8] sm:$0xff] }
  0xb5   : > { %v1162_v34 = vmin.f32 %v1098_v33, 6.0 }
  0xb6   : > { %v847_v35 = vpop.f32.mrf.mxu0 }
  0xb7   : > { %v1226_v37 = vmul.f32 %v1162_v34, %v845_v30  ;;  %v848_v38 = vadd.f32 %v4620_v20, %v847_v35 }
  0xb9   : > { %v1035_v39 = vadd.f32 3.0, %v848_v38  ;;  %4057 = vmatmul.msk.f32.gmra.mxu0 %vm627_vm1, %v575_v36  ;;  %v1290_v40 = vmul.f32 0.16666667, %v1226_v37 }
  0xbb   : > { %v1099_v41 = vmax.f32 %v1035_v39, 0.0  ;;  %4104 = vmatmul.msk.f32.gmra.mxu1 %vm1359_vm2, %v1290_v40  ;;  %v583_v39 = vld [vmem:[%s4577_s0 + $0xd0] sm:$0xff] }
  0xbd   : > { %v1163_v42 = vmin.f32 %v1099_v41, 6.0 }
  0xbe   : > { %v850_v43 = vpop.f32.mrf.mxu0 }
  0xbf   : > { %v1227_v45 = vmul.f32 %v1163_v42, %v848_v38  ;;  %v851_v46 = vadd.f32 %v4620_v20, %v850_v43 }
  0xc1   : > { %v1036_v47 = vadd.f32 3.0, %v851_v46  ;;  %4058 = vmatmul.msk.f32.gmra.mxu0 %vm627_vm1, %v576_v44  ;;  %v1291_v48 = vmul.f32 0.16666667, %v1227_v45 }
  0xc3   : > { %v1100_v49 = vmax.f32 %v1036_v47, 0.0  ;;  %4105 = vmatmul.msk.f32.gmra.mxu1 %vm1359_vm2, %v1291_v48  ;;  %v584_v47 = vld [vmem:[%s4577_s0 + $0xd8] sm:$0xff] }
  0xc5   : > { %v1164_v51 = vmin.f32 %v1100_v49, 6.0 }
  0xc6   : > { %v853_v52 = vpop.f32.mrf.mxu0 }
  0xc7   : > { %v1228_v54 = vmul.f32 %v1164_v51, %v851_v46  ;;  %v854_v55 = vadd.f32 %v4620_v20, %v853_v52 }
  0xc9   : > { %v1037_v56 = vadd.f32 3.0, %v854_v55  ;;  %4059 = vmatmul.msk.f32.gmra.mxu0 %vm627_vm1, %v577_v53  ;;  %v1292_v57 = vmul.f32 0.16666667, %v1228_v54 }
  0xcb   : > { %v1101_v58 = vmax.f32 %v1037_v56, 0.0  ;;  %4106 = vmatmul.msk.f32.gmra.mxu1 %vm1359_vm2, %v1292_v57 }
  0xcd   : > { %v1165_v59 = vmin.f32 %v1101_v58, 6.0 }
  0xce   : > { %v856_v60 = vpop.f32.mrf.mxu0 }
  0xcf   : > { %v1229_v62 = vmul.f32 %v1165_v59, %v854_v55  ;;  %v857_v63 = vadd.f32 %v4620_v20, %v856_v60  ;;  %v585_v55 = vld [vmem:[%s4577_s0 + $0xe0] sm:$0xff] }
  0xd1   : > { %v1038_v0 = vadd.f32 3.0, %v857_v63  ;;  %4060 = vmatmul.msk.f32.gmra.mxu0 %vm627_vm1, %v578_v61  ;;  %v1293_v1 = vmul.f32 0.16666667, %v1229_v62 }
  0xd3   : > { %v1102_v2 = vmax.f32 %v1038_v0, 0.0  ;;  %4107 = vmatmul.msk.f32.gmra.mxu1 %vm1359_vm2, %v1293_v1 }
  0xd5   : > { %v1166_v3 = vmin.f32 %v1102_v2, 6.0 }
  0xd6   : > { %v859_v4 = vpop.f32.mrf.mxu0 }
  0xd7   : > { %v1230_v6 = vmul.f32 %v1166_v3, %v857_v63  ;;  %v860_v7 = vadd.f32 %v4620_v20, %v859_v4  ;;  %v586_v63 = vld [vmem:[%s4577_s0 + $0xe8] sm:$0xff] }
  0xd9   : > { %v1039_v8 = vadd.f32 3.0, %v860_v7  ;;  %4061 = vmatmul.msk.f32.gmra.mxu0 %vm627_vm1, %v579_v5  ;;  %v1294_v9 = vmul.f32 0.16666667, %v1230_v6 }
  0xdb   : > { %v1103_v10 = vmax.f32 %v1039_v8, 0.0  ;;  %4108 = vmatmul.msk.f32.gmra.mxu1 %vm1359_vm2, %v1294_v9 }
  0xdd   : > { %v1167_v12 = vmin.f32 %v1103_v10, 6.0 }
  0xde   : > { %v862_v13 = vpop.f32.mrf.mxu0 }
  0xdf   : > { %v1231_v15 = vmul.f32 %v1167_v12, %v860_v7  ;;  %v863_v16 = vadd.f32 %v4620_v20, %v862_v13  ;;  %v587_v7 = vld [vmem:[%s4577_s0 + $0xf0] sm:$0xff] }
  0xe1   : > { %v1040_v17 = vadd.f32 3.0, %v863_v16  ;;  %4062 = vmatmul.msk.f32.gmra.mxu0 %vm627_vm1, %v580_v14  ;;  %v1295_v18 = vmul.f32 0.16666667, %v1231_v15  ;;  %v588_v15 = vld [vmem:[%s4577_s0 + $0xf8] sm:$0xff] }
  0xe3   : > { %v1104_v19 = vmax.f32 %v1040_v17, 0.0  ;;  %4109 = vmatmul.msk.f32.gmra.mxu1 %vm1359_vm2, %v1295_v18 }
  0xe5   : > { %v1168_v21 = vmin.f32 %v1104_v19, 6.0 }
  0xe6   : > { %v865_v22 = vpop.f32.mrf.mxu0 }
  0xe7   : > { %v1232_v24 = vmul.f32 %v1168_v21, %v863_v16  ;;  %v866_v25 = vadd.f32 %v4620_v20, %v865_v22 }
  0xe9   : > { %v1041_v26 = vadd.f32 3.0, %v866_v25  ;;  %4063 = vmatmul.msk.f32.gmra.mxu0 %vm627_vm1, %v581_v23  ;;  %v1296_v27 = vmul.f32 0.16666667, %v1232_v24  ;;  %v589_v24 = vld [vmem:[%s4577_s0 + $0x100] sm:$0xff] }
  0xeb   : > { %v1105_v28 = vmax.f32 %v1041_v26, 0.0  ;;  %4110 = vmatmul.msk.f32.gmra.mxu1 %vm1359_vm2, %v1296_v27 }
  0xed   : > { %v1169_v29 = vmin.f32 %v1105_v28, 6.0 }
  0xee   : > { %v868_v30 = vpop.f32.mrf.mxu0 }
  0xef   : > { %v1233_v32 = vmul.f32 %v1169_v29, %v866_v25  ;;  %v869_v33 = vadd.f32 %v4620_v20, %v868_v30 }
  0xf1   : > { %v1042_v34 = vadd.f32 3.0, %v869_v33  ;;  %4064 = vmatmul.msk.f32.gmra.mxu0 %vm627_vm1, %v582_v31  ;;  %v1297_v35 = vmul.f32 0.16666667, %v1233_v32  ;;  %v4696_v31 = vld [vmem:[%s6111_s4] ss:$0 sm:$0xff] }
  0xf3   : > { %v1106_v36 = vmax.f32 %v1042_v34, 0.0  ;;  %4111 = vmatmul.msk.f32.gmra.mxu1 %vm1359_vm2, %v1297_v35 }
  0xf5   : > { %v1170_v37 = vmin.f32 %v1106_v36, 6.0 }
  0xf6   : > { %v871_v38 = vpop.f32.mrf.mxu0 }
  0xf7   : > { %v1234_v40 = vmul.f32 %v1170_v37, %v869_v33  ;;  %v872_v41 = vadd.f32 %v4620_v20, %v871_v38  ;;  %v590_v33 = vld [vmem:[%s4577_s0 + $0x108] sm:$0xff] }
  0xf9   : > { %v1043_v42 = vadd.f32 3.0, %v872_v41  ;;  %4065 = vmatmul.msk.f32.gmra.mxu0 %vm627_vm1, %v583_v39  ;;  %v1298_v43 = vmul.f32 0.16666667, %v1234_v40 }
  0xfb   : > { %v1107_v44 = vmax.f32 %v1043_v42, 0.0  ;;  %4112 = vmatmul.msk.f32.gmra.mxu1 %vm1359_vm2, %v1298_v43 }
  0xfd   : > { %v1171_v45 = vmin.f32 %v1107_v44, 6.0  ;;  %v591_v44 = vld [vmem:[%s4577_s0 + $0x110] sm:$0xff] }
  0xfe   : > { %v874_v46 = vpop.f32.mrf.mxu0 }
  0xff   : > { %v1235_v48 = vmul.f32 %v1171_v45, %v872_v41  ;;  %v875_v49 = vadd.f32 %v4620_v20, %v874_v46 }
 0x101   : > { %v1044_v50 = vadd.f32 3.0, %v875_v49  ;;  %4066 = vmatmul.msk.f32.gmra.mxu0 %vm627_vm1, %v584_v47  ;;  %v1299_v51 = vmul.f32 0.16666667, %v1235_v48 }
 0x103   : > { %v1108_v52 = vmax.f32 %v1044_v50, 0.0  ;;  %4113 = vmatmul.msk.f32.gmra.mxu1 %vm1359_vm2, %v1299_v51 }
 0x105   : > { %v1172_v53 = vmin.f32 %v1108_v52, 6.0 }
 0x106   : > { %v877_v54 = vpop.f32.mrf.mxu0 }
 0x107   : > { %v1236_v56 = vmul.f32 %v1172_v53, %v875_v49  ;;  %v878_v57 = vadd.f32 %v4620_v20, %v877_v54 }
 0x109   : > { %v1045_v58 = vadd.f32 3.0, %v878_v57  ;;  %4067 = vmatmul.msk.f32.gmra.mxu0 %vm627_vm1, %v585_v55  ;;  %v1300_v59 = vmul.f32 0.16666667, %v1236_v56 }
 0x10b   : > { %v1109_v60 = vmax.f32 %v1045_v58, 0.0  ;;  %4114 = vmatmul.msk.f32.gmra.mxu1 %vm1359_vm2, %v1300_v59  ;;  %v592_v58 = vld [vmem:[%s4577_s0 + $0x118] sm:$0xff] }
 0x10d   : > { %v1173_v61 = vmin.f32 %v1109_v60, 6.0 }
 0x10e   : > { %v880_v62 = vpop.f32.mrf.mxu0 }
 0x10f   : > { %v1237_v0 = vmul.f32 %v1173_v61, %v878_v57  ;;  %v881_v1 = vadd.f32 %v4620_v20, %v880_v62 }
 0x111   : > { %v1046_v2 = vadd.f32 3.0, %v881_v1  ;;  %4068 = vmatmul.msk.f32.gmra.mxu0 %vm627_vm1, %v586_v63  ;;  %v1301_v3 = vmul.f32 0.16666667, %v1237_v0 }
 0x113   : > { %v1110_v4 = vmax.f32 %v1046_v2, 0.0  ;;  %4115 = vmatmul.msk.f32.gmra.mxu1 %vm1359_vm2, %v1301_v3 }
 0x115   : > { %v1174_v5 = vmin.f32 %v1110_v4, 6.0 }
 0x116   : > { %v883_v6 = vpop.f32.mrf.mxu0 }
 0x117   : > { %v1238_v8 = vmul.f32 %v1174_v5, %v881_v1  ;;  %v884_v9 = vadd.f32 %v4620_v20, %v883_v6 }
 0x119   : > { %v1047_v10 = vadd.f32 3.0, %v884_v9  ;;  %4069 = vmatmul.msk.f32.gmra.mxu0 %vm627_vm1, %v587_v7  ;;  %v1302_v11 = vmul.f32 0.16666667, %v1238_v8 }
 0x11b   : > { %v1111_v12 = vmax.f32 %v1047_v10, 0.0  ;;  %4116 = vmatmul.msk.f32.gmra.mxu1 %vm1359_vm2, %v1302_v11  ;;  %v593_v10 = vld [vmem:[%s4577_s0 + $0x120] sm:$0xff] }
 0x11d   : > { %v1175_v13 = vmin.f32 %v1111_v12, 6.0 }
 0x11e   : > { %v886_v14 = vpop.f32.mrf.mxu0 }
 0x11f   : > { %v1239_v16 = vmul.f32 %v1175_v13, %v884_v9  ;;  %v887_v17 = vadd.f32 %v4620_v20, %v886_v14 }
 0x121   : > { %v1048_v18 = vadd.f32 3.0, %v887_v17  ;;  %4070 = vmatmul.msk.f32.gmra.mxu0 %vm627_vm1, %v588_v15  ;;  %v1303_v19 = vmul.f32 0.16666667, %v1239_v16  ;;  %v1027_v15 = vpop.f32.mrf.mxu2 }
 0x123   : > { %v1112_v21 = vmax.f32 %v1048_v18, 0.0  ;;  %4117 = vmatmul.msk.f32.gmra.mxu1 %vm1359_vm2, %v1303_v19  ;;  %v1028_v19 = vadd.f32 %v4620_v20, %v1027_v15  ;;  %v4739_v15 = vld [vmem:[%s6112_s5] sm:$0xff] }
 0x125   : > { %v1176_v22 = vmin.f32 %v1112_v21, 6.0 }
 0x126   : > { %v889_v23 = vpop.f32.mrf.mxu0 }
 0x127   : > { %v1240_v25 = vmul.f32 %v1176_v22, %v887_v17  ;;  %v890_v26 = vadd.f32 %v4620_v20, %v889_v23 }
 0x129   : > { %v1049_v27 = vadd.f32 3.0, %v890_v26  ;;  %4071 = vmatmul.msk.f32.gmra.mxu0 %vm627_vm1, %v589_v24  ;;  %v1304_v28 = vmul.f32 0.16666667, %v1240_v25  ;;  %v1095_v24 = vadd.f32 3.0, %v1028_v19 }
 0x12b   : > { %v1113_v29 = vmax.f32 %v1049_v27, 0.0  ;;  %4118 = vmatmul.msk.f32.gmra.mxu1 %vm1359_vm2, %v1304_v28  ;;  %v594_v28 = vld [vmem:[%s4577_s0 + $0x128] sm:$0xff] }
 0x12d   : > { %v1177_v30 = vmin.f32 %v1113_v29, 6.0  ;;  %v1159_v29 = vmax.f32 %v1095_v24, 0.0 }
 0x12e   : > { %v892_v32 = vpop.f32.mrf.mxu0 }
 0x12f   : > { %v1241_v34 = vmul.f32 %v1177_v30, %v890_v26  ;;  %v893_v35 = vadd.f32 %v4620_v20, %v892_v32 }
 0x130   : > { %v1569_v36 = vpop.f32.mrf.mxu1 }
 0x131   : > { %v1050_v37 = vadd.f32 3.0, %v893_v35  ;;  %v1570_v38 = vadd.f32 %v4696_v31, %v1569_v36  ;;  %4072 = vmatmul.msk.f32.gmra.mxu0 %vm627_vm1, %v590_v33  ;;  %v1305_v39 = vmul.f32 0.16666667, %v1241_v34  ;;  %v1223_v36 = vmin.f32 %v1159_v29, 6.0 }
 0x133   : > { %v1114_v40 = vmax.f32 %v1050_v37, 0.0  ;;  %4119 = vmatmul.msk.f32.gmra.mxu1 %vm1359_vm2, %v1305_v39  ;;  %v1761_v41 = vadd.f32 3.0, %v1570_v38 }
 0x135   : > { %v1178_v42 = vmin.f32 %v1114_v40, 6.0  ;;  %v1825_v47 = vmax.f32 %v1761_v41, 0.0  ;;  %v1287_v41 = vmul.f32 %v1223_v36, %v1028_v19  ;;  %v597_v19 = vld [vmem:[%s4577_s0 + $0x140] sm:$0xff] }
 0x136   : > { %v895_v43 = vpop.f32.mrf.mxu0 }
 0x137   : > { %v1242_v45 = vmul.f32 %v1178_v42, %v893_v35  ;;  %v896_v46 = vadd.f32 %v4620_v20, %v895_v43  ;;  %v1889_v54 = vmin.f32 %v1825_v47, 6.0 }
 0x138   : > { %v1572_v48 = vpop.f32.mrf.mxu1 }
 0x139   : > { %v1051_v49 = vadd.f32 3.0, %v896_v46  ;;  %v1573_v50 = vadd.f32 %v4696_v31, %v1572_v48  ;;  %4073 = vmatmul.msk.f32.gmra.mxu0 %vm627_vm1, %v591_v44  ;;  %v1306_v51 = vmul.f32 0.16666667, %v1242_v45  ;;  %v1953_v63 = vmul.f32 %v1889_v54, %v1570_v38 }
 0x13a   : > { %v1351_v45 = vmul.f32 0.16666667, %v1287_v41 }
 0x13b   : > { %v1115_v52 = vmax.f32 %v1051_v49, 0.0  ;;  %v1762_v53 = vadd.f32 3.0, %v1573_v50  ;;  %4120 = vmatmul.msk.f32.gmra.mxu1 %vm1359_vm2, %v1306_v51  ;;  %v2017_v8 = vmul.f32 0.16666667, %v1953_v63  ;;  %v595_v49 = vld [vmem:[%s4577_s0 + $0x130] sm:$0xff]  ;;  %v596_v63 = vld [vmem:[%s4577_s0 + $0x138] sm:$0xff] }
 0x13c   : > { %4165 = vmatmul.msk.f32.vlgmr.msra.gmra.mxu3 %vm1359_vm2, %v1351_v45 }
 0x13d   : > { %v1179_v55 = vmin.f32 %v1115_v52, 6.0  ;;  %v1826_v56 = vmax.f32 %v1762_v53, 0.0 }
 0x13e   : > { %v898_v57 = vpop.f32.mrf.mxu0 }
 0x13f   : > { %v1243_v59 = vmul.f32 %v1179_v55, %v896_v46  ;;  %v899_v60 = vadd.f32 %v4620_v20, %v898_v57  ;;  %v1890_v61 = vmin.f32 %v1826_v56, 6.0 }
 0x140   : > { %v1575_v62 = vpop.f32.mrf.mxu1 }
 0x141   : > { %v1052_v0 = vadd.f32 3.0, %v899_v60  ;;  %v1576_v1 = vadd.f32 %v4696_v31, %v1575_v62  ;;  %4074 = vmatmul.msk.f32.gmra.mxu0 %vm627_vm1, %v592_v58  ;;  %v1307_v2 = vmul.f32 0.16666667, %v1243_v59  ;;  %v1954_v3 = vmul.f32 %v1890_v61, %v1573_v50 }
 0x143   : > { %v1116_v4 = vmax.f32 %v1052_v0, 0.0  ;;  %4121 = vmatmul.msk.f32.gmra.mxu1 %vm1359_vm2, %v1307_v2  ;;  %v2018_v5 = vmul.f32 0.16666667, %v1954_v3  ;;  %v1763_v6 = vadd.f32 3.0, %v1576_v1 }
 0x145   : > { %v1180_v7 = vmin.f32 %v1116_v4, 6.0  ;;  %2110 = vmatpush.msrb.mxu2 %v2018_v5  ;;  %v1827_v13 = vmax.f32 %v1763_v6, 0.0  ;;  %v1030_v5 = vpop.f32.mrf.mxu2 }
 0x146   : > { %v901_v9 = vpop.f32.mrf.mxu0 }
 0x147   : > { %v1244_v11 = vmul.f32 %v1180_v7, %v899_v60  ;;  %v902_v12 = vadd.f32 %v4620_v20, %v901_v9  ;;  %2111 = vmatpush.msrb.mxu2 %v2017_v8  ;;  %v1891_v23 = vmin.f32 %v1827_v13, 6.0 }
 0x148   : > { %v1578_v14 = vpop.f32.mrf.mxu1  ;;  %4167 = vmatmul.msk.f32.vlgmr.msrb.gmra.mxu2 %vm1359_vm2, %v4739_v15 }
 0x149   : > { %v1053_v16 = vadd.f32 3.0, %v902_v12  ;;  %v1579_v17 = vadd.f32 %v4696_v31, %v1578_v14  ;;  %4075 = vmatmul.msk.f32.gmra.mxu0 %vm627_vm1, %v593_v10  ;;  %v1308_v18 = vmul.f32 0.16666667, %v1244_v11  ;;  %v1955_v35 = vmul.f32 %v1891_v23, %v1576_v1 }
 0x14a   : > { %v1031_v10 = vadd.f32 %v4620_v20, %v1030_v5 }
 0x14b   : > { %v1117_v21 = vmax.f32 %v1053_v16, 0.0  ;;  %v1764_v22 = vadd.f32 3.0, %v1579_v17  ;;  %4122 = vmatmul.msk.f32.gmra.mxu1 %vm1359_vm2, %v1308_v18  ;;  %v2019_v47 = vmul.f32 0.16666667, %v1955_v35 }
 0x14c   : > { %v1096_v14 = vadd.f32 3.0, %v1031_v10 }
 0x14d   : > { %v1181_v25 = vmin.f32 %v1117_v21, 6.0  ;;  %v1828_v26 = vmax.f32 %v1764_v22, 0.0 }
 0x14e   : > { %v904_v27 = vpop.f32.mrf.mxu0  ;;  %v1160_v21 = vmax.f32 %v1096_v14, 0.0 }
 0x14f   : > { %v1245_v30 = vmul.f32 %v1181_v25, %v902_v12  ;;  %v905_v32 = vadd.f32 %v4620_v20, %v904_v27  ;;  %v1892_v33 = vmin.f32 %v1828_v26, 6.0 }
 0x150   : > { %v1581_v34 = vpop.f32.mrf.mxu1  ;;  %v1224_v26 = vmin.f32 %v1160_v21, 6.0 }
 0x151   : > { %v1054_v37 = vadd.f32 3.0, %v905_v32  ;;  %v1582_v38 = vadd.f32 %v4696_v31, %v1581_v34  ;;  %4076 = vmatmul.msk.f32.gmra.mxu0 %vm627_vm1, %v594_v28  ;;  %v1309_v39 = vmul.f32 0.16666667, %v1245_v30  ;;  %v1956_v40 = vmul.f32 %v1892_v33, %v1579_v17 }
 0x152   : > { %v1288_v30 = vmul.f32 %v1224_v26, %v1031_v10 }
 0x153   : > { %v1118_v42 = vmax.f32 %v1054_v37, 0.0  ;;  %4123 = vmatmul.msk.f32.gmra.mxu1 %vm1359_vm2, %v1309_v39  ;;  %v2020_v43 = vmul.f32 0.16666667, %v1956_v40  ;;  %v1765_v44 = vadd.f32 3.0, %v1582_v38  ;;  %v598_v39 = vld [vmem:[%s4577_s0 + $0x148] sm:$0xff] }
 0x154   : > { %v1352_v35 = vmul.f32 0.16666667, %v1288_v30 }
 0x155   : > { %v1182_v46 = vmin.f32 %v1118_v42, 6.0  ;;  %2145 = vmatpush.msrb.mxu3 %v2020_v43  ;;  %v1829_v52 = vmax.f32 %v1765_v44, 0.0 }
 0x156   : > { %v907_v48 = vpop.f32.mrf.mxu0  ;;  %4166 = vmatmul.msk.f32.gmra.mxu3 %vm1359_vm2, %v1352_v35 }
 0x157   : > { %v1246_v50 = vmul.f32 %v1182_v46, %v905_v32  ;;  %v908_v51 = vadd.f32 %v4620_v20, %v907_v48  ;;  %2146 = vmatpush.msrb.mxu3 %v2019_v47  ;;  %v1893_v59 = vmin.f32 %v1829_v52, 6.0  ;;  %v4757_v52 = vld [vmem:[%s6112_s5 + $0x8] sm:$0xff] }
 0x158   : > { %v1584_v53 = vpop.f32.mrf.mxu1  ;;  %4168 = vmatmul.msk.f32.gmra.mxu2 %vm1359_vm2, %v4757_v52 }
 0x159   : > { %v1055_v54 = vadd.f32 3.0, %v908_v51  ;;  %v1585_v55 = vadd.f32 %v4696_v31, %v1584_v53  ;;  %4077 = vmatmul.msk.f32.gmra.mxu0 %vm627_vm1, %v595_v49  ;;  %v1310_v56 = vmul.f32 0.16666667, %v1246_v50  ;;  %v1957_v3 = vmul.f32 %v1893_v59, %v1582_v38 }
 0x15b   : > { %v1119_v57 = vmax.f32 %v1055_v54, 0.0  ;;  %v1766_v58 = vadd.f32 3.0, %v1585_v55  ;;  %4124 = vmatmul.msk.f32.gmra.mxu1 %vm1359_vm2, %v1310_v56  ;;  %v2021_v17 = vmul.f32 0.16666667, %v1957_v3  ;;  %v599_v56 = vld [vmem:[%s4577_s0 + $0x150] sm:$0xff] }
 0x15c   : > { %v4771_v3 = vld [vmem:[%s6112_s5 + $0x10] sm:$0xff] }
 0x15d   : > { %v1183_v60 = vmin.f32 %v1119_v57, 6.0  ;;  %v1830_v61 = vmax.f32 %v1766_v58, 0.0 }
 0x15e   : > { %v910_v62 = vpop.f32.mrf.mxu0  ;;  %4170 = vmatmul.msk.f32.vlgmr.msrb.gmra.mxu3 %vm1359_vm2, %v4739_v15 }
 0x15f   : > { %v1247_v0 = vmul.f32 %v1183_v60, %v908_v51  ;;  %v1894_v1 = vmin.f32 %v1830_v61, 6.0  ;;  %v911_v2 = vadd.f32 %v4620_v20, %v910_v62 }
 0x160   : > { %v1587_v4 = vpop.f32.mrf.mxu1  ;;  %4169 = vmatmul.msk.f32.gmra.mxu2 %vm1359_vm2, %v4771_v3 }
 0x161   : > { %v1958_v6 = vmul.f32 %v1894_v1, %v1585_v55  ;;  %v1056_v7 = vadd.f32 3.0, %v911_v2  ;;  %v1588_v8 = vadd.f32 %v4696_v31, %v1587_v4  ;;  %4078 = vmatmul.msk.f32.gmra.mxu0 %vm627_vm1, %v596_v63  ;;  %v1311_v9 = vmul.f32 0.16666667, %v1247_v0 }
 0x163   : > { %v2022_v11 = vmul.f32 0.16666667, %v1958_v6  ;;  %v1120_v12 = vmax.f32 %v1056_v7, 0.0  ;;  %4125 = vmatmul.msk.f32.gmra.mxu1 %vm1359_vm2, %v1311_v9  ;;  %v1767_v13 = vadd.f32 3.0, %v1588_v8  ;;  %v600_v7 = vld [vmem:[%s4577_s0 + $0x158] sm:$0xff] }
 0x165   : > { %v1184_v16 = vmin.f32 %v1120_v12, 6.0  ;;  %2198 = vmatpush.msra.mxu2 %v2022_v11  ;;  %v1831_v24 = vmax.f32 %v1767_v13, 0.0 }
 0x166   : > { %v913_v18 = vpop.f32.mrf.mxu0  ;;  %4171 = vmatmul.msk.f32.gmra.mxu3 %vm1359_vm2, %v4757_v52 }
 0x167   : > { %v1248_v22 = vmul.f32 %v1184_v16, %v911_v2  ;;  %v914_v23 = vadd.f32 %v4620_v20, %v913_v18  ;;  %2199 = vmatpush.msra.mxu2 %v2021_v17  ;;  %v1895_v34 = vmin.f32 %v1831_v24, 6.0 }
 0x168   : > { %v1590_v25 = vpop.f32.mrf.mxu1  ;;  %4173 = vmatmul.msk.f32.vlgmr.msra.gmra.mxu2 %vm1359_vm2, %v4739_v15 }
 0x169   : > { %v1057_v27 = vadd.f32 3.0, %v914_v23  ;;  %v1591_v28 = vadd.f32 %v4696_v31, %v1590_v25  ;;  %4079 = vmatmul.msk.f32.gmra.mxu0 %vm627_vm1, %v597_v19  ;;  %v1312_v29 = vmul.f32 0.16666667, %v1248_v22  ;;  %v1959_v43 = vmul.f32 %v1895_v34, %v1588_v8  ;;  %v601_v25 = vld [vmem:[%s4577_s0 + $0x160] sm:$0xff] }
 0x16b   : > { %v1121_v32 = vmax.f32 %v1057_v27, 0.0  ;;  %v1768_v33 = vadd.f32 3.0, %v1591_v28  ;;  %4126 = vmatmul.msk.f32.gmra.mxu1 %vm1359_vm2, %v1312_v29  ;;  %v2023_v54 = vmul.f32 0.16666667, %v1959_v43 }
 0x16d   : > { %v1185_v36 = vmin.f32 %v1121_v32, 6.0  ;;  %v1832_v37 = vmax.f32 %v1768_v33, 0.0 }
 0x16e   : > { %v916_v38 = vpop.f32.mrf.mxu0  ;;  %4172 = vmatmul.msk.f32.gmra.mxu3 %vm1359_vm2, %v4771_v3 }
 0x16f   : > { %v1249_v40 = vmul.f32 %v1185_v36, %v914_v23  ;;  %v1896_v41 = vmin.f32 %v1832_v37, 6.0  ;;  %v917_v42 = vadd.f32 %v4620_v20, %v916_v38 }
 0x170   : > { %v1593_v44 = vpop.f32.mrf.mxu1  ;;  %4174 = vmatmul.msk.f32.gmra.mxu2 %vm1359_vm2, %v4757_v52 }
 0x171   : > { %v1313_v45 = vmul.f32 0.16666667, %v1249_v40  ;;  %v1960_v46 = vmul.f32 %v1896_v41, %v1591_v28  ;;  %v1058_v47 = vadd.f32 3.0, %v917_v42  ;;  %v1594_v48 = vadd.f32 %v4696_v31, %v1593_v44  ;;  %4080 = vmatmul.msk.f32.gmra.mxu0 %vm627_vm1, %v598_v39  ;;  %v602_v40 = vld [vmem:[%s4577_s0 + $0x168] sm:$0xff] }
 0x173   : > { %v2024_v49 = vmul.f32 0.16666667, %v1960_v46  ;;  %v1122_v50 = vmax.f32 %v1058_v47, 0.0  ;;  %4127 = vmatmul.msk.f32.gmra.mxu1 %vm1359_vm2, %v1313_v45  ;;  %v1769_v51 = vadd.f32 3.0, %v1594_v48 }
 0x175   : > { %v1186_v53 = vmin.f32 %v1122_v50, 6.0  ;;  %2230 = vmatpush.msra.mxu3 %v2024_v49  ;;  %v1833_v59 = vmax.f32 %v1769_v51, 0.0 }
 0x176   : > { %v919_v55 = vpop.f32.mrf.mxu0 }
 0x177   : > { %v1250_v57 = vmul.f32 %v1186_v53, %v917_v42  ;;  %v920_v58 = vadd.f32 %v4620_v20, %v919_v55  ;;  %2231 = vmatpush.msra.mxu3 %v2023_v54  ;;  %v1897_v2 = vmin.f32 %v1833_v59, 6.0 }
 0x178   : > { %v1596_v60 = vpop.f32.mrf.mxu1  ;;  %4176 = vmatmul.msk.f32.vlgmr.msra.gmra.mxu3 %vm1359_vm2, %v4739_v15  ;;  %4175 = vmatmul.msk.f32.gmra.mxu2 %vm1359_vm2, %v4771_v3 }
 0x179   : > { %v1314_v61 = vmul.f32 0.16666667, %v1250_v57  ;;  %v1059_v62 = vadd.f32 3.0, %v920_v58  ;;  %v1597_v63 = vadd.f32 %v4696_v31, %v1596_v60  ;;  %4081 = vmatmul.msk.f32.gmra.mxu0 %vm627_vm1, %v599_v56  ;;  %v1961_v11 = vmul.f32 %v1897_v2, %v1594_v48  ;;  %v603_v57 = vld [vmem:[%s4577_s0 + $0x170] sm:$0xff] }
 0x17b   : > { %v1123_v0 = vmax.f32 %v1059_v62, 0.0  ;;  %v1770_v1 = vadd.f32 3.0, %v1597_v63  ;;  %4128 = vmatmul.msk.f32.gmra.mxu1 %vm1359_vm2, %v1314_v61  ;;  %v2025_v23 = vmul.f32 0.16666667, %v1961_v11 }
 0x17d   : > { %v1187_v4 = vmin.f32 %v1123_v0, 6.0  ;;  %v1834_v5 = vmax.f32 %v1770_v1, 0.0 }
 0x17e   : > { %v922_v6 = vpop.f32.mrf.mxu0 }
 0x17f   : > { %v1251_v8 = vmul.f32 %v1187_v4, %v920_v58  ;;  %v1898_v9 = vmin.f32 %v1834_v5, 6.0  ;;  %v923_v10 = vadd.f32 %v4620_v20, %v922_v6 }
 0x180   : > { %v1599_v12 = vpop.f32.mrf.mxu1  ;;  %4177 = vmatmul.msk.f32.gmra.mxu3 %vm1359_vm2, %v4757_v52 }
 0x181   : > { %v1315_v13 = vmul.f32 0.16666667, %v1251_v8  ;;  %v1962_v14 = vmul.f32 %v1898_v9, %v1597_v63  ;;  %v1060_v16 = vadd.f32 3.0, %v923_v10  ;;  %v1600_v17 = vadd.f32 %v4696_v31, %v1599_v12  ;;  %4082 = vmatmul.msk.f32.gmra.mxu0 %vm627_vm1, %v600_v7  ;;  %v604_v8 = vld [vmem:[%s4577_s0 + $0x178] sm:$0xff] }
 0x183   : > { %v2026_v18 = vmul.f32 0.16666667, %v1962_v14  ;;  %v1124_v19 = vmax.f32 %v1060_v16, 0.0  ;;  %4129 = vmatmul.msk.f32.gmra.mxu1 %vm1359_vm2, %v1315_v13  ;;  %v1771_v21 = vadd.f32 3.0, %v1600_v17 }
 0x185   : > { %v1188_v22 = vmin.f32 %v1124_v19, 6.0  ;;  %2274 = vmatpush.msrb.mxu2 %v2026_v18  ;;  %v1835_v28 = vmax.f32 %v1771_v21, 0.0 }
 0x186   : > { %v925_v24 = vpop.f32.mrf.mxu0 }
 0x187   : > { %v1252_v26 = vmul.f32 %v1188_v22, %v923_v10  ;;  %v926_v27 = vadd.f32 %v4620_v20, %v925_v24  ;;  %2275 = vmatpush.msrb.mxu2 %v2025_v23  ;;  %v1899_v36 = vmin.f32 %v1835_v28, 6.0 }
 0x188   : > { %v1602_v29 = vpop.f32.mrf.mxu1  ;;  %4179 = vmatmul.msk.f32.vlgmr.msrb.gmra.mxu2 %vm1359_vm2, %v4739_v15  ;;  %4178 = vmatmul.msk.f32.gmra.mxu3 %vm1359_vm2, %v4771_v3 }
 0x189   : > { %v1316_v30 = vmul.f32 0.16666667, %v1252_v26  ;;  %v1061_v32 = vadd.f32 3.0, %v926_v27  ;;  %v1603_v33 = vadd.f32 %v4696_v31, %v1602_v29  ;;  %4083 = vmatmul.msk.f32.gmra.mxu0 %vm627_vm1, %v601_v25  ;;  %v1963_v44 = vmul.f32 %v1899_v36, %v1600_v17  ;;  %v605_v26 = vld [vmem:[%s4577_s0 + $0x180] sm:$0xff] }
 0x18b   : > { %v1125_v34 = vmax.f32 %v1061_v32, 0.0  ;;  %v1772_v35 = vadd.f32 3.0, %v1603_v33  ;;  %4130 = vmatmul.msk.f32.gmra.mxu1 %vm1359_vm2, %v1316_v30  ;;  %v2027_v55 = vmul.f32 0.16666667, %v1963_v44 }
 0x18d   : > { %v1189_v37 = vmin.f32 %v1125_v34, 6.0  ;;  %v1836_v38 = vmax.f32 %v1772_v35, 0.0 }
 0x18e   : > { %v928_v39 = vpop.f32.mrf.mxu0 }
 0x18f   : > { %v1253_v41 = vmul.f32 %v1189_v37, %v926_v27  ;;  %v1900_v42 = vmin.f32 %v1836_v38, 6.0  ;;  %v929_v43 = vadd.f32 %v4620_v20, %v928_v39 }
 0x190   : > { %v1605_v45 = vpop.f32.mrf.mxu1  ;;  %4180 = vmatmul.msk.f32.gmra.mxu2 %vm1359_vm2, %v4757_v52 }
 0x191   : > { %v1317_v46 = vmul.f32 0.16666667, %v1253_v41  ;;  %v1964_v47 = vmul.f32 %v1900_v42, %v1603_v33  ;;  %v1062_v48 = vadd.f32 3.0, %v929_v43  ;;  %v1606_v49 = vadd.f32 %v4696_v31, %v1605_v45  ;;  %4084 = vmatmul.msk.f32.gmra.mxu0 %vm627_vm1, %v602_v40  ;;  %v606_v41 = vld [vmem:[%s4577_s0 + $0x188] sm:$0xff] }
 0x193   : > { %v2028_v50 = vmul.f32 0.16666667, %v1964_v47  ;;  %v1126_v51 = vmax.f32 %v1062_v48, 0.0  ;;  %4131 = vmatmul.msk.f32.gmra.mxu1 %vm1359_vm2, %v1317_v46  ;;  %v1773_v53 = vadd.f32 3.0, %v1606_v49 }
 0x195   : > { %v1190_v54 = vmin.f32 %v1126_v51, 6.0  ;;  %2306 = vmatpush.msrb.mxu3 %v2028_v50  ;;  %v1837_v60 = vmax.f32 %v1773_v53, 0.0 }
 0x196   : > { %v931_v56 = vpop.f32.mrf.mxu0 }
 0x197   : > { %v1254_v58 = vmul.f32 %v1190_v54, %v929_v43  ;;  %v932_v59 = vadd.f32 %v4620_v20, %v931_v56  ;;  %2307 = vmatpush.msrb.mxu3 %v2027_v55  ;;  %v1901_v4 = vmin.f32 %v1837_v60, 6.0 }
 0x198   : > { %v1608_v61 = vpop.f32.mrf.mxu1  ;;  %4182 = vmatmul.msk.f32.vlgmr.msrb.gmra.mxu3 %vm1359_vm2, %v4739_v15  ;;  %4181 = vmatmul.msk.f32.gmra.mxu2 %vm1359_vm2, %v4771_v3 }
 0x199   : > { %v1318_v62 = vmul.f32 0.16666667, %v1254_v58  ;;  %v1063_v63 = vadd.f32 3.0, %v932_v59  ;;  %v1609_v0 = vadd.f32 %v4696_v31, %v1608_v61  ;;  %4085 = vmatmul.msk.f32.gmra.mxu0 %vm627_vm1, %v603_v57  ;;  %v1965_v12 = vmul.f32 %v1901_v4, %v1606_v49 }
 0x19b   : > { %v1127_v1 = vmax.f32 %v1063_v63, 0.0  ;;  %v1774_v2 = vadd.f32 3.0, %v1609_v0  ;;  %4132 = vmatmul.msk.f32.gmra.mxu1 %vm1359_vm2, %v1318_v62  ;;  %v2029_v24 = vmul.f32 0.16666667, %v1965_v12 }
 0x19d   : > { %v1191_v5 = vmin.f32 %v1127_v1, 6.0  ;;  %v1838_v6 = vmax.f32 %v1774_v2, 0.0 }
 0x19e   : > { %v934_v7 = vpop.f32.mrf.mxu0 }
 0x19f   : > { %v1255_v9 = vmul.f32 %v1191_v5, %v932_v59  ;;  %v1902_v10 = vmin.f32 %v1838_v6, 6.0  ;;  %v935_v11 = vadd.f32 %v4620_v20, %v934_v7  ;;  %v4844_v59 = vld [vmem:[%s6110_s2] ss:$0 sm:$0xff] }
 0x1a0   : > { %v1611_v13 = vpop.f32.mrf.mxu1  ;;  %4183 = vmatmul.msk.f32.gmra.mxu3 %vm1359_vm2, %v4757_v52 }
 0x1a1   : > { %v1319_v14 = vmul.f32 0.16666667, %v1255_v9  ;;  %v1966_v16 = vmul.f32 %v1902_v10, %v1609_v0  ;;  %v1064_v17 = vadd.f32 3.0, %v935_v11  ;;  %v1612_v18 = vadd.f32 %v4696_v31, %v1611_v13  ;;  %4086 = vmatmul.msk.f32.gmra.mxu0 %vm627_vm1, %v604_v8  ;;  %v608_v9 = vld [vmem:[%s4577_s0 + $0x198] sm:$0xff] }
 0x1a3   : > { %v2030_v19 = vmul.f32 0.16666667, %v1966_v16  ;;  %v1128_v21 = vmax.f32 %v1064_v17, 0.0  ;;  %4133 = vmatmul.msk.f32.gmra.mxu1 %vm1359_vm2, %v1319_v14  ;;  %v1775_v22 = vadd.f32 3.0, %v1612_v18 }
 0x1a5   : > { %v1192_v23 = vmin.f32 %v1128_v21, 6.0  ;;  %2350 = vmatpush.msra.mxu2 %v2030_v19  ;;  %v1839_v29 = vmax.f32 %v1775_v22, 0.0 }
 0x1a6   : > { %v937_v25 = vpop.f32.mrf.mxu0 }
 0x1a7   : > { %v1256_v27 = vmul.f32 %v1192_v23, %v935_v11  ;;  %v938_v28 = vadd.f32 %v4620_v20, %v937_v25  ;;  %2351 = vmatpush.msra.mxu2 %v2029_v24  ;;  %v1903_v37 = vmin.f32 %v1839_v29, 6.0 }
 0x1a8   : > { %v1614_v30 = vpop.f32.mrf.mxu1  ;;  %4185 = vmatmul.msk.f32.vlgmr.msra.gmra.mxu2 %vm1359_vm2, %v4739_v15  ;;  %4184 = vmatmul.msk.f32.gmra.mxu3 %vm1359_vm2, %v4771_v3 }
 0x1a9   : > { %v1320_v32 = vmul.f32 0.16666667, %v1256_v27  ;;  %v1065_v33 = vadd.f32 3.0, %v938_v28  ;;  %v1615_v34 = vadd.f32 %v4696_v31, %v1614_v30  ;;  %4087 = vmatmul.msk.f32.gmra.mxu0 %vm627_vm1, %v605_v26  ;;  %v1967_v45 = vmul.f32 %v1903_v37, %v1612_v18  ;;  %v609_v27 = vld [vmem:[%s4577_s0 + $0x1a0] sm:$0xff] }
 0x1ab   : > { %v1129_v35 = vmax.f32 %v1065_v33, 0.0  ;;  %v1776_v36 = vadd.f32 3.0, %v1615_v34  ;;  %4134 = vmatmul.msk.f32.gmra.mxu1 %vm1359_vm2, %v1320_v32  ;;  %v2031_v56 = vmul.f32 0.16666667, %v1967_v45 }
 0x1ad   : > { %v1193_v38 = vmin.f32 %v1129_v35, 6.0  ;;  %v1840_v39 = vmax.f32 %v1776_v36, 0.0 }
 0x1ae   : > { %v940_v40 = vpop.f32.mrf.mxu0 }
 0x1af   : > { %v1257_v42 = vmul.f32 %v1193_v38, %v938_v28  ;;  %v1904_v43 = vmin.f32 %v1840_v39, 6.0  ;;  %v941_v44 = vadd.f32 %v4620_v20, %v940_v40  ;;  %v607_v20 = vld [vmem:[%s4577_s0 + $0x190] sm:$0xff] }
 0x1b0   : > { %v1617_v46 = vpop.f32.mrf.mxu1  ;;  %4186 = vmatmul.msk.f32.gmra.mxu2 %vm1359_vm2, %v4757_v52 }
 0x1b1   : > { %v1321_v47 = vmul.f32 0.16666667, %v1257_v42  ;;  %v1968_v48 = vmul.f32 %v1904_v43, %v1615_v34  ;;  %v1066_v49 = vadd.f32 3.0, %v941_v44  ;;  %v1618_v50 = vadd.f32 %v4696_v31, %v1617_v46  ;;  %4088 = vmatmul.msk.f32.gmra.mxu0 %vm627_vm1, %v606_v41  ;;  %v610_v42 = vld [vmem:[%s4577_s0 + $0x1a8] sm:$0xff] }
 0x1b3   : > { %v2032_v51 = vmul.f32 0.16666667, %v1968_v48  ;;  %v1130_v53 = vmax.f32 %v1066_v49, 0.0  ;;  %4135 = vmatmul.msk.f32.gmra.mxu1 %vm1359_vm2, %v1321_v47  ;;  %v1777_v54 = vadd.f32 3.0, %v1618_v50 }
 0x1b5   : > { %v1194_v55 = vmin.f32 %v1130_v53, 6.0  ;;  %2382 = vmatpush.msra.mxu3 %v2032_v51  ;;  %v1841_v61 = vmax.f32 %v1777_v54, 0.0 }
 0x1b6   : > { %v943_v57 = vpop.f32.mrf.mxu0 }
 0x1b7   : > { %v1258_v58 = vmul.f32 %v1194_v55, %v941_v44  ;;  %v944_v60 = vadd.f32 %v4844_v59, %v943_v57  ;;  %2383 = vmatpush.msra.mxu3 %v2031_v56  ;;  %v1905_v5 = vmin.f32 %v1841_v61, 6.0 }
 0x1b8   : > { %v1620_v62 = vpop.f32.mrf.mxu1  ;;  %4188 = vmatmul.msk.f32.vlgmr.msra.gmra.mxu3 %vm1359_vm2, %v4739_v15  ;;  %4187 = vmatmul.msk.f32.gmra.mxu2 %vm1359_vm2, %v4771_v3 }
 0x1b9   : > { %v1322_v63 = vmul.f32 0.16666667, %v1258_v58  ;;  %v1067_v0 = vadd.f32 3.0, %v944_v60  ;;  %v1621_v1 = vadd.f32 %v4696_v31, %v1620_v62  ;;  %4089 = vmatmul.msk.f32.gmra.mxu0 %vm627_vm1, %v607_v20  ;;  %v1969_v13 = vmul.f32 %v1905_v5, %v1618_v50  ;;  %v611_v58 = vld [vmem:[%s4577_s0 + $0x1b0] sm:$0xff] }
 0x1bb   : > { %v1131_v2 = vmax.f32 %v1067_v0, 0.0  ;;  %v1778_v4 = vadd.f32 3.0, %v1621_v1  ;;  %4136 = vmatmul.msk.f32.gmra.mxu1 %vm1359_vm2, %v1322_v63  ;;  %v2033_v25 = vmul.f32 0.16666667, %v1969_v13 }
 0x1bd   : > { %v1195_v6 = vmin.f32 %v1131_v2, 6.0  ;;  %v1842_v7 = vmax.f32 %v1778_v4, 0.0 }
 0x1be   : > { %v946_v8 = vpop.f32.mrf.mxu0 }
 0x1bf   : > { %v1259_v10 = vmul.f32 %v1195_v6, %v944_v60  ;;  %v1906_v11 = vmin.f32 %v1842_v7, 6.0  ;;  %v947_v12 = vadd.f32 %v4844_v59, %v946_v8 }
 0x1c0   : > { %v1623_v14 = vpop.f32.mrf.mxu1  ;;  %4189 = vmatmul.msk.f32.gmra.mxu3 %vm1359_vm2, %v4757_v52 }
 0x1c1   : > { %v1323_v16 = vmul.f32 0.16666667, %v1259_v10  ;;  %v1970_v17 = vmul.f32 %v1906_v11, %v1621_v1  ;;  %v1068_v18 = vadd.f32 3.0, %v947_v12  ;;  %v1624_v19 = vadd.f32 %v4696_v31, %v1623_v14  ;;  %4090 = vmatmul.msk.f32.gmra.mxu0 %vm627_vm1, %v608_v9  ;;  %v612_v10 = vld [vmem:[%s4577_s0 + $0x1b8] sm:$0xff] }
 0x1c3   : > { %v2034_v21 = vmul.f32 0.16666667, %v1970_v17  ;;  %v1132_v22 = vmax.f32 %v1068_v18, 0.0  ;;  %4137 = vmatmul.msk.f32.gmra.mxu1 %vm1359_vm2, %v1323_v16  ;;  %v1779_v23 = vadd.f32 3.0, %v1624_v19 }
 0x1c5   : > { %v1196_v24 = vmin.f32 %v1132_v22, 6.0  ;;  %2426 = vmatpush.msrb.mxu2 %v2034_v21  ;;  %v1843_v30 = vmax.f32 %v1779_v23, 0.0 }
 0x1c6   : > { %v949_v26 = vpop.f32.mrf.mxu0 }
 0x1c7   : > { %v1260_v28 = vmul.f32 %v1196_v24, %v947_v12  ;;  %v950_v29 = vadd.f32 %v4844_v59, %v949_v26  ;;  %2427 = vmatpush.msrb.mxu2 %v2033_v25  ;;  %v1907_v38 = vmin.f32 %v1843_v30, 6.0 }
 0x1c8   : > { %v1626_v32 = vpop.f32.mrf.mxu1  ;;  %4191 = vmatmul.msk.f32.vlgmr.msrb.gmra.mxu2 %vm1359_vm2, %v4739_v15  ;;  %4190 = vmatmul.msk.f32.gmra.mxu3 %vm1359_vm2, %v4771_v3 }
 0x1c9   : > { %v1324_v33 = vmul.f32 0.16666667, %v1260_v28  ;;  %v1069_v34 = vadd.f32 3.0, %v950_v29  ;;  %v1627_v35 = vadd.f32 %v4696_v31, %v1626_v32  ;;  %4091 = vmatmul.msk.f32.gmra.mxu0 %vm627_vm1, %v609_v27  ;;  %v1971_v46 = vmul.f32 %v1907_v38, %v1624_v19  ;;  %v613_v28 = vld [vmem:[%s4577_s0 + $0x1c0] sm:$0xff] }
 0x1cb   : > { %v1133_v36 = vmax.f32 %v1069_v34, 0.0  ;;  %v1780_v37 = vadd.f32 3.0, %v1627_v35  ;;  %4138 = vmatmul.msk.f32.gmra.mxu1 %vm1359_vm2, %v1324_v33  ;;  %v2035_v57 = vmul.f32 0.16666667, %v1971_v46 }
 0x1cd   : > { %v1197_v39 = vmin.f32 %v1133_v36, 6.0  ;;  %v1844_v40 = vmax.f32 %v1780_v37, 0.0 }
 0x1ce   : > { %v952_v41 = vpop.f32.mrf.mxu0 }
 0x1cf   : > { %v1261_v43 = vmul.f32 %v1197_v39, %v950_v29  ;;  %v1908_v44 = vmin.f32 %v1844_v40, 6.0  ;;  %v953_v45 = vadd.f32 %v4844_v59, %v952_v41 }
 0x1d0   : > { %v1629_v47 = vpop.f32.mrf.mxu1  ;;  %4192 = vmatmul.msk.f32.gmra.mxu2 %vm1359_vm2, %v4757_v52 }
 0x1d1   : > { %v1325_v48 = vmul.f32 0.16666667, %v1261_v43  ;;  %v1972_v49 = vmul.f32 %v1908_v44, %v1627_v35  ;;  %v1070_v50 = vadd.f32 3.0, %v953_v45  ;;  %v1630_v51 = vadd.f32 %v4696_v31, %v1629_v47  ;;  %4092 = vmatmul.msk.f32.gmra.mxu0 %vm627_vm1, %v610_v42  ;;  %v614_v43 = vld [vmem:[%s4577_s0 + $0x1c8] sm:$0xff] }
 0x1d3   : > { %v2036_v53 = vmul.f32 0.16666667, %v1972_v49  ;;  %v1134_v54 = vmax.f32 %v1070_v50, 0.0  ;;  %4139 = vmatmul.msk.f32.gmra.mxu1 %vm1359_vm2, %v1325_v48  ;;  %v1781_v55 = vadd.f32 3.0, %v1630_v51 }
 0x1d5   : > { %v1198_v56 = vmin.f32 %v1134_v54, 6.0  ;;  %2458 = vmatpush.msrb.mxu3 %v2036_v53  ;;  %v1845_v62 = vmax.f32 %v1781_v55, 0.0 }
 0x1d6   : > { %v955_v20 = vpop.f32.mrf.mxu0 }
 0x1d7   : > { %v1262_v60 = vmul.f32 %v1198_v56, %v953_v45  ;;  %v956_v61 = vadd.f32 %v4844_v59, %v955_v20  ;;  %2459 = vmatpush.msrb.mxu3 %v2035_v57  ;;  %v1909_v6 = vmin.f32 %v1845_v62, 6.0 }
 0x1d8   : > { %v1632_v63 = vpop.f32.mrf.mxu1  ;;  %4194 = vmatmul.msk.f32.vlgmr.msrb.gmra.mxu3 %vm1359_vm2, %v4739_v15  ;;  %4193 = vmatmul.msk.f32.gmra.mxu2 %vm1359_vm2, %v4771_v3 }
 0x1d9   : > { %v1326_v0 = vmul.f32 0.16666667, %v1262_v60  ;;  %v1071_v1 = vadd.f32 3.0, %v956_v61  ;;  %v1633_v2 = vadd.f32 %v4696_v31, %v1632_v63  ;;  %4093 = vmatmul.msk.f32.gmra.mxu0 %vm627_vm1, %v611_v58  ;;  %v1973_v14 = vmul.f32 %v1909_v6, %v1630_v51  ;;  %v615_v60 = vld [vmem:[%s4577_s0 + $0x1d0] sm:$0xff] }
 0x1db   : > { %v1135_v4 = vmax.f32 %v1071_v1, 0.0  ;;  %v1782_v5 = vadd.f32 3.0, %v1633_v2  ;;  %4140 = vmatmul.msk.f32.gmra.mxu1 %vm1359_vm2, %v1326_v0  ;;  %v2037_v26 = vmul.f32 0.16666667, %v1973_v14 }
 0x1dd   : > { %v1199_v7 = vmin.f32 %v1135_v4, 6.0  ;;  %v1846_v8 = vmax.f32 %v1782_v5, 0.0 }
 0x1de   : > { %v958_v9 = vpop.f32.mrf.mxu0 }
 0x1df   : > { %v1263_v11 = vmul.f32 %v1199_v7, %v956_v61  ;;  %v1910_v12 = vmin.f32 %v1846_v8, 6.0  ;;  %v959_v13 = vadd.f32 %v4844_v59, %v958_v9  ;;  %v4920_v7 = vpop.f32.mrf.mxu3 }
 0x1e0   : > { %v1635_v16 = vpop.f32.mrf.mxu1  ;;  %4195 = vmatmul.msk.f32.gmra.mxu3 %vm1359_vm2, %v4757_v52 }
 0x1e1   : > { %v1327_v17 = vmul.f32 0.16666667, %v1263_v11  ;;  %v1974_v18 = vmul.f32 %v1910_v12, %v1633_v2  ;;  %v1072_v19 = vadd.f32 3.0, %v959_v13  ;;  %v1636_v21 = vadd.f32 %v4696_v31, %v1635_v16  ;;  %4094 = vmatmul.msk.f32.gmra.mxu0 %vm627_vm1, %v612_v10  ;;  %v616_v12 = vld [vmem:[%s4577_s0 + $0x1d8] sm:$0xff] }
 0x1e3   : > { %v2038_v22 = vmul.f32 0.16666667, %v1974_v18  ;;  %v1136_v23 = vmax.f32 %v1072_v19, 0.0  ;;  %4141 = vmatmul.msk.f32.gmra.mxu1 %vm1359_vm2, %v1327_v17  ;;  %v1783_v24 = vadd.f32 3.0, %v1636_v21 }
 0x1e5   : > { %v1200_v25 = vmin.f32 %v1136_v23, 6.0  ;;  %2502 = vmatpush.msra.mxu2 %v2038_v22  ;;  %v1847_v32 = vmax.f32 %v1783_v24, 0.0  ;;  %v4929_v22 = vld [vmem:[%s6111_s4] ss:$0 sm:$0xff] }
 0x1e6   : > { %v961_v27 = vpop.f32.mrf.mxu0 }
 0x1e7   : > { %v1264_v29 = vmul.f32 %v1200_v25, %v959_v13  ;;  %v962_v30 = vadd.f32 %v4844_v59, %v961_v27  ;;  %2503 = vmatpush.msra.mxu2 %v2037_v26  ;;  %v1911_v39 = vmin.f32 %v1847_v32, 6.0  ;;  %v4934_v26 = vpop.f32.mrf.mxu3 }
 0x1e8   : > { %v1638_v33 = vpop.f32.mrf.mxu1  ;;  %4197 = vmatmul.msk.f32.vlgmr.msra.gmra.mxu2 %vm1359_vm2, %v4739_v15  ;;  %4196 = vmatmul.msk.f32.gmra.mxu3 %vm1359_vm2, %v4771_v3 }
 0x1e9   : > { %v1328_v34 = vmul.f32 0.16666667, %v1264_v29  ;;  %v1073_v35 = vadd.f32 3.0, %v962_v30  ;;  %v1639_v36 = vadd.f32 %v4696_v31, %v1638_v33  ;;  %4095 = vmatmul.msk.f32.gmra.mxu0 %vm627_vm1, %v613_v28  ;;  %v1975_v47 = vmul.f32 %v1911_v39, %v1636_v21  ;;  %v617_v33 = vld [vmem:[%s4577_s0 + $0x1e0] sm:$0xff] }
 0x1eb   : > { %v1137_v37 = vmax.f32 %v1073_v35, 0.0  ;;  %v1784_v38 = vadd.f32 3.0, %v1639_v36  ;;  %4142 = vmatmul.msk.f32.gmra.mxu1 %vm1359_vm2, %v1328_v34  ;;  %v2039_v20 = vmul.f32 0.16666667, %v1975_v47 }
 0x1ed   : > { %v1201_v40 = vmin.f32 %v1137_v37, 6.0  ;;  %v1848_v41 = vmax.f32 %v1784_v38, 0.0 }
 0x1ee   : > { %v964_v42 = vpop.f32.mrf.mxu0 }
 0x1ef   : > { %v1265_v44 = vmul.f32 %v1201_v40, %v962_v30  ;;  %v1912_v45 = vmin.f32 %v1848_v41, 6.0  ;;  %v965_v46 = vadd.f32 %v4844_v59, %v964_v42  ;;  %v4936_v30 = vpop.f32.mrf.mxu2 }
 0x1f0   : > { %v1641_v48 = vpop.f32.mrf.mxu1  ;;  %4198 = vmatmul.msk.f32.gmra.mxu2 %vm1359_vm2, %v4757_v52 }
 0x1f1   : > { %v1329_v49 = vmul.f32 0.16666667, %v1265_v44  ;;  %v1976_v50 = vmul.f32 %v1912_v45, %v1639_v36  ;;  %v1074_v51 = vadd.f32 3.0, %v965_v46  ;;  %v1642_v53 = vadd.f32 %v4696_v31, %v1641_v48  ;;  %4096 = vmatmul.msk.f32.gmra.mxu0 %vm627_vm1, %v614_v43  ;;  %v4947_v43 = vpop.f32.mrf.mxu3 }
 0x1f3   : > { %v2040_v54 = vmul.f32 0.16666667, %v1976_v50  ;;  %v1138_v55 = vmax.f32 %v1074_v51, 0.0  ;;  %4143 = vmatmul.msk.f32.gmra.mxu1 %vm1359_vm2, %v1329_v49  ;;  %v1785_v56 = vadd.f32 3.0, %v1642_v53  ;;  %v618_v49 = vld [vmem:[%s4577_s0 + $0x1e8] sm:$0xff]  ;;  %s6092_s0 = sand.u32 1, %s4413_s25  }
 0x1f4   : > { %s5931_s26 = scalar_lea.vmem [#allocation2], %s6092_s0  ;;  %s6168_s0 = sand.u32 1, %s4413_s25  }
 0x1f5   : > { %v1202_v57 = vmin.f32 %v1138_v55, 6.0  ;;  %2534 = vmatpush.msra.mxu3 %v2040_v54  ;;  %v1849_v63 = vmax.f32 %v1785_v56, 0.0  ;;  %s3951_s22 = sshll.u32 %s5931_s26, 4  ;;  %s3938_s3 = scalar_lea.sflag [#allocation3], %s6168_s0  ;;  %s3952_s22 = int_to_ptr.vmem [resolvable:$true] %s3951_s22 }
 0x1f6   : > { %v967_v58 = vpop.f32.mrf.mxu0 }
 0x1f7   : > { %v1266_v61 = vmul.f32 %v1202_v57, %v965_v46  ;;  %v968_v62 = vadd.f32 %v4844_v59, %v967_v58  ;;  %2535 = vmatpush.msra.mxu3 %v2039_v20  ;;  %v1913_v8 = vmin.f32 %v1849_v63, 6.0  ;;  %v2116_v47 = vpop.f32.mrf.mxu2 }
 0x1f8   : > { %v1644_v0 = vpop.f32.mrf.mxu1  ;;  %4200 = vmatmul.msk.f32.vlgmr.msra.gmra.mxu3 %vm1359_vm2, %v4739_v15  ;;  %4199 = vmatmul.msk.f32.gmra.mxu2 %vm1359_vm2, %v4771_v3 }
 0x1f9   : > { %v1330_v1 = vmul.f32 0.16666667, %v1266_v61  ;;  %v1075_v2 = vadd.f32 3.0, %v968_v62  ;;  %v1645_v4 = vadd.f32 %v4696_v31, %v1644_v0  ;;  %4097 = vmatmul.msk.f32.gmra.mxu0 %vm627_vm1, %v615_v60  ;;  %v1977_v17 = vmul.f32 %v1913_v8, %v1642_v53 }
 0x1fb   : > { %v1139_v5 = vmax.f32 %v1075_v2, 0.0  ;;  %v1786_v6 = vadd.f32 3.0, %v1645_v4  ;;  %4144 = vmatmul.msk.f32.gmra.mxu1 %vm1359_vm2, %v1330_v1  ;;  %v2041_v29 = vmul.f32 0.16666667, %v1977_v17 }
 0x1fd   : > { %v1203_v9 = vmin.f32 %v1139_v5, 6.0  ;;  %v1850_v10 = vmax.f32 %v1786_v6, 0.0 }
 0x1fe   : > { %v970_v11 = vpop.f32.mrf.mxu0 }
 0x1ff   : > { %v1267_v13 = vmul.f32 %v1203_v9, %v968_v62  ;;  %v1914_v14 = vmin.f32 %v1850_v10, 6.0  ;;  %v971_v16 = vadd.f32 %v4844_v59, %v970_v11  ;;  %v4956_v62 = vpop.f32.mrf.mxu3  ;;  %v2119_v2 = vpop.f32.mrf.mxu2 }
 0x200   : > { %v1647_v18 = vpop.f32.mrf.mxu1  ;;  %4201 = vmatmul.msk.f32.gmra.mxu3 %vm1359_vm2, %v4757_v52 }
 0x201   : > { %v1331_v31 = vmul.f32 0.16666667, %v1267_v13  ;;  %v1978_v19 = vmul.f32 %v1914_v14, %v1645_v4  ;;  %v1076_v21 = vadd.f32 3.0, %v971_v16  ;;  %v1648_v23 = vadd.f32 %v4929_v22, %v1647_v18  ;;  %4098 = vmatmul.msk.f32.gmra.mxu0 %vm627_vm1, %v616_v12 }
 0x203   : > { %v2042_v24 = vmul.f32 0.16666667, %v1978_v19  ;;  %v1140_v25 = vmax.f32 %v1076_v21, 0.0  ;;  %4145 = vmatmul.msk.f32.gmra.mxu1 %vm1359_vm2, %v1331_v31  ;;  %v1787_v27 = vadd.f32 3.0, %v1648_v23  ;;  %v4970_v19 = vld [vmem:[%s6113_s6] sm:$0xff] }
 0x205   : > { %v1204_v28 = vmin.f32 %v1140_v25, 6.0  ;;  %2578 = vmatpush.msrb.mxu2 %v2042_v24  ;;  %v1851_v36 = vmax.f32 %v1787_v27, 0.0  ;;  %v4975_v24 = vperm.slane %v4970_v19, 3  ;;  %v4978_v25 = vperm.slane %v4970_v19, 4 }
 0x206   : > { %v973_v32 = vpop.f32.mrf.mxu0 }
 0x207   : > { %v1268_v34 = vmul.f32 %v1204_v28, %v971_v16  ;;  %v974_v35 = vadd.f32 %v4844_v59, %v973_v32  ;;  %2579 = vmatpush.msrb.mxu2 %v2041_v29  ;;  %v1915_v44 = vmin.f32 %v1851_v36, 6.0  ;;  %v4965_v16 = vpop.f32.mrf.mxu3  ;;  %v4972_v21 = vpop.f32.mrf.mxu2  ;;  %v4985_v36 = vperm.slane %v4970_v19, 5 }
 0x208   : > { %v1650_v37 = vpop.f32.mrf.mxu1  ;;  %4202 = vmatmul.msk.f32.gmra.mxu3 %vm1359_vm2, %v4771_v3  ;;  %4203 = vmatmul.msk.f32.vlgmr.msrb.gmra.mxu2 %vm1359_vm2, %v4739_v15 }
 0x209   : > { %v1332_v38 = vmul.f32 0.16666667, %v1268_v34  ;;  %v1077_v39 = vadd.f32 3.0, %v974_v35  ;;  %v1651_v40 = vadd.f32 %v4929_v22, %v1650_v37  ;;  %4099 = vmatmul.msk.f32.gmra.mxu0 %vm627_vm1, %v617_v33  ;;  %v1979_v54 = vmul.f32 %v1915_v44, %v1648_v23 }
 0x20a   : > { %v2123_v34 = vmul.f32 %v4975_v24, %v4936_v30 }
 0x20b   : > { %v1141_v41 = vmax.f32 %v1077_v39, 0.0  ;;  %v1788_v42 = vadd.f32 3.0, %v1651_v40  ;;  %4146 = vmatmul.msk.f32.gmra.mxu1 %vm1359_vm2, %v1332_v38  ;;  %v2043_v1 = vmul.f32 0.16666667, %v1979_v54 }
 0x20d   : > { %v1205_v45 = vmin.f32 %v1141_v41, 6.0  ;;  %v1852_v46 = vmax.f32 %v1788_v42, 0.0  ;;  %v2129_v42 = vmul.f32 %v4985_v36, %v2119_v2 }
 0x20e   : > { %v976_v48 = vpop.f32.mrf.mxu0 }
 0x20f   : > { %v1269_v50 = vmul.f32 %v1205_v45, %v974_v35  ;;  %v1916_v51 = vmin.f32 %v1852_v46, 6.0  ;;  %v977_v53 = vadd.f32 %v4844_v59, %v976_v48  ;;  %v2126_v35 = vmul.f32 %v4978_v25, %v2116_v47  ;;  %v4992_v30 = vpop.f32.mrf.mxu3 }
 0x210   : > { %v1653_v55 = vpop.f32.mrf.mxu1  ;;  %4204 = vmatmul.msk.f32.gmra.mxu2 %vm1359_vm2, %v4757_v52 }
 0x211   : > { %v1333_v56 = vmul.f32 0.16666667, %v1269_v50  ;;  %v1980_v57 = vmul.f32 %v1916_v51, %v1651_v40  ;;  %v1078_v20 = vadd.f32 3.0, %v977_v53  ;;  %v1654_v58 = vadd.f32 %v4929_v22, %v1653_v55  ;;  %4100 = vmatmul.msk.f32.gmra.mxu0 %vm627_vm1, %v618_v49  ;;  %v4996_v50 = vpop.f32.mrf.mxu2 }
 0x212   : > { %v2127_v41 = vadd.f32 %v2126_v35, %v2123_v34 }
 0x213   : > { %v2044_v60 = vmul.f32 0.16666667, %v1980_v57  ;;  %v1142_v61 = vmax.f32 %v1078_v20, 0.0  ;;  %4147 = vmatmul.msk.f32.gmra.mxu1 %vm1359_vm2, %v1333_v56  ;;  %v1789_v63 = vadd.f32 3.0, %v1654_v58 }
 0x214   : > { %v4994_v49 = vadd.f32 %v2129_v42, %v2127_v41 }
 0x215   : > { %v1206_v0 = vmin.f32 %v1142_v61, 6.0  ;;  %2610 = vmatpush.msrb.mxu3 %v2044_v60  ;;  %v1853_v8 = vmax.f32 %v1789_v63, 0.0 }
 0x216   : > { %v979_v4 = vpop.f32.mrf.mxu0 }
 0x217   : > { %v1270_v5 = vmul.f32 %v1206_v0, %v977_v53  ;;  %v980_v6 = vadd.f32 %v4844_v59, %v979_v4  ;;  %2611 = vmatpush.msrb.mxu3 %v2043_v1  ;;  %v1917_v17 = vmin.f32 %v1853_v8, 6.0  ;;  %v5005_v63 = vpop.f32.mrf.mxu3 }
 0x218   : > { %v1656_v9 = vpop.f32.mrf.mxu1  ;;  %4206 = vmatmul.msk.f32.vlgmr.msrb.gmra.mxu3 %vm1359_vm2, %v4739_v15  ;;  %4205 = vmatmul.msk.f32.gmra.mxu2 %vm1359_vm2, %v4771_v3 }
 0x219   : > { %v1334_v10 = vmul.f32 0.16666667, %v1270_v5  ;;  %v1079_v11 = vadd.f32 3.0, %v980_v6  ;;  %v1657_v12 = vadd.f32 %v4929_v22, %v1656_v9  ;;  %v1981_v32 = vmul.f32 %v1917_v17, %v1654_v58  ;;  %v5007_v4 = vpop.f32.mrf.mxu2 }
 0x21b   : > { %v1143_v13 = vmax.f32 %v1079_v11, 0.0  ;;  %v1790_v14 = vadd.f32 3.0, %v1657_v12  ;;  %4148 = vmatmul.msk.f32.gmra.mxu1 %vm1359_vm2, %v1334_v10  ;;  %v2045_v48 = vmul.f32 0.16666667, %v1981_v32 }
 0x21d   : > { %v1207_v18 = vmin.f32 %v1143_v13, 6.0  ;;  %v1854_v31 = vmax.f32 %v1790_v14, 0.0 }
 0x21e   : > { %v982_v23 = vpop.f32.mrf.mxu0 }
 0x21f   : > { %v1271_v27 = vmul.f32 %v1207_v18, %v980_v6  ;;  %v1918_v28 = vmin.f32 %v1854_v31, 6.0  ;;  %v983_v29 = vadd.f32 %v4844_v59, %v982_v23  ;;  %v5014_v31 = vpop.f32.mrf.mxu3 }
 0x220   : > { %v1659_v33 = vpop.f32.mrf.mxu1  ;;  %4207 = vmatmul.msk.f32.gmra.mxu3 %vm1359_vm2, %v4757_v52 }
 0x221   : > { %v1335_v37 = vmul.f32 0.16666667, %v1271_v27  ;;  %v1982_v38 = vmul.f32 %v1918_v28, %v1657_v12  ;;  %v1080_v39 = vadd.f32 3.0, %v983_v29  ;;  %v1660_v40 = vadd.f32 %v4929_v22, %v1659_v33 }
 0x223   : > { %v2046_v44 = vmul.f32 0.16666667, %v1982_v38  ;;  %v1144_v45 = vmax.f32 %v1080_v39, 0.0  ;;  %4149 = vmatmul.msk.f32.gmra.mxu1 %vm1359_vm2, %v1335_v37  ;;  %v1791_v46 = vadd.f32 3.0, %v1660_v40  ;;  %v5022_v37 = vld [vmem:[%s6112_s5] sm:$0xff] }
 0x225   : > { %v1208_v47 = vmin.f32 %v1144_v45, 6.0  ;;  %2654 = vmatpush.msra.mxu2 %v2046_v44  ;;  %v1855_v55 = vmax.f32 %v1791_v46, 0.0 }
 0x226   : > { %v985_v51 = vpop.f32.mrf.mxu0 }
 0x227   : > { %v1272_v53 = vmul.f32 %v1208_v47, %v983_v29  ;;  %v986_v54 = vadd.f32 %v4844_v59, %v985_v51  ;;  %2655 = vmatpush.msra.mxu2 %v2045_v48  ;;  %v1919_v0 = vmin.f32 %v1855_v55, 6.0  ;;  %v5016_v29 = vpop.f32.mrf.mxu2  ;;  %v5030_v44 = vpop.f32.mrf.mxu3 }
 0x228   : > { %v1662_v56 = vpop.f32.mrf.mxu1  ;;  %4208 = vmatmul.msk.f32.gmra.mxu3 %vm1359_vm2, %v4771_v3  ;;  %4209 = vmatmul.msk.f32.vlgmr.msra.gmra.mxu2 %vm1359_vm2, %v4739_v15 }
 0x229   : > { %v1336_v57 = vmul.f32 0.16666667, %v1272_v53  ;;  %v1081_v20 = vadd.f32 3.0, %v986_v54  ;;  %v1663_v58 = vadd.f32 %v4929_v22, %v1662_v56  ;;  %v1983_v9 = vmul.f32 %v1919_v0, %v1660_v40 }
 0x22b   : > { %v1145_v60 = vmax.f32 %v1081_v20, 0.0  ;;  %v1792_v61 = vadd.f32 3.0, %v1663_v58  ;;  %4150 = vmatmul.msk.f32.gmra.mxu1 %vm1359_vm2, %v1336_v57  ;;  %v2047_v28 = vmul.f32 0.16666667, %v1983_v9  ;;  %v5038_v57 = vld [vmem:[%s6112_s5 + $0x8] sm:$0xff] }
 0x22d   : > { %v1209_v1 = vmin.f32 %v1145_v60, 6.0  ;;  %v1856_v2 = vmax.f32 %v1792_v61, 0.0 }
 0x22e   : > { %v988_v5 = vpop.f32.mrf.mxu0 }
 0x22f   : > { %v1273_v6 = vmul.f32 %v1209_v1, %v986_v54  ;;  %v1920_v8 = vmin.f32 %v1856_v2, 6.0  ;;  %v989_v15 = vadd.f32 %v4844_v59, %v988_v5  ;;  %v5032_v48 = vpop.f32.mrf.mxu2  ;;  %v5044_v2 = vpop.f32.mrf.mxu3 }
 0x230   : > { %v1665_v10 = vpop.f32.mrf.mxu1  ;;  %4210 = vmatmul.msk.f32.gmra.mxu2 %vm1359_vm2, %v4757_v52 }
 0x231   : > { %v1337_v11 = vmul.f32 0.16666667, %v1273_v6  ;;  %v1984_v12 = vmul.f32 %v1920_v8, %v1663_v58  ;;  %v1082_v13 = vadd.f32 3.0, %v989_v15  ;;  %v1666_v14 = vadd.f32 %v4929_v22, %v1665_v10 }
 0x233   : > { %v2048_v17 = vmul.f32 0.16666667, %v1984_v12  ;;  %v1146_v18 = vmax.f32 %v1082_v13, 0.0  ;;  %4151 = vmatmul.msk.f32.gmra.mxu1 %vm1359_vm2, %v1337_v11  ;;  %v1793_v23 = vadd.f32 3.0, %v1666_v14 }
 0x235   : > { %v1210_v27 = vmin.f32 %v1146_v18, 6.0  ;;  %2686 = vmatpush.msra.mxu3 %v2048_v17  ;;  %v1857_v34 = vmax.f32 %v1793_v23, 0.0 }
 0x236   : > { %v991_v32 = vpop.f32.mrf.mxu0 }
 0x237   : > { %v1274_v33 = vmul.f32 %v1210_v27, %v989_v15  ;;  %v992_v52 = vadd.f32 %v4844_v59, %v991_v32  ;;  %2687 = vmatpush.msra.mxu3 %v2047_v28  ;;  %v1921_v45 = vmin.f32 %v1857_v34, 6.0  ;;  %v5046_v15 = vpop.f32.mrf.mxu2  ;;  %v5060_v32 = vpop.f32.mrf.mxu3 }
 0x238   : > { %v1668_v35 = vpop.f32.mrf.mxu1  ;;  %4212 = vmatmul.msk.f32.vlgmr.msra.gmra.mxu3 %vm1359_vm2, %v5022_v37  ;;  %4211 = vmatmul.msk.f32.gmra.mxu2 %vm1359_vm2, %v4771_v3 }
 0x239   : > { %v1338_v38 = vmul.f32 0.16666667, %v1274_v33  ;;  %v1083_v39 = vadd.f32 3.0, %v992_v52  ;;  %v1669_v40 = vadd.f32 %v4929_v22, %v1668_v35  ;;  %v1985_v55 = vmul.f32 %v1921_v45, %v1666_v14  ;;  %v5052_v14 = vld [vmem:[%s6112_s5 + $0x10] sm:$0xff] }
 0x23b   : > { %v1147_v41 = vmax.f32 %v1083_v39, 0.0  ;;  %v1794_v42 = vadd.f32 3.0, %v1669_v40  ;;  %4152 = vmatmul.msk.f32.gmra.mxu1 %vm1359_vm2, %v1338_v38  ;;  %v2049_v8 = vmul.f32 0.16666667, %v1985_v55 }
 0x23d   : > { %v1211_v46 = vmin.f32 %v1147_v41, 6.0  ;;  %v1858_v47 = vmax.f32 %v1794_v42, 0.0 }
 0x23e   : > { %v994_v51 = vpop.f32.mrf.mxu0 }
 0x23f   : > { %v1275_v53 = vmul.f32 %v1211_v46, %v992_v52  ;;  %v1922_v54 = vmin.f32 %v1858_v47, 6.0  ;;  %v995_v3 = vadd.f32 %v4844_v59, %v994_v51  ;;  %v5062_v35 = vpop.f32.mrf.mxu2 }
 0x240   : > { %v1671_v56 = vpop.f32.mrf.mxu1  ;;  %4213 = vmatmul.msk.f32.gmra.mxu3 %vm1359_vm2, %v5038_v57 }
 0x241   : > { %v1339_v20 = vmul.f32 0.16666667, %v1275_v53  ;;  %v1986_v58 = vmul.f32 %v1922_v54, %v1669_v40  ;;  %v1084_v60 = vadd.f32 3.0, %v995_v3  ;;  %v1672_v61 = vadd.f32 %v4929_v22, %v1671_v56 }
 0x243   : > { %v2050_v0 = vmul.f32 0.16666667, %v1986_v58  ;;  %v1148_v1 = vmax.f32 %v1084_v60, 0.0  ;;  %4153 = vmatmul.msk.f32.gmra.mxu1 %vm1359_vm2, %v1339_v20  ;;  %v1795_v5 = vadd.f32 3.0, %v1672_v61  ;;  %v5069_v58 = vpop.f32.mrf.mxu3 }
 0x245   : > { %v1212_v6 = vmin.f32 %v1148_v1, 6.0  ;;  %2730 = vmatpush.msrb.mxu2 %v2050_v0  ;;  %v1859_v12 = vmax.f32 %v1795_v5, 0.0 }
 0x246   : > { %v997_v9 = vpop.f32.mrf.mxu0 }
 0x247   : > { %v1276_v10 = vmul.f32 %v1212_v6, %v995_v3  ;;  %v998_v11 = vadd.f32 %v4844_v59, %v997_v9  ;;  %2731 = vmatpush.msrb.mxu2 %v2049_v8  ;;  %v1923_v33 = vmin.f32 %v1859_v12, 6.0  ;;  %v5071_v60 = vpop.f32.mrf.mxu2 }
 0x248   : > { %v1674_v13 = vpop.f32.mrf.mxu1  ;;  %4214 = vmatmul.msk.f32.gmra.mxu3 %vm1359_vm2, %v5052_v14  ;;  %4215 = vmatmul.msk.f32.vlgmr.msrb.gmra.mxu2 %vm1359_vm2, %v5022_v37 }
 0x249   : > { %v1340_v17 = vmul.f32 0.16666667, %v1276_v10  ;;  %v1085_v18 = vadd.f32 3.0, %v998_v11  ;;  %v1675_v23 = vadd.f32 %v4929_v22, %v1674_v13  ;;  %v1987_v42 = vmul.f32 %v1923_v33, %v1672_v61 }
 0x24b   : > { %v1149_v27 = vmax.f32 %v1085_v18, 0.0  ;;  %v1796_v28 = vadd.f32 3.0, %v1675_v23  ;;  %4154 = vmatmul.msk.f32.gmra.mxu1 %vm1359_vm2, %v1340_v17  ;;  %v2051_v20 = vmul.f32 0.16666667, %v1987_v42 }
 0x24d   : > { %v1213_v52 = vmin.f32 %v1149_v27, 6.0  ;;  %v1860_v34 = vmax.f32 %v1796_v28, 0.0 }
 0x24e   : > { %v1000_v38 = vpop.f32.mrf.mxu0 }
 0x24f   : > { %v1277_v39 = vmul.f32 %v1213_v52, %v998_v11  ;;  %v1924_v40 = vmin.f32 %v1860_v34, 6.0  ;;  %v1001_v41 = vadd.f32 %v4844_v59, %v1000_v38  ;;  %v5083_v34 = vpop.f32.mrf.mxu3 }
 0x250   : > { %v1677_v45 = vpop.f32.mrf.mxu1  ;;  %4216 = vmatmul.msk.f32.gmra.mxu2 %vm1359_vm2, %v5038_v57 }
 0x251   : > { %v1341_v46 = vmul.f32 0.16666667, %v1277_v39  ;;  %v1988_v47 = vmul.f32 %v1924_v40, %v1675_v23  ;;  %v1086_v51 = vadd.f32 3.0, %v1001_v41  ;;  %v1678_v53 = vadd.f32 %v4929_v22, %v1677_v45  ;;  %v5080_v23 = vpop.f32.mrf.mxu2 }
 0x253   : > { %v2052_v54 = vmul.f32 0.16666667, %v1988_v47  ;;  %v1150_v3 = vmax.f32 %v1086_v51, 0.0  ;;  %4155 = vmatmul.msk.f32.gmra.mxu1 %vm1359_vm2, %v1341_v46  ;;  %v1797_v55 = vadd.f32 3.0, %v1678_v53 }
 0x255   : > { %v1214_v56 = vmin.f32 %v1150_v3, 6.0  ;;  %2762 = vmatpush.msrb.mxu3 %v2052_v54  ;;  %v1861_v5 = vmax.f32 %v1797_v55, 0.0 }
 0x256   : > { %v1003_v61 = vpop.f32.mrf.mxu0 }
 0x257   : > { %v1278_v0 = vmul.f32 %v1214_v56, %v1001_v41  ;;  %v1004_v1 = vadd.f32 %v4844_v59, %v1003_v61  ;;  %2763 = vmatpush.msrb.mxu3 %v2051_v20  ;;  %v1925_v13 = vmin.f32 %v1861_v5, 6.0 }
 0x258   : > { %v1680_v6 = vpop.f32.mrf.mxu1  ;;  %4218 = vmatmul.msk.f32.vlgmr.msrb.gmra.mxu3 %vm1359_vm2, %v5022_v37  ;;  %4217 = vmatmul.msk.f32.gmra.mxu2 %vm1359_vm2, %v5052_v14 }
 0x259   : > { %v1342_v8 = vmul.f32 0.16666667, %v1278_v0  ;;  %v1087_v9 = vadd.f32 3.0, %v1004_v1  ;;  %v1681_v10 = vadd.f32 %v4929_v22, %v1680_v6  ;;  %v1989_v38 = vmul.f32 %v1925_v13, %v1678_v53  ;;  %v5089_v55 = vpop.f32.mrf.mxu2 }
 0x25b   : > { %v1151_v11 = vmax.f32 %v1087_v9, 0.0  ;;  %v1798_v12 = vadd.f32 3.0, %v1681_v10  ;;  %4156 = vmatmul.msk.f32.gmra.mxu1 %vm1359_vm2, %v1342_v8  ;;  %v2053_v3 = vmul.f32 0.16666667, %v1989_v38  ;;  %v5097_v8 = vpop.f32.mrf.mxu3 }
 0x25d   : > { %v1215_v17 = vmin.f32 %v1151_v11, 6.0  ;;  %v1862_v18 = vmax.f32 %v1798_v12, 0.0 }
 0x25e   : > { %v1006_v27 = vpop.f32.mrf.mxu0 }
 0x25f   : > { %v1279_v28 = vmul.f32 %v1215_v17, %v1004_v1  ;;  %v1926_v33 = vmin.f32 %v1862_v18, 6.0  ;;  %v1007_v52 = vadd.f32 %v4844_v59, %v1006_v27 }
 0x260   : > { %v1683_v39 = vpop.f32.mrf.mxu1  ;;  %4219 = vmatmul.msk.f32.gmra.mxu3 %vm1359_vm2, %v5038_v57 }
 0x261   : > { %v1343_v40 = vmul.f32 0.16666667, %v1279_v28  ;;  %v1990_v41 = vmul.f32 %v1926_v33, %v1681_v10  ;;  %v1088_v42 = vadd.f32 3.0, %v1007_v52  ;;  %v1684_v45 = vadd.f32 %v4929_v22, %v1683_v39  ;;  %v5100_v17 = vpop.f32.mrf.mxu2 }
 0x263   : > { %v2054_v46 = vmul.f32 0.16666667, %v1990_v41  ;;  %v1152_v47 = vmax.f32 %v1088_v42, 0.0  ;;  %4157 = vmatmul.msk.f32.gmra.mxu1 %vm1359_vm2, %v1343_v40  ;;  %v1799_v51 = vadd.f32 3.0, %v1684_v45 }
 0x265   : > { %v1216_v54 = vmin.f32 %v1152_v47, 6.0  ;;  %2806 = vmatpush.msra.mxu2 %v2054_v46  ;;  %v1863_v61 = vmax.f32 %v1799_v51, 0.0  ;;  %v5107_v51 = vpop.f32.mrf.mxu3 }
 0x266   : > { %v1009_v53 = vpop.f32.mrf.mxu0 }
 0x267   : > { %v1280_v56 = vmul.f32 %v1216_v54, %v1007_v52  ;;  %v1010_v20 = vadd.f32 %v4844_v59, %v1009_v53  ;;  %2807 = vmatpush.msra.mxu2 %v2053_v3  ;;  %v1927_v11 = vmin.f32 %v1863_v61, 6.0 }
 0x268   : > { %v1686_v0 = vpop.f32.mrf.mxu1  ;;  %4220 = vmatmul.msk.f32.gmra.mxu3 %vm1359_vm2, %v5052_v14  ;;  %4221 = vmatmul.msk.f32.vlgmr.msra.gmra.mxu2 %vm1359_vm2, %v5022_v37 }
 0x269   : > { %v1344_v1 = vmul.f32 0.16666667, %v1280_v56  ;;  %v1089_v5 = vadd.f32 3.0, %v1010_v20  ;;  %v1687_v6 = vadd.f32 %v4929_v22, %v1686_v0  ;;  %v1991_v52 = vmul.f32 %v1927_v11, %v1684_v45  ;;  %v5109_v45 = vpop.f32.mrf.mxu2 }
 0x26b   : > { %v1153_v9 = vmax.f32 %v1089_v5, 0.0  ;;  %v1800_v10 = vadd.f32 3.0, %v1687_v6  ;;  %4158 = vmatmul.msk.f32.gmra.mxu1 %vm1359_vm2, %v1344_v1  ;;  %v2055_v53 = vmul.f32 0.16666667, %v1991_v52 }
 0x26d   : > { %v1217_v12 = vmin.f32 %v1153_v9, 6.0  ;;  %v1864_v13 = vmax.f32 %v1800_v10, 0.0 }
 0x26e   : > { %v1012_v18 = vpop.f32.mrf.mxu0 }
 0x26f   : > { %v1281_v27 = vmul.f32 %v1217_v12, %v1010_v20  ;;  %v1928_v28 = vmin.f32 %v1864_v13, 6.0  ;;  %v1013_v33 = vadd.f32 %v4844_v59, %v1012_v18 }
 0x270   : > { %v1689_v38 = vpop.f32.mrf.mxu1  ;;  %4222 = vmatmul.msk.f32.gmra.mxu2 %vm1359_vm2, %v5038_v57 }
 0x271   : > { %v1345_v39 = vmul.f32 0.16666667, %v1281_v27  ;;  %v1992_v40 = vmul.f32 %v1928_v28, %v1687_v6  ;;  %v1090_v41 = vadd.f32 3.0, %v1013_v33  ;;  %v1690_v42 = vadd.f32 %v4929_v22, %v1689_v38  ;;  %v5118_v27 = vpop.f32.mrf.mxu3 }
 0x273   : > { %v2056_v46 = vmul.f32 0.16666667, %v1992_v40  ;;  %v1154_v47 = vmax.f32 %v1090_v41, 0.0  ;;  %4159 = vmatmul.msk.f32.gmra.mxu1 %vm1359_vm2, %v1345_v39  ;;  %v1801_v54 = vadd.f32 3.0, %v1690_v42  ;;  %v5121_v39 = vpop.f32.mrf.mxu2 }
 0x275   : > { %v1218_v3 = vmin.f32 %v1154_v47, 6.0  ;;  %2838 = vmatpush.msra.mxu3 %v2056_v46  ;;  %v1865_v0 = vmax.f32 %v1801_v54, 0.0 }
 0x276   : > { %v1015_v56 = vpop.f32.mrf.mxu0 }
 0x277   : > { %v1282_v20 = vmul.f32 %v1218_v3, %v1013_v33  ;;  %v1016_v61 = vadd.f32 %v4844_v59, %v1015_v56  ;;  %2839 = vmatpush.msra.mxu3 %v2055_v53  ;;  %v1929_v12 = vmin.f32 %v1865_v0, 6.0 }
 0x278   : > { %v1692_v1 = vpop.f32.mrf.mxu1  ;;  %4224 = vmatmul.msk.f32.vlgmr.msra.gmra.mxu3 %vm1359_vm2, %v5022_v37  ;;  %4223 = vmatmul.msk.f32.gmra.mxu2 %vm1359_vm2, %v5052_v14 }
 0x279   : > { %v1346_v5 = vmul.f32 0.16666667, %v1282_v20  ;;  %v1091_v6 = vadd.f32 3.0, %v1016_v61  ;;  %v1693_v9 = vadd.f32 %v4929_v22, %v1692_v1  ;;  %v1993_v40 = vmul.f32 %v1929_v12, %v1690_v42  ;;  %v4354_v42 = vld [vmem:[%s6110_s2] ss:$0 sm:$0xff] }
 0x27b   : > { %v1155_v10 = vmax.f32 %v1091_v6, 0.0  ;;  %v1802_v11 = vadd.f32 3.0, %v1693_v9  ;;  %4160 = vmatmul.msk.f32.gmra.mxu1 %vm1359_vm2, %v1346_v5  ;;  %v5130_v6 = vpop.f32.mrf.mxu3 }
 0x27d   : > { %v1219_v13 = vmin.f32 %v1155_v10, 6.0  ;;  %v1866_v18 = vmax.f32 %v1802_v11, 0.0 }
 0x27e   : > { %v1018_v28 = vpop.f32.mrf.mxu0 }
 0x27f   : > { %v1283_v33 = vmul.f32 %v1219_v13, %v1016_v61  ;;  %v1930_v52 = vmin.f32 %v1866_v18, 6.0  ;;  %v1019_v38 = vadd.f32 %v4844_v59, %v1018_v28  ;;  %v2057_v61 = vmul.f32 0.16666667, %v1993_v40  ;;  %v5137_v18 = vpop.f32.mrf.mxu2 }
 0x280   : > { %v1695_v41 = vpop.f32.mrf.mxu1  ;;  %4225 = vmatmul.msk.f32.gmra.mxu3 %vm1359_vm2, %v5038_v57  ;;  %6114 = vst [vmem:[#allocation8_spill] sm:$0xff] %v5137_v18 }
 0x281   : > { %v1347_v46 = vmul.f32 0.16666667, %v1283_v33  ;;  %v1994_v47 = vmul.f32 %v1930_v52, %v1693_v9  ;;  %v1092_v54 = vadd.f32 3.0, %v1019_v38  ;;  %v1696_v3 = vadd.f32 %v4929_v22, %v1695_v41 }
 0x283   : > { %v2058_v53 = vmul.f32 0.16666667, %v1994_v47  ;;  %v1156_v56 = vmax.f32 %v1092_v54, 0.0  ;;  %4161 = vmatmul.msk.f32.gmra.mxu1 %vm1359_vm2, %v1347_v46  ;;  %v1803_v20 = vadd.f32 3.0, %v1696_v3 }
 0x285   : > { %v1220_v0 = vmin.f32 %v1156_v56, 6.0  ;;  %2882 = vmatpush.msrb.mxu2 %v2058_v53  ;;  %v1867_v9 = vmax.f32 %v1803_v20, 0.0 }
 0x286   : > { %v1021_v59 = vpop.f32.mrf.mxu0 }
 0x287   : > { %v1284_v1 = vmul.f32 %v1220_v0, %v1019_v38  ;;  %v1022_v5 = vadd.f32 %v4354_v42, %v1021_v59  ;;  %2883 = vmatpush.msrb.mxu2 %v2057_v61  ;;  %v1931_v52 = vmin.f32 %v1867_v9, 6.0 }
 0x288   : > { %v1698_v10 = vpop.f32.mrf.mxu1  ;;  %4226 = vmatmul.msk.f32.gmra.mxu3 %vm1359_vm2, %v5052_v14  ;;  %4227 = vmatmul.msk.f32.vlgmr.msrb.gmra.mxu2 %vm1359_vm2, %v5022_v37 }
 0x289   : > { %v1348_v11 = vmul.f32 0.16666667, %v1284_v1  ;;  %v1093_v12 = vadd.f32 3.0, %v1022_v5  ;;  %v1699_v13 = vadd.f32 %v4929_v22, %v1698_v10  ;;  %v1995_v53 = vmul.f32 %v1931_v52, %v1696_v3  ;;  %v5143_v1 = vpop.f32.mrf.mxu3 }
 0x28a   : > { %6115 = vst [vmem:[#allocation9_spill] sm:$0xff] %v5143_v1 }
 0x28b   : > { %v1157_v28 = vmax.f32 %v1093_v12, 0.0  ;;  %v1804_v33 = vadd.f32 3.0, %v1699_v13  ;;  %4162 = vmatmul.msk.f32.gmra.mxu1 %vm1359_vm2, %v1348_v11  ;;  %v5146_v11 = vpop.f32.mrf.mxu2 }
 0x28c   : > { %6116 = vst [vmem:[#allocation10_spill] sm:$0xff] %v5146_v11 }
 0x28d   : > { %v1221_v38 = vmin.f32 %v1157_v28, 6.0  ;;  %v1868_v40 = vmax.f32 %v1804_v33, 0.0 }
 0x28e   : > { %v1024_v41 = vpop.f32.mrf.mxu0 }
 0x28f   : > { %v1285_v46 = vmul.f32 %v1221_v38, %v1022_v5  ;;  %v1932_v47 = vmin.f32 %v1868_v40, 6.0  ;;  %v1025_v54 = vadd.f32 %v4354_v42, %v1024_v41  ;;  %v2059_v5 = vmul.f32 0.16666667, %v1995_v53 }
 0x290   : > { %v1701_v56 = vpop.f32.mrf.mxu1  ;;  %4228 = vmatmul.msk.f32.gmra.mxu2 %vm1359_vm2, %v5038_v57 }
 0x291   : > { %v1349_v20 = vmul.f32 0.16666667, %v1285_v46  ;;  %v1996_v61 = vmul.f32 %v1932_v47, %v1699_v13  ;;  %v1094_v0 = vadd.f32 3.0, %v1025_v54  ;;  %v1702_v59 = vadd.f32 %v4929_v22, %v1701_v56  ;;  %v5154_v40 = vpop.f32.mrf.mxu3 }
 0x292   : > { %6117 = vst [vmem:[#allocation11_spill] sm:$0xff] %v5154_v40 }
 0x293   : > { %v2060_v10 = vmul.f32 0.16666667, %v1996_v61  ;;  %v1158_v9 = vmax.f32 %v1094_v0, 0.0  ;;  %4163 = vmatmul.msk.f32.gmra.mxu1 %vm1359_vm2, %v1349_v20  ;;  %v1805_v3 = vadd.f32 3.0, %v1702_v59  ;;  %v5156_v47 = vpop.f32.mrf.mxu2 }
 0x294   : > { %6118 = vst [vmem:[#allocation12_spill] sm:$0xff] %v5156_v47 }
 0x295   : > { %v1222_v42 = vmin.f32 %v1158_v9, 6.0  ;;  %2914 = vmatpush.msrb.mxu3 %v2060_v10  ;;  %v1869_v33 = vmax.f32 %v1805_v3, 0.0 }
 0x297   : > { %v1286_v12 = vmul.f32 %v1222_v42, %v1025_v54  ;;  %2915 = vmatpush.msrb.mxu3 %v2059_v5  ;;  %v1933_v41 = vmin.f32 %v1869_v33, 6.0 }
 0x298   : > { %v1704_v28 = vpop.f32.mrf.mxu1  ;;  %4230 = vmatmul.msk.f32.vlgmr.msrb.gmra.mxu3 %vm1359_vm2, %v5022_v37  ;;  %4229 = vmatmul.msk.f32.gmra.mxu2 %vm1359_vm2, %v5052_v14 }
 0x299   : > { %v1350_v13 = vmul.f32 0.16666667, %v1286_v12  ;;  %v1705_v52 = vadd.f32 %v4929_v22, %v1704_v28  ;;  %v1997_v56 = vmul.f32 %v1933_v41, %v1702_v59  ;;  %v5161_v5 = vpop.f32.mrf.mxu3 }
 0x29a   : > { %6119 = vst [vmem:[#allocation13_spill] sm:$0xff] %v5161_v5 }
 0x29b   : > { %v1806_v38 = vadd.f32 3.0, %v1705_v52  ;;  %4164 = vmatmul.msk.f32.gmra.mxu1 %vm1359_vm2, %v1350_v13  ;;  %v2061_v10 = vmul.f32 0.16666667, %v1997_v56  ;;  %v5163_v42 = vpop.f32.mrf.mxu2 }
 0x29c   : > { %6120 = vst [vmem:[#allocation14_spill] sm:$0xff] %v5163_v42 }
 0x29d   : > { %v1870_v46 = vmax.f32 %v1806_v38, 0.0 }
 0x29f   : > { %v1934_v54 = vmin.f32 %v1870_v46, 6.0 }
 0x2a0   : > { %v1707_v53 = vpop.f32.mrf.mxu1  ;;  %4231 = vmatmul.msk.f32.gmra.mxu3 %vm1359_vm2, %v5038_v57 }
 0x2a1   : > { %v1998_v20 = vmul.f32 %v1934_v54, %v1705_v52  ;;  %v1708_v61 = vadd.f32 %v4929_v22, %v1707_v53  ;;  %v5170_v38 = vpop.f32.mrf.mxu3 }
 0x2a2   : > { %6121 = vst [vmem:[#allocation15_spill] sm:$0xff] %v5170_v38 }
 0x2a3   : > { %v2062_v0 = vmul.f32 0.16666667, %v1998_v20  ;;  %v1807_v9 = vadd.f32 3.0, %v1708_v61  ;;  %v5175_v56 = vpop.f32.mrf.mxu2 }
 0x2a4   : > { %6122 = vst [vmem:[#allocation16_spill] sm:$0xff] %v5175_v56 }
 0x2a5   : > { %2958 = vmatpush.msra.mxu2 %v2062_v0  ;;  %v1871_v59 = vmax.f32 %v1807_v9, 0.0 }
 0x2a7   : > { %2959 = vmatpush.msra.mxu2 %v2061_v10  ;;  %v1935_v13 = vmin.f32 %v1871_v59, 6.0 }
 0x2a8   : > { %v1710_v3 = vpop.f32.mrf.mxu1  ;;  %4232 = vmatmul.msk.f32.gmra.mxu3 %vm1359_vm2, %v5052_v14  ;;  %4233 = vmatmul.msk.f32.vlgmr.msra.gmra.mxu2 %vm1359_vm2, %v5022_v37 }
 0x2a9   : > { %v1711_v12 = vadd.f32 %v4929_v22, %v1710_v3  ;;  %v1999_v46 = vmul.f32 %v1935_v13, %v1708_v61  ;;  %v5182_v59 = vpop.f32.mrf.mxu3 }
 0x2aa   : > { %6123 = vst [vmem:[#allocation17_spill] sm:$0xff] %v5182_v59 }
 0x2ab   : > { %v1808_v28 = vadd.f32 3.0, %v1711_v12  ;;  %v2063_v0 = vmul.f32 0.16666667, %v1999_v46 }
 0x2ad   : > { %v1872_v33 = vmax.f32 %v1808_v28, 0.0  ;;  %v5184_v28 = vpop.f32.mrf.mxu2 }
 0x2ae   : > { %6124 = vst [vmem:[#allocation18_spill] sm:$0xff] %v5184_v28 }
 0x2af   : > { %v1936_v52 = vmin.f32 %v1872_v33, 6.0 }
 0x2b0   : > { %v1713_v41 = vpop.f32.mrf.mxu1  ;;  %4234 = vmatmul.msk.f32.gmra.mxu2 %vm1359_vm2, %v5038_v57 }
 0x2b1   : > { %v2000_v54 = vmul.f32 %v1936_v52, %v1711_v12  ;;  %v1714_v53 = vadd.f32 %v4929_v22, %v1713_v41 }
 0x2b3   : > { %v2064_v20 = vmul.f32 0.16666667, %v2000_v54  ;;  %v1809_v10 = vadd.f32 3.0, %v1714_v53 }
 0x2b5   : > { %2990 = vmatpush.msra.mxu3 %v2064_v20  ;;  %v1873_v3 = vmax.f32 %v1809_v10, 0.0  ;;  %v5189_v10 = vpop.f32.mrf.mxu3  ;;  %v5191_v42 = vpop.f32.mrf.mxu2 }
 0x2b6   : > { %6125 = vst [vmem:[#allocation19_spill] sm:$0xff] %v5189_v10 }
 0x2b7   : > { %2991 = vmatpush.msra.mxu3 %v2063_v0  ;;  %v1937_v13 = vmin.f32 %v1873_v3, 6.0  ;;  %6126 = vst [vmem:[#allocation20_spill] sm:$0xff] %v5191_v42 }
 0x2b8   : > { %v1716_v9 = vpop.f32.mrf.mxu1  ;;  %4236 = vmatmul.msk.f32.vlgmr.msra.gmra.mxu3 %vm1359_vm2, %v5022_v37  ;;  %4235 = vmatmul.msk.f32.gmra.mxu2 %vm1359_vm2, %v5052_v14 }
 0x2b9   : > { %v1717_v61 = vadd.f32 %v4929_v22, %v1716_v9  ;;  %v2001_v46 = vmul.f32 %v1937_v13, %v1714_v53 }
 0x2bb   : > { %v1810_v12 = vadd.f32 3.0, %v1717_v61  ;;  %v2065_v9 = vmul.f32 0.16666667, %v2001_v46 }
 0x2bd   : > { %v1874_v33 = vmax.f32 %v1810_v12, 0.0  ;;  %v5200_v46 = vpop.f32.mrf.mxu2 }
 0x2be   : > { %6128 = vst [vmem:[#allocation22_spill] sm:$0xff] %v5200_v46 }
 0x2bf   : > { %v1938_v52 = vmin.f32 %v1874_v33, 6.0 }
 0x2c0   : > { %v1719_v41 = vpop.f32.mrf.mxu1  ;;  %4237 = vmatmul.msk.f32.gmra.mxu3 %vm1359_vm2, %v5038_v57 }
 0x2c1   : > { %v2002_v54 = vmul.f32 %v1938_v52, %v1717_v61  ;;  %v1720_v20 = vadd.f32 %v4929_v22, %v1719_v41  ;;  %v5198_v52 = vpop.f32.mrf.mxu3 }
 0x2c2   : > { %6127 = vst [vmem:[#allocation21_spill] sm:$0xff] %v5198_v52 }
 0x2c3   : > { %v2066_v0 = vmul.f32 0.16666667, %v2002_v54  ;;  %v1811_v56 = vadd.f32 3.0, %v1720_v20 }
 0x2c5   : > { %3034 = vmatpush.msrb.mxu2 %v2066_v0  ;;  %v1875_v53 = vmax.f32 %v1811_v56, 0.0 }
 0x2c7   : > { %3035 = vmatpush.msrb.mxu2 %v2065_v9  ;;  %v1939_v13 = vmin.f32 %v1875_v53, 6.0 }
 0x2c8   : > { %v1722_v3 = vpop.f32.mrf.mxu1  ;;  %4238 = vmatmul.msk.f32.gmra.mxu3 %vm1359_vm2, %v5052_v14  ;;  %4239 = vmatmul.msk.f32.vlgmr.msrb.gmra.mxu2 %vm1359_vm2, %v5022_v37 }
 0x2c9   : > { %v1723_v61 = vadd.f32 %v4929_v22, %v1722_v3  ;;  %v2003_v0 = vmul.f32 %v1939_v13, %v1720_v20  ;;  %v5205_v3 = vpop.f32.mrf.mxu3 }
 0x2ca   : > { %6129 = vst [vmem:[#allocation23_spill] sm:$0xff] %v5205_v3 }
 0x2cb   : > { %v1812_v12 = vadd.f32 3.0, %v1723_v61  ;;  %v2067_v56 = vmul.f32 0.16666667, %v2003_v0 }
 0x2cd   : > { %v1876_v33 = vmax.f32 %v1812_v12, 0.0 }
 0x2cf   : > { %v1940_v41 = vmin.f32 %v1876_v33, 6.0 }
 0x2d0   : > { %v1725_v54 = vpop.f32.mrf.mxu1  ;;  %4240 = vmatmul.msk.f32.gmra.mxu2 %vm1359_vm2, %v5038_v57 }
 0x2d1   : > { %v2004_v9 = vmul.f32 %v1940_v41, %v1723_v61  ;;  %v1726_v42 = vadd.f32 %v4929_v22, %v1725_v54  ;;  %v5212_v61 = vpop.f32.mrf.mxu2  ;;  %v5217_v46 = vpop.f32.mrf.mxu3 }
 0x2d2   : > { %6130 = vst [vmem:[#allocation24_spill] sm:$0xff] %v5212_v61 }
 0x2d3   : > { %v2068_v28 = vmul.f32 0.16666667, %v2004_v9  ;;  %v1813_v10 = vadd.f32 3.0, %v1726_v42  ;;  %6131 = vst [vmem:[#allocation25_spill] sm:$0xff] %v5217_v46 }
 0x2d5   : > { %3066 = vmatpush.msrb.mxu3 %v2068_v28  ;;  %v1877_v12 = vmax.f32 %v1813_v10, 0.0 }
 0x2d7   : > { %3067 = vmatpush.msrb.mxu3 %v2067_v56  ;;  %v1941_v33 = vmin.f32 %v1877_v12, 6.0 }
 0x2d8   : > { %v1728_v53 = vpop.f32.mrf.mxu1  ;;  %4242 = vmatmul.msk.f32.vlgmr.msrb.gmra.mxu3 %vm1359_vm2, %v5022_v37  ;;  %4241 = vmatmul.msk.f32.gmra.mxu2 %vm1359_vm2, %v5052_v14 }
 0x2d9   : > { %v1729_v20 = vadd.f32 %v4929_v22, %v1728_v53  ;;  %v2005_v0 = vmul.f32 %v1941_v33, %v1726_v42  ;;  %v5219_v10 = vpop.f32.mrf.mxu2 }
 0x2da   : > { %6132 = vst [vmem:[#allocation26_spill] sm:$0xff] %v5219_v10 }
 0x2db   : > { %v1814_v13 = vadd.f32 3.0, %v1729_v20  ;;  %v2069_v53 = vmul.f32 0.16666667, %v2005_v0  ;;  %v5226_v33 = vpop.f32.mrf.mxu3 }
 0x2dc   : > { %6133 = vst [vmem:[#allocation27_spill] sm:$0xff] %v5226_v33 }
 0x2dd   : > { %v1878_v41 = vmax.f32 %v1814_v13, 0.0 }
 0x2df   : > { %v1942_v54 = vmin.f32 %v1878_v41, 6.0 }
 0x2e0   : > { %v1731_v28 = vpop.f32.mrf.mxu1  ;;  %4243 = vmatmul.msk.f32.gmra.mxu3 %vm1359_vm2, %v5038_v57 }
 0x2e1   : > { %v2006_v9 = vmul.f32 %v1942_v54, %v1729_v20  ;;  %v1732_v56 = vadd.f32 %v4929_v22, %v1731_v28  ;;  %v5228_v28 = vpop.f32.mrf.mxu2 }
 0x2e2   : > { %6134 = vst [vmem:[#allocation28_spill] sm:$0xff] %v5228_v28 }
 0x2e3   : > { %v2070_v3 = vmul.f32 0.16666667, %v2006_v9  ;;  %v1815_v52 = vadd.f32 3.0, %v1732_v56 }
 0x2e5   : > { %3110 = vmatpush.msra.mxu2 %v2070_v3  ;;  %v1879_v42 = vmax.f32 %v1815_v52, 0.0 }
 0x2e7   : > { %3111 = vmatpush.msra.mxu2 %v2069_v53  ;;  %v1943_v41 = vmin.f32 %v1879_v42, 6.0 }
 0x2e8   : > { %v1734_v12 = vpop.f32.mrf.mxu1  ;;  %4244 = vmatmul.msk.f32.gmra.mxu3 %vm1359_vm2, %v5052_v14  ;;  %4245 = vmatmul.msk.f32.vlgmr.msra.gmra.mxu2 %vm1359_vm2, %v5022_v37 }
 0x2e9   : > { %v1735_v20 = vadd.f32 %v4929_v22, %v1734_v12  ;;  %v2007_v9 = vmul.f32 %v1943_v41, %v1732_v56  ;;  %v5233_v12 = vpop.f32.mrf.mxu3 }
 0x2ea   : > { %6135 = vst [vmem:[#allocation29_spill] sm:$0xff] %v5233_v12 }
 0x2eb   : > { %v1816_v13 = vadd.f32 3.0, %v1735_v20  ;;  %v2071_v52 = vmul.f32 0.16666667, %v2007_v9  ;;  %v5235_v42 = vpop.f32.mrf.mxu2 }
 0x2ec   : > { %6136 = vst [vmem:[#allocation30_spill] sm:$0xff] %v5235_v42 }
 0x2ed   : > { %v1880_v54 = vmax.f32 %v1816_v13, 0.0 }
 0x2ef   : > { %v1944_v0 = vmin.f32 %v1880_v54, 6.0 }
 0x2f0   : > { %v1737_v3 = vpop.f32.mrf.mxu1  ;;  %4246 = vmatmul.msk.f32.gmra.mxu2 %vm1359_vm2, %v5038_v57 }
 0x2f1   : > { %v2008_v53 = vmul.f32 %v1944_v0, %v1735_v20  ;;  %v1738_v10 = vadd.f32 %v4929_v22, %v1737_v3  ;;  %v5244_v22 = vld [vmem:[%s6111_s4] ss:$0 sm:$0xff]  ;;  %v5247_v3 = vpop.f32.mrf.mxu3  ;;  %s3949_s4 = scalar_lea.hbm %s6074_s17, %s4534_s28 }
 0x2f2   : > { %6137 = vst [vmem:[#allocation31_spill] sm:$0xff] %v5247_v3  ;;  %v1759_v28 = vadd.f32 %v5244_v22, %v4934_v26 }
 0x2f3   : > { %v2072_v61 = vmul.f32 0.16666667, %v2008_v53  ;;  %v1817_v46 = vadd.f32 3.0, %v1738_v10  ;;  %v5252_v42 = vpop.f32.mrf.mxu2 }
 0x2f4   : > { %6138 = vst [vmem:[#allocation32_spill] sm:$0xff] %v5252_v42 }
 0x2f5   : > { %3142 = vmatpush.msra.mxu3 %v2072_v61  ;;  %v1881_v56 = vmax.f32 %v1817_v46, 0.0 }
 0x2f7   : > { %3143 = vmatpush.msra.mxu3 %v2071_v52  ;;  %v1945_v41 = vmin.f32 %v1881_v56, 6.0  ;;  %v3689_v56 = vld [vmem:[%s6069_s12 + $0x38] sm:$0xff] }
 0x2f8   : > { %v1740_v13 = vpop.f32.mrf.mxu1  ;;  %4248 = vmatmul.msk.f32.vlgmr.msra.gmra.mxu3 %vm1359_vm2, %v5022_v37  ;;  %4247 = vmatmul.msk.f32.gmra.mxu2 %vm1359_vm2, %v5052_v14 }
 0x2f9   : > { %v1741_v61 = vadd.f32 %v5244_v22, %v1740_v13  ;;  %v2009_v53 = vmul.f32 %v1945_v41, %v1738_v10  ;;  %3702 = vmatpush.msrb.mxu0 %v3689_v56  ;;  %v1824_v10 = vadd.f32 3.0, %v1759_v28  ;;  %v5265_v41 = vperm.slane %v4970_v19, 1 }
 0x2fb   : > { %v1818_v20 = vadd.f32 3.0, %v1741_v61  ;;  %v2179_v56 = vmul.f32 %v5265_v41, %v4956_v62  ;;  %v5281_v12 = vpop.f32.mrf.mxu2 }
 0x2fd   : > { %v1882_v54 = vmax.f32 %v1818_v20, 0.0  ;;  %v1756_v20 = vadd.f32 %v5244_v22, %v4920_v7 }
 0x2ff   : > { %v1946_v0 = vmin.f32 %v1882_v54, 6.0  ;;  %v2073_v54 = vmul.f32 0.16666667, %v2009_v53  ;;  %v5272_v53 = vpop.f32.mrf.mxu3 }
 0x300   : > { %v1743_v9 = vpop.f32.mrf.mxu1  ;;  %4249 = vmatmul.msk.f32.gmra.mxu3 %vm1359_vm2, %v5038_v57  ;;  %6139 = vst [vmem:[#allocation33_spill] sm:$0xff] %v5272_v53 }
 0x301   : > { %v2010_v52 = vmul.f32 %v1946_v0, %v1741_v61  ;;  %v1744_v46 = vadd.f32 %v5244_v22, %v1743_v9  ;;  %v5262_v61 = vperm.slane %v4970_v19, 0  ;;  %v1823_v0 = vadd.f32 3.0, %v1756_v20 }
 0x303   : > { %v2074_v13 = vmul.f32 0.16666667, %v2010_v52  ;;  %v1819_v3 = vadd.f32 3.0, %v1744_v46  ;;  %v1888_v52 = vmax.f32 %v1824_v10, 0.0  ;;  %v1887_v33 = vmax.f32 %v1823_v0, 0.0 }
 0x304   : > { %v5289_v0 = vperm.slane %v4970_v19, 6 }
 0x305   : > { %3186 = vmatpush.msrb.mxu2 %v2074_v13  ;;  %v1883_v7 = vmax.f32 %v1819_v3, 0.0  ;;  %v2176_v13 = vmul.f32 %v5262_v61, %v4947_v43  ;;  %v1952_v11 = vmin.f32 %v1888_v52, 6.0  ;;  %v1951_v38 = vmin.f32 %v1887_v33, 6.0 }
 0x307   : > { %3187 = vmatpush.msrb.mxu2 %v2073_v54  ;;  %v5279_v54 = vperm.slane %v4970_v19, 2  ;;  %v1947_v47 = vmin.f32 %v1883_v7, 6.0  ;;  %v2016_v1 = vmul.f32 %v1952_v11, %v1759_v28  ;;  %v2210_v7 = vmul.f32 %v4972_v21, %v4975_v24 }
 0x308   : > { %v1746_v26 = vpop.f32.mrf.mxu1  ;;  %4250 = vmatmul.msk.f32.gmra.mxu3 %vm1359_vm2, %v5052_v14  ;;  %4251 = vmatmul.msk.f32.vlgmr.msrb.gmra.mxu2 %vm1359_vm2, %v5022_v37  ;;  %v2015_v33 = vmul.f32 %v1951_v38, %v1756_v20  ;;  %v5302_v28 = vperm.slane %v4970_v19, 7  ;;  %v2158_v21 = vmul.f32 %v5289_v0, %v4947_v43  ;;  %v5320_v20 = vld [vmem:[%s6113_s6 + $0x8] ss:$0 sm:$0xff] }
 0x309   : > { %v1747_v9 = vadd.f32 %v5244_v22, %v1746_v26  ;;  %v2180_v26 = vadd.f32 %v2179_v56, %v2176_v13  ;;  %v2182_v10 = vmul.f32 %v5279_v54, %v4965_v16  ;;  %v2011_v5 = vmul.f32 %v1947_v47, %v1744_v46  ;;  %v5293_v13 = vpop.f32.mrf.mxu3 }
 0x30a   : > { %v2254_v56 = vmul.f32 %v4992_v30, %v5262_v61  ;;  %v2256_v47 = vmul.f32 %v5005_v63, %v5265_v41  ;;  %v2079_v43 = vmul.f32 0.16666667, %v2015_v33 }
 0x30b   : > { %v1820_v42 = vadd.f32 3.0, %v1747_v9  ;;  %v2075_v46 = vmul.f32 0.16666667, %v2011_v5  ;;  %v5299_v11 = vpop.f32.mrf.mxu2  ;;  %v2258_v5 = vmul.f32 %v5014_v31, %v5279_v54 }
 0x30d   : > { %v1884_v3 = vmax.f32 %v1820_v42, 0.0  ;;  %v2183_v42 = vadd.f32 %v2182_v10, %v2180_v26  ;;  %v2159_v26 = vadd.f32 %v2158_v21, %v4994_v49  ;;  %v2164_v49 = vmul.f32 %v5320_v20, %v4965_v16 }
 0x30f   : > { %v1948_v53 = vmin.f32 %v1884_v3, 6.0  ;;  %v2257_v3 = vadd.f32 %v2256_v47, %v2254_v56  ;;  %v2332_v56 = vmul.f32 %v5044_v2, %v5265_v41 }
 0x310   : > { %v1749_v59 = vpop.f32.mrf.mxu1  ;;  %4252 = vmatmul.msk.f32.gmra.mxu2 %vm1359_vm2, %v5038_v57 }
 0x311   : > { %v2012_v18 = vmul.f32 %v1948_v53, %v1747_v9  ;;  %v1750_v40 = vadd.f32 %v5244_v22, %v1749_v59  ;;  %v2080_v9 = vmul.f32 0.16666667, %v2016_v1  ;;  %v2212_v53 = vmul.f32 %v4996_v50, %v4978_v25 }
 0x312   : > { %v2161_v50 = vmul.f32 %v5302_v28, %v4956_v62  ;;  %v2330_v62 = vmul.f32 %v5030_v44, %v5262_v61 }
 0x313   : > { %v2076_v52 = vmul.f32 0.16666667, %v2012_v18  ;;  %v1821_v59 = vadd.f32 3.0, %v1750_v40  ;;  %v2211_v18 = vadd.f32 %v2210_v7, %v2183_v42  ;;  %v2214_v42 = vmul.f32 %v5007_v4, %v4985_v36 }
 0x314   : > { %v2162_v4 = vadd.f32 %v2161_v50, %v2159_v26 }
 0x315   : > { %3218 = vmatpush.msrb.mxu3 %v2076_v52  ;;  %v1885_v19 = vmax.f32 %v1821_v59, 0.0  ;;  %v2213_v10 = vadd.f32 %v2212_v53, %v2211_v18  ;;  %v2259_v52 = vadd.f32 %v2258_v5, %v2257_v3  ;;  %v2242_v59 = vmul.f32 %v4992_v30, %v5289_v0  ;;  %v5348_v30 = vld [vmem:[%s6140_s7] ss:$0 sm:$0xff]  ;;  %s4379_s7 = scalar_lea.hbm %s6074_s17, 2 }
 0x316   : > { %v2288_v53 = vmul.f32 %v5032_v48, %v4978_v25  ;;  %v2333_v3 = vadd.f32 %v2332_v56, %v2330_v62  ;;  %v2334_v5 = vmul.f32 %v5060_v32, %v5279_v54  ;;  %v2318_v56 = vmul.f32 %v5030_v44, %v5289_v0 }
 0x317   : > { %3219 = vmatpush.msrb.mxu3 %v2075_v46  ;;  %v1949_v47 = vmin.f32 %v1885_v19, 6.0  ;;  %v5331_v46 = vpop.f32.mrf.mxu3  ;;  %v2165_v19 = vadd.f32 %v2164_v49, %v2162_v4  ;;  %v2364_v4 = vmul.f32 %v5071_v60, %v4978_v25  ;;  %v3318_v60 = vld [vmem:[%s6141_s8] sm:$0xff] }
 0x318   : > { %v1752_v38 = vpop.f32.mrf.mxu1  ;;  %4254 = vmatmul.msk.f32.vlgmr.msrb.gmra.mxu3 %vm1359_vm2, %v5022_v37  ;;  %4253 = vmatmul.msk.f32.gmra.mxu2 %vm1359_vm2, %v5052_v14 }
 0x319   : > { %v1753_v1 = vadd.f32 %v5244_v22, %v1752_v38  ;;  %3294 = vmatpush.msra.mxu3 %v2080_v9  ;;  %v2286_v22 = vmul.f32 %v5016_v29, %v4975_v24  ;;  %v2215_v9 = vadd.f32 %v2214_v42, %v2213_v10  ;;  %v5337_v29 = vpop.f32.mrf.mxu2  ;;  %v2013_v16 = vmul.f32 %v1949_v47, %v1750_v40 }
 0x31a   : > { %v2290_v10 = vmul.f32 %v5046_v15, %v4985_v36  ;;  %v2335_v42 = vadd.f32 %v2334_v5, %v2333_v3  ;;  %v2362_v40 = vmul.f32 %v5062_v35, %v4975_v24  ;;  %v2246_v35 = vmul.f32 %v5320_v20, %v5014_v31 }
 0x31b   : > { %v1822_v7 = vadd.f32 3.0, %v1753_v1  ;;  %3295 = vmatpush.msra.mxu3 %v2079_v43  ;;  %v2287_v18 = vadd.f32 %v2286_v22, %v2259_v52  ;;  %v2244_v43 = vmul.f32 %v5005_v63, %v5302_v28  ;;  %v2243_v50 = vadd.f32 %v2242_v59, %v2215_v9  ;;  %v3321_v63 = vld [vmem:[%s6141_s8 + $0x18] sm:$0xff]  ;;  %v3319_v9 = vld [vmem:[%s6141_s8 + $0x8] sm:$0xff] }
 0x31c   : > { %v2077_v52 = vmul.f32 0.16666667, %v2013_v16  ;;  %v2169_v22 = vadd.f32 %v5348_v30, %v2165_v19  ;;  %v2363_v49 = vadd.f32 %v2362_v40, %v2335_v42  ;;  %v2410_v31 = vmul.f32 %v5097_v8, %v5279_v54 }
 0x31d   : > { %v1886_v33 = vmax.f32 %v1822_v7, 0.0  ;;  %v2289_v26 = vadd.f32 %v2288_v53, %v2287_v18  ;;  %v2408_v7 = vmul.f32 %v5083_v34, %v5265_v41  ;;  %v2245_v62 = vadd.f32 %v2244_v43, %v2243_v50 }
 0x31e   : > { %v2320_v18 = vmul.f32 %v5044_v2, %v5302_v28  ;;  %v2365_v3 = vadd.f32 %v2364_v4, %v2363_v49  ;;  %v2366_v5 = vmul.f32 %v5080_v23, %v4985_v36  ;;  %v2482_v19 = vmul.f32 %v5107_v51, %v5262_v61  ;;  %v4356_v23 = vld [vmem:[%s6112_s5] sm:$0xff]  ;;  %v6142_v49 = vld [vmem:[#allocation9_spill] sm:$0xff] }
 0x31f   : > { %v1950_v21 = vmin.f32 %v1886_v33, 6.0  ;;  %v5364_v15 = vpop.f32.mrf.mxu3  ;;  %v2291_v47 = vadd.f32 %v2290_v10, %v2289_v26  ;;  %v3320_v33 = vld [vmem:[%s6141_s8 + $0x10] sm:$0xff]  ;;  %v2484_v2 = vmul.f32 %v5118_v27, %v5265_v41  ;;  %v2322_v26 = vmul.f32 %v5320_v20, %v5060_v32 }
 0x320   : > { %4255 = vmatmul.msk.f32.gmra.mxu3 %vm1359_vm2, %v5038_v57  ;;  %v2367_v10 = vadd.f32 %v2366_v5, %v2365_v3  ;;  %v2440_v40 = vmul.f32 %v5100_v17, %v4978_v25  ;;  %v2558_v4 = vmul.f32 %v6142_v49, %v5262_v61 }
 0x321   : > { %v2014_v38 = vmul.f32 %v1950_v21, %v1753_v1  ;;  %v2406_v1 = vmul.f32 %v5069_v58, %v5262_v61  ;;  %v5381_v44 = vpop.f32.mrf.mxu2  ;;  %v2247_v21 = vadd.f32 %v2246_v35, %v2245_v62  ;;  %v2319_v53 = vadd.f32 %v2318_v56, %v2291_v47 }
 0x322   : > { %v2396_v35 = vmul.f32 %v5083_v34, %v5302_v28  ;;  %v2442_v47 = vmul.f32 %v5109_v45, %v4985_v36  ;;  %v4357_v34 = vld [vmem:[%s6112_s5 + $0x8] sm:$0xff]  ;;  %v3688_v45 = vld [vmem:[%s6069_s12 + $0x30] sm:$0xff] }
 0x323   : > { %v2078_v48 = vmul.f32 0.16666667, %v2014_v38  ;;  %v2409_v59 = vadd.f32 %v2408_v7, %v2406_v1  ;;  %v2438_v38 = vmul.f32 %v5089_v55, %v4975_v24  ;;  %v2248_v50 = vadd.f32 %v5348_v30, %v2247_v21  ;;  %3703 = vmatpush.msrb.mxu0 %v3688_v45 }
 0x324   : > { %v2394_v55 = vmul.f32 %v5069_v58, %v5289_v0  ;;  %v2485_v7 = vadd.f32 %v2484_v2, %v2482_v19 }
 0x325   : > { %3262 = vmatpush.msra.mxu2 %v2078_v48  ;;  %v2411_v16 = vadd.f32 %v2410_v31, %v2409_v59  ;;  %v2321_v48 = vadd.f32 %v2320_v18, %v2319_v53  ;;  %v6143_v59 = vld [vmem:[#allocation11_spill] sm:$0xff]  ;;  %v2470_v18 = vmul.f32 %v5107_v51, %v5289_v0 }
 0x326   : > { %v2395_v58 = vadd.f32 %v2394_v55, %v2367_v10  ;;  %v2560_v31 = vmul.f32 %v6143_v59, %v5265_v41 }
 0x327   : > { %3263 = vmatpush.msra.mxu2 %v2077_v52  ;;  %v2439_v42 = vadd.f32 %v2438_v38, %v2411_v16  ;;  %v5412_v1 = vpop.f32.mrf.mxu3  ;;  %v2323_v62 = vadd.f32 %v2322_v26, %v2321_v48  ;;  %v6145_v16 = vld [vmem:[#allocation13_spill] sm:$0xff]  ;;  %v6146_v48 = vld [vmem:[#allocation15_spill] sm:$0xff] }
 0x328   : > { %4256 = vmatmul.msk.f32.gmra.mxu3 %vm1359_vm2, %v5052_v14  ;;  %4257 = vmatmul.msk.f32.vlgmr.msra.gmra.mxu2 %vm1359_vm2, %v5022_v37  ;;  %v2170_v37 = vadd.f32 3.0, %v2169_v22  ;;  %v2561_v5 = vadd.f32 %v2560_v31, %v2558_v4  ;;  %v2562_v38 = vmul.f32 %v6145_v16, %v5279_v54  ;;  %v2634_v51 = vmul.f32 %v6146_v48, %v5262_v61  ;;  %v6147_v26 = vld [vmem:[#allocation17_spill] sm:$0xff] }
 0x329   : > { %3387 = vmatpush.msrb.mxu2 %v3321_v63  ;;  %v2249_v63 = vadd.f32 3.0, %v2248_v50  ;;  %v2441_v56 = vadd.f32 %v2440_v40, %v2439_v42  ;;  %v5429_v21 = vadd.f32 %v5348_v30, %v2323_v62  ;;  %v2472_v42 = vmul.f32 %v5118_v27, %v5302_v28  ;;  %v6149_v62 = vld [vmem:[#allocation12_spill] sm:$0xff] }
 0x32a   : > { %v2171_v43 = vmax.f32 %v2170_v37, 0.0 }
 0x32b   : > { %3388 = vmatpush.msrb.mxu2 %v3320_v33  ;;  %v5414_v32 = vpop.f32.mrf.mxu2  ;;  %v2514_v33 = vmul.f32 %v5121_v39, %v4975_v24  ;;  %v2250_v37 = vmax.f32 %v2249_v63, 0.0  ;;  %v2397_v39 = vadd.f32 %v2396_v35, %v2395_v58  ;;  %v2443_v53 = vadd.f32 %v2442_v47, %v2441_v56  ;;  %v6150_v56 = vld [vmem:[#allocation19_spill] sm:$0xff] }
 0x32c   : > { %v2172_v52 = vmin.f32 %v2171_v43, 6.0  ;;  %v2563_v63 = vadd.f32 %v2562_v38, %v2561_v5  ;;  %v2590_v35 = vmul.f32 %v6149_v62, %v4975_v24  ;;  %v2638_v47 = vmul.f32 %v6150_v56, %v5279_v54  ;;  %v6154_v5 = vld [vmem:[#allocation23_spill] sm:$0xff]  ;;  %v6157_v62 = vld [vmem:[#allocation25_spill] sm:$0xff] }
 0x32d   : > { %3389 = vmatpush.msrb.mxu2 %v3319_v9  ;;  %v2251_v55 = vmin.f32 %v2250_v37, 6.0  ;;  %v2471_v40 = vadd.f32 %v2470_v18, %v2443_v53  ;;  %v2546_v37 = vmul.f32 %v6142_v49, %v5289_v0 }
 0x32e   : > { %v2173_v9 = vmul.f32 %v2172_v52, %v2169_v22  ;;  %v2398_v22 = vmul.f32 %v5320_v20, %v5097_v8  ;;  %v2325_v8 = vadd.f32 3.0, %v5429_v21  ;;  %v2591_v45 = vadd.f32 %v2590_v35, %v2563_v63 }
 0x32f   : > { %3390 = vmatpush.msrb.mxu2 %v3318_v60  ;;  %v6144_v60 = vld [vmem:[#allocation8_spill] sm:$0xff]  ;;  %v5448_v2 = vpop.f32.mrf.mxu3  ;;  %v2252_v27 = vmul.f32 %v2251_v55, %v2248_v50  ;;  %v2473_v31 = vadd.f32 %v2472_v42, %v2471_v40  ;;  %v6152_v50 = vld [vmem:[#allocation18_spill] sm:$0xff]  ;;  %v2714_v35 = vmul.f32 %v6157_v62, %v5279_v54 }
 0x330   : > { %4258 = vmatmul.msk.f32.gmra.mxu2 %vm1359_vm2, %v5038_v57  ;;  %4260 = vmatmul.msk.f32.vlgmr.msra.gmra.mxu3 %vm1359_vm2, %v4356_v23  ;;  %v2486_v57 = vmul.f32 %v5130_v6, %v5279_v54  ;;  %v2516_v3 = vmul.f32 %v6144_v60, %v4978_v25  ;;  %v2174_v19 = vmul.f32 0.16666667, %v2173_v9  ;;  %v2636_v23 = vmul.f32 %v6147_v26, %v5265_v41  ;;  %v6153_v60 = vld [vmem:[#allocation21_spill] sm:$0xff]  ;;  %v6155_v42 = vld [vmem:[#allocation16_spill] sm:$0xff] }
 0x331   : > { %v2399_v10 = vadd.f32 %v2398_v22, %v2397_v39  ;;  %v2474_v9 = vmul.f32 %v5320_v20, %v5130_v6  ;;  %v6151_v39 = vld [vmem:[#allocation14_spill] sm:$0xff]  ;;  %v2712_v6 = vmul.f32 %v6154_v5, %v5265_v41  ;;  %v2253_v49 = vmul.f32 0.16666667, %v2252_v27 }
 0x332   : > { %v2487_v17 = vadd.f32 %v2486_v57, %v2485_v7  ;;  %v6148_v57 = vld [vmem:[#allocation10_spill] sm:$0xff]  ;;  %v2637_v58 = vadd.f32 %v2636_v23, %v2634_v51  ;;  %v2592_v22 = vmul.f32 %v6151_v39, %v4978_v25  ;;  %v2548_v23 = vmul.f32 %v6143_v59, %v5302_v28  ;;  %v6159_v39 = vld [vmem:[#allocation24_spill] sm:$0xff] }
 0x333   : > { %v5450_v43 = vpop.f32.mrf.mxu2  ;;  %v2518_v52 = vmul.f32 %v6148_v57, %v4985_v36  ;;  %v2400_v4 = vadd.f32 %v5348_v30, %v2399_v10  ;;  %v2594_v40 = vmul.f32 %v6155_v42, %v4985_v36  ;;  %v6156_v57 = vld [vmem:[#allocation20_spill] sm:$0xff]  ;;  %v2550_v27 = vmul.f32 %v5320_v20, %v6145_v16  ;;  %v6162_v42 = vld [vmem:[#allocation26_spill] sm:$0xff] }
 0x334   : > { %v2639_v53 = vadd.f32 %v2638_v47, %v2637_v58  ;;  %v2593_v10 = vadd.f32 %v2592_v22, %v2591_v45  ;;  %v2742_v22 = vmul.f32 %v6159_v39, %v4975_v24  ;;  %v2864_v39 = vmul.f32 %v5293_v13, %v5265_v41 }
 0x335   : > { %v2401_v38 = vadd.f32 3.0, %v2400_v4 }
 0x337   : > { %v2402_v58 = vmax.f32 %v2401_v38, 0.0 }
 0x338   : > { %4259 = vmatmul.msk.f32.gmra.mxu2 %vm1359_vm2, %v5052_v14  ;;  %4261 = vmatmul.msk.f32.gmra.mxu3 %vm1359_vm2, %v4357_v34  ;;  %v2515_v14 = vadd.f32 %v2514_v33, %v2487_v17  ;;  %v4358_v17 = vld [vmem:[%s6112_s5 + $0x10] sm:$0xff]  ;;  %v2326_v33 = vmax.f32 %v2325_v8, 0.0  ;;  %s3953_s5 = sshll.u32 %s3949_s4, 4  ;;  %s3954_s5 = int_to_ptr.hbm [resolvable:$true] %s3953_s5 }
 0x339   : > { %s4373_s19 = sshra.s32 %s3954_s5, 4  ;;  %s4374_s19 = int_to_ptr.hbm [resolvable:$true] %s4373_s19 }
 0x33a   : > { %v2517_v7 = vadd.f32 %v2516_v3, %v2515_v14  ;;  %v2666_v14 = vmul.f32 %v6152_v50, %v4975_v24  ;;  %v2710_v3 = vmul.f32 %v6153_v60, %v5262_v61  ;;  %v2327_v8 = vmin.f32 %v2326_v33, 6.0  ;;  %s4375_s29 = scalar_lea.hbm %s4374_s19, 1  ;;  %p4380_p0 = scmp.lt.s32.totalorder %s4374_s19, %s6074_s17 }
 0x33b   : > { %v5477_v18 = vpop.f32.mrf.mxu3  ;;  %v5485_v51 = vpop.f32.mrf.mxu2  ;;  %v2622_v33 = vmul.f32 %v6146_v48, %v5289_v0  ;;  %p4376_p11 = scmp.ne.s32.totalorder %s4374_s19, %s4375_s29  ;;  %p4381_p1 = scmp.lt.s32.totalorder %s4379_s7, %s4375_s29 }
 0x33c   : > { %v2519_v34 = vadd.f32 %v2518_v52, %v2517_v7  ;;  %v2667_v7 = vadd.f32 %v2666_v14, %v2639_v53  ;;  %v2668_v52 = vmul.f32 %v6156_v57, %v4978_v25  ;;  %v2713_v63 = vadd.f32 %v2712_v6, %v2710_v3  ;;  %v6160_v53 = vld [vmem:[#allocation27_spill] sm:$0xff] }
 0x33d   : > { %v2328_v59 = vmul.f32 %v2327_v8, %v5429_v21  ;;  %v2786_v50 = vmul.f32 %v6160_v53, %v5262_v61  ;;  %v6161_v21 = vld [vmem:[#allocation29_spill] sm:$0xff]  ;;  %v2403_v6 = vmin.f32 %v2402_v58, 6.0  ;;  %v6163_v57 = vld [vmem:[#allocation31_spill] sm:$0xff]  ;;  %p4377_p12 = pnand %p4376_p11, %p4551_p5  ;;  %p4382_p2 = por %p4381_p1, %p4380_p0 }
 0x33e   : > { %v2547_v55 = vadd.f32 %v2546_v37, %v2519_v34  ;;  %v6158_v37 = vld [vmem:[#allocation22_spill] sm:$0xff]  ;;  %v2715_v45 = vadd.f32 %v2714_v35, %v2713_v63  ;;  %v2788_v14 = vmul.f32 %v6161_v21, %v5265_v41 }
 0x33f   : > { %v2670_v34 = vmul.f32 %v6158_v37, %v4985_v36  ;;  %v2329_v16 = vmul.f32 0.16666667, %v2328_v59  ;;  %v2404_v63 = vmul.f32 %v2403_v6, %v2400_v4  ;;  %v2626_v59 = vmul.f32 %v5320_v20, %v6150_v56  ;;  %v6165_v37 = vld [vmem:[#allocation30_spill] sm:$0xff]  ;;  %v6166_v4 = vld [vmem:[#allocation33_spill] sm:$0xff]  ;;  %p4378_p13 = pneg %p4377_p12 }
 0x340   : > { %4262 = vmatmul.msk.f32.gmra.mxu3 %vm1359_vm2, %v4358_v17  ;;  %4263 = vmatmul.msk.f32.vlgmr.msrb.gmra.mxu2 %vm3326_vm3, %v2174_v19  ;;  %v2475_v19 = vadd.f32 %v2474_v9, %v2473_v31  ;;  %v2549_v17 = vadd.f32 %v2548_v23, %v2547_v55  ;;  %v2595_v31 = vadd.f32 %v2594_v40, %v2593_v10 }
 0x341   : > { %v2669_v9 = vadd.f32 %v2668_v52, %v2667_v7  ;;  %v2698_v23 = vmul.f32 %v6153_v60, %v5289_v0  ;;  %v2743_v10 = vadd.f32 %v2742_v22, %v2715_v45  ;;  %v2744_v40 = vmul.f32 %v6162_v42, %v4978_v25  ;;  %p4383_p3 = pnand %p4382_p2, %p4378_p13 }
 0x342   : > { %v2476_v47 = vadd.f32 %v5348_v30, %v2475_v19  ;;  %v2551_v38 = vadd.f32 %v2550_v27, %v2549_v17  ;;  %v2624_v19 = vmul.f32 %v6147_v26, %v5302_v28  ;;  %v2789_v7 = vadd.f32 %v2788_v14, %v2786_v50 }
 0x343   : > { %v5510_v3 = vpop.f32.mrf.mxu3  ;;  %v2671_v55 = vadd.f32 %v2670_v34, %v2669_v9  ;;  %v2790_v52 = vmul.f32 %v6163_v57, %v5279_v54  ;;  %v2700_v60 = vmul.f32 %v6154_v5, %v5302_v28  ;;  %v2745_v27 = vadd.f32 %v2744_v40, %v2743_v10 }
 0x344   : > { %v2477_v48 = vadd.f32 3.0, %v2476_v47  ;;  %v2552_v26 = vadd.f32 %v5348_v30, %v2551_v38  ;;  %v2818_v34 = vmul.f32 %v6165_v37, %v4975_v24  ;;  %v2862_v45 = vmul.f32 %v6166_v4, %v5262_v61 }
 0x345   : > { %v2699_v17 = vadd.f32 %v2698_v23, %v2671_v55  ;;  %v2791_v9 = vadd.f32 %v2790_v52, %v2789_v7  ;;  %v2405_v50 = vmul.f32 0.16666667, %v2404_v63  ;;  %v2702_v6 = vmul.f32 %v5320_v20, %v6157_v62 }
 0x346   : > { %v2478_v35 = vmax.f32 %v2477_v48, 0.0  ;;  %v2553_v22 = vadd.f32 3.0, %v2552_v26  ;;  %v2774_v48 = vmul.f32 %v6160_v53, %v5289_v0  ;;  %v2865_v55 = vadd.f32 %v2864_v39, %v2862_v45 }
 0x347   : > { %v2866_v10 = vmul.f32 %v5331_v46, %v5279_v54  ;;  %v2776_v53 = vmul.f32 %v6161_v21, %v5302_v28  ;;  %v2896_v39 = vmul.f32 %v5337_v29, %v4978_v25 }
 0x348   : > { %4264 = vmatmul.msk.f32.gmra.mxu2 %vm3326_vm3, %v2253_v49  ;;  %v2623_v49 = vadd.f32 %v2622_v33, %v2595_v31  ;;  %v6164_v33 = vld [vmem:[#allocation28_spill] sm:$0xff]  ;;  %v2479_v14 = vmin.f32 %v2478_v35, 6.0  ;;  %v2554_v40 = vmax.f32 %v2553_v22, 0.0 }
 0x349   : > { %v2746_v31 = vmul.f32 %v6164_v33, %v4985_v36 }
 0x34a   : > { %v2625_v58 = vadd.f32 %v2624_v19, %v2623_v49  ;;  %v2819_v19 = vadd.f32 %v2818_v34, %v2791_v9  ;;  %v6167_v49 = vld [vmem:[#allocation32_spill] sm:$0xff]  ;;  %v2480_v62 = vmul.f32 %v2479_v14, %v2476_v47  ;;  %v2555_v33 = vmin.f32 %v2554_v40, 6.0 }
 0x34b   : > { %v5514_v8 = vpop.f32.mrf.mxu2  ;;  %v5536_v5 = vpop.f32.mrf.mxu3  ;;  %v2747_v38 = vadd.f32 %v2746_v31, %v2745_v27  ;;  %v2820_v23 = vmul.f32 %v6167_v49, %v4978_v25  ;;  %v2938_v31 = vmul.f32 %v5364_v15, %v5262_v61  ;;  %v2940_v47 = vmul.f32 %v5412_v1, %v5265_v41 }
 0x34c   : > { %v2627_v56 = vadd.f32 %v2626_v59, %v2625_v58  ;;  %v2822_v58 = vmul.f32 %v5281_v12, %v4985_v36  ;;  %v2867_v59 = vadd.f32 %v2866_v10, %v2865_v55  ;;  %v2481_v27 = vmul.f32 0.16666667, %v2480_v62 }
 0x34d   : > { %v2775_v63 = vadd.f32 %v2774_v48, %v2747_v38  ;;  %v2821_v35 = vadd.f32 %v2820_v23, %v2819_v19  ;;  %v2778_v12 = vmul.f32 %v5320_v20, %v6163_v57  ;;  %v2942_v14 = vmul.f32 %v5448_v2, %v5279_v54 }
 0x34e   : > { %v2628_v7 = vadd.f32 %v5348_v30, %v2627_v56  ;;  %v2556_v56 = vmul.f32 %v2555_v33, %v2552_v26  ;;  %v2852_v48 = vmul.f32 %v5293_v13, %v5302_v28  ;;  %v2898_v19 = vmul.f32 %v5381_v44, %v4985_v36 }
 0x34f   : > { %v2777_v37 = vadd.f32 %v2776_v53, %v2775_v63  ;;  %v2823_v34 = vadd.f32 %v2822_v58, %v2821_v35  ;;  %v2970_v26 = vmul.f32 %v5414_v32, %v4975_v24  ;;  %v2854_v13 = vmul.f32 %v5320_v20, %v5331_v46 }
 0x350   : > { %4265 = vmatmul.msk.f32.gmra.mxu2 %vm3326_vm3, %v2329_v16  ;;  %v2701_v16 = vadd.f32 %v2700_v60, %v2699_v17  ;;  %v2894_v60 = vmul.f32 %v5299_v11, %v4975_v24  ;;  %v2629_v17 = vadd.f32 3.0, %v2628_v7  ;;  %v2850_v11 = vmul.f32 %v6166_v4, %v5289_v0 }
 0x351   : > { %v2779_v57 = vadd.f32 %v2778_v12, %v2777_v37  ;;  %v2557_v49 = vmul.f32 0.16666667, %v2556_v56  ;;  %v2926_v62 = vmul.f32 %v5364_v15, %v5289_v0  ;;  %v3014_v53 = vmul.f32 %v5477_v18, %v5262_v61 }
 0x352   : > { %v2703_v52 = vadd.f32 %v2702_v6, %v2701_v16  ;;  %v2895_v45 = vadd.f32 %v2894_v60, %v2867_v59  ;;  %v2630_v22 = vmax.f32 %v2629_v17, 0.0  ;;  %v2851_v38 = vadd.f32 %v2850_v11, %v2823_v34 }
 0x353   : > { %v5547_v42 = vpop.f32.mrf.mxu2  ;;  %v2780_v10 = vadd.f32 %v5348_v30, %v2779_v57  ;;  %v3016_v32 = vmul.f32 %v5510_v3, %v5265_v41  ;;  %v2972_v58 = vmul.f32 %v5450_v43, %v4978_v25  ;;  %v2928_v15 = vmul.f32 %v5412_v1, %v5302_v28 }
 0x354   : > { %v2704_v21 = vadd.f32 %v5348_v30, %v2703_v52  ;;  %v2897_v4 = vadd.f32 %v2896_v39, %v2895_v45  ;;  %v2631_v29 = vmin.f32 %v2630_v22, 6.0  ;;  %v2853_v40 = vadd.f32 %v2852_v48, %v2851_v38 }
 0x355   : > { %v2781_v17 = vadd.f32 3.0, %v2780_v10  ;;  %v3017_v33 = vadd.f32 %v3016_v32, %v3014_v53  ;;  %v2930_v1 = vmul.f32 %v5320_v20, %v5448_v2  ;;  %v3046_v39 = vmul.f32 %v5514_v8, %v4975_v24 }
 0x356   : > { %v2705_v6 = vadd.f32 3.0, %v2704_v21  ;;  %v2899_v52 = vadd.f32 %v2898_v19, %v2897_v4  ;;  %v2632_v63 = vmul.f32 %v2631_v29, %v2628_v7  ;;  %v2855_v46 = vadd.f32 %v2854_v13, %v2853_v40 }
 0x357   : > { %v2974_v7 = vmul.f32 %v5485_v51, %v4985_v36  ;;  %v2782_v12 = vmax.f32 %v2781_v17, 0.0  ;;  %v3002_v22 = vmul.f32 %v5477_v18, %v5289_v0  ;;  %v3048_v2 = vmul.f32 %v5547_v42, %v4978_v25 }
 0x358   : > { %4266 = vmatmul.msk.f32.gmra.mxu2 %vm3326_vm3, %v2405_v50  ;;  %v2941_v50 = vadd.f32 %v2940_v47, %v2938_v31  ;;  %v2706_v55 = vmax.f32 %v2705_v6, 0.0  ;;  %v3018_v31 = vmul.f32 %v5536_v5, %v5279_v54  ;;  %v2633_v47 = vmul.f32 0.16666667, %v2632_v63 }
 0x359   : > { %v2856_v11 = vadd.f32 %v5348_v30, %v2855_v46  ;;  %v2783_v57 = vmin.f32 %v2782_v12, 6.0  ;;  %v3004_v8 = vmul.f32 %v5510_v3, %v5302_v28  ;;  %v3006_v29 = vmul.f32 %v5320_v20, %v5536_v5  ;;  %v3687_v3 = vld [vmem:[%s6069_s12 + $0x28] sm:$0xff] }
 0x35a   : > { %v2943_v23 = vadd.f32 %v2942_v14, %v2941_v50  ;;  %v2707_v60 = vmin.f32 %v2706_v55, 6.0  ;;  %v3019_v45 = vadd.f32 %v3018_v31, %v3017_v33  ;;  %3704 = vmatpush.msrb.mxu0 %v3687_v3 }
 0x35b   : > { %v5560_v9 = vpop.f32.mrf.mxu3  ;;  %v5572_v16 = vpop.f32.mrf.mxu2  ;;  %v2857_v51 = vadd.f32 3.0, %v2856_v11 }
 0x35c   : > { %v2971_v35 = vadd.f32 %v2970_v26, %v2943_v23  ;;  %v2708_v43 = vmul.f32 %v2707_v60, %v2704_v21  ;;  %v3047_v48 = vadd.f32 %v3046_v39, %v3019_v45  ;;  %v3090_v38 = vmul.f32 %v5560_v9, %v5262_v61 }
 0x35d   : > { %v2858_v19 = vmax.f32 %v2857_v51, 0.0  ;;  %v2784_v23 = vmul.f32 %v2783_v57, %v2780_v10  ;;  %v3050_v42 = vmul.f32 %v5572_v16, %v4985_v36  ;;  %v3078_v5 = vmul.f32 %v5560_v9, %v5289_v0 }
 0x35e   : > { %v2973_v37 = vadd.f32 %v2972_v58, %v2971_v35  ;;  %v2709_v6 = vmul.f32 0.16666667, %v2708_v43  ;;  %v3049_v26 = vadd.f32 %v3048_v2, %v3047_v48 }
 0x35f   : > { %v2785_v32 = vmul.f32 0.16666667, %v2784_v23  ;;  %v2859_v63 = vmin.f32 %v2858_v19, 6.0 }
 0x360   : > { %4267 = vmatmul.msk.f32.gmra.mxu2 %vm3326_vm3, %v2481_v27  ;;  %v2927_v27 = vadd.f32 %v2926_v62, %v2899_v52  ;;  %v2975_v56 = vadd.f32 %v2974_v7, %v2973_v37  ;;  %v3051_v10 = vadd.f32 %v3050_v42, %v3049_v26 }
 0x362   : > { %v2929_v34 = vadd.f32 %v2928_v15, %v2927_v27  ;;  %v3003_v18 = vadd.f32 %v3002_v22, %v2975_v56  ;;  %v2860_v27 = vmul.f32 %v2859_v63, %v2856_v11  ;;  %v3079_v33 = vadd.f32 %v3078_v5, %v3051_v10  ;;  %v3794_v11 = vld [vmem:[%s6071_s14 + $0x258] sm:$0xff] }
 0x363   : > { %v3072_v44 = vpop.f32.mrf.mxu3  ;;  %3811 = vmatpush.msrb.mxu1 %v3794_v11 }
 0x364   : > { %v2931_v14 = vadd.f32 %v2930_v1, %v2929_v34  ;;  %v3092_v4 = vmul.f32 %v3072_v44, %v5265_v41  ;;  %v3005_v13 = vadd.f32 %v3004_v8, %v3003_v18  ;;  %v3080_v60 = vmul.f32 %v3072_v44, %v5302_v28 }
 0x365   : > { %v2861_v43 = vmul.f32 0.16666667, %v2860_v27 }
 0x366   : > { %v3093_v55 = vadd.f32 %v3092_v4, %v3090_v38  ;;  %v3007_v53 = vadd.f32 %v3006_v29, %v3005_v13  ;;  %v3081_v7 = vadd.f32 %v3080_v60, %v3079_v33  ;;  %v3440_v33 = vld [vmem:[%s6067_s10] sm:$0xff] }
 0x368   : > { %4268 = vmatmul.msk.f32.gmra.mxu2 %vm3326_vm3, %v2557_v49  ;;  %v2932_v49 = vadd.f32 %v5348_v30, %v2931_v14  ;;  %v3008_v15 = vadd.f32 %v5348_v30, %v3007_v53 }
 0x36a   : > { %v2933_v52 = vadd.f32 3.0, %v2932_v49  ;;  %v3009_v44 = vadd.f32 3.0, %v3008_v15 }
 0x36b   : > { %v3113_v59 = vpop.f32.mrf.mxu2  ;;  %v3075_v50 = vpop.f32.mrf.mxu3 }
 0x36c   : > { %v3094_v40 = vmul.f32 %v3075_v50, %v5279_v54  ;;  %v3122_v16 = vmul.f32 %v3113_v59, %v4975_v24  ;;  %v2934_v46 = vmax.f32 %v2933_v52, 0.0  ;;  %v3082_v31 = vmul.f32 %v5320_v20, %v3075_v50 }
 0x36d   : > { %v3010_v22 = vmax.f32 %v3009_v44, 0.0 }
 0x36e   : > { %v3095_v35 = vadd.f32 %v3094_v40, %v3093_v55  ;;  %v2935_v12 = vmin.f32 %v2934_v46, 6.0  ;;  %v3083_v34 = vadd.f32 %v3082_v31, %v3081_v7 }
 0x36f   : > { %v3011_v4 = vmin.f32 %v3010_v22, 6.0 }
 0x370   : > { %4269 = vmatmul.msk.f32.gmra.mxu2 %vm3326_vm3, %v2633_v47  ;;  %v3123_v47 = vadd.f32 %v3122_v16, %v3095_v35  ;;  %v3084_v56 = vadd.f32 %v5348_v30, %v3083_v34  ;;  %v2936_v51 = vmul.f32 %v2935_v12, %v2932_v49 }
 0x371   : > { %v3012_v19 = vmul.f32 %v3011_v4, %v3008_v15  ;;  %v3441_v15 = vld [vmem:[%s6067_s10 + $0x8] sm:$0xff] }
 0x372   : > { %v3085_v48 = vadd.f32 3.0, %v3084_v56  ;;  %v2937_v2 = vmul.f32 0.16666667, %v2936_v51 }
 0x373   : > { %v3116_v21 = vpop.f32.mrf.mxu2  ;;  %v3013_v26 = vmul.f32 0.16666667, %v3012_v19 }
 0x374   : > { %v3124_v17 = vmul.f32 %v3116_v21, %v4978_v25  ;;  %v3086_v8 = vmax.f32 %v3085_v48, 0.0 }
 0x376   : > { %v3125_v59 = vadd.f32 %v3124_v17, %v3123_v47  ;;  %v3087_v55 = vmin.f32 %v3086_v8, 6.0 }
 0x378   : > { %4270 = vmatmul.msk.f32.gmra.mxu2 %vm3326_vm3, %v2709_v6  ;;  %v3088_v3 = vmul.f32 %v3087_v55, %v3084_v56  ;;  %v3789_v56 = vld [vmem:[%s6071_s14 + $0x230] sm:$0xff] }
 0x379   : > { %3812 = vmatpush.msrb.mxu1 %v3789_v56 }
 0x37a   : > { %v3089_v10 = vmul.f32 0.16666667, %v3088_v3 }
 0x37b   : > { %v3145_v62 = vpop.f32.mrf.mxu3  ;;  %v3119_v58 = vpop.f32.mrf.mxu2 }
 0x37c   : > { %v3126_v9 = vmul.f32 %v3119_v58, %v4985_v36  ;;  %v3154_v1 = vmul.f32 %v3145_v62, %v5289_v0  ;;  %v3166_v49 = vmul.f32 %v3145_v62, %v5262_v61  ;;  %v3442_v62 = vld [vmem:[%s6067_s10 + $0x10] sm:$0xff] }
 0x37d   : > { %3509 = vmatpush.msrb.mxu3 %v3442_v62 }
 0x37e   : > { %v3127_v45 = vadd.f32 %v3126_v9, %v3125_v59 }
 0x37f   : > { %3510 = vmatpush.msrb.mxu3 %v3441_v15 }
 0x380   : > { %4271 = vmatmul.msk.f32.gmra.mxu2 %vm3326_vm3, %v2785_v32  ;;  %v3155_v50 = vadd.f32 %v3154_v1, %v3127_v45 }
 0x381   : > { %3511 = vmatpush.msrb.mxu3 %v3440_v33  ;;  %v3685_v33 = vld [vmem:[%s6069_s12 + $0x18] sm:$0xff] }
 0x383   : > { %v3148_v37 = vpop.f32.mrf.mxu3 }
 0x384   : > { %v3156_v39 = vmul.f32 %v3148_v37, %v5302_v28  ;;  %v3168_v42 = vmul.f32 %v3148_v37, %v5265_v41 }
 0x386   : > { %v3157_v21 = vadd.f32 %v3156_v39, %v3155_v50  ;;  %v3169_v53 = vadd.f32 %v3168_v42, %v3166_v49 }
 0x388   : > { %4272 = vmatmul.msk.f32.gmra.mxu2 %vm3326_vm3, %v2861_v43 }
 0x38b   : > { %v3151_v14 = vpop.f32.mrf.mxu3  ;;  %v3189_v6 = vpop.f32.mrf.mxu2 }
 0x38c   : > { %v3158_v57 = vmul.f32 %v5320_v20, %v3151_v14  ;;  %v3170_v13 = vmul.f32 %v3151_v14, %v5279_v54  ;;  %v3198_v5 = vmul.f32 %v3189_v6, %v4975_v24 }
 0x38e   : > { %v3159_v38 = vadd.f32 %v3158_v57, %v3157_v21  ;;  %v3171_v63 = vadd.f32 %v3170_v13, %v3169_v53 }
 0x390   : > { %4273 = vmatmul.msk.f32.gmra.mxu2 %vm3326_vm3, %v2937_v2  ;;  %v3160_v18 = vadd.f32 %v5348_v30, %v3159_v38  ;;  %v3199_v60 = vadd.f32 %v3198_v5, %v3171_v63 }
 0x392   : > { %v3161_v23 = vadd.f32 3.0, %v3160_v18 }
 0x393   : > { %v3192_v29 = vpop.f32.mrf.mxu2 }
 0x394   : > { %v3162_v40 = vmax.f32 %v3161_v23, 0.0  ;;  %v3200_v16 = vmul.f32 %v3192_v29, %v4978_v25 }
 0x396   : > { %v3163_v32 = vmin.f32 %v3162_v40, 6.0  ;;  %v3201_v27 = vadd.f32 %v3200_v16, %v3199_v60  ;;  %v3779_v60 = vld [vmem:[%s6071_s14 + $0x1e0] sm:$0xff] }
 0x398   : > { %4274 = vmatmul.msk.f32.gmra.mxu2 %vm3326_vm3, %v3013_v26  ;;  %v3164_v58 = vmul.f32 %v3163_v32, %v3160_v18  ;;  %v5681_v26 = vld [vmem:[%s6066_s9] ss:$0 sm:$0xff] }
 0x39a   : > { %v3165_v47 = vmul.f32 0.16666667, %v3164_v58 }
 0x39b   : > { %v3221_v52 = vpop.f32.mrf.mxu3  ;;  %v3195_v35 = vpop.f32.mrf.mxu2 }
 0x39c   : > { %v3202_v17 = vmul.f32 %v3195_v35, %v4985_v36  ;;  %v3230_v9 = vmul.f32 %v3221_v52, %v5289_v0  ;;  %v3242_v39 = vmul.f32 %v3221_v52, %v5262_v61  ;;  %v3686_v61 = vld [vmem:[%s6069_s12 + $0x20] sm:$0xff] }
 0x39d   : > { %3705 = vmatpush.msrb.mxu0 %v3686_v61 }
 0x39e   : > { %v3203_v31 = vadd.f32 %v3202_v17, %v3201_v27 }
 0x39f   : > { %3706 = vmatpush.msrb.mxu0 %v3685_v33 }
 0x3a0   : > { %4275 = vmatmul.msk.f32.gmra.mxu2 %vm3326_vm3, %v3089_v10  ;;  %v3231_v7 = vadd.f32 %v3230_v9, %v3203_v31 }
 0x3a3   : > { %v3224_v46 = vpop.f32.mrf.mxu3 }
 0x3a4   : > { %v3232_v37 = vmul.f32 %v3224_v46, %v5302_v28  ;;  %v3244_v1 = vmul.f32 %v3224_v46, %v5265_v41 }
 0x3a6   : > { %v3233_v12 = vadd.f32 %v3232_v37, %v3231_v7  ;;  %v3245_v14 = vadd.f32 %v3244_v1, %v3242_v39  ;;  %v3774_v7 = vld [vmem:[%s6071_s14 + $0x1b8] sm:$0xff] }
 0x3a8   : > { %4276 = vmatmul.msk.f32.gmra.mxu2 %vm3326_vm3, %v3165_v47 }
 0x3ab   : > { %v3227_v59 = vpop.f32.mrf.mxu3  ;;  %v3265_v43 = vpop.f32.mrf.mxu2 }
 0x3ac   : > { %v3234_v44 = vmul.f32 %v5320_v20, %v3227_v59  ;;  %v3246_v22 = vmul.f32 %v3227_v59, %v5279_v54  ;;  %v3274_v41 = vmul.f32 %v3265_v43, %v4975_v24 }
 0x3ae   : > { %v3235_v34 = vadd.f32 %v3234_v44, %v3233_v12  ;;  %v3247_v57 = vadd.f32 %v3246_v22, %v3245_v14 }
 0x3b0   : > { %v3236_v45 = vadd.f32 %v5348_v30, %v3235_v34  ;;  %v3275_v38 = vadd.f32 %v3274_v41, %v3247_v57 }
 0x3b2   : > { %v3237_v11 = vadd.f32 3.0, %v3236_v45 }
 0x3b3   : > { %v3268_v50 = vpop.f32.mrf.mxu2  ;;  %v3297_v51 = vpop.f32.mrf.mxu3 }
 0x3b4   : > { %v3238_v6 = vmax.f32 %v3237_v11, 0.0  ;;  %v3276_v54 = vmul.f32 %v3268_v50, %v4978_v25  ;;  %v3306_v29 = vmul.f32 %v3297_v51, %v5289_v0  ;;  %v3784_v0 = vld [vmem:[%s6071_s14 + $0x208] sm:$0xff]  ;;  %v3684_v51 = vld [vmem:[%s6069_s12 + $0x10] sm:$0xff] }
 0x3b5   : > { %3813 = vmatpush.msrb.mxu1 %v3784_v0  ;;  %3707 = vmatpush.msrb.mxu0 %v3684_v51 }
 0x3b6   : > { %v3239_v21 = vmin.f32 %v3238_v6, 6.0  ;;  %v3277_v18 = vadd.f32 %v3276_v54, %v3275_v38  ;;  %v5738_v6 = vld [vmem:[%s6068_s11] ss:$0 sm:$0xff] }
 0x3b7   : > { %3814 = vmatpush.msrb.mxu1 %v3779_v60 }
 0x3b8   : > { %v3240_v48 = vmul.f32 %v3239_v21, %v3236_v45  ;;  %v3769_v45 = vld [vmem:[%s6071_s14 + $0x190] sm:$0xff] }
 0x3b9   : > { %3815 = vmatpush.msrb.mxu1 %v3774_v7 }
 0x3ba   : > { %v3241_v2 = vmul.f32 0.16666667, %v3240_v48  ;;  %v3764_v48 = vld [vmem:[%s6071_s14 + $0x168] sm:$0xff] }
 0x3bb   : > { %v3271_v4 = vpop.f32.mrf.mxu2  ;;  %v3300_v8 = vpop.f32.mrf.mxu3  ;;  %3816 = vmatpush.msrb.mxu1 %v3769_v45  ;;  %v3749_v45 = vld [vmem:[%s6071_s14 + $0xf0] sm:$0xff] }
 0x3bc   : > { %v3278_v19 = vmul.f32 %v3271_v4, %v4985_v36  ;;  %4277 = vmatmul.msk.f32.gmra.mxu2 %vm3326_vm3, %v3241_v2  ;;  %v3308_v25 = vmul.f32 %v3300_v8, %v5302_v28 }
 0x3bd   : > { %3817 = vmatpush.msrb.mxu1 %v3764_v48 }
 0x3be   : > { %v3279_v24 = vadd.f32 %v3278_v19, %v3277_v18 }
 0x3c0   : > { %v3307_v23 = vadd.f32 %v3306_v29, %v3279_v24 }
 0x3c2   : > { %v3309_v42 = vadd.f32 %v3308_v25, %v3307_v23 }
 0x3c3   : > { %v3303_v55 = vpop.f32.mrf.mxu3  ;;  %v3392_v49 = vpop.f32.mrf.mxu2 }
 0x3c4   : > { %v3310_v40 = vmul.f32 %v5320_v20, %v3303_v55  ;;  %v3393_v36 = vadd.f32 %v5681_v26, %v3392_v49 }
 0x3c6   : > { %v3311_v13 = vadd.f32 %v3310_v40, %v3309_v42  ;;  %4279 = vmatmul.msk.f32.vlgmr.msrb.gmra.mxu3 %vm3447_vm4, %v3393_v36 }
 0x3c8   : > { %v3312_v3 = vadd.f32 %v5348_v30, %v3311_v13 }
 0x3ca   : > { %v3313_v52 = vadd.f32 3.0, %v3312_v3 }
 0x3cb   : > { %v3395_v28 = vpop.f32.mrf.mxu2 }
 0x3cc   : > { %v3314_v53 = vmax.f32 %v3313_v52, 0.0  ;;  %v3396_v32 = vadd.f32 %v5681_v26, %v3395_v28 }
 0x3ce   : > { %v3315_v63 = vmin.f32 %v3314_v53, 6.0  ;;  %4280 = vmatmul.msk.f32.gmra.mxu3 %vm3447_vm4, %v3396_v32 }
 0x3d0   : > { %v3316_v20 = vmul.f32 %v3315_v63, %v3312_v3 }
 0x3d2   : > { %v3317_v5 = vmul.f32 0.16666667, %v3316_v20 }
 0x3d3   : > { %v3398_v10 = vpop.f32.mrf.mxu2 }
 0x3d4   : > { %v3399_v35 = vadd.f32 %v5681_v26, %v3398_v10  ;;  %4278 = vmatmul.msk.f32.gmra.mxu2 %vm3326_vm3, %v3317_v5 }
 0x3d6   : > { %4281 = vmatmul.msk.f32.gmra.mxu3 %vm3447_vm4, %v3399_v35 }
 0x3db   : > { %v3401_v16 = vpop.f32.mrf.mxu2 }
 0x3dc   : > { %v3402_v30 = vadd.f32 %v5681_v26, %v3401_v16 }
 0x3de   : > { %4282 = vmatmul.msk.f32.gmra.mxu3 %vm3447_vm4, %v3402_v30 }
 0x3e3   : > { %v3404_v62 = vpop.f32.mrf.mxu2 }
 0x3e4   : > { %v3405_v58 = vadd.f32 %v5681_v26, %v3404_v62 }
 0x3e6   : > { %4283 = vmatmul.msk.f32.gmra.mxu3 %vm3447_vm4, %v3405_v58 }
 0x3eb   : > { %v3407_v17 = vpop.f32.mrf.mxu2 }
 0x3ec   : > { %v3408_v46 = vadd.f32 %v5681_v26, %v3407_v17 }
 0x3ee   : > { %4284 = vmatmul.msk.f32.gmra.mxu3 %vm3447_vm4, %v3408_v46 }
 0x3f3   : > { %v3410_v15 = vpop.f32.mrf.mxu2 }
 0x3f4   : > { %v3411_v27 = vadd.f32 %v5681_v26, %v3410_v15 }
 0x3f6   : > { %4285 = vmatmul.msk.f32.gmra.mxu3 %vm3447_vm4, %v3411_v27  ;;  %v3759_v27 = vld [vmem:[%s6071_s14 + $0x140] sm:$0xff] }
 0x3f7   : > { %3818 = vmatpush.msrb.mxu1 %v3759_v27 }
 0x3fb   : > { %v3413_v31 = vpop.f32.mrf.mxu2 }
 0x3fc   : > { %v3414_v47 = vadd.f32 %v5681_v26, %v3413_v31 }
 0x3fe   : > { %4286 = vmatmul.msk.f32.gmra.mxu3 %vm3447_vm4, %v3414_v47 }
 0x403   : > { %v3416_v9 = vpop.f32.mrf.mxu2 }
 0x404   : > { %v3417_v37 = vadd.f32 %v5681_v26, %v3416_v9 }
 0x406   : > { %4287 = vmatmul.msk.f32.gmra.mxu3 %vm3447_vm4, %v3417_v37 }
 0x40b   : > { %v3419_v59 = vpop.f32.mrf.mxu2 }
 0x40c   : > { %v3420_v43 = vadd.f32 %v5681_v26, %v3419_v59 }
 0x40e   : > { %4288 = vmatmul.msk.f32.gmra.mxu3 %vm3447_vm4, %v3420_v43  ;;  %v3683_v43 = vld [vmem:[%s6069_s12 + $0x8] sm:$0xff] }
 0x40f   : > { %3708 = vmatpush.msrb.mxu0 %v3683_v43 }
 0x413   : > { %v3422_v12 = vpop.f32.mrf.mxu2 }
 0x414   : > { %v3423_v44 = vadd.f32 %v5681_v26, %v3422_v12 }
 0x416   : > { %4289 = vmatmul.msk.f32.gmra.mxu3 %vm3447_vm4, %v3423_v44  ;;  %v3754_v44 = vld [vmem:[%s6071_s14 + $0x118] sm:$0xff] }
 0x417   : > { %3819 = vmatpush.msrb.mxu1 %v3754_v44 }
 0x419   : > { %3820 = vmatpush.msrb.mxu1 %v3749_v45 }
 0x41b   : > { %v3425_v34 = vpop.f32.mrf.mxu2 }
 0x41c   : > { %v3426_v1 = vadd.f32 %v5681_v26, %v3425_v34 }
 0x41e   : > { %4290 = vmatmul.msk.f32.gmra.mxu3 %vm3447_vm4, %v3426_v1 }
 0x423   : > { %v3428_v39 = vpop.f32.mrf.mxu2 }
 0x424   : > { %v3429_v11 = vadd.f32 %v5681_v26, %v3428_v39 }
 0x426   : > { %4291 = vmatmul.msk.f32.gmra.mxu3 %vm3447_vm4, %v3429_v11 }
 0x42b   : > { %v3431_v22 = vpop.f32.mrf.mxu2 }
 0x42c   : > { %v3432_v56 = vadd.f32 %v5681_v26, %v3431_v22  ;;  %v3682_v22 = vld [vmem:[%s6069_s12] sm:$0xff] }
 0x42d   : > { %3709 = vmatpush.msrb.mxu0 %v3682_v22 }
 0x42e   : > { %4292 = vmatmul.msk.f32.gmra.mxu3 %vm3447_vm4, %v3432_v56 }
 0x43f   : > { %v3434_v50 = vpop.f32.mrf.mxu2 }
 0x440   : > { %v3435_v14 = vadd.f32 %v5681_v26, %v3434_v50 }
 0x442   : > { %4293 = vmatmul.msk.f32.gmra.mxu3 %vm3447_vm4, %v3435_v14 }
 0x449   : > { %v3513_v21 = vpop.f32.mrf.mxu3 }
 0x44a   : > { %v3514_v57 = vadd.f32 %v5738_v6, %v3513_v21 }
 0x44c   : > { %v3561_v41 = vadd.f32 3.0, %v3514_v57 }
 0x44e   : > { %v3577_v61 = vmax.f32 %v3561_v41, 0.0 }
 0x450   : > { %v3593_v38 = vmin.f32 %v3577_v61, 6.0 }
 0x451   : > { %v3516_v54 = vpop.f32.mrf.mxu3 }
 0x452   : > { %v3517_v2 = vadd.f32 %v5738_v6, %v3516_v54  ;;  %v3609_v8 = vmul.f32 %v3593_v38, %v3514_v57 }
 0x454   : > { %v3562_v4 = vadd.f32 3.0, %v3517_v2  ;;  %v3625_v25 = vmul.f32 0.16666667, %v3609_v8 }
 0x456   : > { %v3578_v18 = vmax.f32 %v3562_v4, 0.0  ;;  %v3642_v36 = vsel %vm3641_vm5, %v3625_v25, 0.0 }
 0x457   : > { %v3437_v19 = vpop.f32.mrf.mxu2 }
 0x458   : > { %v3594_v29 = vmin.f32 %v3578_v18, 6.0  ;;  %v3438_v24 = vadd.f32 %v5681_v26, %v3437_v19 }
 0x459   : > { %v3519_v23 = vpop.f32.mrf.mxu3 }
 0x45a   : > { %v3610_v55 = vmul.f32 %v3594_v29, %v3517_v2  ;;  %v3520_v49 = vadd.f32 %v5738_v6, %v3519_v23  ;;  %4294 = vmatmul.msk.f32.gmra.mxu3 %vm3447_vm4, %v3438_v24 }
 0x45c   : > { %v3626_v42 = vmul.f32 0.16666667, %v3610_v55  ;;  %v3563_v40 = vadd.f32 3.0, %v3520_v49 }
 0x45e   : > { %v3643_v13 = vsel %vm3641_vm5, %v3626_v42, 0.0  ;;  %v3579_v0 = vmax.f32 %v3563_v40, 0.0 }
 0x45f   : > { %v3644_v3 = vadd.f32 %v3643_v13, %v3642_v36 }
 0x460   : > { %v3595_v52 = vmin.f32 %v3579_v0, 6.0 }
 0x461   : > { %v3522_v28 = vpop.f32.mrf.mxu3 }
 0x462   : > { %v3611_v53 = vmul.f32 %v3595_v52, %v3520_v49  ;;  %v3523_v26 = vadd.f32 %v5738_v6, %v3522_v28 }
 0x464   : > { %v3627_v32 = vmul.f32 0.16666667, %v3611_v53  ;;  %v3564_v63 = vadd.f32 3.0, %v3523_v26 }
 0x466   : > { %v3645_v20 = vsel %vm3641_vm5, %v3627_v32, 0.0  ;;  %v3580_v5 = vmax.f32 %v3564_v63, 0.0 }
 0x467   : > { %v3646_v10 = vadd.f32 %v3645_v20, %v3644_v3 }
 0x468   : > { %v3596_v35 = vmin.f32 %v3580_v5, 6.0 }
 0x469   : > { %v3525_v16 = vpop.f32.mrf.mxu3 }
 0x46a   : > { %v3612_v30 = vmul.f32 %v3596_v35, %v3523_v26  ;;  %v3526_v62 = vadd.f32 %v5738_v6, %v3525_v16 }
 0x46c   : > { %v3628_v58 = vmul.f32 0.16666667, %v3612_v30  ;;  %v3565_v60 = vadd.f32 3.0, %v3526_v62 }
 0x46e   : > { %v3647_v17 = vsel %vm3641_vm5, %v3628_v58, 0.0  ;;  %v3581_v46 = vmax.f32 %v3565_v60, 0.0 }
 0x46f   : > { %v3648_v15 = vadd.f32 %v3647_v17, %v3646_v10 }
 0x470   : > { %v3597_v33 = vmin.f32 %v3581_v46, 6.0 }
 0x471   : > { %v3528_v47 = vpop.f32.mrf.mxu3 }
 0x472   : > { %v3613_v31 = vmul.f32 %v3597_v33, %v3526_v62  ;;  %v3529_v50 = vadd.f32 %v5738_v6, %v3528_v47 }
 0x474   : > { %v3629_v9 = vmul.f32 0.16666667, %v3613_v31  ;;  %v3566_v14 = vadd.f32 3.0, %v3529_v50 }
 0x476   : > { %v3649_v37 = vsel %vm3641_vm5, %v3629_v9, 0.0  ;;  %v3582_v61 = vmax.f32 %v3566_v14, 0.0  ;;  %v3795_v14 = vld [vmem:[%s6071_s14 + $0x260] sm:$0xff] }
 0x477   : > { %v5758_v7 = vadd.f32 %v3649_v37, %v3648_v15  ;;  %3831 = vmatpush.msra.mxu2 %v3795_v14  ;;  %v3767_v14 = vld [vmem:[%s6071_s14 + $0x180] sm:$0xff] }
 0x478   : > { %v3598_v18 = vmin.f32 %v3582_v61, 6.0 }
 0x479   : > { %v3531_v59 = vpop.f32.mrf.mxu3 }
 0x47a   : > { %v3532_v51 = vadd.f32 %v5738_v6, %v3531_v59  ;;  %v3614_v42 = vmul.f32 %v3598_v18, %v3529_v50 }
 0x47c   : > { %v3567_v57 = vadd.f32 3.0, %v3532_v51  ;;  %v3630_v63 = vmul.f32 0.16666667, %v3614_v42 }
 0x47e   : > { %v3583_v2 = vmax.f32 %v3567_v57, 0.0  ;;  %v3651_v17 = vsel %vm3641_vm5, %v3630_v63, 0.0  ;;  %v3770_v63 = vld [vmem:[%s6071_s14 + $0x198] sm:$0xff] }
 0x47f   : > { %v3652_v43 = vadd.f32 %v3651_v17, %v5758_v7  ;;  %v3739_v7 = vld [vmem:[%s6071_s14 + $0xa0] sm:$0xff] }
 0x480   : > { %v3599_v23 = vmin.f32 %v3583_v2, 6.0 }
 0x481   : > { %v3534_v12 = vpop.f32.mrf.mxu3 }
 0x482   : > { %v3535_v21 = vadd.f32 %v5738_v6, %v3534_v12  ;;  %v3615_v52 = vmul.f32 %v3599_v23, %v3532_v51  ;;  %v3744_v12 = vld [vmem:[%s6071_s14 + $0xc8] sm:$0xff]  ;;  %v3786_v23 = vld [vmem:[%s6071_s14 + $0x218] sm:$0xff] }
 0x483   : > { %3821 = vmatpush.msrb.mxu1 %v3744_v12  ;;  %v3755_v12 = vld [vmem:[%s6071_s14 + $0x120] sm:$0xff] }
 0x484   : > { %v3568_v54 = vadd.f32 3.0, %v3535_v21  ;;  %v3631_v16 = vmul.f32 0.16666667, %v3615_v52 }
 0x485   : > { %3822 = vmatpush.msrb.mxu1 %v3739_v7  ;;  %v3745_v7 = vld [vmem:[%s6071_s14 + $0xd0] sm:$0xff] }
 0x486   : > { %v3584_v19 = vmax.f32 %v3568_v54, 0.0  ;;  %v3653_v31 = vsel %vm3641_vm5, %v3631_v16, 0.0  ;;  %v3790_v54 = vld [vmem:[%s6071_s14 + $0x238] sm:$0xff]  ;;  %v3771_v16 = vld [vmem:[%s6071_s14 + $0x1a0] sm:$0xff] }
 0x487   : > { %3832 = vmatpush.msra.mxu2 %v3790_v54  ;;  %v3741_v54 = vld [vmem:[%s6071_s14 + $0xb0] sm:$0xff] }
 0x488   : > { %v3600_v36 = vmin.f32 %v3584_v19, 6.0 }
 0x489   : > { %v3537_v34 = vpop.f32.mrf.mxu3 }
 0x48a   : > { %v3538_v41 = vadd.f32 %v5738_v6, %v3537_v34  ;;  %v3616_v20 = vmul.f32 %v3600_v36, %v3535_v21  ;;  %v3796_v21 = vld [vmem:[%s6071_s14 + $0x268] sm:$0xff]  ;;  %v3781_v36 = vld [vmem:[%s6071_s14 + $0x1f0] sm:$0xff] }
 0x48b   : > { %3851 = vmatpush.msra.mxu3 %v3796_v21  ;;  %v3746_v21 = vld [vmem:[%s6071_s14 + $0xd8] sm:$0xff] }
 0x48c   : > { %v3569_v4 = vadd.f32 3.0, %v3538_v41  ;;  %v3632_v46 = vmul.f32 0.16666667, %v3616_v20  ;;  %v3797_v20 = vld [vmem:[%s6071_s14 + $0x270] sm:$0xff] }
 0x48d   : > { %3871 = vmatpush.msra.mxu0 %v3797_v20  ;;  %v3721_v20 = vld [vmem:[%s6071_s14 + $0x10] sm:$0xff] }
 0x48e   : > { %v3585_v25 = vmax.f32 %v3569_v4, 0.0  ;;  %v3655_v44 = vsel %vm3641_vm5, %v3632_v46, 0.0 }
 0x490   : > { %v3601_v28 = vmin.f32 %v3585_v25, 6.0 }
 0x491   : > { %v3540_v1 = vpop.f32.mrf.mxu3 }
 0x492   : > { %v3541_v38 = vadd.f32 %v5738_v6, %v3540_v1  ;;  %v3617_v30 = vmul.f32 %v3601_v28, %v3538_v41 }
 0x494   : > { %v3570_v29 = vadd.f32 3.0, %v3541_v38  ;;  %v3633_v47 = vmul.f32 0.16666667, %v3617_v30 }
 0x496   : > { %v3586_v13 = vmax.f32 %v3570_v29, 0.0 }
 0x498   : > { %v3602_v5 = vmin.f32 %v3586_v13, 6.0 }
 0x499   : > { %v3543_v39 = vpop.f32.mrf.mxu3 }
 0x49a   : > { %v3544_v8 = vadd.f32 %v5738_v6, %v3543_v39  ;;  %v3618_v15 = vmul.f32 %v3602_v5, %v3541_v38  ;;  %v3654_v39 = vadd.f32 %v3653_v31, %v3652_v43  ;;  %v3791_v38 = vld [vmem:[%s6071_s14 + $0x240] sm:$0xff]  ;;  %v3792_v5 = vld [vmem:[%s6071_s14 + $0x248] sm:$0xff] }
 0x49b   : > { %3852 = vmatpush.msra.mxu3 %v3791_v38  ;;  %3872 = vmatpush.msra.mxu0 %v3792_v5  ;;  %v3760_v31 = vld [vmem:[%s6071_s14 + $0x148] sm:$0xff]  ;;  %v3722_v5 = vld [vmem:[%s6071_s14 + $0x18] sm:$0xff] }
 0x49c   : > { %v3571_v55 = vadd.f32 3.0, %v3544_v8  ;;  %v3634_v34 = vmul.f32 0.16666667, %v3618_v15  ;;  %v3656_v51 = vadd.f32 %v3655_v44, %v3654_v39  ;;  %v3766_v15 = vld [vmem:[%s6071_s14 + $0x178] sm:$0xff]  ;;  %v3777_v44 = vld [vmem:[%s6071_s14 + $0x1d0] sm:$0xff] }
 0x49d   : > { %3853 = vmatpush.msra.mxu3 %v3786_v23  ;;  %v3747_v23 = vld [vmem:[%s6071_s14 + $0xe0] sm:$0xff] }
 0x49e   : > { %v3587_v53 = vmax.f32 %v3571_v55, 0.0  ;;  %v3659_v57 = vsel %vm3641_vm5, %v3634_v34, 0.0  ;;  %v3780_v55 = vld [vmem:[%s6071_s14 + $0x1e8] sm:$0xff] }
 0x49f   : > { %3854 = vmatpush.msra.mxu3 %v3781_v36  ;;  %v3758_v36 = vld [vmem:[%s6071_s14 + $0x138] sm:$0xff] }
 0x4a0   : > { %v3603_v62 = vmin.f32 %v3587_v53, 6.0 }
 0x4a1   : > { %v3546_v11 = vpop.f32.mrf.mxu3 }
 0x4a2   : > { %v3547_v24 = vadd.f32 %v5738_v6, %v3546_v11  ;;  %v3619_v9 = vmul.f32 %v3603_v62, %v3544_v8  ;;  %v3657_v11 = vsel %vm3641_vm5, %v3633_v47, 0.0  ;;  %v3785_v8 = vld [vmem:[%s6071_s14 + $0x210] sm:$0xff]  ;;  %v3782_v47 = vld [vmem:[%s6071_s14 + $0x1f8] sm:$0xff] }
 0x4a3   : > { %v3658_v2 = vadd.f32 %v3657_v11, %v3656_v51  ;;  %3833 = vmatpush.msra.mxu2 %v3785_v8  ;;  %v3765_v62 = vld [vmem:[%s6071_s14 + $0x170] sm:$0xff]  ;;  %v3750_v11 = vld [vmem:[%s6071_s14 + $0xf8] sm:$0xff] }
 0x4a4   : > { %v3572_v0 = vadd.f32 3.0, %v3547_v24  ;;  %v3635_v22 = vmul.f32 0.16666667, %v3619_v9 }
 0x4a5   : > { %v3660_v25 = vadd.f32 %v3659_v57, %v3658_v2  ;;  %3834 = vmatpush.msra.mxu2 %v3780_v55  ;;  %v3778_v57 = vld [vmem:[%s6071_s14 + $0x1d8] sm:$0xff]  ;;  %v3757_v2 = vld [vmem:[%s6071_s14 + $0x130] sm:$0xff] }
 0x4a6   : > { %v3588_v10 = vmax.f32 %v3572_v0, 0.0  ;;  %v3661_v18 = vsel %vm3641_vm5, %v3635_v22, 0.0  ;;  %v3775_v0 = vld [vmem:[%s6071_s14 + $0x1c0] sm:$0xff]  ;;  %v3772_v22 = vld [vmem:[%s6071_s14 + $0x1a8] sm:$0xff]  ;;  %v3742_v55 = vld [vmem:[%s6071_s14 + $0xb8] sm:$0xff] }
 0x4a7   : > { %v3662_v13 = vadd.f32 %v3661_v18, %v3660_v25  ;;  %3835 = vmatpush.msra.mxu2 %v3775_v0  ;;  %v3768_v25 = vld [vmem:[%s6071_s14 + $0x188] sm:$0xff]  ;;  %v3731_v0 = vld [vmem:[%s6071_s14 + $0x60] sm:$0xff] }
 0x4a8   : > { %v3604_v27 = vmin.f32 %v3588_v10, 6.0 }
 0x4a9   : > { %v3549_v56 = vpop.f32.mrf.mxu3  ;;  %3836 = vmatpush.msra.mxu2 %v3770_v63  ;;  %v3720_v63 = vld [vmem:[%s6071_s14 + $0x8] sm:$0xff] }
 0x4aa   : > { %v3550_v49 = vadd.f32 %v5738_v6, %v3549_v56  ;;  %v3620_v1 = vmul.f32 %v3604_v27, %v3547_v24  ;;  %v3798_v27 = vld [vmem:[%s6071_s14 + $0x278] sm:$0xff] }
 0x4ab   : > { %3837 = vmatpush.msra.mxu2 %v3765_v62  ;;  %v3723_v62 = vld [vmem:[%s6071_s14 + $0x20] sm:$0xff] }
 0x4ac   : > { %v3573_v26 = vadd.f32 3.0, %v3550_v49  ;;  %v3636_v41 = vmul.f32 0.16666667, %v3620_v1  ;;  %v3756_v1 = vld [vmem:[%s6071_s14 + $0x128] sm:$0xff] }
 0x4ad   : > { %3838 = vmatpush.msra.mxu2 %v3760_v31 }
 0x4ae   : > { %v3589_v58 = vmax.f32 %v3573_v26, 0.0  ;;  %v3663_v42 = vsel %vm3641_vm5, %v3636_v41, 0.0  ;;  %v3776_v26 = vld [vmem:[%s6071_s14 + $0x1c8] sm:$0xff] }
 0x4af   : > { %3855 = vmatpush.msra.mxu3 %v3776_v26  ;;  %3839 = vmatpush.msra.mxu2 %v3755_v12  ;;  %v3727_v26 = vld [vmem:[%s6071_s14 + $0x40] sm:$0xff] }
 0x4b0   : > { %v3605_v37 = vmin.f32 %v3589_v58, 6.0  ;;  %v3787_v58 = vld [vmem:[%s6071_s14 + $0x220] sm:$0xff] }
 0x4b1   : > { %v3552_v48 = vpop.f32.mrf.mxu3  ;;  %3856 = vmatpush.msra.mxu3 %v3771_v16  ;;  %3873 = vmatpush.msra.mxu0 %v3787_v58  ;;  %v3733_v16 = vld [vmem:[%s6071_s14 + $0x70] sm:$0xff]  ;;  %v3690_v58 = vld [vmem:[%s6070_s13] sm:$0x1] }
 0x4b2   : > { %v3553_v3 = vadd.f32 %v5738_v6, %v3552_v48  ;;  %v3621_v56 = vmul.f32 %v3605_v37, %v3550_v49  ;;  %v3734_v48 = vld [vmem:[%s6071_s14 + $0x78] sm:$0xff]  ;;  %v3729_v49 = vld [vmem:[%s6071_s14 + $0x50] sm:$0xff]  ;;  %3840 = vmatpush.msra.mxu2 %v3750_v11 }
 0x4b3   : > { %3823 = vmatpush.msrb.mxu1 %v3734_v48  ;;  %v3761_v37 = vld [vmem:[%s6071_s14 + $0x150] sm:$0xff]  ;;  %3857 = vmatpush.msra.mxu3 %v3766_v15  ;;  %v3762_v48 = vld [vmem:[%s6071_s14 + $0x158] sm:$0xff] }
 0x4b4   : > { %v3574_v35 = vadd.f32 3.0, %v3553_v3  ;;  %v3637_v19 = vmul.f32 0.16666667, %v3621_v56  ;;  %3874 = vmatpush.msra.mxu0 %v3782_v47  ;;  %v3751_v56 = vld [vmem:[%s6071_s14 + $0x100] sm:$0xff]  ;;  %3841 = vmatpush.msra.mxu2 %v3745_v7 }
 0x4b5   : > { %3824 = vmatpush.msrb.mxu1 %v3729_v49  ;;  %3858 = vmatpush.msra.mxu3 %v3761_v37  ;;  %v3763_v49 = vld [vmem:[%s6071_s14 + $0x160] sm:$0xff] }
 0x4b6   : > { %v3590_v33 = vmax.f32 %v3574_v35, 0.0  ;;  %v3665_v52 = vsel %vm3641_vm5, %v3637_v19, 0.0  ;;  %3875 = vmatpush.msra.mxu0 %v3777_v44 }
 0x4b7   : > { %3859 = vmatpush.msra.mxu3 %v3756_v1 }
 0x4b8   : > { %v3606_v45 = vmin.f32 %v3590_v33, 6.0  ;;  %3876 = vmatpush.msra.mxu0 %v3772_v22 }
 0x4b9   : > { %3860 = vmatpush.msra.mxu3 %v3751_v56 }
 0x4ba   : > { %v3622_v61 = vmul.f32 %v3606_v45, %v3553_v3  ;;  %v3724_v3 = vld [vmem:[%s6071_s14 + $0x28] sm:$0xff]  ;;  %3877 = vmatpush.msra.mxu0 %v3767_v14 }
 0x4bb   : > { %3825 = vmatpush.msrb.mxu1 %v3724_v3  ;;  %v3788_v45 = vld [vmem:[%s6071_s14 + $0x228] sm:$0xff]  ;;  %3861 = vmatpush.msra.mxu3 %v3746_v21 }
 0x4bc   : > { %3878 = vmatpush.msra.mxu0 %v3762_v48  ;;  %v3732_v3 = vld [vmem:[%s6071_s14 + $0x68] sm:$0xff] }
 0x4bd   : > { %3862 = vmatpush.msra.mxu3 %v3741_v54 }
 0x4be   : > { %3879 = vmatpush.msra.mxu0 %v3757_v2 }
 0x4c5   : > { %v3555_v40 = vpop.f32.mrf.mxu3 }
 0x4c6   : > { %v3556_v32 = vadd.f32 %v5738_v6, %v3555_v40  ;;  %v3638_v40 = vmul.f32 0.16666667, %v3622_v61  ;;  %v3740_v61 = vld [vmem:[%s6071_s14 + $0xa8] sm:$0xff] }
 0x4c7   : > { %3842 = vmatpush.msra.mxu2 %v3740_v61 }
 0x4c8   : > { %v3575_v60 = vadd.f32 3.0, %v3556_v32  ;;  %v3667_v10 = vsel %vm3641_vm5, %v3638_v40, 0.0  ;;  %v3736_v40 = vld [vmem:[%s6071_s14 + $0x88] sm:$0xff] }
 0x4c9   : > { %3863 = vmatpush.msra.mxu3 %v3736_v40 }
 0x4ca   : > { %v3591_v59 = vmax.f32 %v3575_v60, 0.0  ;;  %v3719_v60 = vld [vmem:[%s6071_s14] sm:$0xff] }
 0x4cb   : > { %3826 = vmatpush.msrb.mxu1 %v3719_v60  ;;  %3864 = vmatpush.msra.mxu3 %v3731_v0 }
 0x4cc   : > { %v3607_v50 = vmin.f32 %v3591_v59, 6.0  ;;  %v3793_v59 = vld [vmem:[%s6071_s14 + $0x250] sm:$0xff] }
 0x4cd   : > { %3891 = vmatpush.msra.mxu1 %v3798_v27 }
 0x4ce   : > { %v3623_v29 = vmul.f32 %v3607_v50, %v3556_v32  ;;  %v3664_v32 = vadd.f32 %v3663_v42, %v3662_v13  ;;  %v3783_v50 = vld [vmem:[%s6071_s14 + $0x200] sm:$0xff]  ;;  %v3730_v13 = vld [vmem:[%s6071_s14 + $0x58] sm:$0xff] }
 0x4cf   : > { %3892 = vmatpush.msra.mxu1 %v3793_v59  ;;  %v3735_v42 = vld [vmem:[%s6071_s14 + $0x80] sm:$0xff] }
 0x4d0   : > { %v3639_v28 = vmul.f32 0.16666667, %v3623_v29  ;;  %v3666_v30 = vadd.f32 %v3665_v52, %v3664_v32  ;;  %v3752_v29 = vld [vmem:[%s6071_s14 + $0x108] sm:$0xff]  ;;  %3843 = vmatpush.msra.mxu2 %v3735_v42  ;;  %v3753_v52 = vld [vmem:[%s6071_s14 + $0x110] sm:$0xff] }
 0x4d1   : > { %3893 = vmatpush.msra.mxu1 %v3788_v45  ;;  %3880 = vmatpush.msra.mxu0 %v3752_v29  ;;  %v3748_v32 = vld [vmem:[%s6071_s14 + $0xe8] sm:$0xff] }
 0x4d2   : > { %v3669_v17 = vsel %vm3641_vm5, %v3639_v28, 0.0  ;;  %v3668_v33 = vadd.f32 %v3667_v10, %v3666_v30  ;;  %3844 = vmatpush.msra.mxu2 %v3730_v13  ;;  %v3725_v28 = vld [vmem:[%s6071_s14 + $0x30] sm:$0xff]  ;;  %v3743_v10 = vld [vmem:[%s6071_s14 + $0xc0] sm:$0xff]  ;;  %v3728_v30 = vld [vmem:[%s6071_s14 + $0x48] sm:$0xff] }
 0x4d3   : > { %3894 = vmatpush.msra.mxu1 %v3783_v50  ;;  %3881 = vmatpush.msra.mxu0 %v3747_v23 }
 0x4d4   : > { %v3670_v43 = vadd.f32 %v3669_v17, %v3668_v33  ;;  %3845 = vmatpush.msra.mxu2 %v3725_v28 }
 0x4d5   : > { %3895 = vmatpush.msra.mxu1 %v3778_v57  ;;  %3882 = vmatpush.msra.mxu0 %v3742_v55 }
 0x4d6   : > { %3846 = vmatpush.msra.mxu2 %v3720_v63 }
 0x4dd   : > { %v3558_v4 = vpop.f32.mrf.mxu3 }
 0x4de   : > { %v3559_v24 = vadd.f32 %v5738_v6, %v3558_v4 }
 0x4e0   : > { %v3576_v6 = vadd.f32 3.0, %v3559_v24 }
 0x4e2   : > { %v3592_v53 = vmax.f32 %v3576_v6, 0.0  ;;  %v3737_v6 = vld [vmem:[%s6071_s14 + $0x90] sm:$0xff] }
 0x4e3   : > { %3883 = vmatpush.msra.mxu0 %v3737_v6 }
 0x4e4   : > { %v3608_v35 = vmin.f32 %v3592_v53, 6.0  ;;  %v3726_v53 = vld [vmem:[%s6071_s14 + $0x38] sm:$0xff] }
 0x4e5   : > { %3884 = vmatpush.msra.mxu0 %v3732_v3  ;;  %3865 = vmatpush.msra.mxu3 %v3726_v53 }
 0x4e6   : > { %v3624_v46 = vmul.f32 %v3608_v35, %v3559_v24  ;;  %v3773_v24 = vld [vmem:[%s6071_s14 + $0x1b0] sm:$0xff]  ;;  %v3738_v35 = vld [vmem:[%s6071_s14 + $0x98] sm:$0xff] }
 0x4e7   : > { %3896 = vmatpush.msra.mxu1 %v3773_v24  ;;  %3885 = vmatpush.msra.mxu0 %v3727_v26 }
 0x4e8   : > { %v3640_v9 = vmul.f32 0.16666667, %v3624_v46  ;;  %3866 = vmatpush.msra.mxu3 %v3721_v20 }
 0x4e9   : > { %3897 = vmatpush.msra.mxu1 %v3768_v25  ;;  %3886 = vmatpush.msra.mxu0 %v3722_v5 }
 0x4ea   : > { %v3671_v34 = vsel %vm3641_vm5, %v3640_v9, 0.0 }
 0x4eb   : > { %v3672_v39 = vadd.f32 %v3671_v34, %v3670_v43  ;;  %3898 = vmatpush.msra.mxu1 %v3763_v49 }
 0x4ed   : > { %v3673_v51 = vrot.slane %v3672_v39, 4  ;;  %3899 = vmatpush.msra.mxu1 %v3758_v36 }
 0x4ef   : > { %v3674_v41 = vadd.f32 %v3673_v51, %v3672_v39  ;;  %3900 = vmatpush.msra.mxu1 %v3753_v52 }
 0x4f1   : > { %v3675_v38 = vrot.slane %v3674_v41, 2  ;;  %3901 = vmatpush.msra.mxu1 %v3748_v32 }
 0x4f3   : > { %v3676_v4 = vadd.f32 %v3675_v38, %v3674_v41  ;;  %3902 = vmatpush.msra.mxu1 %v3743_v10 }
 0x4f5   : > { %v3677_v8 = vrot.slane %v3676_v4, 1  ;;  %3903 = vmatpush.msra.mxu1 %v3738_v35 }
 0x4f7   : > { %v3678_v18 = vadd.f32 %v3677_v8, %v3676_v4  ;;  %3904 = vmatpush.msra.mxu1 %v3733_v16 }
 0x4f9   : > { %v3679_v19 = vmul.f32 0.0078125, %v3678_v18  ;;  %3905 = vmatpush.msra.mxu1 %v3728_v30 }
 0x4fb   : > { %4295 = vmatmul.msk.f32.vlgmr.msrb.gmra.mxu0 %vm3641_vm5, %v3679_v19  ;;  %3681 = vst.msk [vmem:[%s5931_s26] sm:$0x1] %vm3680_vm6, %v3679_v19  ;;  %3906 = vmatpush.msra.mxu1 %v3723_v62 }
 0x578   : > { %v3711_v60 = vpop.f32.mrf.mxu0 }
 0x579   : > { %v3712_v17 = vadd.f32 %v3711_v60, %v3690_v58 }
 0x57b   : > { %v3714_v46 = vadd.f32 3.0, %v3712_v17 }
 0x57d   : > { %v3715_v15 = vmax.f32 %v3714_v46, 0.0 }
 0x57f   : > { %v3716_v27 = vmin.f32 %v3715_v15, 6.0 }
 0x581   : > { %v3717_v33 = vmul.f32 %v3716_v27, %v3712_v17 }
 0x583   : > { %v3718_v31 = vmul.f32 0.16666667, %v3717_v33 }
 0x585   : > { %3827 = vmatmul.f32.vlgmr.msrb.gmra.mxu1 %v3718_v31  ;;  %3847 = vmatmul.f32.vlgmr.msra.gmra.mxu2 %v3718_v31 }
 0x586   : > { %3867 = vmatmul.f32.vlgmr.msra.gmra.mxu3 %v3718_v31  ;;  %3887 = vmatmul.f32.vlgmr.msra.gmra.mxu0 %v3718_v31 }
 0x58d   : > { %3907 = vmatmul.f32.vlgmr.msra.gmra.mxu1 %v3718_v31 }
 0x58e   : > { %4386 = shalt.err (!%p4383_p3)
}
 0x58f   : > { %4304 = dma.vmem_to_hbm [thread:$0]  (%p4551_p5), %s3952_s22, 16, %s3954_s5, %s3938_s3   ;;  %v3799_v47 = vld [vmem:[%s6072_s15] sm:$0x1f]  ;;  %v3928_v50 = vlaneseq  ;;  %vm3921_vm7 = vcmask 1041408   ;;  %vm3923_vm8 = vcmask 1043459   ;;  %vm3925_vm9 = vcmask 1042432  }
 0x590   : > { %v3804_v37 = vperm.slane %v3799_v47, 3  ;;  %v3802_v59 = vperm.slane %v3799_v47, 1  ;;  %v3803_v12 = vperm.slane %v3799_v47, 2  ;;  %v3801_v44 = vperm.slane %v3799_v47, 0  ;;  %s4303_s6 = smul.u32 5, %s4571_s18 }
 0x591   : > { %v3805_v34 = vperm.slane %v3799_v47, 4  ;;  %vm3930_vm10 = vcmp.lt.s32.totalorder %v3928_v50, 640 }
 0x592   : > { %s556_s1 = scalar_lea.vmem %s6073_s16, %s4303_s6 }
 0x602   : > { %v3828_v9 = vpop.f32.mrf.mxu1 }
 0x603   : > { %v3888_v43 = vpop.f32.mrf.mxu0  ;;  %v3829_v51 = vadd.f32 %v3828_v9, %v3801_v44 }
 0x604   : > { %v3889_v45 = vadd.f32 %v3888_v43, %v3804_v37 }
 0x606   : > { %v3918_v57 = vrot.slane %v3889_v45, 5 }
 0x608   : > { %v3848_v1 = vpop.f32.mrf.mxu2 }
 0x609   : > { %v3849_v39 = vadd.f32 %v3848_v1, %v3802_v59  ;;  %v3868_v11 = vpop.f32.mrf.mxu3 }
 0x60a   : > { %v3869_v22 = vadd.f32 %v3868_v11, %v3803_v12  ;;  %v3908_v56 = vpop.f32.mrf.mxu1 }
 0x60b   : > { %v3916_v7 = vrot.slane %v3849_v39, 7  ;;  %v3909_v14 = vadd.f32 %v3908_v56, %v3805_v34 }
 0x60c   : > { %v3917_v21 = vrot.slane %v3869_v22, 6 }
 0x60d   : > { %v3920_v41 = vsel %vm820_vm0, %v3829_v51, %v3916_v7  ;;  %v3919_v61 = vrot.slane %v3909_v14, 4 }
 0x60e   : > { %v3922_v48 = vsel %vm3921_vm7, %v3920_v41, %v3917_v21 }
 0x60f   : > { %v3924_v54 = vsel %vm3923_vm8, %v3918_v57, %v3919_v61 }
 0x610   : > { %v3926_v38 = vsel %vm3925_vm9, %v3922_v48, %v3924_v54 }
 0x611   : > { %3932 = vst.msk [vmem:[%s556_s1] sm:$0x1f] %vm3930_vm10, %v3926_v38 }
 0x612 PF: > { %p4310_p4 = scmp.ge.s32.totalorder %s4421_s27, 2  ;;  %s3972_s18 = sand.u32 1, %s4409_s24  }
 0x613   : > { %s3973_s21 = scalar_lea.sflag [#allocation3], %s3972_s18 }
 0x614   : > { %p4307_p5 = pnand %p4310_p4, %p4555_p6 }
 0x616   : > { %p4308_p7 = pneg %p4307_p5 }
 0x618   : > { %4404 = dma.done.wait (%p4308_p7), %s3973_s21, 16  }
 0x619   : > { %4406 = vsyncadd (%p4308_p7), %s3973_s21, 4294967280  ;;  %s6169_s27 = sld [smem:[#allocation6_spill]]  ;;  %s6172_s24 = smov %s4413_s25 }
 0x61a   : > { %s6170_s4 = sld [smem:[#allocation5_spill]] }
 0x61b   : > { %s6171_s26 = sld [smem:[#allocation7_spill]] }
 0x61f   : > { %p28_p8 = scmp.ge.s32.totalorder %s6169_s27, 4  }
 0x620   : > { %s6173_s25 = smov %s6170_s4 }
 0x621   :  { %30 = sbr.rel (!%p28_p8) target bundleno = 13 (0xd), region = 131 }
 0x626   :  { %3978 = vsyncpa [#allocation3], 1 }
 0x627   :  { %3980 = vsyncpa [#allocation3 + $0x1], 1 }

</bundles_post_ra>
